<compile_context>
chip_gen: v6e
topology: v6e:2x2x1
jax: 0.10.0
libtpu: 0.0.40
codegen_flags: <defaults>
</compile_context>

<pallas_src>
import math
from functools import partial

import jax
import jax.numpy as jnp
from jax import lax
from jax.experimental import pallas as pl
from jax.experimental.pallas import tpu as pltpu


def _rup(x, m=128):
    return ((x + m - 1) // m) * m


def _pad2(a, rows, cols):
    return jnp.pad(a, ((0, rows - a.shape[0]), (0, cols - a.shape[1])))


# ----------------------------------------------------------------------------
# Fused kernel: n_layers transformer blocks + tied lm_head, one grid step.
#
# Per-layer bf16 weight slab (rows = padded input dim `dinp`, every column
# offset a multiple of 128 so every slice below is an aligned view):
#   [ q1 | q2 | k1 | k2 | v1 | v2 | wo_h0 | wo_h1 | skip |  fc  | gate | proj ]
#     hp   hp   hp   hp   hp   hp   dinp    dinp    op     dinp   dinp    op
# wq is pre-scaled by 1/sqrt(head_dim); wo_h* only use rows [0, hp).
# ----------------------------------------------------------------------------
def _llm_kernel(*refs, n_layers, layer_info, batch, seq):
    h_ref = refs[0]
    mask_ref = refs[1]
    tab_ref = refs[2]
    w_hbm = refs[3:3 + n_layers]
    wlm_hbm = refs[3 + n_layers]
    out_ref = refs[4 + n_layers]
    wbufs = refs[5 + n_layers:5 + 2 * n_layers]
    wlm_buf = refs[5 + 2 * n_layers]
    sem = refs[6 + 2 * n_layers]

    BT = batch * seq
    bf16 = jnp.bfloat16
    f32 = jnp.float32

    # Issue every weight DMA up front; later-layer / lm_head copies complete
    # while earlier layers compute (overlap of the serial weight load).
    copies = []
    for l in range(n_layers):
        cp = pltpu.make_async_copy(w_hbm[l], wbufs[l], sem.at[l])
        cp.start()
        copies.append(cp)
    lm_copy = pltpu.make_async_copy(wlm_hbm, wlm_buf, sem.at[n_layers])
    lm_copy.start()

    h = h_ref[...]            # (BT, dinp0) f32 activations (zero-padded lanes)
    mask = mask_ref[...]      # (BT, BT) f32 causal + batch-block-diagonal mask

    for l in range(n_layers):
        din, dout, dinp, hp, op, half = layer_info[l]
        copies[l].wait()
        wb = wbufs[l]

        c_wo = 6 * hp
        c_skip = c_wo + 2 * dinp
        c_proj = c_skip + op + 2 * dinp

        # ---- fused q/k/v projection (one MXU weight push, aligned slices) ----
        qkv = jnp.dot(h.astype(bf16), wb[:, 0:c_wo],
                      preferred_element_type=f32)          # (BT, 6*hp)

        sin = tab_ref[l * BT:(l + 1) * BT, 0:hp]            # (BT, hp) f32
        cos = tab_ref[l * BT:(l + 1) * BT, hp:2 * hp]

        q1, q2 = qkv[:, 0:hp], qkv[:, hp:2 * hp]
        k1, k2 = qkv[:, 2 * hp:3 * hp], qkv[:, 3 * hp:4 * hp]
        v_heads = (qkv[:, 4 * hp:5 * hp], qkv[:, 5 * hp:6 * hp])
        # RoPE: rotate-half over the full channel dim; with 2 heads the rotated
        # halves ARE the per-head tensors (no concat / lane gathers).
        q_heads = (q1 * cos - q2 * sin, q1 * sin + q2 * cos)
        k_heads = (k1 * cos - k2 * sin, k1 * sin + k2 * cos)

        # ---- block-diagonal causal attention: one (BT,BT) matmul per head ----
        attn = None
        for hh in range(2):
            qh = q_heads[hh].astype(bf16)                   # (BT, hp)
            kh = k_heads[hh].astype(bf16)
            vh = v_heads[hh].astype(bf16)
            s = lax.dot_general(qh, kh, (((1,), (1,)), ((), ())),
                                preferred_element_type=f32)  # (BT, BT)
            s = s + mask                                    # scale folded in wq
            s = s - jnp.max(s, axis=-1, keepdims=True)
            p = jnp.exp(s)
            p = p * pl.reciprocal(jnp.sum(p, axis=-1, keepdims=True),
                                  approx=True)
            oh = jnp.dot(p.astype(bf16), vh,
                         preferred_element_type=f32)         # (BT, hp)
            # o-proj folded per head; weight sliced straight from the ref.
            oproj = jnp.dot(
                oh.astype(bf16),
                wb[0:hp, c_wo + hh * dinp:c_wo + (hh + 1) * dinp],
                preferred_element_type=f32)                  # (BT, dinp)
            attn = oproj if attn is None else attn + oproj

        hres = h + attn                                      # (BT, dinp)

        # ---- fused skip / fc / gate projection (one weight push) ----
        sfg = jnp.dot(hres.astype(bf16), wb[:, c_skip:c_proj],
                      preferred_element_type=f32)            # (BT, op+2*dinp)
        r = n_layers * BT + 8 * l
        bskip = tab_ref[r:r + 1, 0:op]                       # (1, op) f32
        skip = sfg[:, 0:op] + bskip
        fc = sfg[:, op:op + dinp]
        gate = sfg[:, op + dinp:op + 2 * dinp]
        act = fc * (gate * jax.nn.sigmoid(gate))             # SwiGLU
        mlp = jnp.dot(act.astype(bf16), wb[:, c_proj:c_proj + op],
                      preferred_element_type=f32)            # (BT, op)

        h = skip + mlp                                       # next-layer input

    # ---- tied lm_head (weight DMA'd during the layer loop) ----
    lm_copy.wait()
    out_ref[...] = jnp.dot(h.astype(bf16), wlm_buf[...],
                           preferred_element_type=f32)


# ----------------------------------------------------------------------------
# Wrapper
# ----------------------------------------------------------------------------
def llm_forward(input_ids, packed, dims, num_heads=2):
    assert num_heads == 2, "kernel relies on rotate-half == head split (2 heads)"
    B, T = input_ids.shape
    BT = B * T
    n_layers = len(packed["wslabs"])
    layer_info = packed["layer_info"]
    vocab = packed["vocab"]
    vocab_p = packed["wlm"].shape[1]

    # TODO(synk): embedding lookup (data-dependent gather) stays in plain JAX.
    h0 = packed["embed"][input_ids].reshape(BT, dims[0])
    dinp0 = layer_info[0][2]
    if dinp0 > dims[0]:
        h0 = jnp.pad(h0, ((0, 0), (0, dinp0 - dims[0])))

    vmem_inputs = [h0, packed["mask"], packed["tables"]]
    hbm_inputs = list(packed["wslabs"]) + [packed["wlm"]]

    def vspec(a):
        nd = a.ndim
        return pl.BlockSpec(a.shape, lambda i, _n=nd: (0,) * _n)

    in_specs = ([vspec(a) for a in vmem_inputs]
                + [pl.BlockSpec(memory_space=pl.ANY)] * len(hbm_inputs))
    scratch_shapes = ([pltpu.VMEM(w.shape, jnp.bfloat16) for w in packed["wslabs"]]
                      + [pltpu.VMEM(packed["wlm"].shape, jnp.bfloat16),
                         pltpu.SemaphoreType.DMA((n_layers + 1,))])

    kernel = partial(_llm_kernel, n_layers=n_layers, layer_info=layer_info,
                     batch=B, seq=T)
    # TODO(synk): on v7x, add a leading "parallel" grid axis over batch to use
    # both TensorCores, and tile the lm_head over vocab (64 MiB VMEM ceiling)
    # once vocab/seq grow beyond these toy sizes.
    logits = pl.pallas_call(
        kernel,
        out_shape=jax.ShapeDtypeStruct((BT, vocab_p), jnp.float32),
        grid=(1,),
        in_specs=in_specs,
        out_specs=pl.BlockSpec((BT, vocab_p), lambda i: (0, 0)),
        scratch_shapes=scratch_shapes,
        compiler_params=pltpu.CompilerParams(
            dimension_semantics=("arbitrary",)),
    )(*vmem_inputs, *hbm_inputs)

    # TODO(synk): labels / cross-entropy branch of LLM.forward not exercised
    # (the reference returns loss=None when labels is None).
    return logits[:, :vocab].reshape(B, T, vocab)


# ----------------------------------------------------------------------------
# Parameter / table setup (deterministic, synthetic)
# ----------------------------------------------------------------------------
def rope_tables(dim, T, base=10.0):
    # PositionalEmbedding: pe[t,2i]=sin(t*div[i]), pe[t,2i+1]=cos(t*div[i]);
    # RoPE uses sin = pe[:, 0::2], cos = pe[:, 1::2] (each width dim//2).
    pos = jnp.arange(T, dtype=jnp.float32)[:, None]
    div = jnp.exp(-math.log(base) *
                  jnp.arange(0, dim, 2, dtype=jnp.float32) / dim)
    return jnp.sin(pos * div), jnp.cos(pos * div)


def block_causal_mask(B, T):
    # Causal within each batch block, fully masked across batches.
    BT = B * T
    r = jnp.arange(BT)
    same_batch = (r[:, None] // T) == (r[None, :] // T)
    causal = (r[None, :] % T) <= (r[:, None] % T)
    # Large finite negative (not -inf): padded rows degrade gracefully.
    return jnp.where(same_batch & causal, 0.0, -1e30).astype(jnp.float32)


def init_params(key, vocab_size, dims, n_layers):
    params = {"layers": []}
    key, k_emb = jax.random.split(key)
    # tied embedding / lm_head weight: (vocab, dim)
    params["embed"] = 0.02 * jax.random.normal(
        k_emb, (vocab_size, dims[0]), dtype=jnp.float32)
    for layer_id in range(n_layers):
        din, dout = dims[layer_id], dims[layer_id + 1]
        hidden = dims[layer_id]
        keys = jax.random.split(jax.random.fold_in(key, layer_id), 9)
        s = 0.02
        params["layers"].append({
            "wq": s * jax.random.normal(keys[0], (din, din), jnp.float32),
            "wk": s * jax.random.normal(keys[1], (din, din), jnp.float32),
            "wv": s * jax.random.normal(keys[2], (din, din), jnp.float32),
            "wo": s * jax.random.normal(keys[3], (din, din), jnp.float32),
            "wskip": s * jax.random.normal(keys[4], (din, dout), jnp.float32),
            "bskip": s * jax.random.normal(keys[5], (1, dout), jnp.float32),
            "wfc": s * jax.random.normal(keys[6], (din, hidden), jnp.float32),
            "wgate": s * jax.random.normal(keys[7], (din, hidden), jnp.float32),
            "wproj": s * jax.random.normal(keys[8], (hidden, dout), jnp.float32),
        })
    return params


def pack_params(raw, dims, B, T):
    """One-time packing: one lane-aligned bf16 weight slab per layer (scale
    folded into wq, o-proj split per head), one f32 table slab (batch-tiled
    sin/cos + skip bias), block-diagonal causal mask, pre-transposed bf16
    tied lm_head.  Nothing is re-done per forward."""
    n_layers = len(raw["layers"])
    BT = B * T
    bf = jnp.bfloat16

    layer_info, wslabs, sincos, bskips = [], [], [], []
    Wt = 0
    for l, lp in enumerate(raw["layers"]):
        din, dout = dims[l], dims[l + 1]
        half = din // 2                    # head_dim (2 heads) == rotate-half
        dinp, hp, op = _rup(din), _rup(half), _rup(dout)
        layer_info.append((din, dout, dinp, hp, op, half))

        scale = 1.0 / math.sqrt(half)
        wq = lp["wq"] * scale              # fold attention scale into wq
        segs = []
        for w in (wq, lp["wk"], lp["wv"]):
            segs.append(_pad2(w[:, :half], dinp, hp))
            segs.append(_pad2(w[:, half:], dinp, hp))
        segs.append(_pad2(lp["wo"][:half, :], dinp, dinp))   # o-proj head 0
        segs.append(_pad2(lp["wo"][half:, :], dinp, dinp))   # o-proj head 1
        segs.append(_pad2(lp["wskip"], dinp, op))
        segs.append(_pad2(lp["wfc"], dinp, dinp))
        segs.append(_pad2(lp["wgate"], dinp, dinp))
        segs.append(_pad2(lp["wproj"], dinp, op))
        wslabs.append(jnp.concatenate(segs, axis=1).astype(bf))

        sin, cos = rope_tables(din, T, base=10.0)            # (T, half)
        sin = jnp.tile(sin, (B, 1))                          # (BT, half)
        cos = jnp.tile(cos, (B, 1))
        sincos.append(jnp.concatenate(
            [_pad2(sin, BT, hp), _pad2(cos, BT, hp)], axis=1))
        bskips.append(_pad2(lp["bskip"], 1, op))
        Wt = max(Wt, 2 * hp, op)

    rows = n_layers * BT + 8 * n_layers
    tab = jnp.zeros((rows, Wt), jnp.float32)
    for l in range(n_layers):
        sc = sincos[l]
        tab = tab.at[l * BT:(l + 1) * BT, :sc.shape[1]].set(sc)
        bsk = bskips[l]
        tab = tab.at[n_layers * BT + 8 * l, :bsk.shape[1]].set(bsk[0])

    vocab = raw["embed"].shape[0]
    wlm = _pad2(raw["embed"].T, _rup(dims[-1]), _rup(vocab)).astype(bf)

    return {
        "embed": raw["embed"],              # f32, used for the token gather
        "wlm": wlm,                         # tied lm_head, (dim_pad, vocab_pad)
        "mask": block_causal_mask(B, T),
        "tables": tab,
        "wslabs": wslabs,
        "layer_info": tuple(layer_info),
        "vocab": vocab,
    }


# ----------------------------------------------------------------------------
if __name__ == "__main__":
    # Module-implied shapes: dims list hard-coded in LLM.__init__
    vocab_size = 512
    n_layers = 4
    dims = [384, 192, 96, 192, 384]
    num_heads = 2
    B, T = 2, 8

    key = jax.random.PRNGKey(0)
    key, k_ids = jax.random.split(key)
    input_ids = jax.random.randint(k_ids, (B, T), 0, vocab_size, dtype=jnp.int32)

    raw = init_params(key, vocab_size, dims, n_layers)
    packed = pack_params(raw, dims, B, T)

    logits = llm_forward(input_ids, packed, dims, num_heads)
    logits = jax.block_until_ready(logits)

    assert logits.shape == (B, T, vocab_size), logits.shape
    assert bool(jnp.isfinite(logits).all()), "non-finite logits"
    print("KERNEL_OK")
</pallas_src>

<mosaic_0001>
module attributes {stable_mosaic.version = 11 : i64} {
  func.func @_llm_kernel(%arg0: i32, %arg1: memref<16x384xf32, #tpu.memory_space<vmem>>, %arg2: memref<16x16xf32, #tpu.memory_space<vmem>>, %arg3: memref<96x512xf32, #tpu.memory_space<vmem>>, %arg4: memref<384x3584xbf16, #tpu.memory_space<any>>, %arg5: memref<256x2048xbf16, #tpu.memory_space<any>>, %arg6: memref<128x1792xbf16, #tpu.memory_space<any>>, %arg7: memref<256x2560xbf16, #tpu.memory_space<any>>, %arg8: memref<384x512xbf16, #tpu.memory_space<any>>, %arg9: memref<16x512xf32, #tpu.memory_space<vmem>>, %arg10: memref<384x3584xbf16, #tpu.memory_space<vmem>>, %arg11: memref<256x2048xbf16, #tpu.memory_space<vmem>>, %arg12: memref<128x1792xbf16, #tpu.memory_space<vmem>>, %arg13: memref<256x2560xbf16, #tpu.memory_space<vmem>>, %arg14: memref<384x512xbf16, #tpu.memory_space<vmem>>, %arg15: memref<5x!tpu.dma_semaphore, #tpu.memory_space<semaphore_mem>>) attributes {dimension_semantics = [#tpu.dimension_semantics<arbitrary>], iteration_bounds = array<i64: 1>, scalar_prefetch = 0 : i64, scratch_operands = 6 : i64, tpu.core_type = #tpu.core_type<tc>, window_params = [{pipeline_mode = #tpu.pipeline_mode<synchronous>, transform_indices = @transform_0, window_bounds = array<i64: 16, 384>}, {pipeline_mode = #tpu.pipeline_mode<synchronous>, transform_indices = @transform_1, window_bounds = array<i64: 16, 16>}, {pipeline_mode = #tpu.pipeline_mode<synchronous>, transform_indices = @transform_2, window_bounds = array<i64: 96, 512>}, {}, {}, {}, {}, {}, {pipeline_mode = #tpu.pipeline_mode<synchronous>, transform_indices = @transform_8, window_bounds = array<i64: 16, 512>}]} {
    %c0_i32 = arith.constant 0 : i32
    %0 = tpu.memref_slice %arg15[%c0_i32] : memref<5x!tpu.dma_semaphore, #tpu.memory_space<semaphore_mem>> -> memref<1x!tpu.dma_semaphore, #tpu.memory_space<semaphore_mem>>
    %1 = tpu.memref_squeeze %0 : memref<1x!tpu.dma_semaphore, #tpu.memory_space<semaphore_mem>> -> memref<!tpu.dma_semaphore, #tpu.memory_space<semaphore_mem>>
    tpu.enqueue_dma source(%arg4 : memref<384x3584xbf16, #tpu.memory_space<any>>) target(%arg10 : memref<384x3584xbf16, #tpu.memory_space<vmem>>) target_semaphore(%1 : memref<!tpu.dma_semaphore, #tpu.memory_space<semaphore_mem>>)
    %c1_i32 = arith.constant 1 : i32
    %2 = tpu.memref_slice %arg15[%c1_i32] : memref<5x!tpu.dma_semaphore, #tpu.memory_space<semaphore_mem>> -> memref<1x!tpu.dma_semaphore, #tpu.memory_space<semaphore_mem>>
    %3 = tpu.memref_squeeze %2 : memref<1x!tpu.dma_semaphore, #tpu.memory_space<semaphore_mem>> -> memref<!tpu.dma_semaphore, #tpu.memory_space<semaphore_mem>>
    tpu.enqueue_dma source(%arg5 : memref<256x2048xbf16, #tpu.memory_space<any>>) target(%arg11 : memref<256x2048xbf16, #tpu.memory_space<vmem>>) target_semaphore(%3 : memref<!tpu.dma_semaphore, #tpu.memory_space<semaphore_mem>>)
    %c2_i32 = arith.constant 2 : i32
    %4 = tpu.memref_slice %arg15[%c2_i32] : memref<5x!tpu.dma_semaphore, #tpu.memory_space<semaphore_mem>> -> memref<1x!tpu.dma_semaphore, #tpu.memory_space<semaphore_mem>>
    %5 = tpu.memref_squeeze %4 : memref<1x!tpu.dma_semaphore, #tpu.memory_space<semaphore_mem>> -> memref<!tpu.dma_semaphore, #tpu.memory_space<semaphore_mem>>
    tpu.enqueue_dma source(%arg6 : memref<128x1792xbf16, #tpu.memory_space<any>>) target(%arg12 : memref<128x1792xbf16, #tpu.memory_space<vmem>>) target_semaphore(%5 : memref<!tpu.dma_semaphore, #tpu.memory_space<semaphore_mem>>)
    %c3_i32 = arith.constant 3 : i32
    %6 = tpu.memref_slice %arg15[%c3_i32] : memref<5x!tpu.dma_semaphore, #tpu.memory_space<semaphore_mem>> -> memref<1x!tpu.dma_semaphore, #tpu.memory_space<semaphore_mem>>
    %7 = tpu.memref_squeeze %6 : memref<1x!tpu.dma_semaphore, #tpu.memory_space<semaphore_mem>> -> memref<!tpu.dma_semaphore, #tpu.memory_space<semaphore_mem>>
    tpu.enqueue_dma source(%arg7 : memref<256x2560xbf16, #tpu.memory_space<any>>) target(%arg13 : memref<256x2560xbf16, #tpu.memory_space<vmem>>) target_semaphore(%7 : memref<!tpu.dma_semaphore, #tpu.memory_space<semaphore_mem>>)
    %c4_i32 = arith.constant 4 : i32
    %8 = tpu.memref_slice %arg15[%c4_i32] : memref<5x!tpu.dma_semaphore, #tpu.memory_space<semaphore_mem>> -> memref<1x!tpu.dma_semaphore, #tpu.memory_space<semaphore_mem>>
    %9 = tpu.memref_squeeze %8 : memref<1x!tpu.dma_semaphore, #tpu.memory_space<semaphore_mem>> -> memref<!tpu.dma_semaphore, #tpu.memory_space<semaphore_mem>>
    tpu.enqueue_dma source(%arg8 : memref<384x512xbf16, #tpu.memory_space<any>>) target(%arg14 : memref<384x512xbf16, #tpu.memory_space<vmem>>) target_semaphore(%9 : memref<!tpu.dma_semaphore, #tpu.memory_space<semaphore_mem>>)
    %c0 = arith.constant 0 : index
    %c0_0 = arith.constant 0 : index
    %10 = vector.load %arg1[%c0, %c0_0] : memref<16x384xf32, #tpu.memory_space<vmem>>, vector<16x384xf32>
    %c0_1 = arith.constant 0 : index
    %c0_2 = arith.constant 0 : index
    %11 = vector.load %arg2[%c0_1, %c0_2] : memref<16x16xf32, #tpu.memory_space<vmem>>, vector<16x16xf32>
    %c0_i32_3 = arith.constant 0 : i32
    %12 = tpu.memref_slice %arg15[%c0_i32_3] : memref<5x!tpu.dma_semaphore, #tpu.memory_space<semaphore_mem>> -> memref<1x!tpu.dma_semaphore, #tpu.memory_space<semaphore_mem>>
    %13 = tpu.memref_squeeze %12 : memref<1x!tpu.dma_semaphore, #tpu.memory_space<semaphore_mem>> -> memref<!tpu.dma_semaphore, #tpu.memory_space<semaphore_mem>>
    tpu.wait_dma2 semaphore(%13 : memref<!tpu.dma_semaphore, #tpu.memory_space<semaphore_mem>>) src(%arg4 : memref<384x3584xbf16, #tpu.memory_space<any>>) dst(%arg10 : memref<384x3584xbf16, #tpu.memory_space<vmem>>)
    %14 = arith.truncf %10 : vector<16x384xf32> to vector<16x384xbf16>
    %c0_4 = arith.constant 0 : index
    %c0_5 = arith.constant 0 : index
    %15 = vector.load %arg10[%c0_4, %c0_5] : memref<384x3584xbf16, #tpu.memory_space<vmem>>, vector<384x1536xbf16>
    %cst = arith.constant dense<0.000000e+00> : vector<16x1536xf32>
    %16 = tpu.matmul %14, %15, %cst {dimension_numbers = #tpu.dot_dimension_numbers<[1], [0], [0], [1], [0, 0, 1, 1], [], []>} : vector<16x384xbf16>, vector<384x1536xbf16>, vector<16x1536xf32> -> vector<16x1536xf32>
    %c0_6 = arith.constant 0 : index
    %c0_7 = arith.constant 0 : index
    %17 = vector.load %arg3[%c0_6, %c0_7] : memref<96x512xf32, #tpu.memory_space<vmem>>, vector<16x256xf32>
    %c0_8 = arith.constant 0 : index
    %c256 = arith.constant 256 : index
    %18 = vector.load %arg3[%c0_8, %c256] : memref<96x512xf32, #tpu.memory_space<vmem>>, vector<16x256xf32>
    %19 = vector.extract_strided_slice %16 {offsets = [0, 0], sizes = [16, 256], strides = [1, 1]} : vector<16x1536xf32> to vector<16x256xf32>
    %20 = vector.extract_strided_slice %16 {offsets = [0, 256], sizes = [16, 256], strides = [1, 1]} : vector<16x1536xf32> to vector<16x256xf32>
    %21 = vector.extract_strided_slice %16 {offsets = [0, 512], sizes = [16, 256], strides = [1, 1]} : vector<16x1536xf32> to vector<16x256xf32>
    %22 = vector.extract_strided_slice %16 {offsets = [0, 768], sizes = [16, 256], strides = [1, 1]} : vector<16x1536xf32> to vector<16x256xf32>
    %23 = vector.extract_strided_slice %16 {offsets = [0, 1024], sizes = [16, 256], strides = [1, 1]} : vector<16x1536xf32> to vector<16x256xf32>
    %24 = vector.extract_strided_slice %16 {offsets = [0, 1280], sizes = [16, 256], strides = [1, 1]} : vector<16x1536xf32> to vector<16x256xf32>
    %25 = arith.mulf %19, %18 : vector<16x256xf32>
    %26 = arith.mulf %20, %17 : vector<16x256xf32>
    %27 = arith.subf %25, %26 : vector<16x256xf32>
    %28 = arith.mulf %19, %17 : vector<16x256xf32>
    %29 = arith.mulf %20, %18 : vector<16x256xf32>
    %30 = arith.addf %28, %29 : vector<16x256xf32>
    %31 = arith.mulf %21, %18 : vector<16x256xf32>
    %32 = arith.mulf %22, %17 : vector<16x256xf32>
    %33 = arith.subf %31, %32 : vector<16x256xf32>
    %34 = arith.mulf %21, %17 : vector<16x256xf32>
    %35 = arith.mulf %22, %18 : vector<16x256xf32>
    %36 = arith.addf %34, %35 : vector<16x256xf32>
    %37 = arith.truncf %27 : vector<16x256xf32> to vector<16x256xbf16>
    %38 = arith.truncf %33 : vector<16x256xf32> to vector<16x256xbf16>
    %39 = arith.truncf %23 : vector<16x256xf32> to vector<16x256xbf16>
    %cst_9 = arith.constant dense<0.000000e+00> : vector<16x16xf32>
    %40 = tpu.matmul %37, %38, %cst_9 {dimension_numbers = #tpu.dot_dimension_numbers<[1], [1], [0], [0], [0, 0, 1, 0], [], []>} : vector<16x256xbf16>, vector<16x256xbf16>, vector<16x16xf32> -> vector<16x16xf32>
    %41 = arith.addf %40, %11 : vector<16x16xf32>
    %cst_10 = arith.constant dense<0xFF800000> : vector<16xf32>
    %42 = vector.multi_reduction <maximumf>, %41, %cst_10 [1] : vector<16x16xf32> to vector<16xf32>
    %43 = vector.shape_cast %42 : vector<16xf32> to vector<16x1xf32>
    %44 = vector.broadcast %43 : vector<16x1xf32> to vector<16x16xf32>
    %45 = arith.subf %41, %44 : vector<16x16xf32>
    %46 = math.exp %45 : vector<16x16xf32>
    %cst_11 = arith.constant dense<0.000000e+00> : vector<16xf32>
    %47 = vector.multi_reduction <add>, %46, %cst_11 [1] : vector<16x16xf32> to vector<16xf32>
    %48 = vector.shape_cast %47 : vector<16xf32> to vector<16x1xf32>
    %49 = tpu.reciprocal %48 {approx = true} : vector<16x1xf32> -> vector<16x1xf32>
    %50 = vector.broadcast %49 : vector<16x1xf32> to vector<16x16xf32>
    %51 = arith.mulf %46, %50 : vector<16x16xf32>
    %52 = arith.truncf %51 : vector<16x16xf32> to vector<16x16xbf16>
    %cst_12 = arith.constant dense<0.000000e+00> : vector<16x256xf32>
    %53 = tpu.matmul %52, %39, %cst_12 {dimension_numbers = #tpu.dot_dimension_numbers<[1], [0], [0], [1], [0, 0, 1, 1], [], []>} : vector<16x16xbf16>, vector<16x256xbf16>, vector<16x256xf32> -> vector<16x256xf32>
    %54 = arith.truncf %53 : vector<16x256xf32> to vector<16x256xbf16>
    %c0_13 = arith.constant 0 : index
    %c1536 = arith.constant 1536 : index
    %55 = vector.load %arg10[%c0_13, %c1536] : memref<384x3584xbf16, #tpu.memory_space<vmem>>, vector<256x384xbf16>
    %cst_14 = arith.constant dense<0.000000e+00> : vector<16x384xf32>
    %56 = tpu.matmul %54, %55, %cst_14 {dimension_numbers = #tpu.dot_dimension_numbers<[1], [0], [0], [1], [0, 0, 1, 1], [], []>} : vector<16x256xbf16>, vector<256x384xbf16>, vector<16x384xf32> -> vector<16x384xf32>
    %57 = arith.truncf %30 : vector<16x256xf32> to vector<16x256xbf16>
    %58 = arith.truncf %36 : vector<16x256xf32> to vector<16x256xbf16>
    %59 = arith.truncf %24 : vector<16x256xf32> to vector<16x256xbf16>
    %cst_15 = arith.constant dense<0.000000e+00> : vector<16x16xf32>
    %60 = tpu.matmul %57, %58, %cst_15 {dimension_numbers = #tpu.dot_dimension_numbers<[1], [1], [0], [0], [0, 0, 1, 0], [], []>} : vector<16x256xbf16>, vector<16x256xbf16>, vector<16x16xf32> -> vector<16x16xf32>
    %61 = arith.addf %60, %11 : vector<16x16xf32>
    %cst_16 = arith.constant dense<0xFF800000> : vector<16xf32>
    %62 = vector.multi_reduction <maximumf>, %61, %cst_16 [1] : vector<16x16xf32> to vector<16xf32>
    %63 = vector.shape_cast %62 : vector<16xf32> to vector<16x1xf32>
    %64 = vector.broadcast %63 : vector<16x1xf32> to vector<16x16xf32>
    %65 = arith.subf %61, %64 : vector<16x16xf32>
    %66 = math.exp %65 : vector<16x16xf32>
    %cst_17 = arith.constant dense<0.000000e+00> : vector<16xf32>
    %67 = vector.multi_reduction <add>, %66, %cst_17 [1] : vector<16x16xf32> to vector<16xf32>
    %68 = vector.shape_cast %67 : vector<16xf32> to vector<16x1xf32>
    %69 = tpu.reciprocal %68 {approx = true} : vector<16x1xf32> -> vector<16x1xf32>
    %70 = vector.broadcast %69 : vector<16x1xf32> to vector<16x16xf32>
    %71 = arith.mulf %66, %70 : vector<16x16xf32>
    %72 = arith.truncf %71 : vector<16x16xf32> to vector<16x16xbf16>
    %cst_18 = arith.constant dense<0.000000e+00> : vector<16x256xf32>
    %73 = tpu.matmul %72, %59, %cst_18 {dimension_numbers = #tpu.dot_dimension_numbers<[1], [0], [0], [1], [0, 0, 1, 1], [], []>} : vector<16x16xbf16>, vector<16x256xbf16>, vector<16x256xf32> -> vector<16x256xf32>
    %74 = arith.truncf %73 : vector<16x256xf32> to vector<16x256xbf16>
    %c0_19 = arith.constant 0 : index
    %c1920 = arith.constant 1920 : index
    %75 = vector.load %arg10[%c0_19, %c1920] : memref<384x3584xbf16, #tpu.memory_space<vmem>>, vector<256x384xbf16>
    %cst_20 = arith.constant dense<0.000000e+00> : vector<16x384xf32>
    %76 = tpu.matmul %74, %75, %cst_20 {dimension_numbers = #tpu.dot_dimension_numbers<[1], [0], [0], [1], [0, 0, 1, 1], [], []>} : vector<16x256xbf16>, vector<256x384xbf16>, vector<16x384xf32> -> vector<16x384xf32>
    %77 = arith.addf %56, %76 : vector<16x384xf32>
    %78 = arith.addf %10, %77 : vector<16x384xf32>
    %79 = arith.truncf %78 : vector<16x384xf32> to vector<16x384xbf16>
    %c0_21 = arith.constant 0 : index
    %c2304 = arith.constant 2304 : index
    %80 = vector.load %arg10[%c0_21, %c2304] : memref<384x3584xbf16, #tpu.memory_space<vmem>>, vector<384x1024xbf16>
    %cst_22 = arith.constant dense<0.000000e+00> : vector<16x1024xf32>
    %81 = tpu.matmul %79, %80, %cst_22 {dimension_numbers = #tpu.dot_dimension_numbers<[1], [0], [0], [1], [0, 0, 1, 1], [], []>} : vector<16x384xbf16>, vector<384x1024xbf16>, vector<16x1024xf32> -> vector<16x1024xf32>
    %c64 = arith.constant 64 : index
    %c0_23 = arith.constant 0 : index
    %82 = vector.load %arg3[%c64, %c0_23] : memref<96x512xf32, #tpu.memory_space<vmem>>, vector<1x256xf32>
    %83 = vector.extract_strided_slice %81 {offsets = [0, 0], sizes = [16, 256], strides = [1, 1]} : vector<16x1024xf32> to vector<16x256xf32>
    %84 = vector.broadcast %82 : vector<1x256xf32> to vector<16x256xf32>
    %85 = arith.addf %83, %84 : vector<16x256xf32>
    %86 = vector.extract_strided_slice %81 {offsets = [0, 256], sizes = [16, 384], strides = [1, 1]} : vector<16x1024xf32> to vector<16x384xf32>
    %87 = vector.extract_strided_slice %81 {offsets = [0, 640], sizes = [16, 384], strides = [1, 1]} : vector<16x1024xf32> to vector<16x384xf32>
    %88 = arith.negf %87 : vector<16x384xf32>
    %89 = math.exp %88 : vector<16x384xf32>
    %cst_24 = arith.constant 1.000000e+00 : f32
    %90 = vector.broadcast %cst_24 : f32 to vector<16x384xf32>
    %91 = arith.addf %90, %89 : vector<16x384xf32>
    %92 = arith.divf %90, %91 : vector<16x384xf32>
    %93 = arith.mulf %87, %92 : vector<16x384xf32>
    %94 = arith.mulf %86, %93 : vector<16x384xf32>
    %95 = arith.truncf %94 : vector<16x384xf32> to vector<16x384xbf16>
    %c0_25 = arith.constant 0 : index
    %c3328 = arith.constant 3328 : index
    %96 = vector.load %arg10[%c0_25, %c3328] : memref<384x3584xbf16, #tpu.memory_space<vmem>>, vector<384x256xbf16>
    %cst_26 = arith.constant dense<0.000000e+00> : vector<16x256xf32>
    %97 = tpu.matmul %95, %96, %cst_26 {dimension_numbers = #tpu.dot_dimension_numbers<[1], [0], [0], [1], [0, 0, 1, 1], [], []>} : vector<16x384xbf16>, vector<384x256xbf16>, vector<16x256xf32> -> vector<16x256xf32>
    %98 = arith.addf %85, %97 : vector<16x256xf32>
    %c1_i32_27 = arith.constant 1 : i32
    %99 = tpu.memref_slice %arg15[%c1_i32_27] : memref<5x!tpu.dma_semaphore, #tpu.memory_space<semaphore_mem>> -> memref<1x!tpu.dma_semaphore, #tpu.memory_space<semaphore_mem>>
    %100 = tpu.memref_squeeze %99 : memref<1x!tpu.dma_semaphore, #tpu.memory_space<semaphore_mem>> -> memref<!tpu.dma_semaphore, #tpu.memory_space<semaphore_mem>>
    tpu.wait_dma2 semaphore(%100 : memref<!tpu.dma_semaphore, #tpu.memory_space<semaphore_mem>>) src(%arg5 : memref<256x2048xbf16, #tpu.memory_space<any>>) dst(%arg11 : memref<256x2048xbf16, #tpu.memory_space<vmem>>)
    %101 = arith.truncf %98 : vector<16x256xf32> to vector<16x256xbf16>
    %c0_28 = arith.constant 0 : index
    %c0_29 = arith.constant 0 : index
    %102 = vector.load %arg11[%c0_28, %c0_29] : memref<256x2048xbf16, #tpu.memory_space<vmem>>, vector<256x768xbf16>
    %cst_30 = arith.constant dense<0.000000e+00> : vector<16x768xf32>
    %103 = tpu.matmul %101, %102, %cst_30 {dimension_numbers = #tpu.dot_dimension_numbers<[1], [0], [0], [1], [0, 0, 1, 1], [], []>} : vector<16x256xbf16>, vector<256x768xbf16>, vector<16x768xf32> -> vector<16x768xf32>
    %c16 = arith.constant 16 : index
    %c0_31 = arith.constant 0 : index
    %104 = vector.load %arg3[%c16, %c0_31] : memref<96x512xf32, #tpu.memory_space<vmem>>, vector<16x128xf32>
    %c16_32 = arith.constant 16 : index
    %c128 = arith.constant 128 : index
    %105 = vector.load %arg3[%c16_32, %c128] : memref<96x512xf32, #tpu.memory_space<vmem>>, vector<16x128xf32>
    %106 = vector.extract_strided_slice %103 {offsets = [0, 0], sizes = [16, 128], strides = [1, 1]} : vector<16x768xf32> to vector<16x128xf32>
    %107 = vector.extract_strided_slice %103 {offsets = [0, 128], sizes = [16, 128], strides = [1, 1]} : vector<16x768xf32> to vector<16x128xf32>
    %108 = vector.extract_strided_slice %103 {offsets = [0, 256], sizes = [16, 128], strides = [1, 1]} : vector<16x768xf32> to vector<16x128xf32>
    %109 = vector.extract_strided_slice %103 {offsets = [0, 384], sizes = [16, 128], strides = [1, 1]} : vector<16x768xf32> to vector<16x128xf32>
    %110 = vector.extract_strided_slice %103 {offsets = [0, 512], sizes = [16, 128], strides = [1, 1]} : vector<16x768xf32> to vector<16x128xf32>
    %111 = vector.extract_strided_slice %103 {offsets = [0, 640], sizes = [16, 128], strides = [1, 1]} : vector<16x768xf32> to vector<16x128xf32>
    %112 = arith.mulf %106, %105 : vector<16x128xf32>
    %113 = arith.mulf %107, %104 : vector<16x128xf32>
    %114 = arith.subf %112, %113 : vector<16x128xf32>
    %115 = arith.mulf %106, %104 : vector<16x128xf32>
    %116 = arith.mulf %107, %105 : vector<16x128xf32>
    %117 = arith.addf %115, %116 : vector<16x128xf32>
    %118 = arith.mulf %108, %105 : vector<16x128xf32>
    %119 = arith.mulf %109, %104 : vector<16x128xf32>
    %120 = arith.subf %118, %119 : vector<16x128xf32>
    %121 = arith.mulf %108, %104 : vector<16x128xf32>
    %122 = arith.mulf %109, %105 : vector<16x128xf32>
    %123 = arith.addf %121, %122 : vector<16x128xf32>
    %124 = arith.truncf %114 : vector<16x128xf32> to vector<16x128xbf16>
    %125 = arith.truncf %120 : vector<16x128xf32> to vector<16x128xbf16>
    %126 = arith.truncf %110 : vector<16x128xf32> to vector<16x128xbf16>
    %cst_33 = arith.constant dense<0.000000e+00> : vector<16x16xf32>
    %127 = tpu.matmul %124, %125, %cst_33 {dimension_numbers = #tpu.dot_dimension_numbers<[1], [1], [0], [0], [0, 0, 1, 0], [], []>} : vector<16x128xbf16>, vector<16x128xbf16>, vector<16x16xf32> -> vector<16x16xf32>
    %128 = arith.addf %127, %11 : vector<16x16xf32>
    %cst_34 = arith.constant dense<0xFF800000> : vector<16xf32>
    %129 = vector.multi_reduction <maximumf>, %128, %cst_34 [1] : vector<16x16xf32> to vector<16xf32>
    %130 = vector.shape_cast %129 : vector<16xf32> to vector<16x1xf32>
    %131 = vector.broadcast %130 : vector<16x1xf32> to vector<16x16xf32>
    %132 = arith.subf %128, %131 : vector<16x16xf32>
    %133 = math.exp %132 : vector<16x16xf32>
    %cst_35 = arith.constant dense<0.000000e+00> : vector<16xf32>
    %134 = vector.multi_reduction <add>, %133, %cst_35 [1] : vector<16x16xf32> to vector<16xf32>
    %135 = vector.shape_cast %134 : vector<16xf32> to vector<16x1xf32>
    %136 = tpu.reciprocal %135 {approx = true} : vector<16x1xf32> -> vector<16x1xf32>
    %137 = vector.broadcast %136 : vector<16x1xf32> to vector<16x16xf32>
    %138 = arith.mulf %133, %137 : vector<16x16xf32>
    %139 = arith.truncf %138 : vector<16x16xf32> to vector<16x16xbf16>
    %cst_36 = arith.constant dense<0.000000e+00> : vector<16x128xf32>
    %140 = tpu.matmul %139, %126, %cst_36 {dimension_numbers = #tpu.dot_dimension_numbers<[1], [0], [0], [1], [0, 0, 1, 1], [], []>} : vector<16x16xbf16>, vector<16x128xbf16>, vector<16x128xf32> -> vector<16x128xf32>
    %141 = arith.truncf %140 : vector<16x128xf32> to vector<16x128xbf16>
    %c0_37 = arith.constant 0 : index
    %c768 = arith.constant 768 : index
    %142 = vector.load %arg11[%c0_37, %c768] : memref<256x2048xbf16, #tpu.memory_space<vmem>>, vector<128x256xbf16>
    %cst_38 = arith.constant dense<0.000000e+00> : vector<16x256xf32>
    %143 = tpu.matmul %141, %142, %cst_38 {dimension_numbers = #tpu.dot_dimension_numbers<[1], [0], [0], [1], [0, 0, 1, 1], [], []>} : vector<16x128xbf16>, vector<128x256xbf16>, vector<16x256xf32> -> vector<16x256xf32>
    %144 = arith.truncf %117 : vector<16x128xf32> to vector<16x128xbf16>
    %145 = arith.truncf %123 : vector<16x128xf32> to vector<16x128xbf16>
    %146 = arith.truncf %111 : vector<16x128xf32> to vector<16x128xbf16>
    %cst_39 = arith.constant dense<0.000000e+00> : vector<16x16xf32>
    %147 = tpu.matmul %144, %145, %cst_39 {dimension_numbers = #tpu.dot_dimension_numbers<[1], [1], [0], [0], [0, 0, 1, 0], [], []>} : vector<16x128xbf16>, vector<16x128xbf16>, vector<16x16xf32> -> vector<16x16xf32>
    %148 = arith.addf %147, %11 : vector<16x16xf32>
    %cst_40 = arith.constant dense<0xFF800000> : vector<16xf32>
    %149 = vector.multi_reduction <maximumf>, %148, %cst_40 [1] : vector<16x16xf32> to vector<16xf32>
    %150 = vector.shape_cast %149 : vector<16xf32> to vector<16x1xf32>
    %151 = vector.broadcast %150 : vector<16x1xf32> to vector<16x16xf32>
    %152 = arith.subf %148, %151 : vector<16x16xf32>
    %153 = math.exp %152 : vector<16x16xf32>
    %cst_41 = arith.constant dense<0.000000e+00> : vector<16xf32>
    %154 = vector.multi_reduction <add>, %153, %cst_41 [1] : vector<16x16xf32> to vector<16xf32>
    %155 = vector.shape_cast %154 : vector<16xf32> to vector<16x1xf32>
    %156 = tpu.reciprocal %155 {approx = true} : vector<16x1xf32> -> vector<16x1xf32>
    %157 = vector.broadcast %156 : vector<16x1xf32> to vector<16x16xf32>
    %158 = arith.mulf %153, %157 : vector<16x16xf32>
    %159 = arith.truncf %158 : vector<16x16xf32> to vector<16x16xbf16>
    %cst_42 = arith.constant dense<0.000000e+00> : vector<16x128xf32>
    %160 = tpu.matmul %159, %146, %cst_42 {dimension_numbers = #tpu.dot_dimension_numbers<[1], [0], [0], [1], [0, 0, 1, 1], [], []>} : vector<16x16xbf16>, vector<16x128xbf16>, vector<16x128xf32> -> vector<16x128xf32>
    %161 = arith.truncf %160 : vector<16x128xf32> to vector<16x128xbf16>
    %c0_43 = arith.constant 0 : index
    %c1024 = arith.constant 1024 : index
    %162 = vector.load %arg11[%c0_43, %c1024] : memref<256x2048xbf16, #tpu.memory_space<vmem>>, vector<128x256xbf16>
    %cst_44 = arith.constant dense<0.000000e+00> : vector<16x256xf32>
    %163 = tpu.matmul %161, %162, %cst_44 {dimension_numbers = #tpu.dot_dimension_numbers<[1], [0], [0], [1], [0, 0, 1, 1], [], []>} : vector<16x128xbf16>, vector<128x256xbf16>, vector<16x256xf32> -> vector<16x256xf32>
    %164 = arith.addf %143, %163 : vector<16x256xf32>
    %165 = arith.addf %98, %164 : vector<16x256xf32>
    %166 = arith.truncf %165 : vector<16x256xf32> to vector<16x256xbf16>
    %c0_45 = arith.constant 0 : index
    %c1280 = arith.constant 1280 : index
    %167 = vector.load %arg11[%c0_45, %c1280] : memref<256x2048xbf16, #tpu.memory_space<vmem>>, vector<256x640xbf16>
    %cst_46 = arith.constant dense<0.000000e+00> : vector<16x640xf32>
    %168 = tpu.matmul %166, %167, %cst_46 {dimension_numbers = #tpu.dot_dimension_numbers<[1], [0], [0], [1], [0, 0, 1, 1], [], []>} : vector<16x256xbf16>, vector<256x640xbf16>, vector<16x640xf32> -> vector<16x640xf32>
    %c72 = arith.constant 72 : index
    %c0_47 = arith.constant 0 : index
    %169 = vector.load %arg3[%c72, %c0_47] : memref<96x512xf32, #tpu.memory_space<vmem>>, vector<1x128xf32>
    %170 = vector.extract_strided_slice %168 {offsets = [0, 0], sizes = [16, 128], strides = [1, 1]} : vector<16x640xf32> to vector<16x128xf32>
    %171 = vector.broadcast %169 : vector<1x128xf32> to vector<16x128xf32>
    %172 = arith.addf %170, %171 : vector<16x128xf32>
    %173 = vector.extract_strided_slice %168 {offsets = [0, 128], sizes = [16, 256], strides = [1, 1]} : vector<16x640xf32> to vector<16x256xf32>
    %174 = vector.extract_strided_slice %168 {offsets = [0, 384], sizes = [16, 256], strides = [1, 1]} : vector<16x640xf32> to vector<16x256xf32>
    %175 = arith.negf %174 : vector<16x256xf32>
    %176 = math.exp %175 : vector<16x256xf32>
    %cst_48 = arith.constant 1.000000e+00 : f32
    %177 = vector.broadcast %cst_48 : f32 to vector<16x256xf32>
    %178 = arith.addf %177, %176 : vector<16x256xf32>
    %179 = arith.divf %177, %178 : vector<16x256xf32>
    %180 = arith.mulf %174, %179 : vector<16x256xf32>
    %181 = arith.mulf %173, %180 : vector<16x256xf32>
    %182 = arith.truncf %181 : vector<16x256xf32> to vector<16x256xbf16>
    %c0_49 = arith.constant 0 : index
    %c1920_50 = arith.constant 1920 : index
    %183 = vector.load %arg11[%c0_49, %c1920_50] : memref<256x2048xbf16, #tpu.memory_space<vmem>>, vector<256x128xbf16>
    %cst_51 = arith.constant dense<0.000000e+00> : vector<16x128xf32>
    %184 = tpu.matmul %182, %183, %cst_51 {dimension_numbers = #tpu.dot_dimension_numbers<[1], [0], [0], [1], [0, 0, 1, 1], [], []>} : vector<16x256xbf16>, vector<256x128xbf16>, vector<16x128xf32> -> vector<16x128xf32>
    %185 = arith.addf %172, %184 : vector<16x128xf32>
    %c2_i32_52 = arith.constant 2 : i32
    %186 = tpu.memref_slice %arg15[%c2_i32_52] : memref<5x!tpu.dma_semaphore, #tpu.memory_space<semaphore_mem>> -> memref<1x!tpu.dma_semaphore, #tpu.memory_space<semaphore_mem>>
    %187 = tpu.memref_squeeze %186 : memref<1x!tpu.dma_semaphore, #tpu.memory_space<semaphore_mem>> -> memref<!tpu.dma_semaphore, #tpu.memory_space<semaphore_mem>>
    tpu.wait_dma2 semaphore(%187 : memref<!tpu.dma_semaphore, #tpu.memory_space<semaphore_mem>>) src(%arg6 : memref<128x1792xbf16, #tpu.memory_space<any>>) dst(%arg12 : memref<128x1792xbf16, #tpu.memory_space<vmem>>)
    %188 = arith.truncf %185 : vector<16x128xf32> to vector<16x128xbf16>
    %c0_53 = arith.constant 0 : index
    %c0_54 = arith.constant 0 : index
    %189 = vector.load %arg12[%c0_53, %c0_54] : memref<128x1792xbf16, #tpu.memory_space<vmem>>, vector<128x768xbf16>
    %cst_55 = arith.constant dense<0.000000e+00> : vector<16x768xf32>
    %190 = tpu.matmul %188, %189, %cst_55 {dimension_numbers = #tpu.dot_dimension_numbers<[1], [0], [0], [1], [0, 0, 1, 1], [], []>} : vector<16x128xbf16>, vector<128x768xbf16>, vector<16x768xf32> -> vector<16x768xf32>
    %c32 = arith.constant 32 : index
    %c0_56 = arith.constant 0 : index
    %191 = vector.load %arg3[%c32, %c0_56] : memref<96x512xf32, #tpu.memory_space<vmem>>, vector<16x128xf32>
    %c32_57 = arith.constant 32 : index
    %c128_58 = arith.constant 128 : index
    %192 = vector.load %arg3[%c32_57, %c128_58] : memref<96x512xf32, #tpu.memory_space<vmem>>, vector<16x128xf32>
    %193 = vector.extract_strided_slice %190 {offsets = [0, 0], sizes = [16, 128], strides = [1, 1]} : vector<16x768xf32> to vector<16x128xf32>
    %194 = vector.extract_strided_slice %190 {offsets = [0, 128], sizes = [16, 128], strides = [1, 1]} : vector<16x768xf32> to vector<16x128xf32>
    %195 = vector.extract_strided_slice %190 {offsets = [0, 256], sizes = [16, 128], strides = [1, 1]} : vector<16x768xf32> to vector<16x128xf32>
    %196 = vector.extract_strided_slice %190 {offsets = [0, 384], sizes = [16, 128], strides = [1, 1]} : vector<16x768xf32> to vector<16x128xf32>
    %197 = vector.extract_strided_slice %190 {offsets = [0, 512], sizes = [16, 128], strides = [1, 1]} : vector<16x768xf32> to vector<16x128xf32>
    %198 = vector.extract_strided_slice %190 {offsets = [0, 640], sizes = [16, 128], strides = [1, 1]} : vector<16x768xf32> to vector<16x128xf32>
    %199 = arith.mulf %193, %192 : vector<16x128xf32>
    %200 = arith.mulf %194, %191 : vector<16x128xf32>
    %201 = arith.subf %199, %200 : vector<16x128xf32>
    %202 = arith.mulf %193, %191 : vector<16x128xf32>
    %203 = arith.mulf %194, %192 : vector<16x128xf32>
    %204 = arith.addf %202, %203 : vector<16x128xf32>
    %205 = arith.mulf %195, %192 : vector<16x128xf32>
    %206 = arith.mulf %196, %191 : vector<16x128xf32>
    %207 = arith.subf %205, %206 : vector<16x128xf32>
    %208 = arith.mulf %195, %191 : vector<16x128xf32>
    %209 = arith.mulf %196, %192 : vector<16x128xf32>
    %210 = arith.addf %208, %209 : vector<16x128xf32>
    %211 = arith.truncf %201 : vector<16x128xf32> to vector<16x128xbf16>
    %212 = arith.truncf %207 : vector<16x128xf32> to vector<16x128xbf16>
    %213 = arith.truncf %197 : vector<16x128xf32> to vector<16x128xbf16>
    %cst_59 = arith.constant dense<0.000000e+00> : vector<16x16xf32>
    %214 = tpu.matmul %211, %212, %cst_59 {dimension_numbers = #tpu.dot_dimension_numbers<[1], [1], [0], [0], [0, 0, 1, 0], [], []>} : vector<16x128xbf16>, vector<16x128xbf16>, vector<16x16xf32> -> vector<16x16xf32>
    %215 = arith.addf %214, %11 : vector<16x16xf32>
    %cst_60 = arith.constant dense<0xFF800000> : vector<16xf32>
    %216 = vector.multi_reduction <maximumf>, %215, %cst_60 [1] : vector<16x16xf32> to vector<16xf32>
    %217 = vector.shape_cast %216 : vector<16xf32> to vector<16x1xf32>
    %218 = vector.broadcast %217 : vector<16x1xf32> to vector<16x16xf32>
    %219 = arith.subf %215, %218 : vector<16x16xf32>
    %220 = math.exp %219 : vector<16x16xf32>
    %cst_61 = arith.constant dense<0.000000e+00> : vector<16xf32>
    %221 = vector.multi_reduction <add>, %220, %cst_61 [1] : vector<16x16xf32> to vector<16xf32>
    %222 = vector.shape_cast %221 : vector<16xf32> to vector<16x1xf32>
    %223 = tpu.reciprocal %222 {approx = true} : vector<16x1xf32> -> vector<16x1xf32>
    %224 = vector.broadcast %223 : vector<16x1xf32> to vector<16x16xf32>
    %225 = arith.mulf %220, %224 : vector<16x16xf32>
    %226 = arith.truncf %225 : vector<16x16xf32> to vector<16x16xbf16>
    %cst_62 = arith.constant dense<0.000000e+00> : vector<16x128xf32>
    %227 = tpu.matmul %226, %213, %cst_62 {dimension_numbers = #tpu.dot_dimension_numbers<[1], [0], [0], [1], [0, 0, 1, 1], [], []>} : vector<16x16xbf16>, vector<16x128xbf16>, vector<16x128xf32> -> vector<16x128xf32>
    %228 = arith.truncf %227 : vector<16x128xf32> to vector<16x128xbf16>
    %c0_63 = arith.constant 0 : index
    %c768_64 = arith.constant 768 : index
    %229 = vector.load %arg12[%c0_63, %c768_64] : memref<128x1792xbf16, #tpu.memory_space<vmem>>, vector<128x128xbf16>
    %cst_65 = arith.constant dense<0.000000e+00> : vector<16x128xf32>
    %230 = tpu.matmul %228, %229, %cst_65 {dimension_numbers = #tpu.dot_dimension_numbers<[1], [0], [0], [1], [0, 0, 1, 1], [], []>} : vector<16x128xbf16>, vector<128x128xbf16>, vector<16x128xf32> -> vector<16x128xf32>
    %231 = arith.truncf %204 : vector<16x128xf32> to vector<16x128xbf16>
    %232 = arith.truncf %210 : vector<16x128xf32> to vector<16x128xbf16>
    %233 = arith.truncf %198 : vector<16x128xf32> to vector<16x128xbf16>
    %cst_66 = arith.constant dense<0.000000e+00> : vector<16x16xf32>
    %234 = tpu.matmul %231, %232, %cst_66 {dimension_numbers = #tpu.dot_dimension_numbers<[1], [1], [0], [0], [0, 0, 1, 0], [], []>} : vector<16x128xbf16>, vector<16x128xbf16>, vector<16x16xf32> -> vector<16x16xf32>
    %235 = arith.addf %234, %11 : vector<16x16xf32>
    %cst_67 = arith.constant dense<0xFF800000> : vector<16xf32>
    %236 = vector.multi_reduction <maximumf>, %235, %cst_67 [1] : vector<16x16xf32> to vector<16xf32>
    %237 = vector.shape_cast %236 : vector<16xf32> to vector<16x1xf32>
    %238 = vector.broadcast %237 : vector<16x1xf32> to vector<16x16xf32>
    %239 = arith.subf %235, %238 : vector<16x16xf32>
    %240 = math.exp %239 : vector<16x16xf32>
    %cst_68 = arith.constant dense<0.000000e+00> : vector<16xf32>
    %241 = vector.multi_reduction <add>, %240, %cst_68 [1] : vector<16x16xf32> to vector<16xf32>
    %242 = vector.shape_cast %241 : vector<16xf32> to vector<16x1xf32>
    %243 = tpu.reciprocal %242 {approx = true} : vector<16x1xf32> -> vector<16x1xf32>
    %244 = vector.broadcast %243 : vector<16x1xf32> to vector<16x16xf32>
    %245 = arith.mulf %240, %244 : vector<16x16xf32>
    %246 = arith.truncf %245 : vector<16x16xf32> to vector<16x16xbf16>
    %cst_69 = arith.constant dense<0.000000e+00> : vector<16x128xf32>
    %247 = tpu.matmul %246, %233, %cst_69 {dimension_numbers = #tpu.dot_dimension_numbers<[1], [0], [0], [1], [0, 0, 1, 1], [], []>} : vector<16x16xbf16>, vector<16x128xbf16>, vector<16x128xf32> -> vector<16x128xf32>
    %248 = arith.truncf %247 : vector<16x128xf32> to vector<16x128xbf16>
    %c0_70 = arith.constant 0 : index
    %c896 = arith.constant 896 : index
    %249 = vector.load %arg12[%c0_70, %c896] : memref<128x1792xbf16, #tpu.memory_space<vmem>>, vector<128x128xbf16>
    %cst_71 = arith.constant dense<0.000000e+00> : vector<16x128xf32>
    %250 = tpu.matmul %248, %249, %cst_71 {dimension_numbers = #tpu.dot_dimension_numbers<[1], [0], [0], [1], [0, 0, 1, 1], [], []>} : vector<16x128xbf16>, vector<128x128xbf16>, vector<16x128xf32> -> vector<16x128xf32>
    %251 = arith.addf %230, %250 : vector<16x128xf32>
    %252 = arith.addf %185, %251 : vector<16x128xf32>
    %253 = arith.truncf %252 : vector<16x128xf32> to vector<16x128xbf16>
    %c0_72 = arith.constant 0 : index
    %c1024_73 = arith.constant 1024 : index
    %254 = vector.load %arg12[%c0_72, %c1024_73] : memref<128x1792xbf16, #tpu.memory_space<vmem>>, vector<128x512xbf16>
    %cst_74 = arith.constant dense<0.000000e+00> : vector<16x512xf32>
    %255 = tpu.matmul %253, %254, %cst_74 {dimension_numbers = #tpu.dot_dimension_numbers<[1], [0], [0], [1], [0, 0, 1, 1], [], []>} : vector<16x128xbf16>, vector<128x512xbf16>, vector<16x512xf32> -> vector<16x512xf32>
    %c80 = arith.constant 80 : index
    %c0_75 = arith.constant 0 : index
    %256 = vector.load %arg3[%c80, %c0_75] : memref<96x512xf32, #tpu.memory_space<vmem>>, vector<1x256xf32>
    %257 = vector.extract_strided_slice %255 {offsets = [0, 0], sizes = [16, 256], strides = [1, 1]} : vector<16x512xf32> to vector<16x256xf32>
    %258 = vector.broadcast %256 : vector<1x256xf32> to vector<16x256xf32>
    %259 = arith.addf %257, %258 : vector<16x256xf32>
    %260 = vector.extract_strided_slice %255 {offsets = [0, 256], sizes = [16, 128], strides = [1, 1]} : vector<16x512xf32> to vector<16x128xf32>
    %261 = vector.extract_strided_slice %255 {offsets = [0, 384], sizes = [16, 128], strides = [1, 1]} : vector<16x512xf32> to vector<16x128xf32>
    %262 = arith.negf %261 : vector<16x128xf32>
    %263 = math.exp %262 : vector<16x128xf32>
    %cst_76 = arith.constant 1.000000e+00 : f32
    %264 = vector.broadcast %cst_76 : f32 to vector<16x128xf32>
    %265 = arith.addf %264, %263 : vector<16x128xf32>
    %266 = arith.divf %264, %265 : vector<16x128xf32>
    %267 = arith.mulf %261, %266 : vector<16x128xf32>
    %268 = arith.mulf %260, %267 : vector<16x128xf32>
    %269 = arith.truncf %268 : vector<16x128xf32> to vector<16x128xbf16>
    %c0_77 = arith.constant 0 : index
    %c1536_78 = arith.constant 1536 : index
    %270 = vector.load %arg12[%c0_77, %c1536_78] : memref<128x1792xbf16, #tpu.memory_space<vmem>>, vector<128x256xbf16>
    %cst_79 = arith.constant dense<0.000000e+00> : vector<16x256xf32>
    %271 = tpu.matmul %269, %270, %cst_79 {dimension_numbers = #tpu.dot_dimension_numbers<[1], [0], [0], [1], [0, 0, 1, 1], [], []>} : vector<16x128xbf16>, vector<128x256xbf16>, vector<16x256xf32> -> vector<16x256xf32>
    %272 = arith.addf %259, %271 : vector<16x256xf32>
    %c3_i32_80 = arith.constant 3 : i32
    %273 = tpu.memref_slice %arg15[%c3_i32_80] : memref<5x!tpu.dma_semaphore, #tpu.memory_space<semaphore_mem>> -> memref<1x!tpu.dma_semaphore, #tpu.memory_space<semaphore_mem>>
    %274 = tpu.memref_squeeze %273 : memref<1x!tpu.dma_semaphore, #tpu.memory_space<semaphore_mem>> -> memref<!tpu.dma_semaphore, #tpu.memory_space<semaphore_mem>>
    tpu.wait_dma2 semaphore(%274 : memref<!tpu.dma_semaphore, #tpu.memory_space<semaphore_mem>>) src(%arg7 : memref<256x2560xbf16, #tpu.memory_space<any>>) dst(%arg13 : memref<256x2560xbf16, #tpu.memory_space<vmem>>)
    %275 = arith.truncf %272 : vector<16x256xf32> to vector<16x256xbf16>
    %c0_81 = arith.constant 0 : index
    %c0_82 = arith.constant 0 : index
    %276 = vector.load %arg13[%c0_81, %c0_82] : memref<256x2560xbf16, #tpu.memory_space<vmem>>, vector<256x768xbf16>
    %cst_83 = arith.constant dense<0.000000e+00> : vector<16x768xf32>
    %277 = tpu.matmul %275, %276, %cst_83 {dimension_numbers = #tpu.dot_dimension_numbers<[1], [0], [0], [1], [0, 0, 1, 1], [], []>} : vector<16x256xbf16>, vector<256x768xbf16>, vector<16x768xf32> -> vector<16x768xf32>
    %c48 = arith.constant 48 : index
    %c0_84 = arith.constant 0 : index
    %278 = vector.load %arg3[%c48, %c0_84] : memref<96x512xf32, #tpu.memory_space<vmem>>, vector<16x128xf32>
    %c48_85 = arith.constant 48 : index
    %c128_86 = arith.constant 128 : index
    %279 = vector.load %arg3[%c48_85, %c128_86] : memref<96x512xf32, #tpu.memory_space<vmem>>, vector<16x128xf32>
    %280 = vector.extract_strided_slice %277 {offsets = [0, 0], sizes = [16, 128], strides = [1, 1]} : vector<16x768xf32> to vector<16x128xf32>
    %281 = vector.extract_strided_slice %277 {offsets = [0, 128], sizes = [16, 128], strides = [1, 1]} : vector<16x768xf32> to vector<16x128xf32>
    %282 = vector.extract_strided_slice %277 {offsets = [0, 256], sizes = [16, 128], strides = [1, 1]} : vector<16x768xf32> to vector<16x128xf32>
    %283 = vector.extract_strided_slice %277 {offsets = [0, 384], sizes = [16, 128], strides = [1, 1]} : vector<16x768xf32> to vector<16x128xf32>
    %284 = vector.extract_strided_slice %277 {offsets = [0, 512], sizes = [16, 128], strides = [1, 1]} : vector<16x768xf32> to vector<16x128xf32>
    %285 = vector.extract_strided_slice %277 {offsets = [0, 640], sizes = [16, 128], strides = [1, 1]} : vector<16x768xf32> to vector<16x128xf32>
    %286 = arith.mulf %280, %279 : vector<16x128xf32>
    %287 = arith.mulf %281, %278 : vector<16x128xf32>
    %288 = arith.subf %286, %287 : vector<16x128xf32>
    %289 = arith.mulf %280, %278 : vector<16x128xf32>
    %290 = arith.mulf %281, %279 : vector<16x128xf32>
    %291 = arith.addf %289, %290 : vector<16x128xf32>
    %292 = arith.mulf %282, %279 : vector<16x128xf32>
    %293 = arith.mulf %283, %278 : vector<16x128xf32>
    %294 = arith.subf %292, %293 : vector<16x128xf32>
    %295 = arith.mulf %282, %278 : vector<16x128xf32>
    %296 = arith.mulf %283, %279 : vector<16x128xf32>
    %297 = arith.addf %295, %296 : vector<16x128xf32>
    %298 = arith.truncf %288 : vector<16x128xf32> to vector<16x128xbf16>
    %299 = arith.truncf %294 : vector<16x128xf32> to vector<16x128xbf16>
    %300 = arith.truncf %284 : vector<16x128xf32> to vector<16x128xbf16>
    %cst_87 = arith.constant dense<0.000000e+00> : vector<16x16xf32>
    %301 = tpu.matmul %298, %299, %cst_87 {dimension_numbers = #tpu.dot_dimension_numbers<[1], [1], [0], [0], [0, 0, 1, 0], [], []>} : vector<16x128xbf16>, vector<16x128xbf16>, vector<16x16xf32> -> vector<16x16xf32>
    %302 = arith.addf %301, %11 : vector<16x16xf32>
    %cst_88 = arith.constant dense<0xFF800000> : vector<16xf32>
    %303 = vector.multi_reduction <maximumf>, %302, %cst_88 [1] : vector<16x16xf32> to vector<16xf32>
    %304 = vector.shape_cast %303 : vector<16xf32> to vector<16x1xf32>
    %305 = vector.broadcast %304 : vector<16x1xf32> to vector<16x16xf32>
    %306 = arith.subf %302, %305 : vector<16x16xf32>
    %307 = math.exp %306 : vector<16x16xf32>
    %cst_89 = arith.constant dense<0.000000e+00> : vector<16xf32>
    %308 = vector.multi_reduction <add>, %307, %cst_89 [1] : vector<16x16xf32> to vector<16xf32>
    %309 = vector.shape_cast %308 : vector<16xf32> to vector<16x1xf32>
    %310 = tpu.reciprocal %309 {approx = true} : vector<16x1xf32> -> vector<16x1xf32>
    %311 = vector.broadcast %310 : vector<16x1xf32> to vector<16x16xf32>
    %312 = arith.mulf %307, %311 : vector<16x16xf32>
    %313 = arith.truncf %312 : vector<16x16xf32> to vector<16x16xbf16>
    %cst_90 = arith.constant dense<0.000000e+00> : vector<16x128xf32>
    %314 = tpu.matmul %313, %300, %cst_90 {dimension_numbers = #tpu.dot_dimension_numbers<[1], [0], [0], [1], [0, 0, 1, 1], [], []>} : vector<16x16xbf16>, vector<16x128xbf16>, vector<16x128xf32> -> vector<16x128xf32>
    %315 = arith.truncf %314 : vector<16x128xf32> to vector<16x128xbf16>
    %c0_91 = arith.constant 0 : index
    %c768_92 = arith.constant 768 : index
    %316 = vector.load %arg13[%c0_91, %c768_92] : memref<256x2560xbf16, #tpu.memory_space<vmem>>, vector<128x256xbf16>
    %cst_93 = arith.constant dense<0.000000e+00> : vector<16x256xf32>
    %317 = tpu.matmul %315, %316, %cst_93 {dimension_numbers = #tpu.dot_dimension_numbers<[1], [0], [0], [1], [0, 0, 1, 1], [], []>} : vector<16x128xbf16>, vector<128x256xbf16>, vector<16x256xf32> -> vector<16x256xf32>
    %318 = arith.truncf %291 : vector<16x128xf32> to vector<16x128xbf16>
    %319 = arith.truncf %297 : vector<16x128xf32> to vector<16x128xbf16>
    %320 = arith.truncf %285 : vector<16x128xf32> to vector<16x128xbf16>
    %cst_94 = arith.constant dense<0.000000e+00> : vector<16x16xf32>
    %321 = tpu.matmul %318, %319, %cst_94 {dimension_numbers = #tpu.dot_dimension_numbers<[1], [1], [0], [0], [0, 0, 1, 0], [], []>} : vector<16x128xbf16>, vector<16x128xbf16>, vector<16x16xf32> -> vector<16x16xf32>
    %322 = arith.addf %321, %11 : vector<16x16xf32>
    %cst_95 = arith.constant dense<0xFF800000> : vector<16xf32>
    %323 = vector.multi_reduction <maximumf>, %322, %cst_95 [1] : vector<16x16xf32> to vector<16xf32>
    %324 = vector.shape_cast %323 : vector<16xf32> to vector<16x1xf32>
    %325 = vector.broadcast %324 : vector<16x1xf32> to vector<16x16xf32>
    %326 = arith.subf %322, %325 : vector<16x16xf32>
    %327 = math.exp %326 : vector<16x16xf32>
    %cst_96 = arith.constant dense<0.000000e+00> : vector<16xf32>
    %328 = vector.multi_reduction <add>, %327, %cst_96 [1] : vector<16x16xf32> to vector<16xf32>
    %329 = vector.shape_cast %328 : vector<16xf32> to vector<16x1xf32>
    %330 = tpu.reciprocal %329 {approx = true} : vector<16x1xf32> -> vector<16x1xf32>
    %331 = vector.broadcast %330 : vector<16x1xf32> to vector<16x16xf32>
    %332 = arith.mulf %327, %331 : vector<16x16xf32>
    %333 = arith.truncf %332 : vector<16x16xf32> to vector<16x16xbf16>
    %cst_97 = arith.constant dense<0.000000e+00> : vector<16x128xf32>
    %334 = tpu.matmul %333, %320, %cst_97 {dimension_numbers = #tpu.dot_dimension_numbers<[1], [0], [0], [1], [0, 0, 1, 1], [], []>} : vector<16x16xbf16>, vector<16x128xbf16>, vector<16x128xf32> -> vector<16x128xf32>
    %335 = arith.truncf %334 : vector<16x128xf32> to vector<16x128xbf16>
    %c0_98 = arith.constant 0 : index
    %c1024_99 = arith.constant 1024 : index
    %336 = vector.load %arg13[%c0_98, %c1024_99] : memref<256x2560xbf16, #tpu.memory_space<vmem>>, vector<128x256xbf16>
    %cst_100 = arith.constant dense<0.000000e+00> : vector<16x256xf32>
    %337 = tpu.matmul %335, %336, %cst_100 {dimension_numbers = #tpu.dot_dimension_numbers<[1], [0], [0], [1], [0, 0, 1, 1], [], []>} : vector<16x128xbf16>, vector<128x256xbf16>, vector<16x256xf32> -> vector<16x256xf32>
    %338 = arith.addf %317, %337 : vector<16x256xf32>
    %339 = arith.addf %272, %338 : vector<16x256xf32>
    %340 = arith.truncf %339 : vector<16x256xf32> to vector<16x256xbf16>
    %c0_101 = arith.constant 0 : index
    %c1280_102 = arith.constant 1280 : index
    %341 = vector.load %arg13[%c0_101, %c1280_102] : memref<256x2560xbf16, #tpu.memory_space<vmem>>, vector<256x896xbf16>
    %cst_103 = arith.constant dense<0.000000e+00> : vector<16x896xf32>
    %342 = tpu.matmul %340, %341, %cst_103 {dimension_numbers = #tpu.dot_dimension_numbers<[1], [0], [0], [1], [0, 0, 1, 1], [], []>} : vector<16x256xbf16>, vector<256x896xbf16>, vector<16x896xf32> -> vector<16x896xf32>
    %c88 = arith.constant 88 : index
    %c0_104 = arith.constant 0 : index
    %343 = vector.load %arg3[%c88, %c0_104] : memref<96x512xf32, #tpu.memory_space<vmem>>, vector<1x384xf32>
    %344 = vector.extract_strided_slice %342 {offsets = [0, 0], sizes = [16, 384], strides = [1, 1]} : vector<16x896xf32> to vector<16x384xf32>
    %345 = vector.broadcast %343 : vector<1x384xf32> to vector<16x384xf32>
    %346 = arith.addf %344, %345 : vector<16x384xf32>
    %347 = vector.extract_strided_slice %342 {offsets = [0, 384], sizes = [16, 256], strides = [1, 1]} : vector<16x896xf32> to vector<16x256xf32>
    %348 = vector.extract_strided_slice %342 {offsets = [0, 640], sizes = [16, 256], strides = [1, 1]} : vector<16x896xf32> to vector<16x256xf32>
    %349 = arith.negf %348 : vector<16x256xf32>
    %350 = math.exp %349 : vector<16x256xf32>
    %cst_105 = arith.constant 1.000000e+00 : f32
    %351 = vector.broadcast %cst_105 : f32 to vector<16x256xf32>
    %352 = arith.addf %351, %350 : vector<16x256xf32>
    %353 = arith.divf %351, %352 : vector<16x256xf32>
    %354 = arith.mulf %348, %353 : vector<16x256xf32>
    %355 = arith.mulf %347, %354 : vector<16x256xf32>
    %356 = arith.truncf %355 : vector<16x256xf32> to vector<16x256xbf16>
    %c0_106 = arith.constant 0 : index
    %c2176 = arith.constant 2176 : index
    %357 = vector.load %arg13[%c0_106, %c2176] : memref<256x2560xbf16, #tpu.memory_space<vmem>>, vector<256x384xbf16>
    %cst_107 = arith.constant dense<0.000000e+00> : vector<16x384xf32>
    %358 = tpu.matmul %356, %357, %cst_107 {dimension_numbers = #tpu.dot_dimension_numbers<[1], [0], [0], [1], [0, 0, 1, 1], [], []>} : vector<16x256xbf16>, vector<256x384xbf16>, vector<16x384xf32> -> vector<16x384xf32>
    %359 = arith.addf %346, %358 : vector<16x384xf32>
    %c4_i32_108 = arith.constant 4 : i32
    %360 = tpu.memref_slice %arg15[%c4_i32_108] : memref<5x!tpu.dma_semaphore, #tpu.memory_space<semaphore_mem>> -> memref<1x!tpu.dma_semaphore, #tpu.memory_space<semaphore_mem>>
    %361 = tpu.memref_squeeze %360 : memref<1x!tpu.dma_semaphore, #tpu.memory_space<semaphore_mem>> -> memref<!tpu.dma_semaphore, #tpu.memory_space<semaphore_mem>>
    tpu.wait_dma2 semaphore(%361 : memref<!tpu.dma_semaphore, #tpu.memory_space<semaphore_mem>>) src(%arg8 : memref<384x512xbf16, #tpu.memory_space<any>>) dst(%arg14 : memref<384x512xbf16, #tpu.memory_space<vmem>>)
    %362 = arith.truncf %359 : vector<16x384xf32> to vector<16x384xbf16>
    %c0_109 = arith.constant 0 : index
    %c0_110 = arith.constant 0 : index
    %363 = vector.load %arg14[%c0_109, %c0_110] : memref<384x512xbf16, #tpu.memory_space<vmem>>, vector<384x512xbf16>
    %cst_111 = arith.constant dense<0.000000e+00> : vector<16x512xf32>
    %364 = tpu.matmul %362, %363, %cst_111 {dimension_numbers = #tpu.dot_dimension_numbers<[1], [0], [0], [1], [0, 0, 1, 1], [], []>} : vector<16x384xbf16>, vector<384x512xbf16>, vector<16x512xf32> -> vector<16x512xf32>
    %c0_112 = arith.constant 0 : index
    %c0_113 = arith.constant 0 : index
    %365 = vector.load %arg9[%c0_112, %c0_113] : memref<16x512xf32, #tpu.memory_space<vmem>>, vector<16x512xf32>
    tpu.vector_store %arg9[%c0_112, %c0_113], %364 {strides = array<i32>} : memref<16x512xf32, #tpu.memory_space<vmem>>, vector<16x512xf32>,
    return
  }
  func.func @transform_0(%arg0: i32) -> (i32, i32) {
    %c0_i32 = arith.constant 0 : i32
    %c0_i32_0 = arith.constant 0 : i32
    %c0_i32_1 = arith.constant 0 : i32
    return %c0_i32, %c0_i32_0 : i32, i32
  }
  func.func @transform_1(%arg0: i32) -> (i32, i32) {
    %c0_i32 = arith.constant 0 : i32
    %c0_i32_0 = arith.constant 0 : i32
    %c0_i32_1 = arith.constant 0 : i32
    return %c0_i32, %c0_i32_0 : i32, i32
  }
  func.func @transform_2(%arg0: i32) -> (i32, i32) {
    %c0_i32 = arith.constant 0 : i32
    %c0_i32_0 = arith.constant 0 : i32
    %c0_i32_1 = arith.constant 0 : i32
    return %c0_i32, %c0_i32_0 : i32, i32
  }
  func.func @transform_8(%arg0: i32) -> (i32, i32) {
    %c0_i32 = arith.constant 0 : i32
    %c0_i32_0 = arith.constant 0 : i32
    %c0_i32_1 = arith.constant 0 : i32
    return %c0_i32, %c0_i32_0 : i32, i32
  }
}

</mosaic_0001>

<bundles_post_ra>
// kernel: tpu_custom_call.1
= control target key start
LH: loop header
LB: loop body
LE: loop exit
PB: predicated region body
PF: predicated region fallthrough
CT: control target
= control target key end

     0   :  { %13 = vsyncpa [#allocation9], 0  ;;  %s16554_s0 = inlined_call_operand.hbm [shape: f32[16,384], index: 0, kind: input, shape index: {}]   ;;  %s16555_s1 = inlined_call_operand.hbm [shape: f32[16,16], index: 1, kind: input, shape index: {}]   ;;  %s16556_s2 = inlined_call_operand.hbm [shape: f32[96,512], index: 2, kind: input, shape index: {}]   ;;  %s16557_s3 = inlined_call_operand.hbm [shape: bf16[384,3584], index: 3, kind: input, shape index: {}]   ;;  %s16558_s4 = inlined_call_operand.hbm [shape: bf16[256,2048], index: 4, kind: input, shape index: {}]   ;;  %s16559_s5 = inlined_call_operand.hbm [shape: bf16[128,1792], index: 5, kind: input, shape index: {}]   ;;  %s16560_s6 = inlined_call_operand.hbm [shape: bf16[256,2560], index: 6, kind: input, shape index: {}]   ;;  %s16561_s7 = inlined_call_operand.hbm [shape: bf16[384,512], index: 7, kind: input, shape index: {}]   ;;  %s16562_s8 = inlined_call_operand.hbm [shape: f32[16,512], index: 8, kind: output, shape index: {}]  }
   0x1   :  { %14 = vsyncpa [#allocation12], 0 }
   0x2   :  { %15 = vsyncpa [#allocation10], 0  ;;  %s15911_s27 = smov [#allocation11]  }
   0x3   :  { %s33_s28 = sshll.u32 %s15911_s27, 4  ;;  %s34_s28 = int_to_ptr.vmem [resolvable:$true] %s33_s28 }
   0x4   :  { %s15723_s29 = scalar_lea.vmem %s34_s28, 256  ;;  %p15728_p1 = scmp.lt.s32.totalorder %s34_s28, %s34_s28 }
   0x5   :  { %p15724_p0 = scmp.ne.s32.totalorder %s34_s28, %s15723_s29  ;;  %p15729_p2 = scmp.lt.s32.totalorder %s15723_s29, %s15723_s29 }
   0x7   :  { %p15730_p3 = por %p15729_p2, %p15728_p1 }
   0x9   :  { %p15731_p4 = pnand %p15730_p3, %p15724_p0 }
   0xb   :  { %15734 = shalt.err (!%p15731_p4)
}
   0xc   :  { %s15912_s30 = smov 128   ;;  %s15913_s9 = smov 8  }
   0xd   :  { %39 = dma.hbm_to_vmem [thread:$0]  %s16555_s1, 256, %s34_s28, [#allocation12], %s15912_s30, %s15912_s30, %s15913_s9  }
   0xe   :  { %s15914_s12 = smov [#allocation8]  }
   0xf   :  { %s21_s13 = sshll.u32 %s15914_s12, 4  ;;  %s22_s13 = int_to_ptr.vmem [resolvable:$true] %s21_s13 }
  0x10   :  { %s15743_s14 = scalar_lea.vmem %s22_s13, 768  ;;  %p15748_p6 = scmp.lt.s32.totalorder %s22_s13, %s22_s13 }
  0x11   :  { %p15744_p5 = scmp.ne.s32.totalorder %s22_s13, %s15743_s14  ;;  %p15749_p7 = scmp.lt.s32.totalorder %s15743_s14, %s15743_s14 }
  0x13   :  { %p15750_p8 = por %p15749_p7, %p15748_p6 }
  0x15   :  { %p15751_p9 = pnand %p15750_p8, %p15744_p5 }
  0x17   :  { %15754 = shalt.err (!%p15751_p9)
}
  0x18   :  { %s15915_s15 = smov 384   ;;  %s15916_s16 = smov 24  }
  0x19   :  { %27 = dma.hbm_to_vmem [thread:$0]  %s16554_s0, 768, %s22_s13, [#allocation9], %s15915_s15, %s15915_s15, %s15916_s16  }
  0x1a   :  { %s15917_s19 = smov [#allocation13]  }
  0x1b   :  { %s45_s20 = sshll.u32 %s15917_s19, 4  ;;  %s46_s20 = int_to_ptr.vmem [resolvable:$true] %s45_s20 }
  0x1c   :  { %s15763_s1 = scalar_lea.vmem %s46_s20, 6144  ;;  %p15768_p11 = scmp.lt.s32.totalorder %s46_s20, %s46_s20 }
  0x1d   :  { %p15764_p10 = scmp.ne.s32.totalorder %s46_s20, %s15763_s1  ;;  %p15769_p12 = scmp.lt.s32.totalorder %s15763_s1, %s15763_s1 }
  0x1f   :  { %p15770_p13 = por %p15769_p12, %p15768_p11 }
  0x21   :  { %p15771_p0 = pnand %p15770_p13, %p15764_p10 }
  0x23   :  { %15774 = shalt.err (!%p15771_p0)
}
  0x24   :  { %s15918_s21 = smov 512   ;;  %s15919_s22 = smov 32  }
  0x25   :  { %51 = dma.hbm_to_vmem [thread:$0]  %s16556_s2, 6144, %s46_s20, [#allocation12], %s15918_s21, %s15918_s21, %s15919_s22  }
  0x26   :  { %15895 = dma.done.wait [#allocation9], 768  }
  0x27   :  { %15896 = vsyncadd [#allocation9], 4294966528 }
  0x28   :  { %15897 = dma.done.wait [#allocation12], 6400  }
  0x29   :  { %15898 = vsyncadd [#allocation12], 4294960896  ;;  %s15920_s0 = smov [#allocation2]   ;;  %s15921_s26 = smov [#allocation3]  }
  0x2a   :  { %s69_s25 = sshll.u32 %s15920_s0, 4  ;;  %s81_s27 = sshll.u32 %s15921_s26, 4  ;;  %s70_s25 = int_to_ptr.vmem [resolvable:$true] %s69_s25  ;;  %s82_s27 = int_to_ptr.vmem [resolvable:$true] %s81_s27 }
  0x2b   :  { %s15783_s28 = scalar_lea.vmem %s70_s25, 86016  ;;  %p15788_p2 = scmp.lt.s32.totalorder %s70_s25, %s70_s25 }
  0x2c   :  { %p15784_p1 = scmp.ne.s32.totalorder %s70_s25, %s15783_s28  ;;  %p15789_p3 = scmp.lt.s32.totalorder %s15783_s28, %s15783_s28 }
  0x2e   :  { %p15790_p4 = por %p15789_p3, %p15788_p2 }
  0x30   :  { %p15791_p5 = pnand %p15790_p4, %p15784_p1 }
  0x32   :  { %15794 = shalt.err (!%p15791_p5)  }
  0x33   :  { %72 = dma.hbm_to_vmem [thread:$0]  %s16557_s3, 86016, %s70_s25, [#allocation7] }
  0x34   :  { %s15803_s2 = scalar_lea.vmem %s82_s27, 32768  ;;  %p15808_p7 = scmp.lt.s32.totalorder %s82_s27, %s82_s27 }
  0x35   :  { %p15804_p6 = scmp.ne.s32.totalorder %s82_s27, %s15803_s2  ;;  %p15809_p8 = scmp.lt.s32.totalorder %s15803_s2, %s15803_s2 }
  0x37   :  { %p15810_p9 = por %p15809_p8, %p15808_p7 }
  0x39   :  { %p15811_p10 = pnand %p15810_p9, %p15804_p6 }
  0x3b   :  { %15814 = shalt.err (!%p15811_p10)  }
  0x3c   :  { %84 = dma.hbm_to_vmem [thread:$0]  %s16558_s4, 32768, %s82_s27, [#allocation7 + $0x1]  ;;  %v15992_v0 = vld [vmem:[#allocation8] sm:$0xff]  ;;  %v15994_v1 = vld [vmem:[#allocation8 + $0x8] sm:$0xff]  ;;  %v15996_v2 = vld [vmem:[#allocation8 + $0x10] sm:$0xff] }
  0x3d   :  { %s15922_s11 = smov [#allocation4]   ;;  %s15923_s13 = smov [#allocation5]   ;;  %v15998_v3 = vld [vmem:[#allocation8 + $0x18] sm:$0xff]  ;;  %v16000_v4 = vld [vmem:[#allocation8 + $0x20] sm:$0xff]  ;;  %v16002_v5 = vld [vmem:[#allocation8 + $0x28] sm:$0xff] }
  0x3e   :  { %s93_s12 = sshll.u32 %s15922_s11, 4  ;;  %s105_s14 = sshll.u32 %s15923_s13, 4  ;;  %s94_s12 = int_to_ptr.vmem [resolvable:$true] %s93_s12  ;;  %s106_s14 = int_to_ptr.vmem [resolvable:$true] %s105_s14 }
  0x3f   :  { %s15823_s3 = scalar_lea.vmem %s94_s12, 14336  ;;  %p15828_p12 = scmp.lt.s32.totalorder %s94_s12, %s94_s12 }
  0x40   :  { %p15824_p11 = scmp.ne.s32.totalorder %s94_s12, %s15823_s3  ;;  %p15829_p13 = scmp.lt.s32.totalorder %s15823_s3, %s15823_s3 }
  0x42   :  { %p15830_p0 = por %p15829_p13, %p15828_p12 }
  0x44   :  { %p15831_p1 = pnand %p15830_p0, %p15824_p11 }
  0x46   :  { %15834 = shalt.err (!%p15831_p1)  }
  0x47   :  { %96 = dma.hbm_to_vmem [thread:$0]  %s16559_s5, 14336, %s94_s12, [#allocation7 + $0x2]  ;;  %v16007_v6 = vld [vmem:[#allocation11] sm:$0xff]  ;;  %v16009_v7 = vld [vmem:[#allocation11 + $0x8] sm:$0xff] }
  0x48   :  { %s15843_s16 = scalar_lea.vmem %s106_s14, 40960  ;;  %p15848_p3 = scmp.lt.s32.totalorder %s106_s14, %s106_s14 }
  0x49   :  { %p15844_p2 = scmp.ne.s32.totalorder %s106_s14, %s15843_s16  ;;  %p15849_p4 = scmp.lt.s32.totalorder %s15843_s16, %s15843_s16 }
  0x4b   :  { %p15850_p5 = por %p15849_p4, %p15848_p3 }
  0x4d   :  { %p15851_p6 = pnand %p15850_p5, %p15844_p2 }
  0x4f   :  { %15854 = shalt.err (!%p15851_p6)  }
  0x50   :  { %108 = dma.hbm_to_vmem [thread:$0]  %s16560_s6, 40960, %s106_s14, [#allocation7 + $0x3] }
  0x51   :  { %s15924_s19 = smov [#allocation6]  }
  0x52   :  { %s117_s20 = sshll.u32 %s15924_s19, 4  ;;  %s118_s20 = int_to_ptr.vmem [resolvable:$true] %s117_s20 }
  0x53   :  { %s15863_s1 = scalar_lea.vmem %s118_s20, 12288  ;;  %p15868_p8 = scmp.lt.s32.totalorder %s118_s20, %s118_s20 }
  0x54   :  { %p15864_p7 = scmp.ne.s32.totalorder %s118_s20, %s15863_s1  ;;  %p15869_p9 = scmp.lt.s32.totalorder %s15863_s1, %s15863_s1 }
  0x56   :  { %p15870_p10 = por %p15869_p9, %p15868_p8 }
  0x58   :  { %p15871_p11 = pnand %p15870_p10, %p15864_p7 }
  0x5a   :  { %15874 = shalt.err (!%p15871_p11)  }
  0x5b   :  { %120 = dma.hbm_to_vmem [thread:$0]  %s16561_s7, 12288, %s118_s20, [#allocation7 + $0x4] }
  0x5c   :  { %15899 = dma.done.wait [#allocation7], 86016 }
  0x5d   :  { %15900 = vsyncadd [#allocation7], 4294881280  ;;  %v16019_v8 = vpack.c.bf16 %v16000_v4, %v15994_v1  ;;  %v15925_v9 = vmov 0   ;;  %v13947_v10 = vld [vmem:[#allocation2 + $0x624] ss:$112 sps:$4 sm:$0xff]   ;;  %v16025_v44 = vpack.c.bf16 %v16002_v5, %v15996_v2  ;;  %vm2483_vm0 = vcmask 130048  }
  0x5e   :  { %1939 = vmatprep.mubr.bf16.mxu1 %v15925_v9  ;;  %v13949_v11 = vld [vmem:[#allocation2 + $0x1424] ss:$112 sps:$4 sm:$0xff]   ;;  %1864 = vmatprep.subr.bf16.mxu0 %v13947_v10  ;;  %v13951_v12 = vld [vmem:[#allocation2 + $0x620] ss:$112 sps:$4 sm:$0xff]   ;;  %v13999_v43 = vld [vmem:[#allocation2 + $0x62c] ss:$112 sps:$4 sm:$0xff]  }
  0x5f   :  { %1896 = vmatprep.mubr.bf16.mxu0 %v16019_v8  ;;  %v13952_v13 = vld [vmem:[#allocation2 + $0x1420] ss:$112 sps:$4 sm:$0xff]   ;;  %1907 = vmatprep.subr.bf16.mxu1 %v13949_v11  ;;  %v13953_v14 = vld [vmem:[#allocation2 + $0x544] ss:$112 sps:$4 sm:$0xff]   ;;  %v13997_v45 = vld [vmem:[#allocation2 + $0x628] ss:$112 sps:$4 sm:$0xff]  }
  0x60   :  { %1865 = vmatpush1.bf16.msra.mxu0 %v13951_v12  ;;  %1908 = vmatpush1.bf16.msra.mxu1 %v13952_v13  ;;  %v13955_v15 = vld [vmem:[#allocation2 + $0x1344] ss:$112 sps:$4 sm:$0xff]   ;;  %v13957_v16 = vld [vmem:[#allocation2 + $0x540] ss:$112 sps:$4 sm:$0xff]   ;;  %v14005_v48 = vld [vmem:[#allocation2 + $0x54c] ss:$112 sps:$4 sm:$0xff]  }
  0x61   :  { %1866 = vmatprep.subr.bf16.mxu0 %v13953_v14  ;;  %v13958_v17 = vld [vmem:[#allocation2 + $0x1340] ss:$112 sps:$4 sm:$0xff]   ;;  %1909 = vmatprep.subr.bf16.mxu1 %v13955_v15  ;;  %v13959_v18 = vld [vmem:[#allocation2 + $0x464] ss:$112 sps:$4 sm:$0xff]   ;;  %v14003_v49 = vld [vmem:[#allocation2 + $0x548] ss:$112 sps:$4 sm:$0xff]  }
  0x62   :  { %v13961_v19 = vld [vmem:[#allocation2 + $0x1264] ss:$112 sps:$4 sm:$0xff]   ;;  %v13963_v20 = vld [vmem:[#allocation2 + $0x460] ss:$112 sps:$4 sm:$0xff]   ;;  %v14011_v52 = vld [vmem:[#allocation2 + $0x46c] ss:$112 sps:$4 sm:$0xff]  }
  0x63   :  { %v13964_v21 = vld [vmem:[#allocation2 + $0x1260] ss:$112 sps:$4 sm:$0xff]   ;;  %v13965_v22 = vld [vmem:[#allocation2 + $0x384] ss:$112 sps:$4 sm:$0xff]   ;;  %v14009_v53 = vld [vmem:[#allocation2 + $0x468] ss:$112 sps:$4 sm:$0xff]  }
  0x64   :  { %1867 = vmatpush1.bf16.msra.mxu0 %v13957_v16  ;;  %1910 = vmatpush1.bf16.msra.mxu1 %v13958_v17  ;;  %v13967_v23 = vld [vmem:[#allocation2 + $0x1184] ss:$112 sps:$4 sm:$0xff]   ;;  %v13969_v24 = vld [vmem:[#allocation2 + $0x380] ss:$112 sps:$4 sm:$0xff]   ;;  %v14017_v56 = vld [vmem:[#allocation2 + $0x38c] ss:$112 sps:$4 sm:$0xff]  }
  0x65   :  { %1868 = vmatprep.subr.bf16.mxu0 %v13959_v18  ;;  %1911 = vmatprep.subr.bf16.mxu1 %v13961_v19  ;;  %v13970_v25 = vld [vmem:[#allocation2 + $0x1180] ss:$112 sps:$4 sm:$0xff]   ;;  %v13971_v26 = vld [vmem:[#allocation2 + $0x2a4] ss:$112 sps:$4 sm:$0xff]   ;;  %v14015_v57 = vld [vmem:[#allocation2 + $0x388] ss:$112 sps:$4 sm:$0xff]  }
  0x66   :  { %v13973_v27 = vld [vmem:[#allocation2 + $0x10a4] ss:$112 sps:$4 sm:$0xff]   ;;  %v13975_v28 = vld [vmem:[#allocation2 + $0x2a0] ss:$112 sps:$4 sm:$0xff]   ;;  %v14023_v60 = vld [vmem:[#allocation2 + $0x2ac] ss:$112 sps:$4 sm:$0xff]  }
  0x67   :  { %v13976_v29 = vld [vmem:[#allocation2 + $0x10a0] ss:$112 sps:$4 sm:$0xff]   ;;  %v13977_v30 = vld [vmem:[#allocation2 + $0x1c4] ss:$112 sps:$4 sm:$0xff]   ;;  %v14021_v61 = vld [vmem:[#allocation2 + $0x2a8] ss:$112 sps:$4 sm:$0xff]  }
  0x68   :  { %1869 = vmatpush1.bf16.msra.mxu0 %v13963_v20  ;;  %1912 = vmatpush1.bf16.msra.mxu1 %v13964_v21  ;;  %v13979_v31 = vld [vmem:[#allocation2 + $0xfc4] ss:$112 sps:$4 sm:$0xff]   ;;  %v13981_v32 = vld [vmem:[#allocation2 + $0x1c0] ss:$112 sps:$4 sm:$0xff]   ;;  %v14029_v10 = vld [vmem:[#allocation2 + $0x1cc] ss:$112 sps:$4 sm:$0xff]  }
  0x69   :  { %1870 = vmatprep.subr.bf16.mxu0 %v13965_v22  ;;  %1913 = vmatprep.subr.bf16.mxu1 %v13967_v23  ;;  %v13982_v33 = vld [vmem:[#allocation2 + $0xfc0] ss:$112 sps:$4 sm:$0xff]   ;;  %v13983_v34 = vld [vmem:[#allocation2 + $0xe4] ss:$112 sps:$4 sm:$0xff]   ;;  %v14027_v11 = vld [vmem:[#allocation2 + $0x1c8] ss:$112 sps:$4 sm:$0xff]   ;;  %v16031_v23 = vpack.c.bf16 %v15998_v3, %v15992_v0 }
  0x6a   :  { %v13985_v35 = vld [vmem:[#allocation2 + $0xee4] ss:$112 sps:$4 sm:$0xff]   ;;  %v13987_v36 = vld [vmem:[#allocation2 + $0xe0] ss:$112 sps:$4 sm:$0xff]   ;;  %v14035_v14 = vld [vmem:[#allocation2 + $0xec] ss:$112 sps:$4 sm:$0xff]  }
  0x6b   :  { %v13988_v37 = vld [vmem:[#allocation2 + $0xee0] ss:$112 sps:$4 sm:$0xff]   ;;  %v13989_v38 = vld [vmem:[#allocation2 + $0x4] ss:$112 sps:$4 sm:$0xff]   ;;  %v14033_v15 = vld [vmem:[#allocation2 + $0xe8] ss:$112 sps:$4 sm:$0xff]  }
  0x6c   :  { %1871 = vmatpush1.bf16.msra.mxu0 %v13969_v24  ;;  %1914 = vmatpush1.bf16.msra.mxu1 %v13970_v25  ;;  %v13991_v39 = vld [vmem:[#allocation2 + $0xe04] ss:$112 sps:$4 sm:$0xff]   ;;  %v13993_v40 = vld [vmem:[#allocation2] ss:$112 sps:$4 sm:$0xff]   ;;  %v14041_v18 = vld [vmem:[#allocation2 + $0xc] ss:$112 sps:$4 sm:$0xff]  }
  0x6d   :  { %1872 = vmatprep.subr.bf16.mxu0 %v13971_v26  ;;  %1915 = vmatprep.subr.bf16.mxu1 %v13973_v27  ;;  %v13994_v41 = vld [vmem:[#allocation2 + $0xe00] ss:$112 sps:$4 sm:$0xff]   ;;  %v13995_v42 = vld [vmem:[#allocation2 + $0xd24] ss:$112 sps:$4 sm:$0xff]   ;;  %v14039_v19 = vld [vmem:[#allocation2 + $0x8] ss:$112 sps:$4 sm:$0xff]  }
  0x6e   :  { %v14000_v46 = vld [vmem:[#allocation2 + $0xd20] ss:$112 sps:$4 sm:$0xff]   ;;  %v14001_v47 = vld [vmem:[#allocation2 + $0xc44] ss:$112 sps:$4 sm:$0xff]   ;;  %v14045_v21 = vld [vmem:[#allocation2 + $0xd2c] ss:$112 sps:$4 sm:$0xff]  }
  0x6f   :  { %v14006_v50 = vld [vmem:[#allocation2 + $0xc40] ss:$112 sps:$4 sm:$0xff]   ;;  %v14007_v51 = vld [vmem:[#allocation2 + $0xb64] ss:$112 sps:$4 sm:$0xff]   ;;  %v14048_v22 = vld [vmem:[#allocation2 + $0x142c] ss:$112 sps:$4 sm:$0xff]  }
  0x70   :  { %1873 = vmatpush1.bf16.msra.mxu0 %v13975_v28  ;;  %1916 = vmatpush1.bf16.msra.mxu1 %v13976_v29  ;;  %v14012_v54 = vld [vmem:[#allocation2 + $0xb60] ss:$112 sps:$4 sm:$0xff]   ;;  %v14013_v55 = vld [vmem:[#allocation2 + $0xa84] ss:$112 sps:$4 sm:$0xff]   ;;  %v14043_v24 = vld [vmem:[#allocation2 + $0xd28] ss:$112 sps:$4 sm:$0xff]  }
  0x71   :  { %1874 = vmatprep.subr.bf16.mxu0 %v13977_v30  ;;  %1917 = vmatprep.subr.bf16.mxu1 %v13979_v31  ;;  %v14018_v58 = vld [vmem:[#allocation2 + $0xa80] ss:$112 sps:$4 sm:$0xff]   ;;  %v14019_v59 = vld [vmem:[#allocation2 + $0x9a4] ss:$112 sps:$4 sm:$0xff]   ;;  %v14046_v25 = vld [vmem:[#allocation2 + $0x1428] ss:$112 sps:$4 sm:$0xff]  }
  0x72   :  { %v14024_v62 = vld [vmem:[#allocation2 + $0x9a0] ss:$112 sps:$4 sm:$0xff]   ;;  %v14025_v63 = vld [vmem:[#allocation2 + $0x8c4] ss:$112 sps:$4 sm:$0xff]   ;;  %v14051_v26 = vld [vmem:[#allocation2 + $0xc4c] ss:$112 sps:$4 sm:$0xff]  }
  0x73   :  { %v14030_v12 = vld [vmem:[#allocation2 + $0x8c0] ss:$112 sps:$4 sm:$0xff]   ;;  %v14031_v13 = vld [vmem:[#allocation2 + $0x7e4] ss:$112 sps:$4 sm:$0xff]   ;;  %v14054_v27 = vld [vmem:[#allocation2 + $0x134c] ss:$112 sps:$4 sm:$0xff]  }
  0x74   :  { %1875 = vmatpush1.bf16.msra.mxu0 %v13981_v32  ;;  %1918 = vmatpush1.bf16.msra.mxu1 %v13982_v33  ;;  %v14036_v16 = vld [vmem:[#allocation2 + $0x7e0] ss:$112 sps:$4 sm:$0xff]   ;;  %v14037_v17 = vld [vmem:[#allocation2 + $0x704] ss:$112 sps:$4 sm:$0xff]   ;;  %v14049_v28 = vld [vmem:[#allocation2 + $0xc48] ss:$112 sps:$4 sm:$0xff]  }
  0x75   :  { %1876 = vmatprep.subr.bf16.mxu0 %v13983_v34  ;;  %1919 = vmatprep.subr.bf16.mxu1 %v13985_v35  ;;  %v14042_v20 = vld [vmem:[#allocation2 + $0x700] ss:$112 sps:$4 sm:$0xff]   ;;  %v14052_v29 = vld [vmem:[#allocation2 + $0x1348] ss:$112 sps:$4 sm:$0xff]   ;;  %v14057_v30 = vld [vmem:[#allocation2 + $0xb6c] ss:$112 sps:$4 sm:$0xff]  }
  0x76   :  { %v14060_v31 = vld [vmem:[#allocation2 + $0x126c] ss:$112 sps:$4 sm:$0xff]   ;;  %v14055_v32 = vld [vmem:[#allocation2 + $0xb68] ss:$112 sps:$4 sm:$0xff]  }
  0x77   :  { %v14058_v33 = vld [vmem:[#allocation2 + $0x1268] ss:$112 sps:$4 sm:$0xff]   ;;  %v14063_v34 = vld [vmem:[#allocation2 + $0xa8c] ss:$112 sps:$4 sm:$0xff]  }
  0x78   :  { %1877 = vmatpush1.bf16.msra.mxu0 %v13987_v36  ;;  %1920 = vmatpush1.bf16.msra.mxu1 %v13988_v37  ;;  %v14066_v35 = vld [vmem:[#allocation2 + $0x118c] ss:$112 sps:$4 sm:$0xff]   ;;  %v14061_v36 = vld [vmem:[#allocation2 + $0xa88] ss:$112 sps:$4 sm:$0xff]  }
  0x79   :  { %1878 = vmatprep.subr.bf16.mxu0 %v13989_v38  ;;  %1921 = vmatprep.subr.bf16.mxu1 %v13991_v39  ;;  %v14064_v37 = vld [vmem:[#allocation2 + $0x1188] ss:$112 sps:$4 sm:$0xff]   ;;  %v14069_v38 = vld [vmem:[#allocation2 + $0x9ac] ss:$112 sps:$4 sm:$0xff]  }
  0x7a   :  { %v14072_v39 = vld [vmem:[#allocation2 + $0x10ac] ss:$112 sps:$4 sm:$0xff]  }
  0x7c   :  { %1879 = vmatpush1.bf16.msra.mxu0 %v13993_v40  ;;  %1922 = vmatpush1.bf16.msra.mxu1 %v13994_v41  ;;  %v14067_v40 = vld [vmem:[#allocation2 + $0x9a8] ss:$112 sps:$4 sm:$0xff]  }
  0x7d   :  { %1880 = vmatprep.subr.bf16.mxu0 %v13995_v42  ;;  %1950 = vmatprep.subr.bf16.mxu1 %v13999_v43  ;;  %v14070_v41 = vld [vmem:[#allocation2 + $0x10a8] ss:$112 sps:$4 sm:$0xff]   ;;  %v14075_v42 = vld [vmem:[#allocation2 + $0x8cc] ss:$112 sps:$4 sm:$0xff]  }
  0x7e   :  { %v14078_v43 = vld [vmem:[#allocation2 + $0xfcc] ss:$112 sps:$4 sm:$0xff]  }
  0x7f   :  { %1940 = vmatmul.mubr.bf16.vlgmr.msra.gmra.mxu1 %v16025_v44 }
  0x80   :  { %1881 = vmatpush2.bf16.msra.mxu0 %v14000_v46  ;;  %1951 = vmatpush1.bf16.msra.mxu1 %v13997_v45  ;;  %v14073_v45 = vld [vmem:[#allocation2 + $0x8c8] ss:$112 sps:$4 sm:$0xff]  }
  0x81   :  { %1882 = vmatprep.subr.bf16.mxu0 %v14001_v47  ;;  %1952 = vmatprep.subr.bf16.mxu1 %v14005_v48  ;;  %v14076_v46 = vld [vmem:[#allocation2 + $0xfc8] ss:$112 sps:$4 sm:$0xff]   ;;  %v14081_v47 = vld [vmem:[#allocation2 + $0x7ec] ss:$112 sps:$4 sm:$0xff]  }
  0x82   :  { %1982 = vmatprep.mubr.bf16.mxu1 %v16019_v8  ;;  %v14084_v48 = vld [vmem:[#allocation2 + $0xeec] ss:$112 sps:$4 sm:$0xff]  }
  0x84   :  { %1883 = vmatpush2.bf16.msra.mxu0 %v14006_v50  ;;  %1953 = vmatpush1.bf16.msra.mxu1 %v14003_v49  ;;  %v14079_v49 = vld [vmem:[#allocation2 + $0x7e8] ss:$112 sps:$4 sm:$0xff]  }
  0x85   :  { %1884 = vmatprep.subr.bf16.mxu0 %v14007_v51  ;;  %1954 = vmatprep.subr.bf16.mxu1 %v14011_v52  ;;  %v14082_v50 = vld [vmem:[#allocation2 + $0xee8] ss:$112 sps:$4 sm:$0xff]   ;;  %v14087_v51 = vld [vmem:[#allocation2 + $0x70c] ss:$112 sps:$4 sm:$0xff]  }
  0x86   :  { %v14090_v52 = vld [vmem:[#allocation2 + $0xe0c] ss:$112 sps:$4 sm:$0xff]  }
  0x88   :  { %1885 = vmatpush2.bf16.msra.mxu0 %v14012_v54  ;;  %1955 = vmatpush1.bf16.msra.mxu1 %v14009_v53  ;;  %v14085_v53 = vld [vmem:[#allocation2 + $0x708] ss:$112 sps:$4 sm:$0xff]  }
  0x89   :  { %1886 = vmatprep.subr.bf16.mxu0 %v14013_v55  ;;  %1956 = vmatprep.subr.bf16.mxu1 %v14017_v56  ;;  %v14088_v54 = vld [vmem:[#allocation2 + $0xe08] ss:$112 sps:$4 sm:$0xff]   ;;  %v14093_v55 = vld [vmem:[#allocation2 + $0x634] ss:$112 sps:$4 sm:$0xff]  }
  0x8a   :  { %v14096_v56 = vld [vmem:[#allocation2 + $0x1434] ss:$112 sps:$4 sm:$0xff]  }
  0x8c   :  { %1887 = vmatpush2.bf16.msra.mxu0 %v14018_v58  ;;  %1957 = vmatpush1.bf16.msra.mxu1 %v14015_v57  ;;  %v14091_v57 = vld [vmem:[#allocation2 + $0x630] ss:$112 sps:$4 sm:$0xff]  }
  0x8d   :  { %1888 = vmatprep.subr.bf16.mxu0 %v14019_v59  ;;  %1958 = vmatprep.subr.bf16.mxu1 %v14023_v60  ;;  %v14094_v58 = vld [vmem:[#allocation2 + $0x1430] ss:$112 sps:$4 sm:$0xff]   ;;  %v14099_v59 = vld [vmem:[#allocation2 + $0x554] ss:$112 sps:$4 sm:$0xff]  }
  0x8e   :  { %v14102_v60 = vld [vmem:[#allocation2 + $0x1354] ss:$112 sps:$4 sm:$0xff]  }
  0x90   :  { %1889 = vmatpush2.bf16.msra.mxu0 %v14024_v62  ;;  %1959 = vmatpush1.bf16.msra.mxu1 %v14021_v61  ;;  %v14097_v61 = vld [vmem:[#allocation2 + $0x550] ss:$112 sps:$4 sm:$0xff]  }
  0x91   :  { %1890 = vmatprep.subr.bf16.mxu0 %v14025_v63  ;;  %1960 = vmatprep.subr.bf16.mxu1 %v14029_v10  ;;  %v14100_v62 = vld [vmem:[#allocation2 + $0x1350] ss:$112 sps:$4 sm:$0xff]   ;;  %v14105_v63 = vld [vmem:[#allocation2 + $0x474] ss:$112 sps:$4 sm:$0xff]  }
  0x92   :  { %v14108_v10 = vld [vmem:[#allocation2 + $0x1274] ss:$112 sps:$4 sm:$0xff]  }
  0x94   :  { %1891 = vmatpush2.bf16.msra.mxu0 %v14030_v12  ;;  %1961 = vmatpush1.bf16.msra.mxu1 %v14027_v11  ;;  %v14103_v11 = vld [vmem:[#allocation2 + $0x470] ss:$112 sps:$4 sm:$0xff]  }
  0x95   :  { %1892 = vmatprep.subr.bf16.mxu0 %v14031_v13  ;;  %1962 = vmatprep.subr.bf16.mxu1 %v14035_v14  ;;  %v14106_v12 = vld [vmem:[#allocation2 + $0x1270] ss:$112 sps:$4 sm:$0xff]   ;;  %v14111_v13 = vld [vmem:[#allocation2 + $0x394] ss:$112 sps:$4 sm:$0xff]  }
  0x96   :  { %v14114_v14 = vld [vmem:[#allocation2 + $0x1194] ss:$112 sps:$4 sm:$0xff]  }
  0x98   :  { %1893 = vmatpush2.bf16.msra.mxu0 %v14036_v16  ;;  %1963 = vmatpush1.bf16.msra.mxu1 %v14033_v15  ;;  %v14109_v15 = vld [vmem:[#allocation2 + $0x390] ss:$112 sps:$4 sm:$0xff]  }
  0x99   :  { %1894 = vmatprep.subr.bf16.mxu0 %v14037_v17  ;;  %1964 = vmatprep.subr.bf16.mxu1 %v14041_v18  ;;  %v14112_v16 = vld [vmem:[#allocation2 + $0x1190] ss:$112 sps:$4 sm:$0xff]   ;;  %v14117_v17 = vld [vmem:[#allocation2 + $0x2b4] ss:$112 sps:$4 sm:$0xff]  }
  0x9a   :  { %v14120_v18 = vld [vmem:[#allocation2 + $0x10b4] ss:$112 sps:$4 sm:$0xff]  }
  0x9c   :  { %1895 = vmatpush2.bf16.msra.mxu0 %v14042_v20  ;;  %1965 = vmatpush1.bf16.msra.mxu1 %v14039_v19  ;;  %v14115_v19 = vld [vmem:[#allocation2 + $0x2b0] ss:$112 sps:$4 sm:$0xff]  }
  0x9d   :  { %1966 = vmatprep.subr.bf16.mxu1 %v14045_v21  ;;  %1993 = vmatprep.subr.bf16.mxu0 %v14048_v22  ;;  %v14118_v20 = vld [vmem:[#allocation2 + $0x10b0] ss:$112 sps:$4 sm:$0xff]   ;;  %v14123_v21 = vld [vmem:[#allocation2 + $0x1d4] ss:$112 sps:$4 sm:$0xff]  }
  0x9e   :  { %v14126_v22 = vld [vmem:[#allocation2 + $0xfd4] ss:$112 sps:$4 sm:$0xff]  }
  0x9f   :  { %1897 = vmatmul.mubr.bf16.vlgmr.msra.gmra.mxu0 %v16031_v23 }
  0xa0   :  { %1967 = vmatpush2.bf16.msra.mxu1 %v14043_v24  ;;  %1994 = vmatpush1.bf16.msra.mxu0 %v14046_v25  ;;  %v14121_v24 = vld [vmem:[#allocation2 + $0x1d0] ss:$112 sps:$4 sm:$0xff]  }
  0xa1   :  { %1968 = vmatprep.subr.bf16.mxu1 %v14051_v26  ;;  %1995 = vmatprep.subr.bf16.mxu0 %v14054_v27  ;;  %v14124_v25 = vld [vmem:[#allocation2 + $0xfd0] ss:$112 sps:$4 sm:$0xff]   ;;  %v14129_v26 = vld [vmem:[#allocation2 + $0xf4] ss:$112 sps:$4 sm:$0xff]  }
  0xa2   :  { %2025 = vmatprep.mubr.bf16.mxu0 %v15925_v9  ;;  %v14132_v27 = vld [vmem:[#allocation2 + $0xef4] ss:$112 sps:$4 sm:$0xff]  }
  0xa4   :  { %1969 = vmatpush2.bf16.msra.mxu1 %v14049_v28  ;;  %1996 = vmatpush1.bf16.msra.mxu0 %v14052_v29  ;;  %v14127_v28 = vld [vmem:[#allocation2 + $0xf0] ss:$112 sps:$4 sm:$0xff]  }
  0xa5   :  { %1970 = vmatprep.subr.bf16.mxu1 %v14057_v30  ;;  %1997 = vmatprep.subr.bf16.mxu0 %v14060_v31  ;;  %v14130_v29 = vld [vmem:[#allocation2 + $0xef0] ss:$112 sps:$4 sm:$0xff]   ;;  %v14135_v30 = vld [vmem:[#allocation2 + $0x14] ss:$112 sps:$4 sm:$0xff]  }
  0xa6   :  { %v14138_v31 = vld [vmem:[#allocation2 + $0xe14] ss:$112 sps:$4 sm:$0xff]  }
  0xa8   :  { %1971 = vmatpush2.bf16.msra.mxu1 %v14055_v32  ;;  %1998 = vmatpush1.bf16.msra.mxu0 %v14058_v33  ;;  %v14133_v32 = vld [vmem:[#allocation2 + $0x10] ss:$112 sps:$4 sm:$0xff]  }
  0xa9   :  { %1972 = vmatprep.subr.bf16.mxu1 %v14063_v34  ;;  %1999 = vmatprep.subr.bf16.mxu0 %v14066_v35  ;;  %v14136_v33 = vld [vmem:[#allocation2 + $0xe10] ss:$112 sps:$4 sm:$0xff]   ;;  %v14141_v34 = vld [vmem:[#allocation2 + $0xd34] ss:$112 sps:$4 sm:$0xff]   ;;  %v14144_v35 = vld [vmem:[#allocation2 + $0x63c] ss:$112 sps:$4 sm:$0xff]  }
  0xac   :  { %1973 = vmatpush2.bf16.msra.mxu1 %v14061_v36  ;;  %2000 = vmatpush1.bf16.msra.mxu0 %v14064_v37  ;;  %v14139_v36 = vld [vmem:[#allocation2 + $0xd30] ss:$112 sps:$4 sm:$0xff]   ;;  %v14142_v37 = vld [vmem:[#allocation2 + $0x638] ss:$112 sps:$4 sm:$0xff]  }
  0xad   :  { %1974 = vmatprep.subr.bf16.mxu1 %v14069_v38  ;;  %2001 = vmatprep.subr.bf16.mxu0 %v14072_v39  ;;  %v14147_v38 = vld [vmem:[#allocation2 + $0xc54] ss:$112 sps:$4 sm:$0xff]   ;;  %v14150_v39 = vld [vmem:[#allocation2 + $0x55c] ss:$112 sps:$4 sm:$0xff]  }
  0xb0   :  { %1975 = vmatpush2.bf16.msra.mxu1 %v14067_v40  ;;  %2002 = vmatpush1.bf16.msra.mxu0 %v14070_v41  ;;  %v14145_v40 = vld [vmem:[#allocation2 + $0xc50] ss:$112 sps:$4 sm:$0xff]   ;;  %v14148_v41 = vld [vmem:[#allocation2 + $0x558] ss:$112 sps:$4 sm:$0xff]  }
  0xb1   :  { %1976 = vmatprep.subr.bf16.mxu1 %v14075_v42  ;;  %2003 = vmatprep.subr.bf16.mxu0 %v14078_v43  ;;  %v14153_v42 = vld [vmem:[#allocation2 + $0xb74] ss:$112 sps:$4 sm:$0xff]   ;;  %v14156_v43 = vld [vmem:[#allocation2 + $0x47c] ss:$112 sps:$4 sm:$0xff]  }
  0xb4   :  { %1977 = vmatpush2.bf16.msra.mxu1 %v14073_v45  ;;  %2004 = vmatpush1.bf16.msra.mxu0 %v14076_v46  ;;  %v14151_v45 = vld [vmem:[#allocation2 + $0xb70] ss:$112 sps:$4 sm:$0xff]   ;;  %v14154_v46 = vld [vmem:[#allocation2 + $0x478] ss:$112 sps:$4 sm:$0xff]  }
  0xb5   :  { %1978 = vmatprep.subr.bf16.mxu1 %v14081_v47  ;;  %2005 = vmatprep.subr.bf16.mxu0 %v14084_v48  ;;  %v14159_v47 = vld [vmem:[#allocation2 + $0xa94] ss:$112 sps:$4 sm:$0xff]   ;;  %v14162_v48 = vld [vmem:[#allocation2 + $0x39c] ss:$112 sps:$4 sm:$0xff]  }
  0xb8   :  { %1979 = vmatpush2.bf16.msra.mxu1 %v14079_v49  ;;  %2006 = vmatpush1.bf16.msra.mxu0 %v14082_v50  ;;  %v14157_v49 = vld [vmem:[#allocation2 + $0xa90] ss:$112 sps:$4 sm:$0xff]   ;;  %v14160_v50 = vld [vmem:[#allocation2 + $0x398] ss:$112 sps:$4 sm:$0xff]  }
  0xb9   :  { %1980 = vmatprep.subr.bf16.mxu1 %v14087_v51  ;;  %2007 = vmatprep.subr.bf16.mxu0 %v14090_v52  ;;  %v14165_v51 = vld [vmem:[#allocation2 + $0x9b4] ss:$112 sps:$4 sm:$0xff]   ;;  %v14168_v52 = vld [vmem:[#allocation2 + $0x2bc] ss:$112 sps:$4 sm:$0xff]  }
  0xbc   :  { %1981 = vmatpush2.bf16.msra.mxu1 %v14085_v53  ;;  %2008 = vmatpush1.bf16.msra.mxu0 %v14088_v54  ;;  %v14163_v53 = vld [vmem:[#allocation2 + $0x9b0] ss:$112 sps:$4 sm:$0xff]   ;;  %v14166_v54 = vld [vmem:[#allocation2 + $0x2b8] ss:$112 sps:$4 sm:$0xff]  }
  0xbd   :  { %2036 = vmatprep.subr.bf16.mxu0 %v14093_v55  ;;  %2079 = vmatprep.subr.bf16.mxu1 %v14096_v56  ;;  %v14171_v55 = vld [vmem:[#allocation2 + $0x8d4] ss:$112 sps:$4 sm:$0xff]   ;;  %v14174_v56 = vld [vmem:[#allocation2 + $0x1dc] ss:$112 sps:$4 sm:$0xff]  }
  0xbf   :  { %1983 = vmatmul.mubr.bf16.vlgmr.msra.gmra.mxu1 %v16031_v23  ;;  %2026 = vmatmul.mubr.bf16.vlgmr.msra.gmra.mxu0 %v16025_v44 }
  0xc0   :  { %2037 = vmatpush1.bf16.msra.mxu0 %v14091_v57  ;;  %2080 = vmatpush1.bf16.msra.mxu1 %v14094_v58  ;;  %v14169_v57 = vld [vmem:[#allocation2 + $0x8d0] ss:$112 sps:$4 sm:$0xff]   ;;  %v14172_v58 = vld [vmem:[#allocation2 + $0x1d8] ss:$112 sps:$4 sm:$0xff]  }
  0xc1   :  { %2038 = vmatprep.subr.bf16.mxu0 %v14099_v59  ;;  %2081 = vmatprep.subr.bf16.mxu1 %v14102_v60  ;;  %v14177_v59 = vld [vmem:[#allocation2 + $0x7f4] ss:$112 sps:$4 sm:$0xff]   ;;  %v14180_v60 = vld [vmem:[#allocation2 + $0xfc] ss:$112 sps:$4 sm:$0xff]  }
  0xc2   :  { %2111 = vmatprep.mubr.bf16.mxu1 %v15925_v9  ;;  %2068 = vmatprep.mubr.bf16.mxu0 %v16019_v8 }
  0xc4   :  { %2039 = vmatpush1.bf16.msra.mxu0 %v14097_v61  ;;  %2082 = vmatpush1.bf16.msra.mxu1 %v14100_v62  ;;  %v14175_v61 = vld [vmem:[#allocation2 + $0x7f0] ss:$112 sps:$4 sm:$0xff]   ;;  %v14178_v62 = vld [vmem:[#allocation2 + $0xf8] ss:$112 sps:$4 sm:$0xff]  }
  0xc5   :  { %2040 = vmatprep.subr.bf16.mxu0 %v14105_v63  ;;  %2083 = vmatprep.subr.bf16.mxu1 %v14108_v10  ;;  %v14183_v63 = vld [vmem:[#allocation2 + $0x714] ss:$112 sps:$4 sm:$0xff]   ;;  %v14186_v10 = vld [vmem:[#allocation2 + $0x1c] ss:$112 sps:$4 sm:$0xff]  }
  0xc8   :  { %2041 = vmatpush1.bf16.msra.mxu0 %v14103_v11  ;;  %2084 = vmatpush1.bf16.msra.mxu1 %v14106_v12  ;;  %v14181_v11 = vld [vmem:[#allocation2 + $0x710] ss:$112 sps:$4 sm:$0xff]   ;;  %v14184_v12 = vld [vmem:[#allocation2 + $0x18] ss:$112 sps:$4 sm:$0xff]  }
  0xc9   :  { %2042 = vmatprep.subr.bf16.mxu0 %v14111_v13  ;;  %2085 = vmatprep.subr.bf16.mxu1 %v14114_v14  ;;  %v14189_v13 = vld [vmem:[#allocation2 + $0xd3c] ss:$112 sps:$4 sm:$0xff]  }
  0xca   :  { %v14192_v14 = vld [vmem:[#allocation2 + $0x143c] ss:$112 sps:$4 sm:$0xff]  }
  0xcc   :  { %2043 = vmatpush1.bf16.msra.mxu0 %v14109_v15  ;;  %2086 = vmatpush1.bf16.msra.mxu1 %v14112_v16  ;;  %v14187_v15 = vld [vmem:[#allocation2 + $0xd38] ss:$112 sps:$4 sm:$0xff]  }
  0xcd   :  { %2044 = vmatprep.subr.bf16.mxu0 %v14117_v17  ;;  %2087 = vmatprep.subr.bf16.mxu1 %v14120_v18  ;;  %v14190_v16 = vld [vmem:[#allocation2 + $0x1438] ss:$112 sps:$4 sm:$0xff]   ;;  %v14195_v17 = vld [vmem:[#allocation2 + $0xc5c] ss:$112 sps:$4 sm:$0xff]  }
  0xce   :  { %v14198_v18 = vld [vmem:[#allocation2 + $0x135c] ss:$112 sps:$4 sm:$0xff]  }
  0xd0   :  { %2045 = vmatpush1.bf16.msra.mxu0 %v14115_v19  ;;  %2088 = vmatpush1.bf16.msra.mxu1 %v14118_v20  ;;  %v14193_v19 = vld [vmem:[#allocation2 + $0xc58] ss:$112 sps:$4 sm:$0xff]  }
  0xd1   :  { %2046 = vmatprep.subr.bf16.mxu0 %v14123_v21  ;;  %2089 = vmatprep.subr.bf16.mxu1 %v14126_v22  ;;  %v14196_v20 = vld [vmem:[#allocation2 + $0x1358] ss:$112 sps:$4 sm:$0xff]   ;;  %v14201_v21 = vld [vmem:[#allocation2 + $0xb7c] ss:$112 sps:$4 sm:$0xff]  }
  0xd2   :  { %v14204_v22 = vld [vmem:[#allocation2 + $0x127c] ss:$112 sps:$4 sm:$0xff]  }
  0xd4   :  { %2047 = vmatpush1.bf16.msra.mxu0 %v14121_v24  ;;  %2090 = vmatpush1.bf16.msra.mxu1 %v14124_v25  ;;  %v14199_v24 = vld [vmem:[#allocation2 + $0xb78] ss:$112 sps:$4 sm:$0xff]  }
  0xd5   :  { %2048 = vmatprep.subr.bf16.mxu0 %v14129_v26  ;;  %2091 = vmatprep.subr.bf16.mxu1 %v14132_v27  ;;  %v14202_v25 = vld [vmem:[#allocation2 + $0x1278] ss:$112 sps:$4 sm:$0xff]   ;;  %v14207_v26 = vld [vmem:[#allocation2 + $0xa9c] ss:$112 sps:$4 sm:$0xff]  }
  0xd6   :  { %v14210_v27 = vld [vmem:[#allocation2 + $0x119c] ss:$112 sps:$4 sm:$0xff]  }
  0xd8   :  { %2049 = vmatpush1.bf16.msra.mxu0 %v14127_v28  ;;  %2092 = vmatpush1.bf16.msra.mxu1 %v14130_v29  ;;  %v14205_v28 = vld [vmem:[#allocation2 + $0xa98] ss:$112 sps:$4 sm:$0xff]  }
  0xd9   :  { %2050 = vmatprep.subr.bf16.mxu0 %v14135_v30  ;;  %2093 = vmatprep.subr.bf16.mxu1 %v14138_v31  ;;  %v14208_v29 = vld [vmem:[#allocation2 + $0x1198] ss:$112 sps:$4 sm:$0xff]   ;;  %v14213_v30 = vld [vmem:[#allocation2 + $0x9bc] ss:$112 sps:$4 sm:$0xff]  }
  0xda   :  { %v14216_v31 = vld [vmem:[#allocation2 + $0x10bc] ss:$112 sps:$4 sm:$0xff]  }
  0xdc   :  { %2051 = vmatpush1.bf16.msra.mxu0 %v14133_v32  ;;  %2094 = vmatpush1.bf16.msra.mxu1 %v14136_v33  ;;  %v14211_v32 = vld [vmem:[#allocation2 + $0x9b8] ss:$112 sps:$4 sm:$0xff]  }
  0xdd   :  { %2052 = vmatprep.subr.bf16.mxu0 %v14141_v34  ;;  %2122 = vmatprep.subr.bf16.mxu1 %v14144_v35  ;;  %v14214_v33 = vld [vmem:[#allocation2 + $0x10b8] ss:$112 sps:$4 sm:$0xff]   ;;  %v14219_v34 = vld [vmem:[#allocation2 + $0x8dc] ss:$112 sps:$4 sm:$0xff]  }
  0xde   :  { %v14222_v35 = vld [vmem:[#allocation2 + $0xfdc] ss:$112 sps:$4 sm:$0xff]  }
  0xdf   :  { %2112 = vmatmul.mubr.bf16.vlgmr.msra.gmra.mxu1 %v16025_v44 }
  0xe0   :  { %2053 = vmatpush2.bf16.msra.mxu0 %v14139_v36  ;;  %2123 = vmatpush1.bf16.msra.mxu1 %v14142_v37  ;;  %v14217_v36 = vld [vmem:[#allocation2 + $0x8d8] ss:$112 sps:$4 sm:$0xff]  }
  0xe1   :  { %2054 = vmatprep.subr.bf16.mxu0 %v14147_v38  ;;  %2124 = vmatprep.subr.bf16.mxu1 %v14150_v39  ;;  %v14220_v37 = vld [vmem:[#allocation2 + $0xfd8] ss:$112 sps:$4 sm:$0xff]   ;;  %v14225_v38 = vld [vmem:[#allocation2 + $0x7fc] ss:$112 sps:$4 sm:$0xff]  }
  0xe2   :  { %2154 = vmatprep.mubr.bf16.mxu1 %v16019_v8  ;;  %v14228_v39 = vld [vmem:[#allocation2 + $0xefc] ss:$112 sps:$4 sm:$0xff]  }
  0xe4   :  { %2055 = vmatpush2.bf16.msra.mxu0 %v14145_v40  ;;  %2125 = vmatpush1.bf16.msra.mxu1 %v14148_v41  ;;  %v14223_v40 = vld [vmem:[#allocation2 + $0x7f8] ss:$112 sps:$4 sm:$0xff]  }
  0xe5   :  { %2056 = vmatprep.subr.bf16.mxu0 %v14153_v42  ;;  %2126 = vmatprep.subr.bf16.mxu1 %v14156_v43  ;;  %v14226_v41 = vld [vmem:[#allocation2 + $0xef8] ss:$112 sps:$4 sm:$0xff]   ;;  %v14231_v42 = vld [vmem:[#allocation2 + $0x71c] ss:$112 sps:$4 sm:$0xff]  }
  0xe6   :  { %v14234_v43 = vld [vmem:[#allocation2 + $0xe1c] ss:$112 sps:$4 sm:$0xff]  }
  0xe8   :  { %2057 = vmatpush2.bf16.msra.mxu0 %v14151_v45  ;;  %2127 = vmatpush1.bf16.msra.mxu1 %v14154_v46  ;;  %v14229_v45 = vld [vmem:[#allocation2 + $0x718] ss:$112 sps:$4 sm:$0xff]  }
  0xe9   :  { %2058 = vmatprep.subr.bf16.mxu0 %v14159_v47  ;;  %2128 = vmatprep.subr.bf16.mxu1 %v14162_v48  ;;  %v14232_v46 = vld [vmem:[#allocation2 + $0xe18] ss:$112 sps:$4 sm:$0xff]   ;;  %v14237_v47 = vld [vmem:[#allocation2 + $0x644] ss:$112 sps:$4 sm:$0xff]  }
  0xea   :  { %v14306_v48 = vld [vmem:[#allocation2 + $0x1444] ss:$112 sps:$4 sm:$0xff]  }
  0xec   :  { %2059 = vmatpush2.bf16.msra.mxu0 %v14157_v49  ;;  %2129 = vmatpush1.bf16.msra.mxu1 %v14160_v50  ;;  %v14235_v49 = vld [vmem:[#allocation2 + $0x640] ss:$112 sps:$4 sm:$0xff]   ;;  %v14240_v50 = vld [vmem:[#allocation2 + $0x564] ss:$112 sps:$4 sm:$0xff]  }
  0xed   :  { %2060 = vmatprep.subr.bf16.mxu0 %v14165_v51  ;;  %2130 = vmatprep.subr.bf16.mxu1 %v14168_v52  ;;  %v14304_v51 = vld [vmem:[#allocation2 + $0x1440] ss:$112 sps:$4 sm:$0xff]   ;;  %v14312_v52 = vld [vmem:[#allocation2 + $0x1364] ss:$112 sps:$4 sm:$0xff]  }
  0xf0   :  { %2061 = vmatpush2.bf16.msra.mxu0 %v14163_v53  ;;  %2131 = vmatpush1.bf16.msra.mxu1 %v14166_v54  ;;  %v14238_v53 = vld [vmem:[#allocation2 + $0x560] ss:$112 sps:$4 sm:$0xff]   ;;  %v14243_v54 = vld [vmem:[#allocation2 + $0x484] ss:$112 sps:$4 sm:$0xff]  }
  0xf1   :  { %2062 = vmatprep.subr.bf16.mxu0 %v14171_v55  ;;  %2132 = vmatprep.subr.bf16.mxu1 %v14174_v56  ;;  %v14310_v55 = vld [vmem:[#allocation2 + $0x1360] ss:$112 sps:$4 sm:$0xff]   ;;  %v14315_v56 = vld [vmem:[#allocation2 + $0x1284] ss:$112 sps:$4 sm:$0xff]  }
  0xf4   :  { %2063 = vmatpush2.bf16.msra.mxu0 %v14169_v57  ;;  %2133 = vmatpush1.bf16.msra.mxu1 %v14172_v58  ;;  %v14241_v57 = vld [vmem:[#allocation2 + $0x480] ss:$112 sps:$4 sm:$0xff]   ;;  %v14246_v58 = vld [vmem:[#allocation2 + $0x3a4] ss:$112 sps:$4 sm:$0xff]  }
  0xf5   :  { %2064 = vmatprep.subr.bf16.mxu0 %v14177_v59  ;;  %2134 = vmatprep.subr.bf16.mxu1 %v14180_v60  ;;  %v14313_v59 = vld [vmem:[#allocation2 + $0x1280] ss:$112 sps:$4 sm:$0xff]   ;;  %v14318_v60 = vld [vmem:[#allocation2 + $0x11a4] ss:$112 sps:$4 sm:$0xff]  }
  0xf8   :  { %2065 = vmatpush2.bf16.msra.mxu0 %v14175_v61  ;;  %2135 = vmatpush1.bf16.msra.mxu1 %v14178_v62  ;;  %v14244_v61 = vld [vmem:[#allocation2 + $0x3a0] ss:$112 sps:$4 sm:$0xff]   ;;  %v14249_v62 = vld [vmem:[#allocation2 + $0x2c4] ss:$112 sps:$4 sm:$0xff]  }
  0xf9   :  { %2066 = vmatprep.subr.bf16.mxu0 %v14183_v63  ;;  %2136 = vmatprep.subr.bf16.mxu1 %v14186_v10  ;;  %v14316_v63 = vld [vmem:[#allocation2 + $0x11a0] ss:$112 sps:$4 sm:$0xff]   ;;  %v14321_v10 = vld [vmem:[#allocation2 + $0x10c4] ss:$112 sps:$4 sm:$0xff]  }
  0xfc   :  { %2067 = vmatpush2.bf16.msra.mxu0 %v14181_v11  ;;  %2137 = vmatpush1.bf16.msra.mxu1 %v14184_v12  ;;  %v14247_v11 = vld [vmem:[#allocation2 + $0x2c0] ss:$112 sps:$4 sm:$0xff]   ;;  %v14252_v12 = vld [vmem:[#allocation2 + $0x1e4] ss:$112 sps:$4 sm:$0xff]  }
  0xfd   :  { %2138 = vmatprep.subr.bf16.mxu1 %v14189_v13  ;;  %2165 = vmatprep.subr.bf16.mxu0 %v14192_v14  ;;  %v14319_v13 = vld [vmem:[#allocation2 + $0x10c0] ss:$112 sps:$4 sm:$0xff]   ;;  %v14324_v14 = vld [vmem:[#allocation2 + $0xfe4] ss:$112 sps:$4 sm:$0xff]  }
  0xff   :  { %2069 = vmatmul.mubr.bf16.vlgmr.msra.gmra.mxu0 %v16031_v23 }
 0x100   :  { %2139 = vmatpush2.bf16.msra.mxu1 %v14187_v15  ;;  %2166 = vmatpush1.bf16.msra.mxu0 %v14190_v16  ;;  %v14250_v15 = vld [vmem:[#allocation2 + $0x1e0] ss:$112 sps:$4 sm:$0xff]   ;;  %v14255_v16 = vld [vmem:[#allocation2 + $0x104] ss:$112 sps:$4 sm:$0xff]  }
 0x101   :  { %2140 = vmatprep.subr.bf16.mxu1 %v14195_v17  ;;  %2167 = vmatprep.subr.bf16.mxu0 %v14198_v18  ;;  %v14322_v17 = vld [vmem:[#allocation2 + $0xfe0] ss:$112 sps:$4 sm:$0xff]   ;;  %v14327_v18 = vld [vmem:[#allocation2 + $0xf04] ss:$112 sps:$4 sm:$0xff]  }
 0x102   :  { %2197 = vmatprep.mubr.bf16.mxu0 %v15925_v9 }
 0x104   :  { %2141 = vmatpush2.bf16.msra.mxu1 %v14193_v19  ;;  %2168 = vmatpush1.bf16.msra.mxu0 %v14196_v20  ;;  %v14253_v19 = vld [vmem:[#allocation2 + $0x100] ss:$112 sps:$4 sm:$0xff]   ;;  %v14258_v20 = vld [vmem:[#allocation2 + $0x24] ss:$112 sps:$4 sm:$0xff]  }
 0x105   :  { %2142 = vmatprep.subr.bf16.mxu1 %v14201_v21  ;;  %2169 = vmatprep.subr.bf16.mxu0 %v14204_v22  ;;  %v14325_v21 = vld [vmem:[#allocation2 + $0xf00] ss:$112 sps:$4 sm:$0xff]   ;;  %v14330_v22 = vld [vmem:[#allocation2 + $0xe24] ss:$112 sps:$4 sm:$0xff]  }
 0x108   :  { %2143 = vmatpush2.bf16.msra.mxu1 %v14199_v24  ;;  %2170 = vmatpush1.bf16.msra.mxu0 %v14202_v25  ;;  %v14256_v24 = vld [vmem:[#allocation2 + $0x20] ss:$112 sps:$4 sm:$0xff]   ;;  %v14261_v25 = vld [vmem:[#allocation2 + $0xd44] ss:$112 sps:$4 sm:$0xff]  }
 0x109   :  { %2144 = vmatprep.subr.bf16.mxu1 %v14207_v26  ;;  %2171 = vmatprep.subr.bf16.mxu0 %v14210_v27  ;;  %v14328_v26 = vld [vmem:[#allocation2 + $0xe20] ss:$112 sps:$4 sm:$0xff]   ;;  %v14333_v27 = vld [vmem:[#allocation2 + $0x64c] ss:$112 sps:$4 sm:$0xff]  }
 0x10c   :  { %2145 = vmatpush2.bf16.msra.mxu1 %v14205_v28  ;;  %2172 = vmatpush1.bf16.msra.mxu0 %v14208_v29  ;;  %v14259_v28 = vld [vmem:[#allocation2 + $0xd40] ss:$112 sps:$4 sm:$0xff]   ;;  %v14264_v29 = vld [vmem:[#allocation2 + $0xc64] ss:$112 sps:$4 sm:$0xff]  }
 0x10d   :  { %2146 = vmatprep.subr.bf16.mxu1 %v14213_v30  ;;  %2173 = vmatprep.subr.bf16.mxu0 %v14216_v31  ;;  %v14331_v30 = vld [vmem:[#allocation2 + $0x648] ss:$112 sps:$4 sm:$0xff]   ;;  %v14336_v31 = vld [vmem:[#allocation2 + $0x56c] ss:$112 sps:$4 sm:$0xff]  }
 0x110   :  { %2147 = vmatpush2.bf16.msra.mxu1 %v14211_v32  ;;  %2174 = vmatpush1.bf16.msra.mxu0 %v14214_v33  ;;  %v14262_v32 = vld [vmem:[#allocation2 + $0xc60] ss:$112 sps:$4 sm:$0xff]   ;;  %v14267_v33 = vld [vmem:[#allocation2 + $0xb84] ss:$112 sps:$4 sm:$0xff]  }
 0x111   :  { %2148 = vmatprep.subr.bf16.mxu1 %v14219_v34  ;;  %2175 = vmatprep.subr.bf16.mxu0 %v14222_v35  ;;  %v14334_v34 = vld [vmem:[#allocation2 + $0x568] ss:$112 sps:$4 sm:$0xff]   ;;  %v14339_v35 = vld [vmem:[#allocation2 + $0x48c] ss:$112 sps:$4 sm:$0xff]  }
 0x114   :  { %2149 = vmatpush2.bf16.msra.mxu1 %v14217_v36  ;;  %2176 = vmatpush1.bf16.msra.mxu0 %v14220_v37  ;;  %v14265_v36 = vld [vmem:[#allocation2 + $0xb80] ss:$112 sps:$4 sm:$0xff]   ;;  %v14270_v37 = vld [vmem:[#allocation2 + $0xaa4] ss:$112 sps:$4 sm:$0xff]  }
 0x115   :  { %2150 = vmatprep.subr.bf16.mxu1 %v14225_v38  ;;  %2177 = vmatprep.subr.bf16.mxu0 %v14228_v39  ;;  %v14337_v38 = vld [vmem:[#allocation2 + $0x488] ss:$112 sps:$4 sm:$0xff]   ;;  %v14342_v39 = vld [vmem:[#allocation2 + $0x3ac] ss:$112 sps:$4 sm:$0xff]  }
 0x118   :  { %2151 = vmatpush2.bf16.msra.mxu1 %v14223_v40  ;;  %2178 = vmatpush1.bf16.msra.mxu0 %v14226_v41  ;;  %v14268_v40 = vld [vmem:[#allocation2 + $0xaa0] ss:$112 sps:$4 sm:$0xff]   ;;  %v14273_v41 = vld [vmem:[#allocation2 + $0x9c4] ss:$112 sps:$4 sm:$0xff]  }
 0x119   :  { %2152 = vmatprep.subr.bf16.mxu1 %v14231_v42  ;;  %2179 = vmatprep.subr.bf16.mxu0 %v14234_v43  ;;  %v14340_v42 = vld [vmem:[#allocation2 + $0x3a8] ss:$112 sps:$4 sm:$0xff]   ;;  %v14271_v43 = vld [vmem:[#allocation2 + $0x9c0] ss:$112 sps:$4 sm:$0xff]  }
 0x11c   :  { %2153 = vmatpush2.bf16.msra.mxu1 %v14229_v45  ;;  %2180 = vmatpush1.bf16.msra.mxu0 %v14232_v46  ;;  %v14345_v45 = vld [vmem:[#allocation2 + $0x2cc] ss:$112 sps:$4 sm:$0xff]   ;;  %v14276_v46 = vld [vmem:[#allocation2 + $0x8e4] ss:$112 sps:$4 sm:$0xff]  }
 0x11d   :  { %2208 = vmatprep.subr.bf16.mxu0 %v14237_v47  ;;  %2251 = vmatprep.subr.bf16.mxu1 %v14306_v48  ;;  %v14343_v47 = vld [vmem:[#allocation2 + $0x2c8] ss:$112 sps:$4 sm:$0xff]   ;;  %v14274_v48 = vld [vmem:[#allocation2 + $0x8e0] ss:$112 sps:$4 sm:$0xff]  }
 0x11f   :  { %2155 = vmatmul.mubr.bf16.vlgmr.msra.gmra.mxu1 %v16031_v23  ;;  %2198 = vmatmul.mubr.bf16.vlgmr.msra.gmra.mxu0 %v16025_v44 }
 0x120   :  { %2209 = vmatpush1.bf16.msra.mxu0 %v14235_v49  ;;  %2240 = vmatprep.mubr.bf16.mxu0 %v16019_v8  ;;  %v14279_v49 = vld [vmem:[#allocation2 + $0x804] ss:$112 sps:$4 sm:$0xff]  }
 0x121   :  { %2210 = vmatprep.subr.bf16.mxu0 %v14240_v50  ;;  %2252 = vmatpush1.bf16.msra.mxu1 %v14304_v51  ;;  %v14346_v50 = vld [vmem:[#allocation2 + $0x1e8] ss:$112 sps:$4 sm:$0xff]   ;;  %v14351_v51 = vld [vmem:[#allocation2 + $0x10c] ss:$112 sps:$4 sm:$0xff]  }
 0x122   :  { %2253 = vmatprep.subr.bf16.mxu1 %v14312_v52  ;;  %2283 = vmatprep.mubr.bf16.mxu1 %v15925_v9  ;;  %v14277_v52 = vld [vmem:[#allocation2 + $0x800] ss:$112 sps:$4 sm:$0xff]  }
 0x124   :  { %2211 = vmatpush1.bf16.msra.mxu0 %v14238_v53  ;;  %v14282_v53 = vld [vmem:[#allocation2 + $0x724] ss:$112 sps:$4 sm:$0xff]  }
 0x125   :  { %2212 = vmatprep.subr.bf16.mxu0 %v14243_v54  ;;  %2254 = vmatpush1.bf16.msra.mxu1 %v14310_v55  ;;  %v14349_v54 = vld [vmem:[#allocation2 + $0x108] ss:$112 sps:$4 sm:$0xff]   ;;  %v14354_v55 = vld [vmem:[#allocation2 + $0x2c] ss:$112 sps:$4 sm:$0xff]  }
 0x126   :  { %2255 = vmatprep.subr.bf16.mxu1 %v14315_v56  ;;  %v14280_v56 = vld [vmem:[#allocation2 + $0x720] ss:$112 sps:$4 sm:$0xff]  }
 0x128   :  { %2213 = vmatpush1.bf16.msra.mxu0 %v14241_v57  ;;  %v14285_v57 = vld [vmem:[#allocation2 + $0x144c] ss:$112 sps:$4 sm:$0xff]  }
 0x129   :  { %2214 = vmatprep.subr.bf16.mxu0 %v14246_v58  ;;  %2256 = vmatpush1.bf16.msra.mxu1 %v14313_v59  ;;  %v14352_v58 = vld [vmem:[#allocation2 + $0x28] ss:$112 sps:$4 sm:$0xff]   ;;  %v14357_v59 = vld [vmem:[#allocation2 + $0xd4c] ss:$112 sps:$4 sm:$0xff]  }
 0x12a   :  { %2257 = vmatprep.subr.bf16.mxu1 %v14318_v60  ;;  %v14283_v60 = vld [vmem:[#allocation2 + $0x1448] ss:$112 sps:$4 sm:$0xff]  }
 0x12c   :  { %2215 = vmatpush1.bf16.msra.mxu0 %v14244_v61 }
 0x12d   :  { %2216 = vmatprep.subr.bf16.mxu0 %v14249_v62  ;;  %2258 = vmatpush1.bf16.msra.mxu1 %v14316_v63  ;;  %v14288_v62 = vld [vmem:[#allocation2 + $0x136c] ss:$112 sps:$4 sm:$0xff]   ;;  %v14355_v63 = vld [vmem:[#allocation2 + $0xd48] ss:$112 sps:$4 sm:$0xff]  }
 0x12e   :  { %2259 = vmatprep.subr.bf16.mxu1 %v14321_v10  ;;  %v14360_v10 = vld [vmem:[#allocation2 + $0xc6c] ss:$112 sps:$4 sm:$0xff]  }
 0x130   :  { %2217 = vmatpush1.bf16.msra.mxu0 %v14247_v11  ;;  %v14286_v11 = vld [vmem:[#allocation2 + $0x1368] ss:$112 sps:$4 sm:$0xff]  }
 0x131   :  { %2218 = vmatprep.subr.bf16.mxu0 %v14252_v12  ;;  %2260 = vmatpush1.bf16.msra.mxu1 %v14319_v13 }
 0x132   :  { %2261 = vmatprep.subr.bf16.mxu1 %v14324_v14  ;;  %v14291_v14 = vld [vmem:[#allocation2 + $0x128c] ss:$112 sps:$4 sm:$0xff]  }
 0x134   :  { %2219 = vmatpush1.bf16.msra.mxu0 %v14250_v15  ;;  %v14358_v15 = vld [vmem:[#allocation2 + $0xc68] ss:$112 sps:$4 sm:$0xff]  }
 0x135   :  { %2220 = vmatprep.subr.bf16.mxu0 %v14255_v16  ;;  %2262 = vmatpush1.bf16.msra.mxu1 %v14322_v17  ;;  %v14363_v17 = vld [vmem:[#allocation2 + $0xb8c] ss:$112 sps:$4 sm:$0xff]  }
 0x136   :  { %2263 = vmatprep.subr.bf16.mxu1 %v14327_v18 }
 0x138   :  { %2221 = vmatpush1.bf16.msra.mxu0 %v14253_v19  ;;  %v14289_v19 = vld [vmem:[#allocation2 + $0x1288] ss:$112 sps:$4 sm:$0xff]  }
 0x139   :  { %2222 = vmatprep.subr.bf16.mxu0 %v14258_v20  ;;  %2264 = vmatpush1.bf16.msra.mxu1 %v14325_v21 }
 0x13a   :  { %2265 = vmatprep.subr.bf16.mxu1 %v14330_v22  ;;  %v14294_v22 = vld [vmem:[#allocation2 + $0x11ac] ss:$112 sps:$4 sm:$0xff]  }
 0x13c   :  { %2223 = vmatpush1.bf16.msra.mxu0 %v14256_v24  ;;  %v14361_v24 = vld [vmem:[#allocation2 + $0xb88] ss:$112 sps:$4 sm:$0xff]  }
 0x13d   :  { %2224 = vmatprep.subr.bf16.mxu0 %v14261_v25  ;;  %2266 = vmatpush1.bf16.msra.mxu1 %v14328_v26  ;;  %v14366_v26 = vld [vmem:[#allocation2 + $0xaac] ss:$112 sps:$4 sm:$0xff]  }
 0x13e   :  { %2294 = vmatprep.subr.bf16.mxu1 %v14333_v27  ;;  %v14292_v27 = vld [vmem:[#allocation2 + $0x11a8] ss:$112 sps:$4 sm:$0xff]  }
 0x13f   :  { %v1941_v61 = vpop.f32.mrf.mxu1 }
 0x140   :  { %2225 = vmatpush2.bf16.msra.mxu0 %v14259_v28  ;;  %2284 = vmatmul.mubr.bf16.vlgmr.msra.gmra.mxu1 %v16025_v44  ;;  %v14297_v28 = vld [vmem:[#allocation2 + $0x10cc] ss:$112 sps:$4 sm:$0xff]  }
 0x141   :  { %2226 = vmatprep.subr.bf16.mxu0 %v14264_v29  ;;  %2295 = vmatpush1.bf16.msra.mxu1 %v14331_v30  ;;  %v16049_v12 = vpop.f32.mrf.mxu1  ;;  %v14364_v29 = vld [vmem:[#allocation2 + $0xaa8] ss:$112 sps:$4 sm:$0xff]   ;;  %v14369_v30 = vld [vmem:[#allocation2 + $0x9cc] ss:$112 sps:$4 sm:$0xff]  }
 0x142   :  { %2296 = vmatprep.subr.bf16.mxu1 %v14336_v31  ;;  %2326 = vmatprep.mubr.bf16.mxu1 %v16019_v8  ;;  %v14348_v8 = vld [vmem:[#allocation2 + $0x1ec] ss:$112 sps:$4 sm:$0xff]   ;;  %v14295_v31 = vld [vmem:[#allocation2 + $0x10c8] ss:$112 sps:$4 sm:$0xff]  }
 0x143   :  { %v1945_v20 = vpop.f32.mrf.mxu1 }
 0x144   :  { %2227 = vmatpush2.bf16.msra.mxu0 %v14262_v32  ;;  %v14300_v32 = vld [vmem:[#allocation2 + $0xfec] ss:$112 sps:$4 sm:$0xff]  }
 0x145   :  { %2228 = vmatprep.subr.bf16.mxu0 %v14267_v33  ;;  %2297 = vmatpush1.bf16.msra.mxu1 %v14334_v34  ;;  %v14367_v33 = vld [vmem:[#allocation2 + $0x9c8] ss:$112 sps:$4 sm:$0xff]   ;;  %v14372_v34 = vld [vmem:[#allocation2 + $0x8ec] ss:$112 sps:$4 sm:$0xff]  }
 0x146   :  { %2298 = vmatprep.subr.bf16.mxu1 %v14339_v35  ;;  %v14298_v35 = vld [vmem:[#allocation2 + $0xfe8] ss:$112 sps:$4 sm:$0xff]  }
 0x148   :  { %2229 = vmatpush2.bf16.msra.mxu0 %v14265_v36  ;;  %v14303_v36 = vld [vmem:[#allocation2 + $0xf0c] ss:$112 sps:$4 sm:$0xff]  }
 0x149   :  { %2230 = vmatprep.subr.bf16.mxu0 %v14270_v37  ;;  %2299 = vmatpush1.bf16.msra.mxu1 %v14337_v38  ;;  %v14370_v37 = vld [vmem:[#allocation2 + $0x8e8] ss:$112 sps:$4 sm:$0xff]   ;;  %v14375_v38 = vld [vmem:[#allocation2 + $0x80c] ss:$112 sps:$4 sm:$0xff]  }
 0x14a   :  { %2300 = vmatprep.subr.bf16.mxu1 %v14342_v39  ;;  %v14301_v39 = vld [vmem:[#allocation2 + $0xf08] ss:$112 sps:$4 sm:$0xff]  }
 0x14c   :  { %2231 = vmatpush2.bf16.msra.mxu0 %v14268_v40  ;;  %v14309_v40 = vld [vmem:[#allocation2 + $0xe2c] ss:$112 sps:$4 sm:$0xff]  }
 0x14d   :  { %2232 = vmatprep.subr.bf16.mxu0 %v14273_v41  ;;  %2301 = vmatpush1.bf16.msra.mxu1 %v14340_v42  ;;  %v14373_v41 = vld [vmem:[#allocation2 + $0x808] ss:$112 sps:$4 sm:$0xff]   ;;  %v14378_v42 = vld [vmem:[#allocation2 + $0x72c] ss:$112 sps:$4 sm:$0xff]  }
 0x14e   :  { %2302 = vmatprep.subr.bf16.mxu1 %v14345_v45  ;;  %v14376_v45 = vld [vmem:[#allocation2 + $0x728] ss:$112 sps:$4 sm:$0xff]  }
 0x150   :  { %2233 = vmatpush2.bf16.msra.mxu0 %v14271_v43  ;;  %v14307_v43 = vld [vmem:[#allocation2 + $0xe28] ss:$112 sps:$4 sm:$0xff]  }
 0x151   :  { %2234 = vmatprep.subr.bf16.mxu0 %v14276_v46  ;;  %2303 = vmatpush1.bf16.msra.mxu1 %v14343_v47  ;;  %v16057_v46 = vld [vmem:[#allocation13 + $0x10] sm:$0xff]  ;;  %v1947_v47 = vpop.f32.mrf.mxu1 }
 0x152   :  { %2304 = vmatprep.subr.bf16.mxu1 %v14348_v8  ;;  %v16059_v8 = vld [vmem:[#allocation13] sm:$0xff] }
 0x154   :  { %2235 = vmatpush2.bf16.msra.mxu0 %v14274_v48 }
 0x155   :  { %2236 = vmatprep.subr.bf16.mxu0 %v14279_v49  ;;  %2305 = vmatpush1.bf16.msra.mxu1 %v14346_v50  ;;  %v16061_v49 = vld [vmem:[#allocation13 + $0x8] sm:$0xff] }
 0x156   :  { %2306 = vmatprep.subr.bf16.mxu1 %v14351_v51 }
 0x158   :  { %2237 = vmatpush2.bf16.msra.mxu0 %v14277_v52 }
 0x159   :  { %2238 = vmatprep.subr.bf16.mxu0 %v14282_v53  ;;  %2307 = vmatpush1.bf16.msra.mxu1 %v14349_v54 }
 0x15a   :  { %2308 = vmatprep.subr.bf16.mxu1 %v14354_v55  ;;  %v16068_v55 = vld [vmem:[#allocation13 + $0x18] sm:$0xff] }
 0x15c   :  { %2239 = vmatpush2.bf16.msra.mxu0 %v14280_v56 }
 0x15d   :  { %2337 = vmatprep.subr.bf16.mxu0 %v14285_v57  ;;  %2309 = vmatpush1.bf16.msra.mxu1 %v14352_v58 }
 0x15e   :  { %2310 = vmatprep.subr.bf16.mxu1 %v14357_v59  ;;  %v16073_v59 = vld [vmem:[#allocation13 + $0x20] sm:$0xff] }
 0x15f   :  { %v1898_v13 = vpop.f32.mrf.mxu0  ;;  %2241 = vmatmul.mubr.bf16.vlgmr.msra.gmra.mxu0 %v16031_v23 }
 0x160   :  { %v16052_v16 = vadd.f32 %v1941_v61, %v1898_v13  ;;  %2338 = vmatpush1.bf16.msra.mxu0 %v14283_v60  ;;  %2369 = vmatprep.mubr.bf16.mxu0 %v15925_v9  ;;  %v16075_v60 = vld [vmem:[#allocation13 + $0x30] sm:$0xff] }
 0x161   :  { %v1900_v18 = vpop.f32.mrf.mxu0  ;;  %2339 = vmatprep.subr.bf16.mxu0 %v14288_v62  ;;  %2311 = vmatpush2.bf16.msra.mxu1 %v14355_v63  ;;  %v16080_v63 = vld [vmem:[#allocation13 + $0x28] sm:$0xff] }
 0x162   :  { %2312 = vmatprep.subr.bf16.mxu1 %v14360_v10  ;;  %v1944_v50 = vadd.f32 %v16049_v12, %v1900_v18  ;;  %v2388_v54 = vmul.f32 %v16057_v46, %v16052_v16  ;;  %v2400_v58 = vmul.f32 %v16059_v8, %v16052_v16  ;;  %v16082_v10 = vld [vmem:[#allocation13 + $0x38] sm:$0xff] }
 0x163   :  { %v1902_v21 = vpop.f32.mrf.mxu0 }
 0x164   :  { %v16055_v25 = vadd.f32 %v1945_v20, %v1902_v21  ;;  %2340 = vmatpush1.bf16.msra.mxu0 %v14286_v11  ;;  %v2401_v62 = vmul.f32 %v16061_v49, %v1944_v50  ;;  %v2389_v20 = vmul.f32 %v16068_v55, %v1944_v50 }
 0x165   :  { %2341 = vmatprep.subr.bf16.mxu0 %v14291_v14  ;;  %2313 = vmatpush2.bf16.msra.mxu1 %v14358_v15  ;;  %v1904_v48 = vpop.f32.mrf.mxu0 }
 0x166   :  { %2314 = vmatprep.subr.bf16.mxu1 %v14363_v17  ;;  %v1948_v13 = vadd.f32 %v1947_v47, %v1904_v48 }
 0x168   :  { %2342 = vmatpush1.bf16.msra.mxu0 %v14289_v19 }
 0x169   :  { %2343 = vmatprep.subr.bf16.mxu0 %v14294_v22  ;;  %2315 = vmatpush2.bf16.msra.mxu1 %v14361_v24 }
 0x16a   :  { %2316 = vmatprep.subr.bf16.mxu1 %v14366_v26  ;;  %v2390_v26 = vmul.f32 %v16075_v60, %v16055_v25 }
 0x16c   :  { %2344 = vmatpush1.bf16.msra.mxu0 %v14292_v27  ;;  %v2402_v27 = vmul.f32 %v16073_v59, %v16055_v25 }
 0x16d   :  { %2345 = vmatprep.subr.bf16.mxu0 %v14297_v28  ;;  %2317 = vmatpush2.bf16.msra.mxu1 %v14364_v29 }
 0x16e   :  { %2318 = vmatprep.subr.bf16.mxu1 %v14369_v30  ;;  %v2391_v30 = vmul.f32 %v16082_v10, %v1948_v13 }
 0x170   :  { %2346 = vmatpush1.bf16.msra.mxu0 %v14295_v31  ;;  %v2403_v31 = vmul.f32 %v16080_v63, %v1948_v13 }
 0x171   :  { %2347 = vmatprep.subr.bf16.mxu0 %v14300_v32  ;;  %2319 = vmatpush2.bf16.msra.mxu1 %v14367_v33 }
 0x172   :  { %2320 = vmatprep.subr.bf16.mxu1 %v14372_v34 }
 0x174   :  { %2348 = vmatpush1.bf16.msra.mxu0 %v14298_v35 }
 0x175   :  { %2349 = vmatprep.subr.bf16.mxu0 %v14303_v36  ;;  %2321 = vmatpush2.bf16.msra.mxu1 %v14370_v37 }
 0x176   :  { %2322 = vmatprep.subr.bf16.mxu1 %v14375_v38 }
 0x178   :  { %2350 = vmatpush1.bf16.msra.mxu0 %v14301_v39 }
 0x179   :  { %2351 = vmatprep.subr.bf16.mxu0 %v14309_v40  ;;  %2323 = vmatpush2.bf16.msra.mxu1 %v14373_v41 }
 0x17a   :  { %2324 = vmatprep.subr.bf16.mxu1 %v14378_v42 }
 0x17c   :  { %2352 = vmatpush1.bf16.msra.mxu0 %v14307_v43 }
 0x17d   :  { %2325 = vmatpush2.bf16.msra.mxu1 %v14376_v45 }
 0x17f   :  { %v1984_v51 = vpop.f32.mrf.mxu1  ;;  %v2027_v52 = vpop.f32.mrf.mxu0  ;;  %2370 = vmatmul.mubr.bf16.vlgmr.msra.gmra.mxu0 %v16025_v44 }
 0x180   :  { %v2028_v53 = vadd.f32 %v2027_v52, %v1984_v51  ;;  %2327 = vmatmul.mubr.bf16.vlgmr.msra.gmra.mxu1 %v16031_v23 }
 0x181   :  { %v1986_v56 = vpop.f32.mrf.mxu1  ;;  %v2029_v57 = vpop.f32.mrf.mxu0  ;;  %2542 = vmatprep.mubr.bf16.mxu1 %v15925_v9 }
 0x182   :  { %v2392_v44 = vmul.f32 %v16059_v8, %v2028_v53  ;;  %v2404_v23 = vmul.f32 %v16057_v46, %v2028_v53  ;;  %v2030_v61 = vadd.f32 %v2029_v57, %v1986_v56 }
 0x183   :  { %v1988_v11 = vpop.f32.mrf.mxu1  ;;  %v2031_v12 = vpop.f32.mrf.mxu0 }
 0x184   :  { %v2396_v14 = vsub.f32 %v2388_v54, %v2392_v44  ;;  %v16084_v15 = vadd.f32 %v2404_v23, %v2400_v58  ;;  %v2405_v16 = vmul.f32 %v16068_v55, %v2030_v61  ;;  %v2032_v17 = vadd.f32 %v2031_v12, %v1988_v11 }
 0x185   :  { %v1990_v18 = vpop.f32.mrf.mxu1  ;;  %v2033_v19 = vpop.f32.mrf.mxu0  ;;  %v2393_v21 = vmul.f32 %v16061_v49, %v2030_v61 }
 0x186   :  { %v16089_v22 = vadd.f32 %v2405_v16, %v2401_v62  ;;  %v2034_v24 = vadd.f32 %v2033_v19, %v1990_v18  ;;  %v2394_v28 = vmul.f32 %v16073_v59, %v2032_v17  ;;  %v2406_v29 = vmul.f32 %v16075_v60, %v2032_v17 }
 0x187   :  { %v2397_v36 = vsub.f32 %v2389_v20, %v2393_v21 }
 0x188   :  { %v2395_v32 = vmul.f32 %v16080_v63, %v2034_v24  ;;  %v2407_v33 = vmul.f32 %v16082_v10, %v2034_v24  ;;  %v2398_v34 = vsub.f32 %v2390_v26, %v2394_v28  ;;  %v16101_v35 = vadd.f32 %v2406_v29, %v2402_v27 }
 0x18a   :  { %v2399_v37 = vsub.f32 %v2391_v30, %v2395_v32  ;;  %v16103_v38 = vadd.f32 %v2407_v33, %v2403_v31  ;;  %v2436_v25 = vpack.c.bf16 %v2398_v34, %v2396_v14  ;;  %v2619_v39 = vpack.c.bf16 %v16101_v35, %v16084_v15 }
 0x18c   :  { %v2437_v40 = vpack.c.bf16 %v2399_v37, %v2397_v36  ;;  %v2620_v41 = vpack.c.bf16 %v16103_v38, %v16089_v22 }
 0x18e   :  { %2474 = vmatprep.mubr.bf16.mxu0 %v2437_v40 }
 0x19f   :  { %v2113_v42 = vpop.f32.mrf.mxu1 }
 0x1a1   :  { %v2115_v45 = vpop.f32.mrf.mxu1 }
 0x1a3   :  { %v2117_v48 = vpop.f32.mrf.mxu1 }
 0x1a5   :  { %v2119_v51 = vpop.f32.mrf.mxu1 }
 0x1bf   :  { %v2070_v43 = vpop.f32.mrf.mxu0 }
 0x1c0   :  { %v2114_v13 = vadd.f32 %v2113_v42, %v2070_v43 }
 0x1c1   :  { %v2072_v47 = vpop.f32.mrf.mxu0 }
 0x1c2   :  { %v2116_v58 = vadd.f32 %v2115_v45, %v2072_v47  ;;  %v2412_v30 = vmul.f32 %v16057_v46, %v2114_v13  ;;  %v2424_v43 = vmul.f32 %v16059_v8, %v2114_v13 }
 0x1c3   :  { %v2074_v50 = vpop.f32.mrf.mxu0 }
 0x1c4   :  { %v2118_v23 = vadd.f32 %v2117_v48, %v2074_v50  ;;  %v2413_v17 = vmul.f32 %v16068_v55, %v2116_v58  ;;  %v2425_v32 = vmul.f32 %v16061_v49, %v2116_v58 }
 0x1c5   :  { %v2076_v52 = vpop.f32.mrf.mxu0 }
 0x1c6   :  { %v2120_v61 = vadd.f32 %v2119_v51, %v2076_v52  ;;  %v2414_v20 = vmul.f32 %v16075_v60, %v2118_v23 }
 0x1c8   :  { %v2415_v21 = vmul.f32 %v16082_v10, %v2120_v61  ;;  %v2427_v26 = vmul.f32 %v16080_v63, %v2120_v61 }
 0x1df   :  { %v2156_v53 = vpop.f32.mrf.mxu1  ;;  %v2199_v54 = vpop.f32.mrf.mxu0 }
 0x1e0   :  { %v2200_v62 = vadd.f32 %v2199_v54, %v2156_v53 }
 0x1e1   :  { %v2158_v56 = vpop.f32.mrf.mxu1  ;;  %v2201_v57 = vpop.f32.mrf.mxu0 }
 0x1e2   :  { %v2202_v44 = vadd.f32 %v2201_v57, %v2158_v56  ;;  %v2416_v22 = vmul.f32 %v16059_v8, %v2200_v62 }
 0x1e3   :  { %v2160_v11 = vpop.f32.mrf.mxu1  ;;  %v2203_v12 = vpop.f32.mrf.mxu0 }
 0x1e4   :  { %v2204_v14 = vadd.f32 %v2203_v12, %v2160_v11  ;;  %v2417_v18 = vmul.f32 %v16061_v49, %v2202_v44  ;;  %v2429_v27 = vmul.f32 %v16068_v55, %v2202_v44  ;;  %v2420_v36 = vsub.f32 %v2412_v30, %v2416_v22 }
 0x1e5   :  { %v2162_v15 = vpop.f32.mrf.mxu1  ;;  %v2205_v16 = vpop.f32.mrf.mxu0 }
 0x1e6   :  { %v2206_v19 = vadd.f32 %v2205_v16, %v2162_v15  ;;  %v2418_v24 = vmul.f32 %v16073_v59, %v2204_v14  ;;  %v2421_v33 = vsub.f32 %v2413_v17, %v2417_v18  ;;  %v2433_v37 = vadd.f32 %v2429_v27, %v2425_v32 }
 0x1e7   :  { %v2430_v40 = vmul.f32 %v16075_v60, %v2204_v14 }
 0x1e8   :  { %v2419_v28 = vmul.f32 %v16080_v63, %v2206_v19  ;;  %v2431_v29 = vmul.f32 %v16082_v10, %v2206_v19  ;;  %v2422_v31 = vsub.f32 %v2414_v20, %v2418_v24  ;;  %v2426_v63 = vmul.f32 %v16073_v59, %v2118_v23 }
 0x1e9   :  { %v2428_v10 = vmul.f32 %v16057_v46, %v2200_v62 }
 0x1ea   :  { %v2423_v34 = vsub.f32 %v2415_v21, %v2419_v28  ;;  %v2435_v35 = vadd.f32 %v2431_v29, %v2427_v26  ;;  %v2438_v42 = vpack.c.bf16 %v2422_v31, %v2420_v36  ;;  %v2434_v49 = vadd.f32 %v2430_v40, %v2426_v63 }
 0x1eb   :  { %v2432_v45 = vadd.f32 %v2428_v10, %v2424_v43 }
 0x1ec   :  { %v2439_v38 = vpack.c.bf16 %v2423_v34, %v2421_v33  ;;  %v2622_v55 = vpack.c.bf16 %v2435_v35, %v2433_v37 }
 0x1ed   :  { %v2621_v47 = vpack.c.bf16 %v2434_v49, %v2432_v45 }
 0x1ee   :  { %2456 = vmatprep.subr.bf16.mxu0 %v2439_v38 }
 0x1ef   :  { %2457 = vmatpush1.bf16.xpose.msra.mxu0 %v2438_v42 }
 0x1f0   :  { %2639 = vmatprep.subr.bf16.mxu0 %v2622_v55 }
 0x1f6   :  { %2475 = vmatmul.mubr.bf16.vlgmr.msra.gmra.mxu0 %v2436_v25 }
 0x1f7   :  { %2640 = vmatpush1.bf16.xpose.msra.mxu0 %v2621_v47  ;;  %2657 = vmatprep.mubr.bf16.mxu0 %v2620_v41 }
 0x1fe   :  { %2658 = vmatmul.mubr.bf16.vlgmr.msra.gmra.mxu0 %v2619_v39 }
 0x200   :  { %v2285_v48 = vpop.f32.mrf.mxu1 }
 0x202   :  { %v2287_v60 = vpop.f32.mrf.mxu1 }
 0x204   :  { %v2289_v51 = vpop.f32.mrf.mxu1 }
 0x206   :  { %v2291_v54 = vpop.f32.mrf.mxu1 }
 0x21f   :  { %v2242_v50 = vpop.f32.mrf.mxu0 }
 0x220   :  { %v2286_v53 = vadd.f32 %v2285_v48, %v2242_v50 }
 0x221   :  { %v2244_v52 = vpop.f32.mrf.mxu0 }
 0x222   :  { %v2288_v46 = vadd.f32 %v2287_v60, %v2244_v52 }
 0x223   :  { %v2246_v59 = vpop.f32.mrf.mxu0 }
 0x224   :  { %v2290_v56 = vadd.f32 %v2289_v51, %v2246_v59 }
 0x225   :  { %v2248_v57 = vpop.f32.mrf.mxu0 }
 0x226   :  { %v2292_v58 = vadd.f32 %v2291_v54, %v2248_v57  ;;  %v2440_v8 = vpack.c.bf16 %v2290_v56, %v2286_v53  ;;  %v14379_v56 = vld [vmem:[#allocation2 + $0x65c] ss:$112 sps:$4 sm:$0xff]   ;;  %v14381_v57 = vld [vmem:[#allocation2 + $0x660] ss:$112 sps:$4 sm:$0xff]  }
 0x227   :  { %3057 = vmatprep.subr.bf16.mxu0 %v14381_v57  ;;  %v14436_v57 = vld [vmem:[#allocation2 + $0x824] ss:$112 sps:$4 sm:$0xff]  }
 0x228   :  { %v2441_v44 = vpack.c.bf16 %v2292_v58, %v2288_v46  ;;  %v14384_v58 = vld [vmem:[#allocation2 + $0x580] ss:$112 sps:$4 sm:$0xff]   ;;  %3058 = vmatpush1.bf16.msra.mxu0 %v14379_v56 }
 0x229   :  { %3059 = vmatprep.subr.bf16.mxu0 %v14384_v58  ;;  %v14435_v56 = vld [vmem:[#allocation2 + $0x820] ss:$112 sps:$4 sm:$0xff]   ;;  %v14437_v58 = vld [vmem:[#allocation2 + $0x124] ss:$112 sps:$4 sm:$0xff]  }
 0x22a   :  { %2524 = vmatprep.subr.bf16.mxu1 %v2441_v44  ;;  %v14387_v44 = vld [vmem:[#allocation2 + $0x4a0] ss:$112 sps:$4 sm:$0xff]  }
 0x22b   :  { %2525 = vmatpush1.bf16.msra.mxu1 %v2440_v8  ;;  %v14382_v8 = vld [vmem:[#allocation2 + $0x57c] ss:$112 sps:$4 sm:$0xff]  }
 0x22c   :  { %3060 = vmatpush1.bf16.msra.mxu0 %v14382_v8  ;;  %v14440_v8 = vld [vmem:[#allocation2 + $0x740] ss:$112 sps:$4 sm:$0xff]  }
 0x22d   :  { %3061 = vmatprep.subr.bf16.mxu0 %v14387_v44  ;;  %v14441_v44 = vld [vmem:[#allocation2 + $0x744] ss:$112 sps:$4 sm:$0xff]  }
 0x23f   :  { %v2371_v25 = vpop.f32.mrf.mxu0 }
 0x240   :  { %v2328_v23 = vpop.f32.mrf.mxu1 }
 0x241   :  { %v16125_v41 = vadd.f32 %v2371_v25, %v2328_v23  ;;  %v2373_v39 = vpop.f32.mrf.mxu0  ;;  %v14385_v25 = vld [vmem:[#allocation2 + $0x49c] ss:$112 sps:$4 sm:$0xff]   ;;  %v14390_v23 = vld [vmem:[#allocation2 + $0x3c0] ss:$112 sps:$4 sm:$0xff]  }
 0x242   :  { %v2330_v61 = vpop.f32.mrf.mxu1  ;;  %3062 = vmatpush1.bf16.msra.mxu0 %v14385_v25  ;;  %v14438_v25 = vld [vmem:[#allocation2 + $0x73c] ss:$112 sps:$4 sm:$0xff]  }
 0x243   :  { %v2375_v62 = vpop.f32.mrf.mxu0  ;;  %v2374_v12 = vadd.f32 %v2373_v39, %v2330_v61  ;;  %v14388_v39 = vld [vmem:[#allocation2 + $0x3bc] ss:$112 sps:$4 sm:$0xff]   ;;  %3063 = vmatprep.subr.bf16.mxu0 %v14390_v23  ;;  %v14393_v61 = vld [vmem:[#allocation2 + $0x2e0] ss:$112 sps:$4 sm:$0xff]   ;;  %v14442_v23 = vld [vmem:[#allocation2 + $0x44] ss:$112 sps:$4 sm:$0xff]  }
 0x244   :  { %v2332_v11 = vpop.f32.mrf.mxu1 }
 0x245   :  { %v16127_v13 = vadd.f32 %v2375_v62, %v2332_v11  ;;  %v2377_v14 = vpop.f32.mrf.mxu0  ;;  %v14391_v62 = vld [vmem:[#allocation2 + $0x2dc] ss:$112 sps:$4 sm:$0xff]   ;;  %v14396_v11 = vld [vmem:[#allocation2 + $0x200] ss:$112 sps:$4 sm:$0xff]  }
 0x246   :  { %v2334_v15 = vpop.f32.mrf.mxu1  ;;  %3064 = vmatpush1.bf16.msra.mxu0 %v14388_v39  ;;  %v14445_v39 = vld [vmem:[#allocation2 + $0x654] ss:$112 sps:$4 sm:$0xff]  }
 0x247   :  { %v2623_v16 = vpack.c.bf16 %v16127_v13, %v16125_v41  ;;  %v2378_v17 = vadd.f32 %v2377_v14, %v2334_v15  ;;  %3065 = vmatprep.subr.bf16.mxu0 %v14393_v61  ;;  %v14399_v14 = vld [vmem:[#allocation2 + $0x120] ss:$112 sps:$4 sm:$0xff]   ;;  %v14397_v15 = vld [vmem:[#allocation2 + $0x11c] ss:$112 sps:$4 sm:$0xff]   ;;  %v14417_v41 = vld [vmem:[#allocation2 + $0x4a4] ss:$112 sps:$4 sm:$0xff]  }
 0x248   :  { %v14421_v13 = vld [vmem:[#allocation2 + $0xac4] ss:$112 sps:$4 sm:$0xff]   ;;  %v14446_v61 = vld [vmem:[#allocation2 + $0xd58] ss:$112 sps:$4 sm:$0xff]  }
 0x249   :  { %v2624_v18 = vpack.c.bf16 %v2378_v17, %v2374_v12  ;;  %v14394_v12 = vld [vmem:[#allocation2 + $0x1fc] ss:$112 sps:$4 sm:$0xff]   ;;  %v14402_v17 = vld [vmem:[#allocation2 + $0x40] ss:$112 sps:$4 sm:$0xff]  }
 0x24a   :  { %3066 = vmatpush1.bf16.msra.mxu0 %v14391_v62 }
 0x24b   :  { %2706 = vmatprep.subr.bf16.mxu1 %v2624_v18  ;;  %3067 = vmatprep.subr.bf16.mxu0 %v14396_v11  ;;  %v14400_v18 = vld [vmem:[#allocation2 + $0x3c] ss:$112 sps:$4 sm:$0xff]  }
 0x24e   :  { %3068 = vmatpush1.bf16.msra.mxu0 %v14394_v12 }
 0x24f   :  { %3069 = vmatprep.subr.bf16.mxu0 %v14399_v14 }
 0x252   :  { %3070 = vmatpush1.bf16.msra.mxu0 %v14397_v15 }
 0x253   :  { %3071 = vmatprep.subr.bf16.mxu0 %v14402_v17 }
 0x256   :  { %3072 = vmatpush1.bf16.msra.mxu0 %v14400_v18 }
 0x2b6   :  { %v2476_v19 = vpop.f32.mrf.mxu0 }
 0x2b7   :  { %v2477_v20 = vadd.f32 %v2476_v19, %v16007_v6  ;;  %v14405_v19 = vld [vmem:[#allocation2 + $0xd60] ss:$112 sps:$4 sm:$0xff]  }
 0x2b8   :  { %v2478_v21 = vpop.f32.mrf.mxu0  ;;  %3073 = vmatprep.subr.bf16.mxu0 %v14405_v19 }
 0x2b9   :  { %v2484_v22 = vsel %vm2483_vm0, %v2477_v20, -inf  ;;  %v14410_v21 = vld [vmem:[#allocation2 + $0xc80] ss:$112 sps:$4 sm:$0xff]  }
 0x2ba   :  { %v2479_v24 = vpop.f32.mrf.mxu0  ;;  %2485 = vmax.xlane.f32.xlu0 %v2484_v22  ;;  %v14408_v22 = vld [vmem:[#allocation2 + $0xc7c] ss:$112 sps:$4 sm:$0xff]  }
 0x2bb   :  { %v2480_v26 = vadd.f32 %v2479_v24, %v16009_v7  ;;  %v14415_v24 = vld [vmem:[#allocation2 + $0xba0] ss:$112 sps:$4 sm:$0xff]  }
 0x2bc   :  { %v2481_v27 = vpop.f32.mrf.mxu0 }
 0x2bd   :  { %v2487_v28 = vsel %vm2483_vm0, %v2480_v26, -inf  ;;  %v14420_v27 = vld [vmem:[#allocation2 + $0xac0] ss:$112 sps:$4 sm:$0xff]  }
 0x2be   :  { %v2659_v29 = vpop.f32.mrf.mxu0  ;;  %2488 = vmax.xlane.f32.xlu0 %v2487_v28  ;;  %v14418_v28 = vld [vmem:[#allocation2 + $0xabc] ss:$112 sps:$4 sm:$0xff]  }
 0x2bf   :  { %v2660_v30 = vadd.f32 %v2659_v29, %v16007_v6 }
 0x2c0   :  { %v2661_v31 = vpop.f32.mrf.mxu0 }
 0x2c1   :  { %v2666_v32 = vsel %vm2483_vm0, %v2660_v30, -inf }
 0x2c2   :  { %v2662_v33 = vpop.f32.mrf.mxu0  ;;  %2667 = vmax.xlane.f32.xlu1 %v2666_v32 }
 0x2c3   :  { %v2663_v34 = vadd.f32 %v2662_v33, %v16009_v7 }
 0x2c4   :  { %v2664_v35 = vpop.f32.mrf.mxu0 }
 0x2c5   :  { %v2669_v36 = vsel %vm2483_vm0, %v2663_v34, -inf }
 0x2c6   :  { %2670 = vmax.xlane.f32.xlu1 %v2669_v36 }
 0x343   :  { %v2486_v37 = vpop.xlane.xlu0 %2485 }
 0x344   :  { %v2490_v38 = vsub.f32 %v2477_v20, %v2486_v37  ;;  %v14403_v20 = vld [vmem:[#allocation2 + $0xd5c] ss:$112 sps:$4 sm:$0xff]  }
 0x345   :  { %3074 = vmatpush2.bf16.msra.mxu0 %v14403_v20 }
 0x346   :  { %v2492_v40 = vmul.f32 1.442695, %v2490_v38  ;;  %3075 = vmatprep.subr.bf16.mxu0 %v14410_v21  ;;  %v14406_v38 = vld [vmem:[#allocation2 + $0xd64] ss:$112 sps:$4 sm:$0xff]   ;;  %v14443_v21 = vld [vmem:[#allocation2 + $0x650] ss:$112 sps:$4 sm:$0xff]  }
 0x347   :  { %v2489_v42 = vpop.xlane.xlu0 %2488 }
 0x348   :  { %14867 = vpow2.f32 %v2492_v40  ;;  %v2491_v55 = vsub.f32 %v2480_v26, %v2489_v42  ;;  %v14413_v26 = vld [vmem:[#allocation2 + $0xb9c] ss:$112 sps:$4 sm:$0xff]  }
 0x349   :  { %3076 = vmatpush2.bf16.msra.mxu0 %v14408_v22  ;;  %v14447_v22 = vld [vmem:[#allocation2 + $0x658] ss:$112 sps:$4 sm:$0xff]  }
 0x34a   :  { %v2494_v63 = vmul.f32 1.442695, %v2491_v55  ;;  %3077 = vmatprep.subr.bf16.mxu0 %v14415_v24 }
 0x34b   :  { %v2668_v10 = vpop.xlane.xlu1 %2667 }
 0x34c   :  { %14869 = vpow2.f32 %v2494_v63  ;;  %v2672_v43 = vsub.f32 %v2660_v30, %v2668_v10  ;;  %v14407_v10 = vld [vmem:[#allocation2 + $0x664] ss:$112 sps:$4 sm:$0xff]  }
 0x34d   :  { %3078 = vmatpush2.bf16.msra.mxu0 %v14413_v26  ;;  %v14450_v26 = vld [vmem:[#allocation2 + $0x574] ss:$112 sps:$4 sm:$0xff]  }
 0x34e   :  { %v2674_v49 = vmul.f32 1.442695, %v2672_v43  ;;  %3079 = vmatprep.subr.bf16.mxu0 %v14420_v27  ;;  %v14451_v27 = vld [vmem:[#allocation2 + $0xc78] ss:$112 sps:$4 sm:$0xff]  }
 0x34f   :  { %v2671_v45 = vpop.xlane.xlu1 %2670 }
 0x350   :  { %14871 = vpow2.f32 %v2674_v49  ;;  %v2673_v47 = vsub.f32 %v2663_v34, %v2671_v45  ;;  %v14411_v49 = vld [vmem:[#allocation2 + $0xc84] ss:$112 sps:$4 sm:$0xff]  }
 0x351   :  { %3080 = vmatpush2.bf16.msra.mxu0 %v14418_v28  ;;  %v14412_v45 = vld [vmem:[#allocation2 + $0x584] ss:$112 sps:$4 sm:$0xff]  }
 0x352   :  { %v2676_v48 = vmul.f32 1.442695, %v2673_v47  ;;  %v14416_v47 = vld [vmem:[#allocation2 + $0xba4] ss:$112 sps:$4 sm:$0xff]  }
 0x354   :  { %14873 = vpow2.f32 %v2676_v48  ;;  %v14423_v48 = vld [vmem:[#allocation2 + $0x9dc] ss:$112 sps:$4 sm:$0xff]  }
 0x355   :  { %v16139_v60 = vpop.eup %14867 }
 0x356   :  { %v2496_v50 = vsel %vm2483_vm0, %v16139_v60, 0.0 }
 0x357   :  { %2497 = vadd.xlane.f32.xlu0 %v2496_v50  ;;  %v14426_v50 = vld [vmem:[#allocation2 + $0x9e4] ss:$112 sps:$4 sm:$0xff]  }
 0x359   :  { %v16143_v51 = vpop.eup %14869 }
 0x35a   :  { %v2499_v52 = vsel %vm2483_vm0, %v16143_v51, 0.0 }
 0x35b   :  { %2500 = vadd.xlane.f32.xlu1 %v2499_v52  ;;  %v14430_v52 = vld [vmem:[#allocation2 + $0x900] ss:$112 sps:$4 sm:$0xff]  }
 0x35d   :  { %v16147_v53 = vpop.eup %14871 }
 0x35e   :  { %v2678_v59 = vsel %vm2483_vm0, %v16147_v53, 0.0 }
 0x35f   :  { %2679 = vadd.xlane.f32.xlu0 %v2678_v59  ;;  %v14428_v59 = vld [vmem:[#allocation2 + $0x8fc] ss:$112 sps:$4 sm:$0xff]  }
 0x361   :  { %v16151_v54 = vpop.eup %14873 }
 0x362   :  { %v2681_v46 = vsel %vm2483_vm0, %v16151_v54, 0.0 }
 0x363   :  { %2682 = vadd.xlane.f32.xlu1 %v2681_v46  ;;  %v14433_v46 = vld [vmem:[#allocation2 + $0x81c] ss:$112 sps:$4 sm:$0xff]  }
 0x3e0   :  { %v2498_v29 = vpop.xlane.xlu0 %2497 }
 0x3e1   :  { %14875 = vrcp.f32 %v2498_v29  ;;  %v14448_v29 = vld [vmem:[#allocation2 + $0x570] ss:$112 sps:$4 sm:$0xff]  }
 0x3e4   :  { %v2501_v30 = vpop.xlane.xlu1 %2500 }
 0x3e5   :  { %14877 = vrcp.f32 %v2501_v30  ;;  %v14452_v30 = vld [vmem:[#allocation2 + $0x578] ss:$112 sps:$4 sm:$0xff]  }
 0x3e8   :  { %v2680_v31 = vpop.xlane.xlu0 %2679 }
 0x3e9   :  { %14879 = vrcp.f32 %v2680_v31  ;;  %v14455_v31 = vld [vmem:[#allocation2 + $0x494] ss:$112 sps:$4 sm:$0xff]  }
 0x3ec   :  { %v2683_v32 = vpop.xlane.xlu1 %2682 }
 0x3ed   :  { %14881 = vrcp.f32 %v2683_v32  ;;  %v14456_v32 = vld [vmem:[#allocation2 + $0xb98] ss:$112 sps:$4 sm:$0xff]  }
 0x3ee   :  { %v14876_v33 = vpop.eup %14875 }
 0x3ef   :  { %v2504_v35 = vmul.f32 %v14876_v33, %v16139_v60  ;;  %v14425_v60 = vld [vmem:[#allocation2 + $0x9e0] ss:$112 sps:$4 sm:$0xff]  }
 0x3f0   :  { %3081 = vmatprep.subr.bf16.mxu0 %v14425_v60  ;;  %v14453_v33 = vld [vmem:[#allocation2 + $0x490] ss:$112 sps:$4 sm:$0xff]   ;;  %v14481_v60 = vld [vmem:[#allocation2 + $0x738] ss:$112 sps:$4 sm:$0xff]  }
 0x3f1   :  { %3082 = vmatpush2.bf16.msra.mxu0 %v14423_v48  ;;  %v14480_v48 = vld [vmem:[#allocation2 + $0x34] ss:$112 sps:$4 sm:$0xff]  }
 0x3f2   :  { %v14878_v34 = vpop.eup %14877  ;;  %3083 = vmatprep.subr.bf16.mxu0 %v14430_v52  ;;  %v14485_v52 = vld [vmem:[#allocation2 + $0xd54] ss:$112 sps:$4 sm:$0xff]  }
 0x3f3   :  { %v2505_v36 = vmul.f32 %v14878_v34, %v16143_v51  ;;  %v14427_v51 = vld [vmem:[#allocation2 + $0x2e4] ss:$112 sps:$4 sm:$0xff]   ;;  %v14457_v34 = vld [vmem:[#allocation2 + $0x498] ss:$112 sps:$4 sm:$0xff]  }
 0x3f5   :  { %v2506_v37 = vpack.c.bf16 %v2505_v36, %v2504_v35  ;;  %3084 = vmatpush2.bf16.msra.mxu0 %v14428_v59  ;;  %v14460_v35 = vld [vmem:[#allocation2 + $0x3b4] ss:$112 sps:$4 sm:$0xff]   ;;  %v14461_v36 = vld [vmem:[#allocation2 + $0xab8] ss:$112 sps:$4 sm:$0xff]  }
 0x3f6   :  { %v14880_v40 = vpop.eup %14879  ;;  %3085 = vmatprep.subr.bf16.mxu0 %v14435_v56  ;;  %v14491_v56 = vld [vmem:[#allocation2 + $0xb94] ss:$112 sps:$4 sm:$0xff]  }
 0x3f7   :  { %12558 = vmatmul.mubr.msk.bf16.vlgmr.msra.gmra.mxu1 %vm2483_vm0, %v2506_v37  ;;  %v2686_v55 = vmul.f32 %v14880_v40, %v16147_v53  ;;  %v14431_v53 = vld [vmem:[#allocation2 + $0x904] ss:$112 sps:$4 sm:$0xff]   ;;  %v14458_v37 = vld [vmem:[#allocation2 + $0x3b0] ss:$112 sps:$4 sm:$0xff]  }
 0x3f8   :  { %2707 = vmatpush1.bf16.msra.mxu1 %v2623_v16  ;;  %2724 = vmatprep.mubr.bf16.mxu1 %v15925_v9  ;;  %v14422_v16 = vld [vmem:[#allocation2 + $0x3c4] ss:$112 sps:$4 sm:$0xff]  }
 0x3f9   :  { %13643 = vmatprep.subr.bf16.mxu1 %v14406_v38  ;;  %3086 = vmatpush2.bf16.msra.mxu0 %v14433_v46  ;;  %v14462_v38 = vld [vmem:[#allocation2 + $0x3b8] ss:$112 sps:$4 sm:$0xff]   ;;  %v14465_v40 = vld [vmem:[#allocation2 + $0x2d4] ss:$112 sps:$4 sm:$0xff]   ;;  %v14486_v46 = vld [vmem:[#allocation2 + $0xc70] ss:$112 sps:$4 sm:$0xff]  }
 0x3fa   :  { %v14882_v42 = vpop.eup %14881  ;;  %3087 = vmatprep.subr.bf16.mxu0 %v14440_v8  ;;  %v14492_v8 = vld [vmem:[#allocation2 + $0xab0] ss:$112 sps:$4 sm:$0xff]  }
 0x3fb   :  { %v2687_v63 = vmul.f32 %v14882_v42, %v16151_v54  ;;  %v14432_v54 = vld [vmem:[#allocation2 + $0x204] ss:$112 sps:$4 sm:$0xff]   ;;  %v14466_v42 = vld [vmem:[#allocation2 + $0x9d8] ss:$112 sps:$4 sm:$0xff]  }
 0x3fd   :  { %v2688_v43 = vpack.c.bf16 %v2687_v63, %v2686_v55  ;;  %3088 = vmatpush2.bf16.msra.mxu0 %v14438_v25  ;;  %v14463_v55 = vld [vmem:[#allocation2 + $0x2d0] ss:$112 sps:$4 sm:$0xff]   ;;  %v14467_v63 = vld [vmem:[#allocation2 + $0x2d8] ss:$112 sps:$4 sm:$0xff]  }
 0x3fe   :  { %13665 = vmatprep.subr.bf16.mxu0 %v14446_v61  ;;  %v14495_v25 = vld [vmem:[#allocation2 + $0x9d0] ss:$112 sps:$4 sm:$0xff]   ;;  %v14503_v61 = vld [vmem:[#allocation2 + $0x814] ss:$112 sps:$4 sm:$0xff]  }
 0x3ff   :  { %12559 = vmatmul.mubr.msk.bf16.vlgmr.msra.gmra.mxu1 %vm2483_vm0, %v2688_v43  ;;  %v14471_v43 = vld [vmem:[#allocation2 + $0x8f8] ss:$112 sps:$4 sm:$0xff]  }
 0x400   :  { %13644 = vmatpush3.bf16.msra.mxu1 %v14407_v10  ;;  %v14470_v10 = vld [vmem:[#allocation2 + $0x1f4] ss:$112 sps:$4 sm:$0xff]  }
 0x401   :  { %13645 = vmatprep.subr.bf16.mxu1 %v14411_v49  ;;  %v14468_v49 = vld [vmem:[#allocation2 + $0x1f0] ss:$112 sps:$4 sm:$0xff]  }
 0x404   :  { %13646 = vmatpush3.bf16.msra.mxu1 %v14412_v45  ;;  %v14472_v45 = vld [vmem:[#allocation2 + $0x1f8] ss:$112 sps:$4 sm:$0xff]  }
 0x405   :  { %13647 = vmatprep.subr.bf16.mxu1 %v14416_v47  ;;  %v14475_v47 = vld [vmem:[#allocation2 + $0x114] ss:$112 sps:$4 sm:$0xff]  }
 0x408   :  { %13648 = vmatpush3.bf16.msra.mxu1 %v14417_v41  ;;  %v14476_v41 = vld [vmem:[#allocation2 + $0x818] ss:$112 sps:$4 sm:$0xff]  }
 0x409   :  { %13649 = vmatprep.subr.bf16.mxu1 %v14421_v13  ;;  %v14473_v13 = vld [vmem:[#allocation2 + $0x110] ss:$112 sps:$4 sm:$0xff]  }
 0x40c   :  { %13650 = vmatpush3.bf16.msra.mxu1 %v14422_v16  ;;  %v14477_v16 = vld [vmem:[#allocation2 + $0x118] ss:$112 sps:$4 sm:$0xff]  }
 0x40d   :  { %13651 = vmatprep.subr.bf16.mxu1 %v14426_v50  ;;  %v14478_v50 = vld [vmem:[#allocation2 + $0x30] ss:$112 sps:$4 sm:$0xff]  }
 0x410   :  { %13652 = vmatpush3.bf16.msra.mxu1 %v14427_v51  ;;  %v14482_v51 = vld [vmem:[#allocation2 + $0x38] ss:$112 sps:$4 sm:$0xff]  }
 0x411   :  { %13653 = vmatprep.subr.bf16.mxu1 %v14431_v53  ;;  %v14483_v53 = vld [vmem:[#allocation2 + $0xd50] ss:$112 sps:$4 sm:$0xff]  }
 0x414   :  { %13654 = vmatpush3.bf16.msra.mxu1 %v14432_v54  ;;  %v14488_v54 = vld [vmem:[#allocation2 + $0xc74] ss:$112 sps:$4 sm:$0xff]  }
 0x415   :  { %13655 = vmatprep.subr.bf16.mxu1 %v14436_v57  ;;  %v14489_v57 = vld [vmem:[#allocation2 + $0xb90] ss:$112 sps:$4 sm:$0xff]  }
 0x418   :  { %13656 = vmatpush3.bf16.msra.mxu1 %v14437_v58  ;;  %v14494_v58 = vld [vmem:[#allocation2 + $0xab4] ss:$112 sps:$4 sm:$0xff]  }
 0x419   :  { %13657 = vmatprep.subr.bf16.mxu1 %v14441_v44  ;;  %v14497_v44 = vld [vmem:[#allocation2 + $0x9d4] ss:$112 sps:$4 sm:$0xff]  }
 0x41c   :  { %13658 = vmatpush3.bf16.msra.mxu1 %v14442_v23  ;;  %v14500_v23 = vld [vmem:[#allocation2 + $0x8f4] ss:$112 sps:$4 sm:$0xff]  }
 0x41d   :  { %3397 = vmatprep.subr.bf16.mxu1 %v14445_v39  ;;  %v14498_v39 = vld [vmem:[#allocation2 + $0x8f0] ss:$112 sps:$4 sm:$0xff]  }
 0x4b7   :  { %v16165_v62 = vpop.f32.mrf.mxu1 }
 0x4b9   :  { %v2546_v11 = vpop.f32.mrf.mxu1 }
 0x4bb   :  { %v16167_v12 = vpop.f32.mrf.mxu1 }
 0x4bc   :  { %v2553_v59 = vpack.c.bf16 %v16167_v12, %v16165_v62  ;;  %v14501_v62 = vld [vmem:[#allocation2 + $0x810] ss:$112 sps:$4 sm:$0xff]  }
 0x4bd   :  { %v2550_v14 = vpop.f32.mrf.mxu1  ;;  %v14504_v12 = vld [vmem:[#allocation2 + $0x730] ss:$112 sps:$4 sm:$0xff]  }
 0x4be   :  { %v2554_v28 = vpack.c.bf16 %v2550_v14, %v2546_v11  ;;  %v14506_v11 = vld [vmem:[#allocation2 + $0x734] ss:$112 sps:$4 sm:$0xff]   ;;  %v14507_v14 = vld [vmem:[#allocation2 + $0x668] ss:$112 sps:$4 sm:$0xff]  }
 0x4bf   :  { %v2726_v15 = vpop.f32.mrf.mxu1 }
 0x4c1   :  { %v2728_v17 = vpop.f32.mrf.mxu1 }
 0x4c3   :  { %v2730_v18 = vpop.f32.mrf.mxu1 }
 0x4c4   :  { %v2735_v24 = vpack.c.bf16 %v2730_v18, %v2726_v15  ;;  %v14509_v15 = vld [vmem:[#allocation2 + $0x66c] ss:$112 sps:$4 sm:$0xff]  }
 0x4c5   :  { %v2732_v19 = vpop.f32.mrf.mxu1  ;;  %v14512_v18 = vld [vmem:[#allocation2 + $0x146c] ss:$112 sps:$4 sm:$0xff]  }
 0x4c6   :  { %v2736_v20 = vpack.c.bf16 %v2732_v19, %v2728_v17  ;;  %v14510_v17 = vld [vmem:[#allocation2 + $0x1468] ss:$112 sps:$4 sm:$0xff]   ;;  %v14515_v19 = vld [vmem:[#allocation2 + $0x58c] ss:$112 sps:$4 sm:$0xff]  }
 0x4c8   :  { %3089 = vmatprep.mubr.bf16.mxu0 %v2736_v20  ;;  %3132 = vmatprep.mubr.bf16.mxu1 %v2736_v20  ;;  %v14518_v20 = vld [vmem:[#allocation2 + $0x138c] ss:$112 sps:$4 sm:$0xff]  }
 0x4c9   :  { %3090 = vmatmul.mubr.bf16.vlgmr.msra.gmra.mxu0 %v2735_v24  ;;  %3133 = vmatmul.mubr.bf16.vlgmr.msra.gmra.mxu1 %v2735_v24  ;;  %v14521_v24 = vld [vmem:[#allocation2 + $0x4ac] ss:$112 sps:$4 sm:$0xff]  }
 0x4ca   :  { %3398 = vmatpush1.bf16.msra.mxu1 %v14443_v21  ;;  %13666 = vmatpush3.bf16.msra.mxu0 %v14447_v22  ;;  %v14513_v21 = vld [vmem:[#allocation2 + $0x588] ss:$112 sps:$4 sm:$0xff]  }
 0x4cb   :  { %3429 = vmatprep.mubr.bf16.mxu1 %v2554_v28  ;;  %3472 = vmatprep.mubr.bf16.mxu0 %v2554_v28  ;;  %v14516_v22 = vld [vmem:[#allocation2 + $0x1388] ss:$112 sps:$4 sm:$0xff]  }
 0x4cc   :  { %3399 = vmatprep.subr.bf16.mxu1 %v14450_v26  ;;  %13667 = vmatprep.subr.bf16.mxu0 %v14451_v27  ;;  %v14524_v26 = vld [vmem:[#allocation2 + $0x12ac] ss:$112 sps:$4 sm:$0xff]   ;;  %v14519_v27 = vld [vmem:[#allocation2 + $0x4a8] ss:$112 sps:$4 sm:$0xff]  }
 0x4cd   :  { %v14522_v28 = vld [vmem:[#allocation2 + $0x12a8] ss:$112 sps:$4 sm:$0xff]  }
 0x4ce   :  { %3400 = vmatpush1.bf16.msra.mxu1 %v14448_v29  ;;  %13668 = vmatpush3.bf16.msra.mxu0 %v14452_v30  ;;  %v14527_v29 = vld [vmem:[#allocation2 + $0x3cc] ss:$112 sps:$4 sm:$0xff]  }
 0x4cf   :  { %3401 = vmatprep.subr.bf16.mxu1 %v14455_v31  ;;  %13669 = vmatprep.subr.bf16.mxu0 %v14456_v32  ;;  %v14530_v30 = vld [vmem:[#allocation2 + $0x11cc] ss:$112 sps:$4 sm:$0xff]   ;;  %v14525_v31 = vld [vmem:[#allocation2 + $0x3c8] ss:$112 sps:$4 sm:$0xff]  }
 0x4d0   :  { %v14528_v32 = vld [vmem:[#allocation2 + $0x11c8] ss:$112 sps:$4 sm:$0xff]  }
 0x4d2   :  { %3402 = vmatpush1.bf16.msra.mxu1 %v14453_v33  ;;  %13670 = vmatpush3.bf16.msra.mxu0 %v14457_v34  ;;  %v14533_v33 = vld [vmem:[#allocation2 + $0x2ec] ss:$112 sps:$4 sm:$0xff]  }
 0x4d3   :  { %3403 = vmatprep.subr.bf16.mxu1 %v14460_v35  ;;  %13671 = vmatprep.subr.bf16.mxu0 %v14461_v36  ;;  %v14536_v34 = vld [vmem:[#allocation2 + $0x10ec] ss:$112 sps:$4 sm:$0xff]   ;;  %v14531_v35 = vld [vmem:[#allocation2 + $0x2e8] ss:$112 sps:$4 sm:$0xff]  }
 0x4d4   :  { %v14534_v36 = vld [vmem:[#allocation2 + $0x10e8] ss:$112 sps:$4 sm:$0xff]  }
 0x4d6   :  { %3404 = vmatpush1.bf16.msra.mxu1 %v14458_v37  ;;  %13672 = vmatpush3.bf16.msra.mxu0 %v14462_v38  ;;  %v14539_v37 = vld [vmem:[#allocation2 + $0x20c] ss:$112 sps:$4 sm:$0xff]   ;;  %v14537_v38 = vld [vmem:[#allocation2 + $0x208] ss:$112 sps:$4 sm:$0xff]  }
 0x4d7   :  { %3405 = vmatprep.subr.bf16.mxu1 %v14465_v40  ;;  %13673 = vmatprep.subr.bf16.mxu0 %v14466_v42  ;;  %v14542_v40 = vld [vmem:[#allocation2 + $0x100c] ss:$112 sps:$4 sm:$0xff]   ;;  %v14540_v42 = vld [vmem:[#allocation2 + $0x1008] ss:$112 sps:$4 sm:$0xff]  }
 0x4da   :  { %3406 = vmatpush1.bf16.msra.mxu1 %v14463_v55  ;;  %13674 = vmatpush3.bf16.msra.mxu0 %v14467_v63  ;;  %v14545_v55 = vld [vmem:[#allocation2 + $0x12c] ss:$112 sps:$4 sm:$0xff]   ;;  %v14543_v63 = vld [vmem:[#allocation2 + $0x128] ss:$112 sps:$4 sm:$0xff]  }
 0x4db   :  { %3407 = vmatprep.subr.bf16.mxu1 %v14470_v10  ;;  %13675 = vmatprep.subr.bf16.mxu0 %v14471_v43  ;;  %v14548_v10 = vld [vmem:[#allocation2 + $0xf2c] ss:$112 sps:$4 sm:$0xff]   ;;  %v14546_v43 = vld [vmem:[#allocation2 + $0xf28] ss:$112 sps:$4 sm:$0xff]  }
 0x4de   :  { %3408 = vmatpush1.bf16.msra.mxu1 %v14468_v49  ;;  %13676 = vmatpush3.bf16.msra.mxu0 %v14472_v45  ;;  %v14551_v49 = vld [vmem:[#allocation2 + $0x4c] ss:$112 sps:$4 sm:$0xff]   ;;  %v14549_v45 = vld [vmem:[#allocation2 + $0x48] ss:$112 sps:$4 sm:$0xff]  }
 0x4df   :  { %3409 = vmatprep.subr.bf16.mxu1 %v14475_v47  ;;  %13677 = vmatprep.subr.bf16.mxu0 %v14476_v41  ;;  %v14554_v47 = vld [vmem:[#allocation2 + $0xe4c] ss:$112 sps:$4 sm:$0xff]   ;;  %v14552_v41 = vld [vmem:[#allocation2 + $0xe48] ss:$112 sps:$4 sm:$0xff]  }
 0x4e2   :  { %3410 = vmatpush1.bf16.msra.mxu1 %v14473_v13  ;;  %13678 = vmatpush3.bf16.msra.mxu0 %v14477_v16  ;;  %v14557_v13 = vld [vmem:[#allocation2 + $0xd6c] ss:$112 sps:$4 sm:$0xff]   ;;  %v14555_v16 = vld [vmem:[#allocation2 + $0xd68] ss:$112 sps:$4 sm:$0xff]  }
 0x4e3   :  { %3411 = vmatprep.subr.bf16.mxu1 %v14480_v48  ;;  %13679 = vmatprep.subr.bf16.mxu0 %v14481_v60  ;;  %v14560_v48 = vld [vmem:[#allocation2 + $0x674] ss:$112 sps:$4 sm:$0xff]   ;;  %v14561_v60 = vld [vmem:[#allocation2 + $0xc88] ss:$112 sps:$4 sm:$0xff]  }
 0x4e6   :  { %3412 = vmatpush1.bf16.msra.mxu1 %v14478_v50  ;;  %13680 = vmatpush3.bf16.msra.mxu0 %v14482_v51  ;;  %v14563_v50 = vld [vmem:[#allocation2 + $0xc8c] ss:$112 sps:$4 sm:$0xff]   ;;  %v14567_v51 = vld [vmem:[#allocation2 + $0xba8] ss:$112 sps:$4 sm:$0xff]  }
 0x4e7   :  { %3413 = vmatprep.subr.bf16.mxu1 %v14485_v52  ;;  %4642 = vmatprep.subr.bf16.mxu0 %v14509_v15  ;;  %v14569_v52 = vld [vmem:[#allocation2 + $0xbac] ss:$112 sps:$4 sm:$0xff]  }
 0x4e9   :  { %3473 = vmatmul.mubr.bf16.vlgmr.msra.gmra.mxu0 %v2553_v59 }
 0x4ea   :  { %3414 = vmatpush2.bf16.msra.mxu1 %v14483_v53  ;;  %4643 = vmatpush1.bf16.msra.mxu0 %v14507_v14  ;;  %v14573_v53 = vld [vmem:[#allocation2 + $0xac8] ss:$112 sps:$4 sm:$0xff]  }
 0x4eb   :  { %3415 = vmatprep.subr.bf16.mxu1 %v14488_v54  ;;  %4644 = vmatprep.subr.bf16.mxu0 %v14515_v19  ;;  %v14579_v54 = vld [vmem:[#allocation2 + $0x9e8] ss:$112 sps:$4 sm:$0xff]  }
 0x4ee   :  { %3416 = vmatpush2.bf16.msra.mxu1 %v14486_v46  ;;  %4645 = vmatpush1.bf16.msra.mxu0 %v14513_v21  ;;  %v14581_v46 = vld [vmem:[#allocation2 + $0x9ec] ss:$112 sps:$4 sm:$0xff]  }
 0x4ef   :  { %3417 = vmatprep.subr.bf16.mxu1 %v14491_v56  ;;  %4646 = vmatprep.subr.bf16.mxu0 %v14521_v24  ;;  %v14587_v56 = vld [vmem:[#allocation2 + $0x90c] ss:$112 sps:$4 sm:$0xff]  }
 0x4f2   :  { %3418 = vmatpush2.bf16.msra.mxu1 %v14489_v57  ;;  %4647 = vmatpush1.bf16.msra.mxu0 %v14519_v27  ;;  %v14585_v57 = vld [vmem:[#allocation2 + $0x908] ss:$112 sps:$4 sm:$0xff]  }
 0x4f3   :  { %3419 = vmatprep.subr.bf16.mxu1 %v14494_v58  ;;  %4648 = vmatprep.subr.bf16.mxu0 %v14527_v29  ;;  %v14593_v58 = vld [vmem:[#allocation2 + $0x82c] ss:$112 sps:$4 sm:$0xff]  }
 0x4f6   :  { %3420 = vmatpush2.bf16.msra.mxu1 %v14492_v8  ;;  %4649 = vmatpush1.bf16.msra.mxu0 %v14525_v31  ;;  %v14591_v8 = vld [vmem:[#allocation2 + $0x828] ss:$112 sps:$4 sm:$0xff]  }
 0x4f7   :  { %3421 = vmatprep.subr.bf16.mxu1 %v14497_v44  ;;  %4650 = vmatprep.subr.bf16.mxu0 %v14533_v33  ;;  %v14599_v44 = vld [vmem:[#allocation2 + $0x74c] ss:$112 sps:$4 sm:$0xff]  }
 0x4fa   :  { %3422 = vmatpush2.bf16.msra.mxu1 %v14495_v25  ;;  %4651 = vmatpush1.bf16.msra.mxu0 %v14531_v35  ;;  %v14597_v25 = vld [vmem:[#allocation2 + $0x748] ss:$112 sps:$4 sm:$0xff]   ;;  %v14564_v35 = vld [vmem:[#allocation2 + $0x590] ss:$112 sps:$4 sm:$0xff]  }
 0x4fb   :  { %3423 = vmatprep.subr.bf16.mxu1 %v14500_v23  ;;  %4652 = vmatprep.subr.bf16.mxu0 %v14539_v37  ;;  %v14605_v23 = vld [vmem:[#allocation2 + $0x1474] ss:$112 sps:$4 sm:$0xff]   ;;  %v14570_v37 = vld [vmem:[#allocation2 + $0x4b0] ss:$112 sps:$4 sm:$0xff]  }
 0x4fe   :  { %3424 = vmatpush2.bf16.msra.mxu1 %v14498_v39  ;;  %4653 = vmatpush1.bf16.msra.mxu0 %v14537_v38  ;;  %v14578_v38 = vld [vmem:[#allocation2 + $0x3d4] ss:$112 sps:$4 sm:$0xff]  }
 0x4ff   :  { %3425 = vmatprep.subr.bf16.mxu1 %v14503_v61  ;;  %4654 = vmatprep.subr.bf16.mxu0 %v14545_v55 }
 0x502   :  { %3426 = vmatpush2.bf16.msra.mxu1 %v14501_v62  ;;  %4655 = vmatpush1.bf16.msra.mxu0 %v14543_v63  ;;  %v14588_v63 = vld [vmem:[#allocation2 + $0x210] ss:$112 sps:$4 sm:$0xff]  }
 0x503   :  { %3427 = vmatprep.subr.bf16.mxu1 %v14506_v11  ;;  %4656 = vmatprep.subr.bf16.mxu0 %v14551_v49 }
 0x506   :  { %3428 = vmatpush2.bf16.msra.mxu1 %v14504_v12  ;;  %4657 = vmatpush1.bf16.msra.mxu0 %v14549_v45  ;;  %v14594_v45 = vld [vmem:[#allocation2 + $0x130] ss:$112 sps:$4 sm:$0xff]  }
 0x507   :  { %4685 = vmatprep.subr.bf16.mxu1 %v14512_v18  ;;  %4658 = vmatprep.subr.bf16.mxu0 %v14557_v13  ;;  %v14602_v13 = vld [vmem:[#allocation2 + $0x54] ss:$112 sps:$4 sm:$0xff]  }
 0x509   :  { %3430 = vmatmul.mubr.bf16.vlgmr.msra.gmra.mxu1 %v2553_v59  ;;  %v14575_v59 = vld [vmem:[#allocation2 + $0xacc] ss:$112 sps:$4 sm:$0xff]  }
 0x50a   :  { %4717 = vmatprep.mubr.bf16.mxu1 %v15925_v9  ;;  %4686 = vmatpush1.bf16.msra.mxu1 %v14510_v17 }
 0x50b   :  { %4687 = vmatprep.subr.bf16.mxu1 %v14518_v20  ;;  %4659 = vmatpush2.bf16.msra.mxu0 %v14555_v16 }
 0x50c   :  { %4660 = vmatprep.subr.bf16.mxu0 %v14563_v50 }
 0x50e   :  { %4688 = vmatpush1.bf16.msra.mxu1 %v14516_v22 }
 0x50f   :  { %4689 = vmatprep.subr.bf16.mxu1 %v14524_v26  ;;  %4661 = vmatpush2.bf16.msra.mxu0 %v14561_v60 }
 0x510   :  { %4662 = vmatprep.subr.bf16.mxu0 %v14569_v52 }
 0x512   :  { %4690 = vmatpush1.bf16.msra.mxu1 %v14522_v28 }
 0x513   :  { %4691 = vmatprep.subr.bf16.mxu1 %v14530_v30  ;;  %4663 = vmatpush2.bf16.msra.mxu0 %v14567_v51  ;;  %v14600_v51 = vld [vmem:[#allocation2 + $0x50] ss:$112 sps:$4 sm:$0xff]  }
 0x514   :  { %4664 = vmatprep.subr.bf16.mxu0 %v14575_v59 }
 0x516   :  { %4692 = vmatpush1.bf16.msra.mxu1 %v14528_v32  ;;  %v14558_v32 = vld [vmem:[#allocation2 + $0x670] ss:$112 sps:$4 sm:$0xff]  }
 0x517   :  { %4693 = vmatprep.subr.bf16.mxu1 %v14536_v34  ;;  %4665 = vmatpush2.bf16.msra.mxu0 %v14573_v53  ;;  %v14566_v34 = vld [vmem:[#allocation2 + $0x594] ss:$112 sps:$4 sm:$0xff]  }
 0x518   :  { %4666 = vmatprep.subr.bf16.mxu0 %v14581_v46 }
 0x51a   :  { %4694 = vmatpush1.bf16.msra.mxu1 %v14534_v36  ;;  %v14572_v36 = vld [vmem:[#allocation2 + $0x4b4] ss:$112 sps:$4 sm:$0xff]  }
 0x51b   :  { %4695 = vmatprep.subr.bf16.mxu1 %v14542_v40  ;;  %4667 = vmatpush2.bf16.msra.mxu0 %v14579_v54  ;;  %v14576_v40 = vld [vmem:[#allocation2 + $0x3d0] ss:$112 sps:$4 sm:$0xff]   ;;  %v14608_v54 = vld [vmem:[#allocation2 + $0xd74] ss:$112 sps:$4 sm:$0xff]  }
 0x51c   :  { %4668 = vmatprep.subr.bf16.mxu0 %v14587_v56  ;;  %v14603_v56 = vld [vmem:[#allocation2 + $0x1470] ss:$112 sps:$4 sm:$0xff]  }
 0x51e   :  { %4696 = vmatpush1.bf16.msra.mxu1 %v14540_v42  ;;  %v14590_v42 = vld [vmem:[#allocation2 + $0x214] ss:$112 sps:$4 sm:$0xff]  }
 0x51f   :  { %4697 = vmatprep.subr.bf16.mxu1 %v14548_v10  ;;  %4669 = vmatpush2.bf16.msra.mxu0 %v14585_v57  ;;  %v14596_v10 = vld [vmem:[#allocation2 + $0x134] ss:$112 sps:$4 sm:$0xff]  }
 0x520   :  { %4670 = vmatprep.subr.bf16.mxu0 %v14593_v58  ;;  %v14606_v58 = vld [vmem:[#allocation2 + $0xd70] ss:$112 sps:$4 sm:$0xff]  }
 0x522   :  { %4698 = vmatpush1.bf16.msra.mxu1 %v14546_v43 }
 0x523   :  { %4699 = vmatprep.subr.bf16.mxu1 %v14554_v47  ;;  %4671 = vmatpush2.bf16.msra.mxu0 %v14591_v8  ;;  %v14611_v8 = vld [vmem:[#allocation2 + $0x1394] ss:$112 sps:$4 sm:$0xff]  }
 0x524   :  { %4672 = vmatprep.subr.bf16.mxu0 %v14599_v44  ;;  %v14620_v44 = vld [vmem:[#allocation2 + $0xbb4] ss:$112 sps:$4 sm:$0xff]  }
 0x526   :  { %4700 = vmatpush1.bf16.msra.mxu1 %v14552_v41 }
 0x527   :  { %4728 = vmatprep.subr.bf16.mxu1 %v14560_v48  ;;  %4673 = vmatpush2.bf16.msra.mxu0 %v14597_v25  ;;  %v14615_v25 = vld [vmem:[#allocation2 + $0x12b0] ss:$112 sps:$4 sm:$0xff]  }
 0x528   :  { %4771 = vmatprep.subr.bf16.mxu0 %v14605_v23  ;;  %v14618_v23 = vld [vmem:[#allocation2 + $0xbb0] ss:$112 sps:$4 sm:$0xff]  }
 0x589   :  { %v3091_v39 = vpop.f32.mrf.mxu0  ;;  %v13659_v62 = vpop.f32.mrf.mxu1 }
 0x58b   :  { %v3093_v61 = vpop.f32.mrf.mxu0  ;;  %v13660_v12 = vpop.f32.mrf.mxu1 }
 0x58c   :  { %v13661_v22 = vadd.f32 %v13660_v12, %v13659_v62  ;;  %v14621_v62 = vld [vmem:[#allocation2 + $0x11d0] ss:$112 sps:$4 sm:$0xff]   ;;  %v14629_v12 = vld [vmem:[#allocation2 + $0x10f4] ss:$112 sps:$4 sm:$0xff]  }
 0x58d   :  { %v3095_v11 = vpop.f32.mrf.mxu0  ;;  %v13662_v15 = vpop.f32.mrf.mxu1 }
 0x58f   :  { %v3097_v14 = vpop.f32.mrf.mxu0  ;;  %v13663_v20 = vpop.f32.mrf.mxu1 }
 0x590   :  { %v13664_v26 = vadd.f32 %v13663_v20, %v13662_v15  ;;  %v14627_v15 = vld [vmem:[#allocation2 + $0x10f0] ss:$112 sps:$4 sm:$0xff]  }
 0x591   :  { %v14633_v20 = vld [vmem:[#allocation2 + $0x1010] ss:$112 sps:$4 sm:$0xff]  }
 0x5a9   :  { %v13681_v17 = vpop.f32.mrf.mxu0 }
 0x5ab   :  { %v13682_v18 = vpop.f32.mrf.mxu0 }
 0x5ac   :  { %v13683_v19 = vadd.f32 %v13682_v18, %v13681_v17  ;;  %v14630_v17 = vld [vmem:[#allocation2 + $0x9f0] ss:$112 sps:$4 sm:$0xff]   ;;  %v14635_v18 = vld [vmem:[#allocation2 + $0x1014] ss:$112 sps:$4 sm:$0xff]  }
 0x5ad   :  { %v13684_v21 = vpop.f32.mrf.mxu0 }
 0x5ae   :  { %v3475_v27 = vadd.f32 %v13683_v19, %v13661_v22  ;;  %v14638_v19 = vld [vmem:[#allocation2 + $0x914] ss:$112 sps:$4 sm:$0xff]  }
 0x5af   :  { %v13685_v24 = vpop.f32.mrf.mxu0  ;;  %v14641_v22 = vld [vmem:[#allocation2 + $0xf34] ss:$112 sps:$4 sm:$0xff]  }
 0x5b0   :  { %v13686_v28 = vadd.f32 %v13685_v24, %v13684_v21  ;;  %v3483_v30 = vadd.f32 %v3475_v27, %v15996_v2  ;;  %v14584_v2 = vld [vmem:[#allocation2 + $0x2f4] ss:$112 sps:$4 sm:$0xff]   ;;  %v14636_v21 = vld [vmem:[#allocation2 + $0x910] ss:$112 sps:$4 sm:$0xff]  }
 0x5b1   :  { %v14644_v24 = vld [vmem:[#allocation2 + $0x834] ss:$112 sps:$4 sm:$0xff]   ;;  %v14642_v27 = vld [vmem:[#allocation2 + $0x830] ss:$112 sps:$4 sm:$0xff]  }
 0x5b2   :  { %v3478_v29 = vadd.f32 %v13686_v28, %v13664_v26  ;;  %v14639_v26 = vld [vmem:[#allocation2 + $0xf30] ss:$112 sps:$4 sm:$0xff]   ;;  %v14647_v28 = vld [vmem:[#allocation2 + $0xe54] ss:$112 sps:$4 sm:$0xff]  }
 0x5b4   :  { %v3486_v31 = vadd.f32 %v3478_v29, %v16002_v5  ;;  %v14582_v5 = vld [vmem:[#allocation2 + $0x2f0] ss:$112 sps:$4 sm:$0xff]   ;;  %v14650_v29 = vld [vmem:[#allocation2 + $0x754] ss:$112 sps:$4 sm:$0xff]  }
 0x5b6   :  { %v16174_v33 = vpack.c.bf16 %v3486_v31, %v3483_v30  ;;  %v14645_v30 = vld [vmem:[#allocation2 + $0xe50] ss:$112 sps:$4 sm:$0xff]  }
 0x5b7   :  { %v14648_v31 = vld [vmem:[#allocation2 + $0x750] ss:$112 sps:$4 sm:$0xff]  }
 0x5b8   :  { %4718 = vmatmul.mubr.bf16.vlgmr.msra.gmra.mxu1 %v16174_v33 }
 0x5b9   :  { %4729 = vmatpush1.bf16.msra.mxu1 %v14558_v32  ;;  %v14653_v32 = vld [vmem:[#allocation2 + $0x67c] ss:$112 sps:$4 sm:$0xff]  }
 0x5ba   :  { %4730 = vmatprep.subr.bf16.mxu1 %v14566_v34  ;;  %v14656_v34 = vld [vmem:[#allocation2 + $0x147c] ss:$112 sps:$4 sm:$0xff]  }
 0x5bd   :  { %4731 = vmatpush1.bf16.msra.mxu1 %v14564_v35  ;;  %v14651_v35 = vld [vmem:[#allocation2 + $0x678] ss:$112 sps:$4 sm:$0xff]  }
 0x5be   :  { %4732 = vmatprep.subr.bf16.mxu1 %v14572_v36  ;;  %v14654_v36 = vld [vmem:[#allocation2 + $0x1478] ss:$112 sps:$4 sm:$0xff]  }
 0x5c1   :  { %4733 = vmatpush1.bf16.msra.mxu1 %v14570_v37  ;;  %v14659_v37 = vld [vmem:[#allocation2 + $0x59c] ss:$112 sps:$4 sm:$0xff]  }
 0x5c2   :  { %4734 = vmatprep.subr.bf16.mxu1 %v14578_v38  ;;  %v14662_v38 = vld [vmem:[#allocation2 + $0x139c] ss:$112 sps:$4 sm:$0xff]  }
 0x5c5   :  { %4735 = vmatpush1.bf16.msra.mxu1 %v14576_v40  ;;  %v14657_v40 = vld [vmem:[#allocation2 + $0x598] ss:$112 sps:$4 sm:$0xff]  }
 0x5c6   :  { %4736 = vmatprep.subr.bf16.mxu1 %v14584_v2  ;;  %v14660_v2 = vld [vmem:[#allocation2 + $0x1398] ss:$112 sps:$4 sm:$0xff]  }
 0x5c9   :  { %4737 = vmatpush1.bf16.msra.mxu1 %v14582_v5  ;;  %v3431_v55 = vpop.f32.mrf.mxu1  ;;  %v14665_v5 = vld [vmem:[#allocation2 + $0x4bc] ss:$112 sps:$4 sm:$0xff]  }
 0x5ca   :  { %4738 = vmatprep.subr.bf16.mxu1 %v14590_v42  ;;  %v3432_v16 = vadd.f32 %v3431_v55, %v3091_v39  ;;  %v14623_v39 = vld [vmem:[#allocation2 + $0x11d4] ss:$112 sps:$4 sm:$0xff]   ;;  %v14668_v42 = vld [vmem:[#allocation2 + $0x12bc] ss:$112 sps:$4 sm:$0xff]   ;;  %v14663_v55 = vld [vmem:[#allocation2 + $0x4b8] ss:$112 sps:$4 sm:$0xff]  }
 0x5cb   :  { %v3433_v43 = vpop.f32.mrf.mxu1 }
 0x5cc   :  { %v3434_v47 = vadd.f32 %v3433_v43, %v3093_v61  ;;  %v3481_v59 = vadd.f32 %v3432_v16, %v15992_v0  ;;  %v14612_v0 = vld [vmem:[#allocation2 + $0xc90] ss:$112 sps:$4 sm:$0xff]   ;;  %v14626_v61 = vld [vmem:[#allocation2 + $0xad4] ss:$112 sps:$4 sm:$0xff]   ;;  %v14674_v43 = vld [vmem:[#allocation2 + $0x11dc] ss:$112 sps:$4 sm:$0xff]  }
 0x5cd   :  { %4739 = vmatpush1.bf16.msra.mxu1 %v14588_v63  ;;  %v3435_v49 = vpop.f32.mrf.mxu1  ;;  %v14666_v63 = vld [vmem:[#allocation2 + $0x12b8] ss:$112 sps:$4 sm:$0xff]  }
 0x5ce   :  { %v3436_v41 = vadd.f32 %v3435_v49, %v3095_v11  ;;  %4740 = vmatprep.subr.bf16.mxu1 %v14596_v10  ;;  %v3482_v52 = vadd.f32 %v3434_v47, %v15994_v1  ;;  %v14609_v1 = vld [vmem:[#allocation2 + $0x1390] ss:$112 sps:$4 sm:$0xff]   ;;  %v14671_v10 = vld [vmem:[#allocation2 + $0x3dc] ss:$112 sps:$4 sm:$0xff]   ;;  %v14669_v49 = vld [vmem:[#allocation2 + $0x3d8] ss:$112 sps:$4 sm:$0xff]  }
 0x5cf   :  { %v3437_v48 = vpop.f32.mrf.mxu1  ;;  %v14624_v11 = vld [vmem:[#allocation2 + $0xad0] ss:$112 sps:$4 sm:$0xff]   ;;  %v14677_v47 = vld [vmem:[#allocation2 + $0x2fc] ss:$112 sps:$4 sm:$0xff]   ;;  %v14678_v16 = vld [vmem:[#allocation2 + $0x10f8] ss:$112 sps:$4 sm:$0xff]  }
 0x5d0   :  { %v3438_v60 = vadd.f32 %v3437_v48, %v3097_v14  ;;  %v3484_v50 = vadd.f32 %v3436_v41, %v15998_v3  ;;  %v14614_v3 = vld [vmem:[#allocation2 + $0xc94] ss:$112 sps:$4 sm:$0xff]   ;;  %v14680_v41 = vld [vmem:[#allocation2 + $0x10fc] ss:$112 sps:$4 sm:$0xff]  }
 0x5d1   :  { %4741 = vmatpush1.bf16.msra.mxu1 %v14594_v45  ;;  %v14632_v14 = vld [vmem:[#allocation2 + $0x9f4] ss:$112 sps:$4 sm:$0xff]   ;;  %v14672_v45 = vld [vmem:[#allocation2 + $0x11d8] ss:$112 sps:$4 sm:$0xff]   ;;  %v14683_v48 = vld [vmem:[#allocation2 + $0x21c] ss:$112 sps:$4 sm:$0xff]  }
 0x5d2   :  { %v3485_v53 = vadd.f32 %v3438_v60, %v16000_v4  ;;  %4742 = vmatprep.subr.bf16.mxu1 %v14602_v13  ;;  %v16183_v57 = vpack.c.bf16 %v3484_v50, %v3481_v59  ;;  %v14617_v4 = vld [vmem:[#allocation2 + $0x12b4] ss:$112 sps:$4 sm:$0xff]   ;;  %v14675_v13 = vld [vmem:[#allocation2 + $0x2f8] ss:$112 sps:$4 sm:$0xff]   ;;  %v14686_v60 = vld [vmem:[#allocation2 + $0x101c] ss:$112 sps:$4 sm:$0xff]  }
 0x5d3   :  { %v14681_v50 = vld [vmem:[#allocation2 + $0x218] ss:$112 sps:$4 sm:$0xff]  }
 0x5d4   :  { %v16181_v46 = vpack.c.bf16 %v3485_v53, %v3482_v52  ;;  %v14689_v52 = vld [vmem:[#allocation2 + $0x13c] ss:$112 sps:$4 sm:$0xff]   ;;  %v14687_v59 = vld [vmem:[#allocation2 + $0x138] ss:$112 sps:$4 sm:$0xff]  }
 0x5d5   :  { %4743 = vmatpush1.bf16.msra.mxu1 %v14600_v51  ;;  %v14684_v51 = vld [vmem:[#allocation2 + $0x1018] ss:$112 sps:$4 sm:$0xff]   ;;  %v14692_v53 = vld [vmem:[#allocation2 + $0xf3c] ss:$112 sps:$4 sm:$0xff]  }
 0x5d6   :  { %4674 = vmatprep.mubr.bf16.mxu0 %v16181_v46  ;;  %4760 = vmatprep.mubr.bf16.mxu1 %v16181_v46 }
 0x5d7   :  { %4675 = vmatmul.mubr.bf16.vlgmr.msra.gmra.mxu0 %v16183_v57  ;;  %4744 = vmatprep.subr.bf16.mxu1 %v14608_v54  ;;  %v14690_v54 = vld [vmem:[#allocation2 + $0xf38] ss:$112 sps:$4 sm:$0xff]  }
 0x5d8   :  { %4772 = vmatpush1.bf16.msra.mxu0 %v14603_v56  ;;  %4803 = vmatprep.mubr.bf16.mxu0 %v15925_v9  ;;  %v14695_v56 = vld [vmem:[#allocation2 + $0x5c] ss:$112 sps:$4 sm:$0xff]  }
 0x5d9   :  { %4745 = vmatpush2.bf16.msra.mxu1 %v14606_v58  ;;  %4773 = vmatprep.subr.bf16.mxu0 %v14611_v8  ;;  %v14698_v58 = vld [vmem:[#allocation2 + $0xe5c] ss:$112 sps:$4 sm:$0xff]   ;;  %v14693_v8 = vld [vmem:[#allocation2 + $0x58] ss:$112 sps:$4 sm:$0xff]  }
 0x5da   :  { %4746 = vmatprep.subr.bf16.mxu1 %v14614_v3  ;;  %v14696_v3 = vld [vmem:[#allocation2 + $0xe58] ss:$112 sps:$4 sm:$0xff]  }
 0x5dc   :  { %4774 = vmatpush1.bf16.msra.mxu0 %v14609_v1  ;;  %v14701_v1 = vld [vmem:[#allocation2 + $0xd7c] ss:$112 sps:$4 sm:$0xff]  }
 0x5dd   :  { %4747 = vmatpush2.bf16.msra.mxu1 %v14612_v0  ;;  %4775 = vmatprep.subr.bf16.mxu0 %v14617_v4  ;;  %v14704_v0 = vld [vmem:[#allocation2 + $0x684] ss:$112 sps:$4 sm:$0xff]   ;;  %v14699_v4 = vld [vmem:[#allocation2 + $0xd78] ss:$112 sps:$4 sm:$0xff]  }
 0x5de   :  { %4748 = vmatprep.subr.bf16.mxu1 %v14620_v44  ;;  %v14702_v44 = vld [vmem:[#allocation2 + $0x680] ss:$112 sps:$4 sm:$0xff]  }
 0x5e0   :  { %4776 = vmatpush1.bf16.msra.mxu0 %v14615_v25  ;;  %v14707_v25 = vld [vmem:[#allocation2 + $0xc9c] ss:$112 sps:$4 sm:$0xff]  }
 0x5e1   :  { %4749 = vmatpush2.bf16.msra.mxu1 %v14618_v23  ;;  %4777 = vmatprep.subr.bf16.mxu0 %v14623_v39  ;;  %v14710_v23 = vld [vmem:[#allocation2 + $0x5a4] ss:$112 sps:$4 sm:$0xff]   ;;  %v14705_v39 = vld [vmem:[#allocation2 + $0xc98] ss:$112 sps:$4 sm:$0xff]  }
 0x5e2   :  { %4750 = vmatprep.subr.bf16.mxu1 %v14626_v61  ;;  %v14708_v61 = vld [vmem:[#allocation2 + $0x5a0] ss:$112 sps:$4 sm:$0xff]  }
 0x5e4   :  { %4778 = vmatpush1.bf16.msra.mxu0 %v14621_v62  ;;  %v14713_v62 = vld [vmem:[#allocation2 + $0xbbc] ss:$112 sps:$4 sm:$0xff]  }
 0x5e5   :  { %4751 = vmatpush2.bf16.msra.mxu1 %v14624_v11  ;;  %4779 = vmatprep.subr.bf16.mxu0 %v14629_v12  ;;  %v14716_v11 = vld [vmem:[#allocation2 + $0x4c4] ss:$112 sps:$4 sm:$0xff]   ;;  %v14711_v12 = vld [vmem:[#allocation2 + $0xbb8] ss:$112 sps:$4 sm:$0xff]  }
 0x5e6   :  { %4752 = vmatprep.subr.bf16.mxu1 %v14632_v14  ;;  %v14714_v14 = vld [vmem:[#allocation2 + $0x4c0] ss:$112 sps:$4 sm:$0xff]  }
 0x5e8   :  { %4780 = vmatpush1.bf16.msra.mxu0 %v14627_v15  ;;  %v14719_v15 = vld [vmem:[#allocation2 + $0xadc] ss:$112 sps:$4 sm:$0xff]  }
 0x5e9   :  { %4753 = vmatpush2.bf16.msra.mxu1 %v14630_v17  ;;  %4781 = vmatprep.subr.bf16.mxu0 %v14635_v18  ;;  %v14722_v17 = vld [vmem:[#allocation2 + $0x3e4] ss:$112 sps:$4 sm:$0xff]   ;;  %v14717_v18 = vld [vmem:[#allocation2 + $0xad8] ss:$112 sps:$4 sm:$0xff]  }
 0x5ea   :  { %4754 = vmatprep.subr.bf16.mxu1 %v14638_v19  ;;  %v14720_v19 = vld [vmem:[#allocation2 + $0x3e0] ss:$112 sps:$4 sm:$0xff]  }
 0x5ec   :  { %4782 = vmatpush1.bf16.msra.mxu0 %v14633_v20  ;;  %v14725_v20 = vld [vmem:[#allocation2 + $0x9fc] ss:$112 sps:$4 sm:$0xff]  }
 0x5ed   :  { %4755 = vmatpush2.bf16.msra.mxu1 %v14636_v21  ;;  %4783 = vmatprep.subr.bf16.mxu0 %v14641_v22  ;;  %v14723_v21 = vld [vmem:[#allocation2 + $0x9f8] ss:$112 sps:$4 sm:$0xff]   ;;  %v14726_v22 = vld [vmem:[#allocation2 + $0x300] ss:$112 sps:$4 sm:$0xff]  }
 0x5ee   :  { %4756 = vmatprep.subr.bf16.mxu1 %v14644_v24  ;;  %v14731_v24 = vld [vmem:[#allocation2 + $0x91c] ss:$112 sps:$4 sm:$0xff]  }
 0x5f0   :  { %4784 = vmatpush1.bf16.msra.mxu0 %v14639_v26  ;;  %v14734_v26 = vld [vmem:[#allocation2 + $0x224] ss:$112 sps:$4 sm:$0xff]  }
 0x5f1   :  { %4757 = vmatpush2.bf16.msra.mxu1 %v14642_v27  ;;  %4785 = vmatprep.subr.bf16.mxu0 %v14647_v28  ;;  %v14729_v27 = vld [vmem:[#allocation2 + $0x918] ss:$112 sps:$4 sm:$0xff]   ;;  %v14732_v28 = vld [vmem:[#allocation2 + $0x220] ss:$112 sps:$4 sm:$0xff]  }
 0x5f2   :  { %4758 = vmatprep.subr.bf16.mxu1 %v14650_v29  ;;  %v14737_v29 = vld [vmem:[#allocation2 + $0x83c] ss:$112 sps:$4 sm:$0xff]  }
 0x5f4   :  { %4786 = vmatpush1.bf16.msra.mxu0 %v14645_v30  ;;  %v14740_v30 = vld [vmem:[#allocation2 + $0x144] ss:$112 sps:$4 sm:$0xff]  }
 0x5f5   :  { %4759 = vmatpush2.bf16.msra.mxu1 %v14648_v31  ;;  %4814 = vmatprep.subr.bf16.mxu0 %v14653_v32  ;;  %v14735_v31 = vld [vmem:[#allocation2 + $0x838] ss:$112 sps:$4 sm:$0xff]   ;;  %v14738_v32 = vld [vmem:[#allocation2 + $0x140] ss:$112 sps:$4 sm:$0xff]  }
 0x5f6   :  { %4857 = vmatprep.subr.bf16.mxu1 %v14656_v34  ;;  %v14743_v34 = vld [vmem:[#allocation2 + $0x75c] ss:$112 sps:$4 sm:$0xff]  }
 0x5f7   :  { %4804 = vmatmul.mubr.bf16.vlgmr.msra.gmra.mxu0 %v16174_v33 }
 0x5f8   :  { %4761 = vmatmul.mubr.bf16.vlgmr.msra.gmra.mxu1 %v16183_v57  ;;  %4815 = vmatpush1.bf16.msra.mxu0 %v14651_v35  ;;  %v14746_v35 = vld [vmem:[#allocation2 + $0x64] ss:$112 sps:$4 sm:$0xff]  }
 0x5f9   :  { %4846 = vmatprep.mubr.bf16.mxu0 %v16181_v46  ;;  %4858 = vmatpush1.bf16.msra.mxu1 %v14654_v36  ;;  %v14741_v36 = vld [vmem:[#allocation2 + $0x758] ss:$112 sps:$4 sm:$0xff]  }
 0x5fa   :  { %4816 = vmatprep.subr.bf16.mxu0 %v14659_v37  ;;  %4859 = vmatprep.subr.bf16.mxu1 %v14662_v38  ;;  %v14744_v37 = vld [vmem:[#allocation2 + $0x60] ss:$112 sps:$4 sm:$0xff]   ;;  %v14749_v38 = vld [vmem:[#allocation2 + $0x1484] ss:$112 sps:$4 sm:$0xff]  }
 0x5fb   :  { %4889 = vmatprep.mubr.bf16.mxu1 %v15925_v9 }
 0x5fc   :  { %4817 = vmatpush1.bf16.msra.mxu0 %v14657_v40  ;;  %v14752_v40 = vld [vmem:[#allocation2 + $0xd84] ss:$112 sps:$4 sm:$0xff]  }
 0x5fd   :  { %4860 = vmatpush1.bf16.msra.mxu1 %v14660_v2  ;;  %4818 = vmatprep.subr.bf16.mxu0 %v14665_v5  ;;  %v14747_v2 = vld [vmem:[#allocation2 + $0x1480] ss:$112 sps:$4 sm:$0xff]  }
 0x5fe   :  { %4861 = vmatprep.subr.bf16.mxu1 %v14668_v42  ;;  %v14750_v5 = vld [vmem:[#allocation2 + $0xd80] ss:$112 sps:$4 sm:$0xff]   ;;  %v14755_v42 = vld [vmem:[#allocation2 + $0x13a4] ss:$112 sps:$4 sm:$0xff]  }
 0x600   :  { %4819 = vmatpush1.bf16.msra.mxu0 %v14663_v55  ;;  %v14758_v55 = vld [vmem:[#allocation2 + $0xca4] ss:$112 sps:$4 sm:$0xff]  }
 0x601   :  { %4862 = vmatpush1.bf16.msra.mxu1 %v14666_v63  ;;  %4820 = vmatprep.subr.bf16.mxu0 %v14671_v10  ;;  %v14753_v63 = vld [vmem:[#allocation2 + $0x13a0] ss:$112 sps:$4 sm:$0xff]  }
 0x602   :  { %4863 = vmatprep.subr.bf16.mxu1 %v14674_v43  ;;  %v14756_v10 = vld [vmem:[#allocation2 + $0xca0] ss:$112 sps:$4 sm:$0xff]   ;;  %v14761_v43 = vld [vmem:[#allocation2 + $0x12c4] ss:$112 sps:$4 sm:$0xff]  }
 0x604   :  { %4821 = vmatpush1.bf16.msra.mxu0 %v14669_v49  ;;  %v14764_v49 = vld [vmem:[#allocation2 + $0xbc4] ss:$112 sps:$4 sm:$0xff]  }
 0x605   :  { %4864 = vmatpush1.bf16.msra.mxu1 %v14672_v45  ;;  %4822 = vmatprep.subr.bf16.mxu0 %v14677_v47  ;;  %v14759_v45 = vld [vmem:[#allocation2 + $0x12c0] ss:$112 sps:$4 sm:$0xff]  }
 0x606   :  { %4865 = vmatprep.subr.bf16.mxu1 %v14680_v41  ;;  %v14762_v47 = vld [vmem:[#allocation2 + $0xbc0] ss:$112 sps:$4 sm:$0xff]   ;;  %v14767_v41 = vld [vmem:[#allocation2 + $0x11e4] ss:$112 sps:$4 sm:$0xff]  }
 0x608   :  { %4823 = vmatpush1.bf16.msra.mxu0 %v14675_v13  ;;  %v14770_v13 = vld [vmem:[#allocation2 + $0xae4] ss:$112 sps:$4 sm:$0xff]  }
 0x609   :  { %4866 = vmatpush1.bf16.msra.mxu1 %v14678_v16  ;;  %4824 = vmatprep.subr.bf16.mxu0 %v14683_v48  ;;  %v14765_v16 = vld [vmem:[#allocation2 + $0x11e0] ss:$112 sps:$4 sm:$0xff]  }
 0x60a   :  { %4867 = vmatprep.subr.bf16.mxu1 %v14686_v60  ;;  %v14768_v48 = vld [vmem:[#allocation2 + $0xae0] ss:$112 sps:$4 sm:$0xff]   ;;  %v14773_v60 = vld [vmem:[#allocation2 + $0x1104] ss:$112 sps:$4 sm:$0xff]  }
 0x60c   :  { %4825 = vmatpush1.bf16.msra.mxu0 %v14681_v50  ;;  %v14776_v50 = vld [vmem:[#allocation2 + $0xa04] ss:$112 sps:$4 sm:$0xff]  }
 0x60d   :  { %4868 = vmatpush1.bf16.msra.mxu1 %v14684_v51  ;;  %4826 = vmatprep.subr.bf16.mxu0 %v14689_v52  ;;  %v14771_v51 = vld [vmem:[#allocation2 + $0x1100] ss:$112 sps:$4 sm:$0xff]  }
 0x60e   :  { %4869 = vmatprep.subr.bf16.mxu1 %v14692_v53  ;;  %v14774_v52 = vld [vmem:[#allocation2 + $0xa00] ss:$112 sps:$4 sm:$0xff]   ;;  %v14779_v53 = vld [vmem:[#allocation2 + $0x1024] ss:$112 sps:$4 sm:$0xff]  }
 0x610   :  { %4827 = vmatpush1.bf16.msra.mxu0 %v14687_v59  ;;  %v14782_v59 = vld [vmem:[#allocation2 + $0x924] ss:$112 sps:$4 sm:$0xff]  }
 0x611   :  { %4870 = vmatpush1.bf16.msra.mxu1 %v14690_v54  ;;  %4828 = vmatprep.subr.bf16.mxu0 %v14695_v56  ;;  %v14777_v54 = vld [vmem:[#allocation2 + $0x1020] ss:$112 sps:$4 sm:$0xff]  }
 0x612   :  { %4871 = vmatprep.subr.bf16.mxu1 %v14698_v58  ;;  %v14780_v56 = vld [vmem:[#allocation2 + $0x920] ss:$112 sps:$4 sm:$0xff]   ;;  %v14785_v58 = vld [vmem:[#allocation2 + $0xf44] ss:$112 sps:$4 sm:$0xff]  }
 0x614   :  { %4829 = vmatpush1.bf16.msra.mxu0 %v14693_v8  ;;  %v14788_v8 = vld [vmem:[#allocation2 + $0x844] ss:$112 sps:$4 sm:$0xff]  }
 0x615   :  { %4872 = vmatpush1.bf16.msra.mxu1 %v14696_v3  ;;  %4830 = vmatprep.subr.bf16.mxu0 %v14701_v1  ;;  %v14783_v3 = vld [vmem:[#allocation2 + $0xf40] ss:$112 sps:$4 sm:$0xff]  }
 0x616   :  { %4900 = vmatprep.subr.bf16.mxu1 %v14704_v0  ;;  %v14786_v1 = vld [vmem:[#allocation2 + $0x840] ss:$112 sps:$4 sm:$0xff]   ;;  %v14791_v0 = vld [vmem:[#allocation2 + $0xe64] ss:$112 sps:$4 sm:$0xff]  }
 0x618   :  { %4831 = vmatpush2.bf16.msra.mxu0 %v14699_v4  ;;  %4890 = vmatmul.mubr.bf16.vlgmr.msra.gmra.mxu1 %v16174_v33  ;;  %v14794_v4 = vld [vmem:[#allocation2 + $0x764] ss:$112 sps:$4 sm:$0xff]  }
 0x619   :  { %4901 = vmatpush1.bf16.msra.mxu1 %v14702_v44  ;;  %4932 = vmatprep.mubr.bf16.mxu1 %v16181_v46  ;;  %v14728_v46 = vld [vmem:[#allocation2 + $0x304] ss:$112 sps:$4 sm:$0xff]   ;;  %v14789_v44 = vld [vmem:[#allocation2 + $0xe60] ss:$112 sps:$4 sm:$0xff]  }
 0x61a   :  { %4832 = vmatprep.subr.bf16.mxu0 %v14707_v25  ;;  %4902 = vmatprep.subr.bf16.mxu1 %v14710_v23  ;;  %v14792_v25 = vld [vmem:[#allocation2 + $0x760] ss:$112 sps:$4 sm:$0xff]   ;;  %v14797_v23 = vld [vmem:[#allocation2 + $0x68c] ss:$112 sps:$4 sm:$0xff]  }
 0x61c   :  { %4833 = vmatpush2.bf16.msra.mxu0 %v14705_v39  ;;  %v14795_v39 = vld [vmem:[#allocation2 + $0x688] ss:$112 sps:$4 sm:$0xff]  }
 0x61d   :  { %4903 = vmatpush1.bf16.msra.mxu1 %v14708_v61  ;;  %4834 = vmatprep.subr.bf16.mxu0 %v14713_v62  ;;  %v14800_v61 = vld [vmem:[#allocation2 + $0x5ac] ss:$112 sps:$4 sm:$0xff]   ;;  %v14798_v62 = vld [vmem:[#allocation2 + $0x5a8] ss:$112 sps:$4 sm:$0xff]  }
 0x61e   :  { %4904 = vmatprep.subr.bf16.mxu1 %v14716_v11  ;;  %v14803_v11 = vld [vmem:[#allocation2 + $0x4cc] ss:$112 sps:$4 sm:$0xff]  }
 0x620   :  { %4835 = vmatpush2.bf16.msra.mxu0 %v14711_v12  ;;  %v14801_v12 = vld [vmem:[#allocation2 + $0x4c8] ss:$112 sps:$4 sm:$0xff]  }
 0x621   :  { %4905 = vmatpush1.bf16.msra.mxu1 %v14714_v14  ;;  %4836 = vmatprep.subr.bf16.mxu0 %v14719_v15  ;;  %v14806_v15 = vld [vmem:[#allocation2 + $0x3ec] ss:$112 sps:$4 sm:$0xff]  }
 0x622   :  { %4906 = vmatprep.subr.bf16.mxu1 %v14722_v17  ;;  %v14804_v17 = vld [vmem:[#allocation2 + $0x3e8] ss:$112 sps:$4 sm:$0xff]  }
 0x624   :  { %4837 = vmatpush2.bf16.msra.mxu0 %v14717_v18  ;;  %v14807_v18 = vld [vmem:[#allocation2 + $0x308] ss:$112 sps:$4 sm:$0xff]  }
 0x625   :  { %4907 = vmatpush1.bf16.msra.mxu1 %v14720_v19  ;;  %4838 = vmatprep.subr.bf16.mxu0 %v14725_v20 }
 0x626   :  { %4908 = vmatprep.subr.bf16.mxu1 %v14728_v46 }
 0x628   :  { %4839 = vmatpush2.bf16.msra.mxu0 %v14723_v21 }
 0x629   :  { %4909 = vmatpush1.bf16.msra.mxu1 %v14726_v22  ;;  %4840 = vmatprep.subr.bf16.mxu0 %v14731_v24  ;;  %v14812_v22 = vld [vmem:[#allocation2 + $0x22c] ss:$112 sps:$4 sm:$0xff]  }
 0x62a   :  { %4910 = vmatprep.subr.bf16.mxu1 %v14734_v26  ;;  %v14810_v26 = vld [vmem:[#allocation2 + $0x228] ss:$112 sps:$4 sm:$0xff]  }
 0x62c   :  { %4841 = vmatpush2.bf16.msra.mxu0 %v14729_v27 }
 0x62d   :  { %4911 = vmatpush1.bf16.msra.mxu1 %v14732_v28  ;;  %4842 = vmatprep.subr.bf16.mxu0 %v14737_v29 }
 0x62e   :  { %4912 = vmatprep.subr.bf16.mxu1 %v14740_v30 }
 0x630   :  { %4843 = vmatpush2.bf16.msra.mxu0 %v14735_v31  ;;  %v14815_v31 = vld [vmem:[#allocation2 + $0x14c] ss:$112 sps:$4 sm:$0xff]  }
 0x631   :  { %4913 = vmatpush1.bf16.msra.mxu1 %v14738_v32  ;;  %4844 = vmatprep.subr.bf16.mxu0 %v14743_v34  ;;  %v14813_v34 = vld [vmem:[#allocation2 + $0x148] ss:$112 sps:$4 sm:$0xff]  }
 0x632   :  { %4914 = vmatprep.subr.bf16.mxu1 %v14746_v35  ;;  %v14818_v35 = vld [vmem:[#allocation2 + $0x6c] ss:$112 sps:$4 sm:$0xff]  }
 0x634   :  { %4845 = vmatpush2.bf16.msra.mxu0 %v14741_v36  ;;  %v14816_v36 = vld [vmem:[#allocation2 + $0x68] ss:$112 sps:$4 sm:$0xff]  }
 0x635   :  { %4915 = vmatpush1.bf16.msra.mxu1 %v14744_v37  ;;  %4943 = vmatprep.subr.bf16.mxu0 %v14749_v38  ;;  %v14821_v37 = vld [vmem:[#allocation2 + $0xd8c] ss:$112 sps:$4 sm:$0xff]   ;;  %v14819_v38 = vld [vmem:[#allocation2 + $0xd88] ss:$112 sps:$4 sm:$0xff]  }
 0x636   :  { %4916 = vmatprep.subr.bf16.mxu1 %v14752_v40  ;;  %v14824_v40 = vld [vmem:[#allocation2 + $0x148c] ss:$112 sps:$4 sm:$0xff]  }
 0x637   :  { %4847 = vmatmul.mubr.bf16.vlgmr.msra.gmra.mxu0 %v16183_v57 }
 0x638   :  { %4944 = vmatpush1.bf16.msra.mxu0 %v14747_v2  ;;  %4975 = vmatprep.mubr.bf16.mxu0 %v15925_v9  ;;  %v14822_v2 = vld [vmem:[#allocation2 + $0x1488] ss:$112 sps:$4 sm:$0xff]  }
 0x639   :  { %4917 = vmatpush2.bf16.msra.mxu1 %v14750_v5  ;;  %4945 = vmatprep.subr.bf16.mxu0 %v14755_v42  ;;  %v14827_v5 = vld [vmem:[#allocation2 + $0xcac] ss:$112 sps:$4 sm:$0xff]   ;;  %v14825_v42 = vld [vmem:[#allocation2 + $0xca8] ss:$112 sps:$4 sm:$0xff]  }
 0x63a   :  { %4918 = vmatprep.subr.bf16.mxu1 %v14758_v55  ;;  %v14830_v55 = vld [vmem:[#allocation2 + $0x13ac] ss:$112 sps:$4 sm:$0xff]  }
 0x63c   :  { %4946 = vmatpush1.bf16.msra.mxu0 %v14753_v63  ;;  %v14828_v63 = vld [vmem:[#allocation2 + $0x13a8] ss:$112 sps:$4 sm:$0xff]  }
 0x63d   :  { %4919 = vmatpush2.bf16.msra.mxu1 %v14756_v10  ;;  %4947 = vmatprep.subr.bf16.mxu0 %v14761_v43  ;;  %v14833_v10 = vld [vmem:[#allocation2 + $0xbcc] ss:$112 sps:$4 sm:$0xff]   ;;  %v14831_v43 = vld [vmem:[#allocation2 + $0xbc8] ss:$112 sps:$4 sm:$0xff]  }
 0x63e   :  { %4920 = vmatprep.subr.bf16.mxu1 %v14764_v49  ;;  %v14836_v49 = vld [vmem:[#allocation2 + $0x12cc] ss:$112 sps:$4 sm:$0xff]  }
 0x640   :  { %4948 = vmatpush1.bf16.msra.mxu0 %v14759_v45  ;;  %v14834_v45 = vld [vmem:[#allocation2 + $0x12c8] ss:$112 sps:$4 sm:$0xff]  }
 0x641   :  { %4921 = vmatpush2.bf16.msra.mxu1 %v14762_v47  ;;  %4949 = vmatprep.subr.bf16.mxu0 %v14767_v41  ;;  %v14839_v47 = vld [vmem:[#allocation2 + $0xaec] ss:$112 sps:$4 sm:$0xff]   ;;  %v14837_v41 = vld [vmem:[#allocation2 + $0xae8] ss:$112 sps:$4 sm:$0xff]  }
 0x642   :  { %4922 = vmatprep.subr.bf16.mxu1 %v14770_v13  ;;  %v14842_v13 = vld [vmem:[#allocation2 + $0x11ec] ss:$112 sps:$4 sm:$0xff]  }
 0x644   :  { %4950 = vmatpush1.bf16.msra.mxu0 %v14765_v16  ;;  %v14840_v16 = vld [vmem:[#allocation2 + $0x11e8] ss:$112 sps:$4 sm:$0xff]  }
 0x645   :  { %4923 = vmatpush2.bf16.msra.mxu1 %v14768_v48  ;;  %4951 = vmatprep.subr.bf16.mxu0 %v14773_v60  ;;  %v14845_v48 = vld [vmem:[#allocation2 + $0xa0c] ss:$112 sps:$4 sm:$0xff]   ;;  %v14843_v60 = vld [vmem:[#allocation2 + $0xa08] ss:$112 sps:$4 sm:$0xff]  }
 0x646   :  { %4924 = vmatprep.subr.bf16.mxu1 %v14776_v50  ;;  %v14848_v50 = vld [vmem:[#allocation2 + $0x110c] ss:$112 sps:$4 sm:$0xff]  }
 0x648   :  { %4952 = vmatpush1.bf16.msra.mxu0 %v14771_v51  ;;  %v14846_v51 = vld [vmem:[#allocation2 + $0x1108] ss:$112 sps:$4 sm:$0xff]  }
 0x649   :  { %4925 = vmatpush2.bf16.msra.mxu1 %v14774_v52  ;;  %4953 = vmatprep.subr.bf16.mxu0 %v14779_v53  ;;  %v14851_v52 = vld [vmem:[#allocation2 + $0x92c] ss:$112 sps:$4 sm:$0xff]   ;;  %v14849_v53 = vld [vmem:[#allocation2 + $0x928] ss:$112 sps:$4 sm:$0xff]  }
 0x64a   :  { %4926 = vmatprep.subr.bf16.mxu1 %v14782_v59  ;;  %v14854_v59 = vld [vmem:[#allocation2 + $0x102c] ss:$112 sps:$4 sm:$0xff]  }
 0x64c   :  { %4954 = vmatpush1.bf16.msra.mxu0 %v14777_v54  ;;  %v14852_v54 = vld [vmem:[#allocation2 + $0x1028] ss:$112 sps:$4 sm:$0xff]  }
 0x64d   :  { %4927 = vmatpush2.bf16.msra.mxu1 %v14780_v56  ;;  %4955 = vmatprep.subr.bf16.mxu0 %v14785_v58  ;;  %v14857_v56 = vld [vmem:[#allocation2 + $0x84c] ss:$112 sps:$4 sm:$0xff]   ;;  %v14855_v58 = vld [vmem:[#allocation2 + $0x848] ss:$112 sps:$4 sm:$0xff]  }
 0x64e   :  { %4928 = vmatprep.subr.bf16.mxu1 %v14788_v8  ;;  %v14860_v8 = vld [vmem:[#allocation2 + $0xf4c] ss:$112 sps:$4 sm:$0xff]  }
 0x650   :  { %4956 = vmatpush1.bf16.msra.mxu0 %v14783_v3  ;;  %v14858_v3 = vld [vmem:[#allocation2 + $0xf48] ss:$112 sps:$4 sm:$0xff]  }
 0x651   :  { %4929 = vmatpush2.bf16.msra.mxu1 %v14786_v1  ;;  %4957 = vmatprep.subr.bf16.mxu0 %v14791_v0  ;;  %v14863_v1 = vld [vmem:[#allocation2 + $0x76c] ss:$112 sps:$4 sm:$0xff]   ;;  %v14861_v0 = vld [vmem:[#allocation2 + $0x768] ss:$112 sps:$4 sm:$0xff]  }
 0x652   :  { %4930 = vmatprep.subr.bf16.mxu1 %v14794_v4  ;;  %v14866_v4 = vld [vmem:[#allocation2 + $0xe6c] ss:$112 sps:$4 sm:$0xff]  }
 0x654   :  { %4958 = vmatpush1.bf16.msra.mxu0 %v14789_v44  ;;  %v14864_v44 = vld [vmem:[#allocation2 + $0xe68] ss:$112 sps:$4 sm:$0xff]  }
 0x655   :  { %4931 = vmatpush2.bf16.msra.mxu1 %v14792_v25  ;;  %5342 = vmatprep.subr.bf16.mxu0 %v14797_v23 }
 0x656   :  { %5385 = vmatprep.subr.bf16.mxu1 %v14824_v40 }
 0x657   :  { %4976 = vmatmul.mubr.bf16.vlgmr.msra.gmra.mxu0 %v16174_v33 }
 0x658   :  { %4933 = vmatmul.mubr.bf16.vlgmr.msra.gmra.mxu1 %v16183_v57  ;;  %5343 = vmatpush1.bf16.msra.mxu0 %v14795_v39  ;;  %v14809_v57 = vld [vmem:[#allocation2 + $0x30c] ss:$112 sps:$4 sm:$0xff]  }
 0x659   :  { %5417 = vmatprep.mubr.bf16.mxu1 %v15925_v9  ;;  %5344 = vmatprep.subr.bf16.mxu0 %v14800_v61 }
 0x65a   :  { %5386 = vmatpush1.bf16.msra.mxu1 %v14822_v2 }
 0x65b   :  { %5387 = vmatprep.subr.bf16.mxu1 %v14830_v55 }
 0x65c   :  { %5345 = vmatpush1.bf16.msra.mxu0 %v14798_v62 }
 0x65d   :  { %5346 = vmatprep.subr.bf16.mxu0 %v14803_v11 }
 0x65e   :  { %5388 = vmatpush1.bf16.msra.mxu1 %v14828_v63 }
 0x65f   :  { %5389 = vmatprep.subr.bf16.mxu1 %v14836_v49 }
 0x660   :  { %5347 = vmatpush1.bf16.msra.mxu0 %v14801_v12 }
 0x661   :  { %5348 = vmatprep.subr.bf16.mxu0 %v14806_v15 }
 0x662   :  { %5390 = vmatpush1.bf16.msra.mxu1 %v14834_v45 }
 0x663   :  { %5391 = vmatprep.subr.bf16.mxu1 %v14842_v13 }
 0x664   :  { %5349 = vmatpush1.bf16.msra.mxu0 %v14804_v17 }
 0x665   :  { %5350 = vmatprep.subr.bf16.mxu0 %v14809_v57 }
 0x666   :  { %5392 = vmatpush1.bf16.msra.mxu1 %v14840_v16 }
 0x667   :  { %5393 = vmatprep.subr.bf16.mxu1 %v14848_v50 }
 0x668   :  { %5351 = vmatpush1.bf16.msra.mxu0 %v14807_v18 }
 0x669   :  { %5352 = vmatprep.subr.bf16.mxu0 %v14812_v22 }
 0x66a   :  { %5394 = vmatpush1.bf16.msra.mxu1 %v14846_v51 }
 0x66b   :  { %5395 = vmatprep.subr.bf16.mxu1 %v14854_v59 }
 0x66c   :  { %5353 = vmatpush1.bf16.msra.mxu0 %v14810_v26 }
 0x66d   :  { %5354 = vmatprep.subr.bf16.mxu0 %v14815_v31 }
 0x66e   :  { %5396 = vmatpush1.bf16.msra.mxu1 %v14852_v54 }
 0x66f   :  { %5397 = vmatprep.subr.bf16.mxu1 %v14860_v8 }
 0x670   :  { %5355 = vmatpush1.bf16.msra.mxu0 %v14813_v34 }
 0x671   :  { %5356 = vmatprep.subr.bf16.mxu0 %v14818_v35 }
 0x672   :  { %5398 = vmatpush1.bf16.msra.mxu1 %v14858_v3 }
 0x673   :  { %5399 = vmatprep.subr.bf16.mxu1 %v14866_v4 }
 0x674   :  { %5357 = vmatpush1.bf16.msra.mxu0 %v14816_v36 }
 0x675   :  { %5358 = vmatprep.subr.bf16.mxu0 %v14821_v37 }
 0x676   :  { %5400 = vmatpush1.bf16.msra.mxu1 %v14864_v44 }
 0x678   :  { %v4719_v14 = vpop.f32.mrf.mxu1  ;;  %5359 = vmatpush2.bf16.msra.mxu0 %v14819_v38 }
 0x679   :  { %5360 = vmatprep.subr.bf16.mxu0 %v14827_v5 }
 0x67a   :  { %v4721_v33 = vpop.f32.mrf.mxu1 }
 0x67c   :  { %v4723_v46 = vpop.f32.mrf.mxu1  ;;  %5361 = vmatpush2.bf16.msra.mxu0 %v14825_v42 }
 0x67d   :  { %5362 = vmatprep.subr.bf16.mxu0 %v14833_v10 }
 0x67e   :  { %v4725_v29 = vpop.f32.mrf.mxu1 }
 0x680   :  { %5363 = vmatpush2.bf16.msra.mxu0 %v14831_v43 }
 0x681   :  { %5364 = vmatprep.subr.bf16.mxu0 %v14839_v47 }
 0x684   :  { %5365 = vmatpush2.bf16.msra.mxu0 %v14837_v41 }
 0x685   :  { %5366 = vmatprep.subr.bf16.mxu0 %v14845_v48 }
 0x688   :  { %5367 = vmatpush2.bf16.msra.mxu0 %v14843_v60 }
 0x689   :  { %5368 = vmatprep.subr.bf16.mxu0 %v14851_v52 }
 0x68c   :  { %5369 = vmatpush2.bf16.msra.mxu0 %v14849_v53 }
 0x68d   :  { %5370 = vmatprep.subr.bf16.mxu0 %v14857_v56 }
 0x690   :  { %5371 = vmatpush2.bf16.msra.mxu0 %v14855_v58 }
 0x691   :  { %5372 = vmatprep.subr.bf16.mxu0 %v14863_v1 }
 0x694   :  { %5373 = vmatpush2.bf16.msra.mxu0 %v14861_v0 }
 0x697   :  { %v4676_v19 = vpop.f32.mrf.mxu0 }
 0x698   :  { %v16200_v20 = vadd.f32 %v4719_v14, %v4676_v19 }
 0x699   :  { %v4678_v21 = vpop.f32.mrf.mxu0 }
 0x69a   :  { %v16202_v24 = vadd.f32 %v4721_v33, %v4678_v21 }
 0x69b   :  { %v4680_v27 = vpop.f32.mrf.mxu0 }
 0x69c   :  { %v16204_v28 = vadd.f32 %v4723_v46, %v4680_v27 }
 0x69d   :  { %v4682_v30 = vpop.f32.mrf.mxu0 }
 0x69e   :  { %v16206_v32 = vadd.f32 %v4725_v29, %v4682_v30 }
 0x6b7   :  { %v16208_v25 = vpop.f32.mrf.mxu0 }
 0x6b8   :  { %v16210_v23 = vpop.f32.mrf.mxu1 }
 0x6b9   :  { %v16212_v39 = vpop.f32.mrf.mxu0 }
 0x6ba   :  { %v16214_v61 = vpop.f32.mrf.mxu1 }
 0x6bb   :  { %v16216_v62 = vpop.f32.mrf.mxu0 }
 0x6bc   :  { %v4766_v11 = vpop.f32.mrf.mxu1 }
 0x6bd   :  { %v16218_v12 = vpop.f32.mrf.mxu0  ;;  %v4810_v4 = vadd.f32 %v16216_v62, %v4766_v11 }
 0x6be   :  { %v16220_v14 = vpop.f32.mrf.mxu1 }
 0x6d8   :  { %v16224_v17 = vpop.f32.mrf.mxu1 }
 0x6da   :  { %v4893_v57 = vpop.f32.mrf.mxu1 }
 0x6dc   :  { %v16228_v19 = vpop.f32.mrf.mxu1 }
 0x6de   :  { %v4897_v21 = vpop.f32.mrf.mxu1 }
 0x6f7   :  { %v16222_v15 = vpop.f32.mrf.mxu0 }
 0x6f9   :  { %v4850_v33 = vpop.f32.mrf.mxu0 }
 0x6fa   :  { %v4894_v26 = vadd.f32 %v4893_v57, %v4850_v33  ;;  %v4808_v33 = vadd.f32 %v16212_v39, %v16214_v61  ;;  %v4812_v57 = vadd.f32 %v16218_v12, %v16220_v14 }
 0x6fb   :  { %v16226_v18 = vpop.f32.mrf.mxu0 }
 0x6fc   :  { %v12848_v29 = vmul.f32 -1.442695, %v4894_v26  ;;  %v4896_v62 = vadd.f32 %v16228_v19, %v16226_v18 }
 0x6fd   :  { %v4854_v46 = vpop.f32.mrf.mxu0 }
 0x6fe   :  { %v4898_v22 = vadd.f32 %v4897_v21, %v4854_v46 }
 0x700   :  { %v12851_v27 = vmul.f32 -1.442695, %v4898_v22 }
 0x702   :  { %14883 = vpow2.f32 %v12851_v27 }
 0x703   :  { %14885 = vpow2.f32 %v12848_v29  ;;  %v4806_v29 = vadd.f32 %v16208_v25, %v16210_v23  ;;  %v4989_v25 = vlaneseq }
 0x705   :  { %v16241_v23 = vshrl.u32 %v4989_v25, 7 }
 0x707   :  { %v16247_v18 = vsub.s32 1, %v16241_v23 }
 0x70f   :  { %v14884_v45 = vpop.eup %14883 }
 0x710   :  { %v14886_v47 = vpop.eup %14885  ;;  %v5024_v41 = vadd.f32 1.0, %v14884_v45 }
 0x711   :  { %v5021_v16 = vadd.f32 1.0, %v14886_v47 }
 0x717   :  { %v4977_v30 = vpop.f32.mrf.mxu0 }
 0x718   :  { %v4934_v31 = vpop.f32.mrf.mxu1 }
 0x719   :  { %v4978_v34 = vadd.f32 %v4977_v30, %v4934_v31  ;;  %v4979_v35 = vpop.f32.mrf.mxu0 }
 0x71a   :  { %v4936_v36 = vpop.f32.mrf.mxu1 }
 0x71b   :  { %v12849_v37 = vmul.f32 -1.442695, %v4978_v34  ;;  %v4980_v38 = vadd.f32 %v4979_v35, %v4936_v36  ;;  %v4981_v40 = vpop.f32.mrf.mxu0 }
 0x71c   :  { %v4938_v2 = vpop.f32.mrf.mxu1 }
 0x71d   :  { %14887 = vpow2.f32 %v12849_v37  ;;  %v12850_v5 = vmul.f32 -1.442695, %v4980_v38  ;;  %v4982_v42 = vadd.f32 %v4981_v40, %v4938_v2  ;;  %v4983_v55 = vpop.f32.mrf.mxu0 }
 0x71e   :  { %v4940_v63 = vpop.f32.mrf.mxu1 }
 0x71f   :  { %14889 = vpow2.f32 %v12850_v5  ;;  %v12852_v10 = vmul.f32 -1.442695, %v4982_v42  ;;  %v4984_v43 = vadd.f32 %v4983_v55, %v4940_v63 }
 0x721   :  { %14891 = vpow2.f32 %v12852_v10  ;;  %v12853_v49 = vmul.f32 -1.442695, %v4984_v43 }
 0x723   :  { %14893 = vpow2.f32 %v12853_v49 }
 0x724   :  { %14895 = vrcp.f32 %v5024_v41 }
 0x72a   :  { %v14888_v13 = vpop.eup %14887 }
 0x72b   :  { %v5022_v48 = vadd.f32 1.0, %v14888_v13 }
 0x72c   :  { %v14890_v60 = vpop.eup %14889 }
 0x72d   :  { %14897 = vrcp.f32 %v5022_v48  ;;  %v5023_v50 = vadd.f32 1.0, %v14890_v60 }
 0x72e   :  { %v14892_v51 = vpop.eup %14891  ;;  %14899 = vrcp.f32 %v5021_v16 }
 0x72f   :  { %14901 = vrcp.f32 %v5023_v50  ;;  %v5025_v52 = vadd.f32 1.0, %v14892_v51 }
 0x730   :  { %v14894_v53 = vpop.eup %14893 }
 0x731   :  { %14903 = vrcp.f32 %v5025_v52  ;;  %v5026_v59 = vadd.f32 1.0, %v14894_v53  ;;  %v14896_v54 = vpop.eup %14895 }
 0x732   :  { %v5042_v3 = vmul.f32 %v14896_v54, %v4898_v22  ;;  %v4892_v22 = vadd.f32 %v16224_v17, %v16222_v15  ;;  %v16244_v15 = vsub.s32 0, %v16241_v23  ;;  %v4987_v17 = vld [vmem:[#allocation13 + $0x100] ss:$8 sm:$0x3] }
 0x733   :  { %14905 = vrcp.f32 %v5026_v59  ;;  %v4996_v36 = vrot.slane %v4987_v17, %v16247_v18 }
 0x734   :  { %v5048_v30 = vmul.f32 %v5042_v3, %v4810_v4  ;;  %v4992_v19 = vrot.slane %v4987_v17, %v16244_v15 }
 0x735   :  { %v5000_v55 = vadd.f32 %v4996_v36, %v16202_v24  ;;  %v5002_v48 = vadd.f32 %v4996_v36, %v16206_v32 }
 0x736   :  { %v4999_v40 = vadd.f32 %v4992_v19, %v16200_v20  ;;  %v5001_v45 = vadd.f32 %v4992_v19, %v16204_v28 }
 0x73a   :  { %v14898_v56 = vpop.eup %14897 }
 0x73b   :  { %v14900_v58 = vpop.eup %14899  ;;  %v5040_v1 = vmul.f32 %v14898_v56, %v4978_v34 }
 0x73c   :  { %v14902_v8 = vpop.eup %14901  ;;  %v5039_v44 = vmul.f32 %v14900_v58, %v4894_v26 }
 0x73d   :  { %v5041_v46 = vmul.f32 %v14902_v8, %v4980_v38  ;;  %v5046_v11 = vmul.f32 %v5040_v1, %v4808_v33 }
 0x73e   :  { %v14904_v0 = vpop.eup %14903  ;;  %v5045_v39 = vmul.f32 %v5039_v44, %v4806_v29 }
 0x73f   :  { %v5043_v21 = vmul.f32 %v14904_v0, %v4982_v42  ;;  %v5047_v61 = vmul.f32 %v5041_v46, %v4892_v22 }
 0x740   :  { %v14906_v27 = vpop.eup %14905  ;;  %v5051_v14 = vpack.c.bf16 %v5048_v30, %v5045_v39 }
 0x741   :  { %v5049_v26 = vmul.f32 %v5043_v21, %v4812_v57  ;;  %v5044_v31 = vmul.f32 %v14906_v27, %v4984_v43 }
 0x743   :  { %v5050_v34 = vmul.f32 %v5044_v31, %v4896_v62  ;;  %v5052_v12 = vpack.c.bf16 %v5049_v26, %v5046_v11 }
 0x745   :  { %v5053_v35 = vpack.c.bf16 %v5050_v34, %v5047_v61  ;;  %5374 = vmatprep.mubr.bf16.mxu0 %v5052_v12 }
 0x746   :  { %5375 = vmatmul.mubr.bf16.vlgmr.msra.gmra.mxu0 %v5051_v14 }
 0x747   :  { %5418 = vmatmul.mubr.bf16.vlgmr.msra.gmra.mxu1 %v5053_v35 }
 0x806   :  { %v5376_v37 = vpop.f32.mrf.mxu0 }
 0x807   :  { %v5419_v38 = vpop.f32.mrf.mxu1 }
 0x808   :  { %v5420_v2 = vadd.f32 %v5419_v38, %v5376_v37  ;;  %v5378_v5 = vpop.f32.mrf.mxu0 }
 0x809   :  { %v5421_v42 = vpop.f32.mrf.mxu1 }
 0x80a   :  { %v16253_v63 = vadd.f32 %v5420_v2, %v4999_v40  ;;  %v5422_v10 = vadd.f32 %v5421_v42, %v5378_v5  ;;  %v5380_v43 = vpop.f32.mrf.mxu0 }
 0x80b   :  { %v5423_v49 = vpop.f32.mrf.mxu1 }
 0x80c   :  { %v16256_v47 = vadd.f32 %v5422_v10, %v5000_v55  ;;  %v5424_v41 = vadd.f32 %v5423_v49, %v5380_v43  ;;  %v5382_v13 = vpop.f32.mrf.mxu0 }
 0x80d   :  { %v5425_v16 = vpop.f32.mrf.mxu1 }
 0x80e   :  { %v16259_v20 = vadd.f32 %v5424_v41, %v5001_v45  ;;  %v5426_v60 = vadd.f32 %v5425_v16, %v5382_v13 }
 0x810   :  { %v16261_v50 = vadd.f32 %v5426_v60, %v5002_v48 }
 0x811   :  { %15901 = dma.done.wait [#allocation7 + $0x1], 32768 }
 0x812   :  { %15902 = vsyncadd [#allocation7 + $0x1], 4294934528  ;;  %v16265_v24 = vpack.c.bf16 %v16261_v50, %v16256_v47  ;;  %v5481_v28 = vld [vmem:[#allocation3 + $0x388] sm:$0xff]  ;;  %v5480_v52 = vld [vmem:[#allocation3 + $0x380] sm:$0xff]  ;;  %vm15927_vm1 = vmmov 0  }
 0x813   :  { %v5484_v51 = vld [vmem:[#allocation3 + $0x3c8] sm:$0xff]  ;;  %v5483_v59 = vld [vmem:[#allocation3 + $0x3c0] sm:$0xff] }
 0x814   :  { %6089 = vmatprep.mubr.bf16.mxu0 %v16265_v24  ;;  %6046 = vmatprep.mubr.bf16.mxu1 %v16265_v24  ;;  %v12947_v53 = vcombine.high %v5481_v28, %v5484_v51  ;;  %v12946_v32 = vcombine.low %v5481_v28, %v5484_v51  ;;  %v5475_v54 = vld [vmem:[#allocation3 + $0x308] sm:$0xff]  ;;  %v12945_v58 = vcombine.high %v5480_v52, %v5483_v59  ;;  %v5474_v1 = vld [vmem:[#allocation3 + $0x300] sm:$0xff] }
 0x815   :  { %v5478_v56 = vld [vmem:[#allocation3 + $0x348] sm:$0xff]  ;;  %v12944_v8 = vcombine.low %v5480_v52, %v5483_v59  ;;  %v5477_v0 = vld [vmem:[#allocation3 + $0x340] sm:$0xff] }
 0x816   :  { %v12941_v3 = vcombine.high %v5475_v54, %v5478_v56  ;;  %v5469_v4 = vld [vmem:[#allocation3 + $0x288] sm:$0xff]  ;;  %6057 = vmatprep.subr.bf16.mxu0 %v12947_v53  ;;  %v12939_v44 = vcombine.high %v5474_v1, %v5477_v0  ;;  %v5468_v57 = vld [vmem:[#allocation3 + $0x280] sm:$0xff]  ;;  %6014 = vmatprep.subr.bf16.mxu1 %v12945_v58  ;;  %v12940_v21 = vcombine.low %v5475_v54, %v5478_v56 }
 0x817   :  { %v5472_v33 = vld [vmem:[#allocation3 + $0x2c8] sm:$0xff]  ;;  %v5471_v46 = vld [vmem:[#allocation3 + $0x2c0] sm:$0xff]  ;;  %6058 = vmatpush1.bf16.msra.mxu0 %v12946_v32  ;;  %6015 = vmatpush1.bf16.msra.mxu1 %v12944_v8  ;;  %v12938_v27 = vcombine.low %v5474_v1, %v5477_v0 }
 0x818   :  { %6059 = vmatprep.subr.bf16.mxu0 %v12941_v3  ;;  %v12935_v29 = vcombine.high %v5469_v4, %v5472_v33  ;;  %6016 = vmatprep.subr.bf16.mxu1 %v12939_v44  ;;  %v12933_v22 = vcombine.high %v5468_v57, %v5471_v46  ;;  %v5463_v30 = vld [vmem:[#allocation3 + $0x208] sm:$0xff]  ;;  %v5462_v11 = vld [vmem:[#allocation3 + $0x200] sm:$0xff]  ;;  %v12934_v31 = vcombine.low %v5469_v4, %v5472_v33 }
 0x819   :  { %v5466_v62 = vld [vmem:[#allocation3 + $0x248] sm:$0xff]  ;;  %v5465_v26 = vld [vmem:[#allocation3 + $0x240] sm:$0xff]  ;;  %v12932_v39 = vcombine.low %v5468_v57, %v5471_v46 }
 0x81a   :  { %v12929_v61 = vcombine.high %v5463_v30, %v5466_v62  ;;  %v12927_v34 = vcombine.high %v5462_v11, %v5465_v26  ;;  %v5457_v12 = vld [vmem:[#allocation3 + $0x188] sm:$0xff]  ;;  %v5456_v35 = vld [vmem:[#allocation3 + $0x180] sm:$0xff]  ;;  %v12928_v17 = vcombine.low %v5463_v30, %v5466_v62  ;;  %v12926_v19 = vcombine.low %v5462_v11, %v5465_v26 }
 0x81b   :  { %6060 = vmatpush1.bf16.msra.mxu0 %v12940_v21  ;;  %6017 = vmatpush1.bf16.msra.mxu1 %v12938_v27  ;;  %v5460_v14 = vld [vmem:[#allocation3 + $0x1c8] sm:$0xff]  ;;  %v5459_v25 = vld [vmem:[#allocation3 + $0x1c0] sm:$0xff] }
 0x81c   :  { %6061 = vmatprep.subr.bf16.mxu0 %v12935_v29  ;;  %6018 = vmatprep.subr.bf16.mxu1 %v12933_v22  ;;  %v12923_v36 = vcombine.high %v5457_v12, %v5460_v14  ;;  %v12921_v37 = vcombine.high %v5456_v35, %v5459_v25  ;;  %v5451_v38 = vld [vmem:[#allocation3 + $0x108] sm:$0xff]  ;;  %v5450_v2 = vld [vmem:[#allocation3 + $0x100] sm:$0xff]  ;;  %v12922_v42 = vcombine.low %v5457_v12, %v5460_v14 }
 0x81d   :  { %v5454_v40 = vld [vmem:[#allocation3 + $0x148] sm:$0xff]  ;;  %v5453_v5 = vld [vmem:[#allocation3 + $0x140] sm:$0xff]  ;;  %v12920_v55 = vcombine.low %v5456_v35, %v5459_v25 }
 0x81e   :  { %v12917_v10 = vcombine.high %v5451_v38, %v5454_v40  ;;  %v12915_v43 = vcombine.high %v5450_v2, %v5453_v5  ;;  %v5445_v49 = vld [vmem:[#allocation3 + $0x88] sm:$0xff]  ;;  %v5444_v41 = vld [vmem:[#allocation3 + $0x80] sm:$0xff]  ;;  %v12916_v16 = vcombine.low %v5451_v38, %v5454_v40  ;;  %v12914_v48 = vcombine.low %v5450_v2, %v5453_v5 }
 0x81f   :  { %6062 = vmatpush1.bf16.msra.mxu0 %v12934_v31  ;;  %6019 = vmatpush1.bf16.msra.mxu1 %v12932_v39  ;;  %v5448_v45 = vld [vmem:[#allocation3 + $0xc8] sm:$0xff]  ;;  %v5447_v13 = vld [vmem:[#allocation3 + $0xc0] sm:$0xff] }
 0x820   :  { %6063 = vmatprep.subr.bf16.mxu0 %v12929_v61  ;;  %6020 = vmatprep.subr.bf16.mxu1 %v12927_v34  ;;  %v12911_v60 = vcombine.high %v5445_v49, %v5448_v45  ;;  %v12909_v28 = vcombine.high %v5444_v41, %v5447_v13  ;;  %v5439_v51 = vld [vmem:[#allocation3 + $0x8] sm:$0xff]  ;;  %v5438_v53 = vld [vmem:[#allocation3] sm:$0xff]  ;;  %v12910_v59 = vcombine.low %v5445_v49, %v5448_v45 }
 0x821   :  { %v5442_v52 = vld [vmem:[#allocation3 + $0x48] sm:$0xff]  ;;  %v5441_v32 = vld [vmem:[#allocation3 + $0x40] sm:$0xff]  ;;  %v12908_v54 = vcombine.low %v5444_v41, %v5447_v13 }
 0x822   :  { %v12905_v56 = vcombine.high %v5439_v51, %v5442_v52  ;;  %v12903_v58 = vcombine.high %v5438_v53, %v5441_v32  ;;  %v5529_v8 = vld [vmem:[#allocation3 + $0x788] sm:$0xff]  ;;  %v5528_v1 = vld [vmem:[#allocation3 + $0x780] sm:$0xff]  ;;  %v12904_v4 = vcombine.low %v5439_v51, %v5442_v52  ;;  %v12902_v44 = vcombine.low %v5438_v53, %v5441_v32 }
 0x823   :  { %6064 = vmatpush1.bf16.msra.mxu0 %v12928_v17  ;;  %6021 = vmatpush1.bf16.msra.mxu1 %v12926_v19  ;;  %v5532_v3 = vld [vmem:[#allocation3 + $0x7c8] sm:$0xff]  ;;  %v5531_v0 = vld [vmem:[#allocation3 + $0x7c0] sm:$0xff] }
 0x824   :  { %6065 = vmatprep.subr.bf16.mxu0 %v12923_v36  ;;  %6022 = vmatprep.subr.bf16.mxu1 %v12921_v37  ;;  %v12995_v33 = vcombine.high %v5529_v8, %v5532_v3  ;;  %v12993_v57 = vcombine.high %v5528_v1, %v5531_v0  ;;  %v5523_v46 = vld [vmem:[#allocation3 + $0x708] sm:$0xff]  ;;  %v5522_v27 = vld [vmem:[#allocation3 + $0x700] sm:$0xff]  ;;  %v12994_v22 = vcombine.low %v5529_v8, %v5532_v3 }
 0x825   :  { %v5526_v21 = vld [vmem:[#allocation3 + $0x748] sm:$0xff]  ;;  %v5525_v29 = vld [vmem:[#allocation3 + $0x740] sm:$0xff]  ;;  %v12992_v30 = vcombine.low %v5528_v1, %v5531_v0 }
 0x826   :  { %v12989_v62 = vcombine.high %v5523_v46, %v5526_v21  ;;  %v12987_v11 = vcombine.high %v5522_v27, %v5525_v29  ;;  %v5517_v26 = vld [vmem:[#allocation3 + $0x688] sm:$0xff]  ;;  %v5516_v39 = vld [vmem:[#allocation3 + $0x680] sm:$0xff]  ;;  %v12988_v34 = vcombine.low %v5523_v46, %v5526_v21  ;;  %v12986_v12 = vcombine.low %v5522_v27, %v5525_v29 }
 0x827   :  { %6066 = vmatpush1.bf16.msra.mxu0 %v12922_v42  ;;  %6023 = vmatpush1.bf16.msra.mxu1 %v12920_v55  ;;  %v5520_v31 = vld [vmem:[#allocation3 + $0x6c8] sm:$0xff]  ;;  %v5519_v61 = vld [vmem:[#allocation3 + $0x6c0] sm:$0xff] }
 0x828   :  { %6067 = vmatprep.subr.bf16.mxu0 %v12917_v10  ;;  %6024 = vmatprep.subr.bf16.mxu1 %v12915_v43  ;;  %v12983_v14 = vcombine.high %v5517_v26, %v5520_v31  ;;  %v12981_v35 = vcombine.high %v5516_v39, %v5519_v61  ;;  %v5511_v25 = vld [vmem:[#allocation3 + $0x608] sm:$0xff]  ;;  %v5510_v19 = vld [vmem:[#allocation3 + $0x600] sm:$0xff]  ;;  %v12982_v37 = vcombine.low %v5517_v26, %v5520_v31 }
 0x829   :  { %v5514_v17 = vld [vmem:[#allocation3 + $0x648] sm:$0xff]  ;;  %v5513_v36 = vld [vmem:[#allocation3 + $0x640] sm:$0xff]  ;;  %v12980_v38 = vcombine.low %v5516_v39, %v5519_v61 }
 0x82a   :  { %v12977_v40 = vcombine.high %v5511_v25, %v5514_v17  ;;  %v12975_v2 = vcombine.high %v5510_v19, %v5513_v36  ;;  %v5505_v5 = vld [vmem:[#allocation3 + $0x588] sm:$0xff]  ;;  %v5504_v55 = vld [vmem:[#allocation3 + $0x580] sm:$0xff]  ;;  %v12976_v43 = vcombine.low %v5511_v25, %v5514_v17  ;;  %v12974_v49 = vcombine.low %v5510_v19, %v5513_v36 }
 0x82b   :  { %6068 = vmatpush1.bf16.msra.mxu0 %v12916_v16  ;;  %6025 = vmatpush1.bf16.msra.mxu1 %v12914_v48  ;;  %v5508_v42 = vld [vmem:[#allocation3 + $0x5c8] sm:$0xff]  ;;  %v5507_v10 = vld [vmem:[#allocation3 + $0x5c0] sm:$0xff] }
 0x82c   :  { %6069 = vmatprep.subr.bf16.mxu0 %v12911_v60  ;;  %6026 = vmatprep.subr.bf16.mxu1 %v12909_v28  ;;  %v12971_v45 = vcombine.high %v5505_v5, %v5508_v42  ;;  %v12969_v41 = vcombine.high %v5504_v55, %v5507_v10  ;;  %v5499_v13 = vld [vmem:[#allocation3 + $0x508] sm:$0xff]  ;;  %v5498_v48 = vld [vmem:[#allocation3 + $0x500] sm:$0xff]  ;;  %v12970_v28 = vcombine.low %v5505_v5, %v5508_v42 }
 0x82d   :  { %v5502_v16 = vld [vmem:[#allocation3 + $0x548] sm:$0xff]  ;;  %v5501_v60 = vld [vmem:[#allocation3 + $0x540] sm:$0xff]  ;;  %v12968_v51 = vcombine.low %v5504_v55, %v5507_v10 }
 0x82e   :  { %v12965_v52 = vcombine.high %v5499_v13, %v5502_v16  ;;  %v12963_v53 = vcombine.high %v5498_v48, %v5501_v60  ;;  %v5493_v32 = vld [vmem:[#allocation3 + $0x488] sm:$0xff]  ;;  %v12962_v8 = vcombine.low %v5498_v48, %v5501_v60 }
 0x82f   :  { %6070 = vmatpush1.bf16.msra.mxu0 %v12910_v59  ;;  %6027 = vmatpush1.bf16.msra.mxu1 %v12908_v54  ;;  %v5496_v59 = vld [vmem:[#allocation3 + $0x4c8] sm:$0xff]  ;;  %v5492_v54 = vld [vmem:[#allocation3 + $0x480] sm:$0xff] }
 0x830   :  { %6071 = vmatprep.subr.bf16.mxu0 %v12905_v56  ;;  %6028 = vmatprep.subr.bf16.mxu1 %v12903_v58  ;;  %v5495_v56 = vld [vmem:[#allocation3 + $0x4c0] sm:$0xff]  ;;  %v12964_v58 = vcombine.low %v5499_v13, %v5502_v16  ;;  %v12959_v3 = vcombine.high %v5493_v32, %v5496_v59  ;;  %v5487_v0 = vld [vmem:[#allocation3 + $0x408] sm:$0xff] }
 0x831   :  { %v12957_v1 = vcombine.high %v5492_v54, %v5495_v56  ;;  %v12956_v46 = vcombine.low %v5492_v54, %v5495_v56  ;;  %v6145_v61 = vld [vmem:[#allocation13 + $0x48] sm:$0xff] }
 0x833   :  { %6072 = vmatpush1.bf16.msra.mxu0 %v12904_v4  ;;  %6029 = vmatpush1.bf16.msra.mxu1 %v12902_v44  ;;  %v5490_v4 = vld [vmem:[#allocation3 + $0x448] sm:$0xff]  ;;  %v5486_v44 = vld [vmem:[#allocation3 + $0x400] sm:$0xff] }
 0x834   :  { %6073 = vmatprep.subr.bf16.mxu0 %v12995_v33  ;;  %6030 = vmatprep.subr.bf16.mxu1 %v12993_v57  ;;  %v5489_v33 = vld [vmem:[#allocation3 + $0x440] sm:$0xff]  ;;  %v12958_v57 = vcombine.low %v5493_v32, %v5496_v59  ;;  %v12953_v21 = vcombine.high %v5487_v0, %v5490_v4  ;;  %v12952_v29 = vcombine.low %v5487_v0, %v5490_v4  ;;  %v5476_v0 = vld [vmem:[#allocation3 + $0x310] sm:$0xff] }
 0x835   :  { %v12951_v27 = vcombine.high %v5486_v44, %v5489_v33 }
 0x837   :  { %6074 = vmatpush2.bf16.msra.mxu0 %v12994_v22  ;;  %6031 = vmatpush2.bf16.msra.mxu1 %v12992_v30  ;;  %v12950_v22 = vcombine.low %v5486_v44, %v5489_v33  ;;  %v16271_v30 = vpack.c.bf16 %v16259_v20, %v16253_v63  ;;  %v5479_v33 = vld [vmem:[#allocation3 + $0x350] sm:$0xff] }
 0x838   :  { %6075 = vmatprep.subr.bf16.mxu0 %v12989_v62  ;;  %6032 = vmatprep.subr.bf16.mxu1 %v12987_v11  ;;  %v15926_v62 = vmov 0.0   ;;  %v6143_v11 = vld [vmem:[#allocation13 + $0x40] sm:$0xff] }
 0x83b   :  { %6076 = vmatpush2.bf16.msra.mxu0 %v12988_v34  ;;  %6033 = vmatpush2.bf16.msra.mxu1 %v12986_v12 }
 0x83c   :  { %6077 = vmatprep.subr.bf16.mxu0 %v12983_v14  ;;  %6034 = vmatprep.subr.bf16.mxu1 %v12981_v35  ;;  %v6144_v14 = vld [vmem:[#allocation13 + $0x60] sm:$0xff] }
 0x83f   :  { %6078 = vmatpush2.bf16.msra.mxu0 %v12982_v37  ;;  %6035 = vmatpush2.bf16.msra.mxu1 %v12980_v38 }
 0x840   :  { %6079 = vmatprep.subr.bf16.mxu0 %v12977_v40  ;;  %6036 = vmatprep.subr.bf16.mxu1 %v12975_v2 }
 0x843   :  { %6080 = vmatpush2.bf16.msra.mxu0 %v12976_v43  ;;  %6037 = vmatpush2.bf16.msra.mxu1 %v12974_v49 }
 0x844   :  { %6081 = vmatprep.subr.bf16.mxu0 %v12971_v45  ;;  %6038 = vmatprep.subr.bf16.mxu1 %v12969_v41 }
 0x847   :  { %6082 = vmatpush2.bf16.msra.mxu0 %v12970_v28  ;;  %6039 = vmatpush2.bf16.msra.mxu1 %v12968_v51 }
 0x848   :  { %6083 = vmatprep.subr.bf16.mxu0 %v12965_v52  ;;  %6040 = vmatprep.subr.bf16.mxu1 %v12963_v53 }
 0x84b   :  { %6084 = vmatpush2.bf16.msra.mxu0 %v12964_v58  ;;  %6041 = vmatpush2.bf16.msra.mxu1 %v12962_v8 }
 0x84c   :  { %6085 = vmatprep.subr.bf16.mxu0 %v12959_v3  ;;  %6042 = vmatprep.subr.bf16.mxu1 %v12957_v1  ;;  %v5482_v3 = vld [vmem:[#allocation3 + $0x390] sm:$0xff] }
 0x84d   :  { %v5485_v1 = vld [vmem:[#allocation3 + $0x3d0] sm:$0xff] }
 0x84e   :  { %v12948_v4 = vcombine.low %v5482_v3, %v5485_v1  ;;  %v12949_v44 = vcombine.high %v5482_v3, %v5485_v1  ;;  %v5506_v1 = vld [vmem:[#allocation3 + $0x590] sm:$0xff] }
 0x84f   :  { %6086 = vmatpush2.bf16.msra.mxu0 %v12958_v57  ;;  %6043 = vmatpush2.bf16.msra.mxu1 %v12956_v46  ;;  %v12943_v57 = vcombine.high %v5476_v0, %v5479_v33  ;;  %v5470_v46 = vld [vmem:[#allocation3 + $0x290] sm:$0xff] }
 0x850   :  { %6087 = vmatprep.subr.bf16.mxu0 %v12953_v21  ;;  %6044 = vmatprep.subr.bf16.mxu1 %v12951_v27  ;;  %v5473_v21 = vld [vmem:[#allocation3 + $0x2d0] sm:$0xff]  ;;  %v12942_v27 = vcombine.low %v5476_v0, %v5479_v33 }
 0x851   :  { %v5509_v0 = vld [vmem:[#allocation3 + $0x5d0] sm:$0xff] }
 0x852   :  { %v5500_v33 = vld [vmem:[#allocation3 + $0x510] sm:$0xff] }
 0x853   :  { %6088 = vmatpush2.bf16.msra.mxu0 %v12952_v29  ;;  %6045 = vmatpush2.bf16.msra.mxu1 %v12950_v22  ;;  %v12937_v29 = vcombine.high %v5470_v46, %v5473_v21  ;;  %v5464_v22 = vld [vmem:[#allocation3 + $0x210] sm:$0xff] }
 0x854   :  { %13817 = vmatprep.subr.bf16.mxu0 %v15926_v62  ;;  %6100 = vmatprep.subr.bf16.mxu1 %v12949_v44  ;;  %v12973_v44 = vcombine.high %v5506_v1, %v5509_v0 }
 0x856   :  { %6090 = vmatmul.mubr.bf16.vlgmr.msra.gmra.mxu0 %v16271_v30  ;;  %6047 = vmatmul.mubr.bf16.vlgmr.msra.gmra.mxu1 %v16271_v30 }
 0x857   :  { %6132 = vmatprep.mubr.bf16.mxu1 %v16265_v24  ;;  %13819 = vmatprep.mubr.msk.bf16.mxu0 %vm15927_vm1, %v15926_v62  ;;  %v6146_v24 = vld [vmem:[#allocation13 + $0x68] sm:$0xff] }
 0x858   :  { %6101 = vmatpush1.bf16.msra.mxu1 %v12948_v4 }
 0x859   :  { %6102 = vmatprep.subr.bf16.mxu1 %v12943_v57  ;;  %v5503_v57 = vld [vmem:[#allocation3 + $0x550] sm:$0xff] }
 0x85c   :  { %6103 = vmatpush1.bf16.msra.mxu1 %v12942_v27  ;;  %v5494_v27 = vld [vmem:[#allocation3 + $0x490] sm:$0xff] }
 0x85d   :  { %6104 = vmatprep.subr.bf16.mxu1 %v12937_v29  ;;  %v5497_v29 = vld [vmem:[#allocation3 + $0x4d0] sm:$0xff] }
 0x916   :  { %v6091_v26 = vpop.f32.mrf.mxu0  ;;  %v6048_v39 = vpop.f32.mrf.mxu1 }
 0x917   :  { %v6165_v31 = vmul.f32 %v6143_v11, %v6091_v26  ;;  %v6153_v34 = vmul.f32 %v6143_v11, %v6048_v39  ;;  %v6159_v55 = vmul.f32 %v6145_v61, %v6091_v26  ;;  %v6147_v13 = vmul.f32 %v6145_v61, %v6048_v39  ;;  %v5458_v39 = vld [vmem:[#allocation3 + $0x190] sm:$0xff] }
 0x918   :  { %v6093_v12 = vpop.f32.mrf.mxu0  ;;  %v6050_v25 = vpop.f32.mrf.mxu1  ;;  %v12936_v26 = vcombine.low %v5470_v46, %v5473_v21  ;;  %v12972_v46 = vcombine.low %v5506_v1, %v5509_v0  ;;  %v12967_v21 = vcombine.high %v5500_v33, %v5503_v57  ;;  %v6294_v1 = vld [vmem:[#allocation3 + $0x2d8] sm:$0xff] }
 0x919   :  { %v6167_v35 = vmul.f32 %v6145_v61, %v6093_v12  ;;  %v6155_v17 = vmul.f32 %v6145_v61, %v6050_v25  ;;  %v6161_v36 = vmul.f32 %v6143_v11, %v6093_v12  ;;  %v6149_v28 = vmul.f32 %v6143_v11, %v6050_v25  ;;  %v5467_v11 = vld [vmem:[#allocation3 + $0x250] sm:$0xff] }
 0x91a   :  { %v6095_v19 = vpop.f32.mrf.mxu0  ;;  %v6052_v40 = vpop.f32.mrf.mxu1  ;;  %v5461_v61 = vld [vmem:[#allocation3 + $0x1d0] sm:$0xff]  ;;  %6105 = vmatpush1.bf16.msra.mxu1 %v12936_v26 }
 0x91b   :  { %v16279_v37 = vadd.f32 %v6167_v35, %v6165_v31  ;;  %v6166_v38 = vmul.f32 %v6144_v14, %v6095_v19  ;;  %v16281_v2 = vadd.f32 %v6155_v17, %v6153_v34  ;;  %v6154_v5 = vmul.f32 %v6144_v14, %v6052_v40  ;;  %v5455_v35 = vld [vmem:[#allocation3 + $0x150] sm:$0xff] }
 0x91c   :  { %v6097_v42 = vpop.f32.mrf.mxu0  ;;  %v6160_v10 = vmul.f32 %v6146_v24, %v6095_v19  ;;  %v6054_v45 = vpop.f32.mrf.mxu1  ;;  %v6163_v16 = vsub.f32 %v6159_v55, %v6161_v36  ;;  %v6148_v51 = vmul.f32 %v6146_v24, %v6052_v40  ;;  %v6151_v56 = vsub.f32 %v6147_v13, %v6149_v28  ;;  %v5446_v19 = vld [vmem:[#allocation3 + $0x90] sm:$0xff] }
 0x91d   :  { %v6162_v43 = vmul.f32 %v6144_v14, %v6097_v42  ;;  %v6168_v49 = vmul.f32 %v6146_v24, %v6097_v42  ;;  %v6156_v41 = vmul.f32 %v6146_v24, %v6054_v45  ;;  %v6150_v52 = vmul.f32 %v6144_v14, %v6054_v45  ;;  %v5452_v14 = vld [vmem:[#allocation3 + $0x110] sm:$0xff] }
 0x91e   :  { %v12931_v31 = vcombine.high %v5464_v22, %v5467_v11  ;;  %v12930_v34 = vcombine.low %v5464_v22, %v5467_v11  ;;  %v12925_v12 = vcombine.high %v5458_v39, %v5461_v61  ;;  %v12924_v25 = vcombine.low %v5458_v39, %v5461_v61  ;;  %v5449_v24 = vld [vmem:[#allocation3 + $0xd0] sm:$0xff] }
 0x91f   :  { %v6164_v48 = vsub.f32 %v6160_v10, %v6162_v43  ;;  %v16283_v60 = vadd.f32 %v6168_v49, %v6166_v38  ;;  %v16285_v53 = vadd.f32 %v6156_v41, %v6154_v5  ;;  %v6152_v58 = vsub.f32 %v6148_v51, %v6150_v52  ;;  %v5440_v40 = vld [vmem:[#allocation3 + $0x10] sm:$0xff] }
 0x920   :  { %6106 = vmatprep.subr.bf16.mxu1 %v12931_v31  ;;  %v12919_v17 = vcombine.high %v5452_v14, %v5455_v35  ;;  %v12918_v36 = vcombine.low %v5452_v14, %v5455_v35  ;;  %v12913_v38 = vcombine.high %v5446_v19, %v5449_v24  ;;  %v5443_v5 = vld [vmem:[#allocation3 + $0x50] sm:$0xff]  ;;  %v12912_v42 = vcombine.low %v5446_v19, %v5449_v24 }
 0x921   :  { %v6172_v32 = vpack.c.bf16 %v6164_v48, %v6163_v16  ;;  %v6300_v59 = vpack.c.bf16 %v16283_v60, %v16279_v37  ;;  %v6299_v54 = vpack.c.bf16 %v16285_v53, %v16281_v2  ;;  %v6171_v8 = vpack.c.bf16 %v6152_v58, %v6151_v56  ;;  %6107 = vmatpush1.bf16.msra.mxu1 %v12930_v34  ;;  %v5530_v10 = vld [vmem:[#allocation3 + $0x790] sm:$0xff] }
 0x922   :  { %6108 = vmatprep.subr.bf16.mxu1 %v12925_v12  ;;  %v12907_v55 = vcombine.high %v5440_v40, %v5443_v5  ;;  %v5533_v43 = vld [vmem:[#allocation3 + $0x7d0] sm:$0xff]  ;;  %v12906_v49 = vcombine.low %v5440_v40, %v5443_v5  ;;  %v12966_v22 = vcombine.low %v5500_v33, %v5503_v57  ;;  %v12961_v11 = vcombine.high %v5494_v27, %v5497_v29  ;;  %v6292_v33 = vld [vmem:[#allocation3 + $0x258] sm:$0xff] }
 0x923   :  { %13818 = vmatpush3.bf16.xpose.msra.mxu0 %v6172_v32  ;;  %v12997_v45 = vcombine.high %v5530_v10, %v5533_v43  ;;  %v5524_v41 = vld [vmem:[#allocation3 + $0x710] sm:$0xff]  ;;  %v12996_v16 = vcombine.low %v5530_v10, %v5533_v43  ;;  %v12960_v39 = vcombine.low %v5494_v27, %v5497_v29  ;;  %v6290_v27 = vld [vmem:[#allocation3 + $0x1d8] sm:$0xff] }
 0x924   :  { %13823 = vmatprep.subr.bf16.mxu0 %v15926_v62  ;;  %v5527_v13 = vld [vmem:[#allocation3 + $0x750] sm:$0xff] }
 0x925   :  { %6109 = vmatpush1.bf16.msra.mxu1 %v12924_v25  ;;  %v12991_v48 = vcombine.high %v5524_v41, %v5527_v13  ;;  %v5518_v28 = vld [vmem:[#allocation3 + $0x690] sm:$0xff]  ;;  %v12990_v52 = vcombine.low %v5524_v41, %v5527_v13 }
 0x926   :  { %6110 = vmatprep.subr.bf16.mxu1 %v12919_v17  ;;  %v5521_v51 = vld [vmem:[#allocation3 + $0x6d0] sm:$0xff] }
 0x927   :  { %v12985_v32 = vcombine.high %v5518_v28, %v5521_v51  ;;  %v5512_v56 = vld [vmem:[#allocation3 + $0x610] sm:$0xff] }
 0x928   :  { %v5515_v58 = vld [vmem:[#allocation3 + $0x650] sm:$0xff] }
 0x929   :  { %6111 = vmatpush1.bf16.msra.mxu1 %v12918_v36  ;;  %v12979_v3 = vcombine.high %v5512_v56, %v5515_v58  ;;  %v12978_v4 = vcombine.low %v5512_v56, %v5515_v58  ;;  %v5488_v26 = vld [vmem:[#allocation3 + $0x410] sm:$0xff]  ;;  %v6296_v58 = vld [vmem:[#allocation3 + $0x358] sm:$0xff] }
 0x92a   :  { %13820 = vmatmul.mubr.bf16.vlgmr.msra.gmra.mxu0 %v6171_v8  ;;  %6112 = vmatprep.subr.bf16.mxu1 %v12913_v38  ;;  %v12984_v8 = vcombine.low %v5518_v28, %v5521_v51  ;;  %v5491_v31 = vld [vmem:[#allocation3 + $0x450] sm:$0xff]  ;;  %v6297_v28 = vld [vmem:[#allocation3 + $0x398] sm:$0xff] }
 0x92b   :  { %13825 = vmatprep.mubr.msk.bf16.mxu0 %vm15927_vm1, %v15926_v62  ;;  %v12955_v61 = vcombine.high %v5488_v26, %v5491_v31  ;;  %v12954_v34 = vcombine.low %v5488_v26, %v5491_v31  ;;  %v6298_v51 = vld [vmem:[#allocation3 + $0x3d8] sm:$0xff] }
 0x92c   :  { %v13031_v56 = vcombine.high %v6297_v28, %v6298_v51  ;;  %v6288_v26 = vld [vmem:[#allocation3 + $0x158] sm:$0xff] }
 0x92d   :  { %6113 = vmatpush1.bf16.msra.mxu1 %v12912_v42 }
 0x92e   :  { %6114 = vmatprep.subr.bf16.mxu1 %v12907_v55 }
 0x931   :  { %6115 = vmatpush1.bf16.msra.mxu1 %v12906_v49 }
 0x932   :  { %6116 = vmatprep.subr.bf16.mxu1 %v12997_v45 }
 0x935   :  { %6117 = vmatpush2.bf16.msra.mxu1 %v12996_v16 }
 0x936   :  { %6118 = vmatprep.subr.bf16.mxu1 %v12991_v48 }
 0x939   :  { %6119 = vmatpush2.bf16.msra.mxu1 %v12990_v52  ;;  %v6295_v52 = vld [vmem:[#allocation3 + $0x318] sm:$0xff] }
 0x93a   :  { %6120 = vmatprep.subr.bf16.mxu1 %v12985_v32  ;;  %v13030_v32 = vcombine.low %v6297_v28, %v6298_v51  ;;  %v13028_v0 = vcombine.low %v6295_v52, %v6296_v58 }
 0x93d   :  { %6121 = vmatpush2.bf16.msra.mxu1 %v12984_v8  ;;  %v13029_v8 = vcombine.high %v6295_v52, %v6296_v58 }
 0x93e   :  { %6122 = vmatprep.subr.bf16.mxu1 %v12979_v3  ;;  %v6293_v3 = vld [vmem:[#allocation3 + $0x298] sm:$0xff] }
 0x93f   :  { %v13026_v57 = vcombine.low %v6293_v3, %v6294_v1 }
 0x941   :  { %6123 = vmatpush2.bf16.msra.mxu1 %v12978_v4  ;;  %v13027_v4 = vcombine.high %v6293_v3, %v6294_v1 }
 0x942   :  { %6124 = vmatprep.subr.bf16.mxu1 %v12973_v44  ;;  %v6291_v44 = vld [vmem:[#allocation3 + $0x218] sm:$0xff] }
 0x943   :  { %v13024_v29 = vcombine.low %v6291_v44, %v6292_v33 }
 0x945   :  { %6125 = vmatpush2.bf16.msra.mxu1 %v12972_v46  ;;  %v13025_v46 = vcombine.high %v6291_v44, %v6292_v33  ;;  %v6425_v44 = vld [vmem:[#allocation3 + $0x3a0] sm:$0xff] }
 0x946   :  { %6126 = vmatprep.subr.bf16.mxu1 %v12967_v21  ;;  %v6289_v21 = vld [vmem:[#allocation3 + $0x198] sm:$0xff]  ;;  %v6426_v33 = vld [vmem:[#allocation3 + $0x3e0] sm:$0xff] }
 0x947   :  { %v13022_v31 = vcombine.low %v6289_v21, %v6290_v27 }
 0x949   :  { %6127 = vmatpush2.bf16.msra.mxu1 %v12966_v22  ;;  %v13023_v22 = vcombine.high %v6289_v21, %v6290_v27 }
 0x94a   :  { %6128 = vmatprep.subr.bf16.mxu1 %v12961_v11  ;;  %v6287_v11 = vld [vmem:[#allocation3 + $0x118] sm:$0xff] }
 0x94d   :  { %6129 = vmatpush2.bf16.msra.mxu1 %v12960_v39  ;;  %v13021_v39 = vcombine.high %v6287_v11, %v6288_v26 }
 0x94e   :  { %6130 = vmatprep.subr.bf16.mxu1 %v12955_v61  ;;  %v6285_v61 = vld [vmem:[#allocation3 + $0x98] sm:$0xff] }
 0x951   :  { %6131 = vmatpush2.bf16.msra.mxu1 %v12954_v34  ;;  %v6286_v34 = vld [vmem:[#allocation3 + $0xd8] sm:$0xff] }
 0x952   :  { %6630 = vmatprep.subr.bf16.mxu1 %v13031_v56 }
 0x954   :  { %6133 = vmatmul.mubr.bf16.vlgmr.msra.gmra.mxu1 %v16271_v30 }
 0x955   :  { %6662 = vmatprep.mubr.bf16.mxu1 %v15925_v9  ;;  %6631 = vmatpush1.bf16.msra.mxu1 %v13030_v32 }
 0x956   :  { %6632 = vmatprep.subr.bf16.mxu1 %v13029_v8 }
 0x959   :  { %6633 = vmatpush1.bf16.msra.mxu1 %v13028_v0 }
 0x95a   :  { %6634 = vmatprep.subr.bf16.mxu1 %v13027_v4 }
 0x95d   :  { %6635 = vmatpush1.bf16.msra.mxu1 %v13026_v57  ;;  %v13014_v57 = vcombine.low %v6425_v44, %v6426_v33 }
 0x95e   :  { %6636 = vmatprep.subr.bf16.mxu1 %v13025_v46  ;;  %v13015_v46 = vcombine.high %v6425_v44, %v6426_v33 }
 0x961   :  { %6637 = vmatpush1.bf16.msra.mxu1 %v13024_v29 }
 0x962   :  { %6638 = vmatprep.subr.bf16.mxu1 %v13023_v22 }
 0x965   :  { %6639 = vmatpush1.bf16.msra.mxu1 %v13022_v31 }
 0x966   :  { %6640 = vmatprep.subr.bf16.mxu1 %v13021_v39 }
 0x9ea   :  { %v6208_v12 = vpop.f32.mrf.mxu0 }
 0x9eb   :  { %v6209_v14 = vadd.f32 %v6208_v12, %v16007_v6  ;;  %v13020_v12 = vcombine.low %v6287_v11, %v6288_v26  ;;  %v6423_v11 = vld [vmem:[#allocation3 + $0x320] sm:$0xff] }
 0x9ec   :  { %v13821_v35 = vpop.f32.mrf.mxu0  ;;  %v6424_v26 = vld [vmem:[#allocation3 + $0x360] sm:$0xff] }
 0x9ed   :  { %v6215_v25 = vsel %vm2483_vm0, %v6209_v14, -inf  ;;  %6641 = vmatpush1.bf16.msra.mxu1 %v13020_v12  ;;  %v13018_v35 = vcombine.low %v6285_v61, %v6286_v34  ;;  %v6421_v12 = vld [vmem:[#allocation3 + $0x2a0] sm:$0xff] }
 0x9ee   :  { %6216 = vmax.xlane.f32.xlu0 %v6215_v25  ;;  %v6211_v17 = vpop.f32.mrf.mxu0 }
 0x9ef   :  { %v6212_v19 = vadd.f32 %v6211_v17, %v16009_v7 }
 0x9f0   :  { %v13822_v24 = vpop.f32.mrf.mxu0 }
 0x9f1   :  { %v6218_v36 = vsel %vm2483_vm0, %v6212_v19, -inf }
 0x9f2   :  { %6219 = vmax.xlane.f32.xlu0 %v6218_v36 }
 0xa14   :  { %v6134_v41 = vpop.f32.mrf.mxu1 }
 0xa16   :  { %v16302_v13 = vpop.f32.mrf.mxu1 }
 0xa18   :  { %v6138_v16 = vpop.f32.mrf.mxu1 }
 0xa19   :  { %v6173_v48 = vpack.c.bf16 %v6138_v16, %v6134_v41 }
 0xa1b   :  { %13824 = vmatpush3.bf16.msra.mxu0 %v6173_v48 }
 0xa1c   :  { %13829 = vmatprep.subr.bf16.mxu0 %v15926_v62 }
 0xa77   :  { %v6217_v38 = vpop.xlane.xlu0 %6216 }
 0xa78   :  { %v6221_v40 = vsub.f32 %v6209_v14, %v6217_v38  ;;  %v13019_v14 = vcombine.high %v6285_v61, %v6286_v34  ;;  %v13013_v34 = vcombine.high %v6423_v11, %v6424_v26 }
 0xa7a   :  { %v6223_v5 = vmul.f32 1.442695, %v6221_v40  ;;  %6642 = vmatprep.subr.bf16.mxu1 %v13019_v14  ;;  %v6422_v14 = vld [vmem:[#allocation3 + $0x2e0] sm:$0xff] }
 0xa7b   :  { %v6220_v30 = vpop.xlane.xlu0 %6219  ;;  %6643 = vmatpush1.bf16.msra.mxu1 %v13018_v35  ;;  %v13012_v35 = vcombine.low %v6423_v11, %v6424_v26 }
 0xa7c   :  { %14907 = vpow2.f32 %v6223_v5  ;;  %v6222_v42 = vsub.f32 %v6212_v19, %v6220_v30  ;;  %v6140_v5 = vpop.f32.mrf.mxu1 }
 0xa7d   :  { %v6301_v30 = vpack.c.bf16 %v6140_v5, %v16302_v13 }
 0xa7e   :  { %v6225_v55 = vmul.f32 1.442695, %v6222_v42  ;;  %v6283_v42 = vld [vmem:[#allocation3 + $0x18] sm:$0xff] }
 0xa80   :  { %14909 = vpow2.f32 %v6225_v55  ;;  %v6284_v55 = vld [vmem:[#allocation3 + $0x58] sm:$0xff] }
 0xa81   :  { %v13016_v37 = vcombine.low %v6283_v42, %v6284_v55  ;;  %v13017_v60 = vcombine.high %v6283_v42, %v6284_v55  ;;  %v6415_v42 = vld [vmem:[#allocation3 + $0x120] sm:$0xff] }
 0xa82   :  { %v6416_v55 = vld [vmem:[#allocation3 + $0x160] sm:$0xff] }
 0xa83   :  { %6644 = vmatprep.subr.bf16.mxu1 %v13017_v60  ;;  %v13005_v60 = vcombine.high %v6415_v42, %v6416_v55 }
 0xa84   :  { %6645 = vmatpush1.bf16.msra.mxu1 %v13016_v37 }
 0xa89   :  { %v14908_v10 = vpop.eup %14907 }
 0xa8a   :  { %v6227_v43 = vsel %vm2483_vm0, %v14908_v10, 0.0 }
 0xa8b   :  { %6228 = vadd.xlane.f32.xlu1 %v6227_v43 }
 0xa8d   :  { %v14910_v49 = vpop.eup %14909 }
 0xa8e   :  { %v6230_v45 = vsel %vm2483_vm0, %v14910_v49, 0.0 }
 0xa8f   :  { %6231 = vadd.xlane.f32.xlu1 %v6230_v45 }
 0xb14   :  { %v6229_v25 = vpop.xlane.xlu1 %6228 }
 0xb15   :  { %14911 = vrcp.f32 %v6229_v25  ;;  %v13011_v25 = vcombine.high %v6421_v12, %v6422_v14 }
 0xb18   :  { %v6232_v17 = vpop.xlane.xlu1 %6231 }
 0xb19   :  { %14913 = vrcp.f32 %v6232_v17  ;;  %v6419_v17 = vld [vmem:[#allocation3 + $0x220] sm:$0xff] }
 0xb22   :  { %v14912_v19 = vpop.eup %14911 }
 0xb23   :  { %v6235_v36 = vmul.f32 %v14912_v19, %v14908_v10  ;;  %v6420_v19 = vld [vmem:[#allocation3 + $0x260] sm:$0xff] }
 0xb24   :  { %v13008_v5 = vcombine.low %v6419_v17, %v6420_v19 }
 0xb26   :  { %v14914_v24 = vpop.eup %14913 }
 0xb27   :  { %v6236_v38 = vmul.f32 %v14914_v24, %v14910_v49  ;;  %v13010_v24 = vcombine.low %v6421_v12, %v6422_v14  ;;  %v6686_v12 = vld [vmem:[#allocation3 + $0xb0] sm:$0xff] }
 0xb28   :  { %v6689_v14 = vld [vmem:[#allocation3 + $0xf0] sm:$0xff] }
 0xb29   :  { %v6237_v40 = vpack.c.bf16 %v6236_v38, %v6235_v36  ;;  %v13009_v36 = vcombine.high %v6419_v17, %v6420_v19  ;;  %v6417_v38 = vld [vmem:[#allocation3 + $0x1a0] sm:$0xff]  ;;  %v6680_v17 = vld [vmem:[#allocation3 + $0x30] sm:$0xff] }
 0xb2a   :  { %v6683_v19 = vld [vmem:[#allocation3 + $0x70] sm:$0xff] }
 0xb2b   :  { %13826 = vmatmul.mubr.msk.bf16.vlgmr.msra.gmra.mxu0 %vm2483_vm0, %v6237_v40  ;;  %v6418_v40 = vld [vmem:[#allocation3 + $0x1e0] sm:$0xff] }
 0xb2c   :  { %13830 = vmatpush3.bf16.xpose.msra.mxu0 %v6300_v59  ;;  %13831 = vmatprep.mubr.msk.bf16.mxu0 %vm15927_vm1, %v15926_v62  ;;  %v13006_v37 = vcombine.low %v6417_v38, %v6418_v40 }
 0xb2d   :  { %13835 = vmatprep.subr.bf16.mxu0 %v15926_v62 }
 0xb33   :  { %13832 = vmatmul.mubr.bf16.vlgmr.msra.gmra.mxu0 %v6299_v54 }
 0xb34   :  { %13836 = vmatpush3.bf16.msra.mxu0 %v6301_v30  ;;  %13837 = vmatprep.mubr.msk.bf16.mxu0 %vm15927_vm1, %v15926_v62  ;;  %v13007_v30 = vcombine.high %v6417_v38, %v6418_v40  ;;  %v6770_v38 = vld [vmem:[#allocation3 + $0x7b0] sm:$0xff] }
 0xb35   :  { %6507 = vmatprep.subr.bf16.mxu0 %v13015_v46  ;;  %v6707_v46 = vld [vmem:[#allocation3 + $0x270] sm:$0xff] }
 0xb36   :  { %v6773_v40 = vld [vmem:[#allocation3 + $0x7f0] sm:$0xff] }
 0xbeb   :  { %v6275_v59 = vpop.f32.mrf.mxu0 }
 0xbed   :  { %v13827_v10 = vpop.f32.mrf.mxu0 }
 0xbee   :  { %v6414_v10 = vld [vmem:[#allocation3 + $0xe0] sm:$0xff] }
 0xbef   :  { %v6278_v43 = vpop.f32.mrf.mxu0 }
 0xbf0   :  { %v6282_v49 = vpack.c.bf16 %v6278_v43, %v6275_v59  ;;  %v6413_v59 = vld [vmem:[#allocation3 + $0xa0] sm:$0xff]  ;;  %v13004_v43 = vcombine.low %v6415_v42, %v6416_v55  ;;  %v6764_v42 = vld [vmem:[#allocation3 + $0x730] sm:$0xff] }
 0xbf1   :  { %v13828_v45 = vpop.f32.mrf.mxu0  ;;  %v6767_v55 = vld [vmem:[#allocation3 + $0x770] sm:$0xff] }
 0xbf2   :  { %6663 = vmatmul.mubr.bf16.vlgmr.msra.gmra.mxu1 %v6282_v49  ;;  %v13003_v49 = vcombine.high %v6413_v59, %v6414_v10  ;;  %v13002_v45 = vcombine.low %v6413_v59, %v6414_v10  ;;  %v6758_v59 = vld [vmem:[#allocation3 + $0x6b0] sm:$0xff] }
 0xbf3   :  { %v6336_v41 = vpop.f32.mrf.mxu0  ;;  %v6761_v10 = vld [vmem:[#allocation3 + $0x6f0] sm:$0xff] }
 0xbf4   :  { %v6337_v2 = vadd.f32 %v6336_v41, %v16007_v6  ;;  %v6411_v41 = vld [vmem:[#allocation3 + $0x20] sm:$0xff] }
 0xbf5   :  { %v13833_v53 = vpop.f32.mrf.mxu0 }
 0xbf6   :  { %v6343_v54 = vsel %vm2483_vm0, %v6337_v2, -inf }
 0xbf7   :  { %6344 = vmax.xlane.f32.xlu0 %v6343_v54  ;;  %v6339_v13 = vpop.f32.mrf.mxu0 }
 0xbf8   :  { %v6340_v16 = vadd.f32 %v6339_v13, %v16009_v7  ;;  %v16326_v13 = vld [vmem:[#allocation3 + $0x3a8] sm:$0xff] }
 0xbf9   :  { %v13834_v48 = vpop.f32.mrf.mxu0 }
 0xbfa   :  { %v6346_v28 = vsel %vm2483_vm0, %v6340_v16, -inf }
 0xbfb   :  { %6347 = vmax.xlane.f32.xlu1 %v6346_v28 }
 0xc80   :  { %v6345_v51 = vpop.xlane.xlu0 %6344 }
 0xc81   :  { %v6349_v52 = vsub.f32 %v6337_v2, %v6345_v51  ;;  %v6412_v2 = vld [vmem:[#allocation3 + $0x60] sm:$0xff]  ;;  %v6722_v51 = vld [vmem:[#allocation3 + $0x3b0] sm:$0xff] }
 0xc82   :  { %v13000_v53 = vcombine.low %v6411_v41, %v6412_v2  ;;  %v13001_v54 = vcombine.high %v6411_v41, %v6412_v2  ;;  %v6755_v41 = vld [vmem:[#allocation3 + $0x670] sm:$0xff] }
 0xc83   :  { %v6351_v32 = vmul.f32 1.442695, %v6349_v52  ;;  %v6725_v52 = vld [vmem:[#allocation3 + $0x3f0] sm:$0xff] }
 0xc84   :  { %v6348_v56 = vpop.xlane.xlu1 %6347 }
 0xc85   :  { %14915 = vpow2.f32 %v6351_v32  ;;  %v6350_v58 = vsub.f32 %v6340_v16, %v6348_v56  ;;  %v16328_v16 = vld [vmem:[#allocation3 + $0x3e8] sm:$0xff]  ;;  %v13069_v32 = vcombine.low %v6722_v51, %v6725_v52  ;;  %v13070_v56 = vcombine.high %v6722_v51, %v6725_v52 }
 0xc86   :  { %v13067_v48 = vcombine.low %v16326_v13, %v16328_v16  ;;  %v13068_v28 = vcombine.high %v16326_v13, %v16328_v16 }
 0xc87   :  { %v6353_v8 = vmul.f32 1.442695, %v6350_v58  ;;  %7234 = vmatprep.subr.bf16.mxu1 %v13070_v56  ;;  %v6716_v58 = vld [vmem:[#allocation3 + $0x330] sm:$0xff] }
 0xc88   :  { %7235 = vmatpush1.bf16.msra.mxu1 %v13069_v32 }
 0xc89   :  { %14917 = vpow2.f32 %v6353_v8  ;;  %v6719_v8 = vld [vmem:[#allocation3 + $0x370] sm:$0xff] }
 0xc92   :  { %v14916_v3 = vpop.eup %14915 }
 0xc93   :  { %v6355_v1 = vsel %vm2483_vm0, %v14916_v3, 0.0 }
 0xc94   :  { %6356 = vadd.xlane.f32.xlu0 %v6355_v1  ;;  %v13065_v1 = vcombine.high %v6716_v58, %v6719_v8 }
 0xc96   :  { %v14918_v0 = vpop.eup %14917  ;;  %7236 = vmatprep.subr.bf16.mxu1 %v13065_v1 }
 0xc97   :  { %v6358_v4 = vsel %vm2483_vm0, %v14918_v0, 0.0 }
 0xc98   :  { %6359 = vadd.xlane.f32.xlu1 %v6358_v4  ;;  %v6713_v4 = vld [vmem:[#allocation3 + $0x2f0] sm:$0xff] }
 0xd1d   :  { %v6357_v21 = vpop.xlane.xlu0 %6356 }
 0xd1e   :  { %14919 = vrcp.f32 %v6357_v21 }
 0xd21   :  { %v6360_v27 = vpop.xlane.xlu1 %6359 }
 0xd22   :  { %14921 = vrcp.f32 %v6360_v27 }
 0xd2b   :  { %v14920_v29 = vpop.eup %14919 }
 0xd2c   :  { %v6363_v31 = vmul.f32 %v14920_v29, %v14916_v3  ;;  %v13064_v3 = vcombine.low %v6716_v58, %v6719_v8  ;;  %v6698_v29 = vld [vmem:[#allocation3 + $0x1b0] sm:$0xff]  ;;  %v6715_v58 = vld [vmem:[#allocation3 + $0x328] sm:$0xff] }
 0xd2d   :  { %v6718_v8 = vld [vmem:[#allocation3 + $0x368] sm:$0xff] }
 0xd2e   :  { %7237 = vmatpush1.bf16.msra.mxu1 %v13064_v3 }
 0xd2f   :  { %v14922_v22 = vpop.eup %14921 }
 0xd30   :  { %v6364_v39 = vmul.f32 %v14922_v22, %v14918_v0  ;;  %v6710_v0 = vld [vmem:[#allocation3 + $0x2b0] sm:$0xff] }
 0xd31   :  { %v13059_v44 = vcombine.low %v6710_v0, %v6713_v4  ;;  %v13060_v33 = vcombine.high %v6710_v0, %v6713_v4  ;;  %v6701_v22 = vld [vmem:[#allocation3 + $0x1f0] sm:$0xff]  ;;  %v13063_v0 = vcombine.high %v6715_v58, %v6718_v8 }
 0xd32   :  { %v6365_v61 = vpack.c.bf16 %v6364_v39, %v6363_v31  ;;  %v13049_v11 = vcombine.low %v6698_v29, %v6701_v22  ;;  %v13050_v26 = vcombine.high %v6698_v29, %v6701_v22  ;;  %v6692_v31 = vld [vmem:[#allocation3 + $0x130] sm:$0xff] }
 0xd33   :  { %7238 = vmatprep.subr.bf16.mxu1 %v13060_v33  ;;  %v6695_v39 = vld [vmem:[#allocation3 + $0x170] sm:$0xff]  ;;  %v6712_v33 = vld [vmem:[#allocation3 + $0x2e8] sm:$0xff] }
 0xd34   :  { %13838 = vmatmul.mubr.msk.bf16.vlgmr.msra.gmra.mxu0 %vm2483_vm0, %v6365_v61  ;;  %7239 = vmatpush1.bf16.msra.mxu1 %v13059_v44  ;;  %v13044_v61 = vcombine.low %v6692_v31, %v6695_v39  ;;  %v6709_v44 = vld [vmem:[#allocation3 + $0x2a8] sm:$0xff] }
 0xd35   :  { %6508 = vmatpush1.bf16.msra.mxu0 %v13014_v57  ;;  %6539 = vmatprep.mubr.bf16.mxu0 %v15925_v9  ;;  %v6704_v57 = vld [vmem:[#allocation3 + $0x230] sm:$0xff]  ;;  %v13057_v29 = vcombine.low %v6709_v44, %v6712_v33 }
 0xd36   :  { %6509 = vmatprep.subr.bf16.mxu0 %v13013_v34  ;;  %v13054_v21 = vcombine.low %v6704_v57, %v6707_v46  ;;  %v13055_v27 = vcombine.high %v6704_v57, %v6707_v46  ;;  %v13045_v34 = vcombine.high %v6692_v31, %v6695_v39  ;;  %v13062_v57 = vcombine.low %v6715_v58, %v6718_v8  ;;  %v6740_v8 = vld [vmem:[#allocation3 + $0x530] sm:$0xff] }
 0xd37   :  { %v13058_v46 = vcombine.high %v6709_v44, %v6712_v33  ;;  %v6733_v44 = vld [vmem:[#allocation3 + $0x4a8] sm:$0xff] }
 0xd38   :  { %7240 = vmatprep.subr.bf16.mxu1 %v13055_v27  ;;  %v6706_v27 = vld [vmem:[#allocation3 + $0x268] sm:$0xff] }
 0xd39   :  { %6510 = vmatpush1.bf16.msra.mxu0 %v13012_v35  ;;  %7241 = vmatpush1.bf16.msra.mxu1 %v13054_v21  ;;  %v13039_v35 = vcombine.low %v6686_v12, %v6689_v14  ;;  %v6703_v21 = vld [vmem:[#allocation3 + $0x228] sm:$0xff] }
 0xd3a   :  { %6511 = vmatprep.subr.bf16.mxu0 %v13011_v25  ;;  %7242 = vmatprep.subr.bf16.mxu1 %v13050_v26  ;;  %v13040_v25 = vcombine.high %v6686_v12, %v6689_v14  ;;  %v13053_v22 = vcombine.high %v6703_v21, %v6706_v27  ;;  %v6700_v26 = vld [vmem:[#allocation3 + $0x1e8] sm:$0xff]  ;;  %v13052_v31 = vcombine.low %v6703_v21, %v6706_v27  ;;  %v6737_v21 = vld [vmem:[#allocation3 + $0x4f0] sm:$0xff] }
 0xd3b   :  { %v6688_v12 = vld [vmem:[#allocation3 + $0xe8] sm:$0xff] }
 0xd3c   :  { %v6736_v33 = vld [vmem:[#allocation3 + $0x4e8] sm:$0xff] }
 0xd3d   :  { %6512 = vmatpush1.bf16.msra.mxu0 %v13010_v24  ;;  %7243 = vmatpush1.bf16.msra.mxu1 %v13049_v11  ;;  %v13034_v24 = vcombine.low %v6680_v17, %v6683_v19  ;;  %v6697_v11 = vld [vmem:[#allocation3 + $0x1a8] sm:$0xff]  ;;  %v13077_v27 = vcombine.low %v6733_v44, %v6736_v33 }
 0xd3e   :  { %6513 = vmatprep.subr.bf16.mxu0 %v13009_v36  ;;  %7244 = vmatprep.subr.bf16.mxu1 %v13045_v34  ;;  %v13035_v36 = vcombine.high %v6680_v17, %v6683_v19  ;;  %v13048_v39 = vcombine.high %v6697_v11, %v6700_v26  ;;  %v6694_v34 = vld [vmem:[#allocation3 + $0x168] sm:$0xff]  ;;  %v13047_v13 = vcombine.low %v6697_v11, %v6700_v26 }
 0xd3f   :  { %v6682_v17 = vld [vmem:[#allocation3 + $0x68] sm:$0xff] }
 0xd40   :  { %v6727_v11 = vld [vmem:[#allocation3 + $0x428] sm:$0xff] }
 0xd41   :  { %6514 = vmatpush1.bf16.msra.mxu0 %v13008_v5  ;;  %7245 = vmatpush1.bf16.msra.mxu1 %v13044_v61  ;;  %v13109_v5 = vcombine.low %v6770_v38, %v6773_v40  ;;  %v6691_v61 = vld [vmem:[#allocation3 + $0x128] sm:$0xff] }
 0xd42   :  { %6515 = vmatprep.subr.bf16.mxu0 %v13007_v30  ;;  %7246 = vmatprep.subr.bf16.mxu1 %v13040_v25  ;;  %v13110_v30 = vcombine.high %v6770_v38, %v6773_v40  ;;  %v13043_v16 = vcombine.high %v6691_v61, %v6694_v34  ;;  %v13042_v14 = vcombine.low %v6691_v61, %v6694_v34  ;;  %v6679_v25 = vld [vmem:[#allocation3 + $0x28] sm:$0xff]  ;;  %v6731_v61 = vld [vmem:[#allocation3 + $0x470] sm:$0xff] }
 0xd43   :  { %v6772_v38 = vld [vmem:[#allocation3 + $0x7e8] sm:$0xff]  ;;  %v13032_v40 = vcombine.low %v6679_v25, %v6682_v17 }
 0xd44   :  { %v6730_v26 = vld [vmem:[#allocation3 + $0x468] sm:$0xff] }
 0xd45   :  { %6516 = vmatpush1.bf16.msra.mxu0 %v13006_v37  ;;  %7247 = vmatpush1.bf16.msra.mxu1 %v13039_v35  ;;  %v13104_v37 = vcombine.low %v6764_v42, %v6767_v55  ;;  %v13072_v34 = vcombine.low %v6727_v11, %v6730_v26 }
 0xd46   :  { %6517 = vmatprep.subr.bf16.mxu0 %v13005_v60  ;;  %7248 = vmatprep.subr.bf16.mxu1 %v13035_v36  ;;  %v13105_v60 = vcombine.high %v6764_v42, %v6767_v55  ;;  %v6769_v36 = vld [vmem:[#allocation3 + $0x7a8] sm:$0xff] }
 0xd47   :  { %v6766_v42 = vld [vmem:[#allocation3 + $0x768] sm:$0xff]  ;;  %v13107_v55 = vcombine.low %v6769_v36, %v6772_v38 }
 0xd49   :  { %6518 = vmatpush1.bf16.msra.mxu0 %v13004_v43  ;;  %7249 = vmatpush1.bf16.msra.mxu1 %v13034_v24  ;;  %v13099_v43 = vcombine.low %v6758_v59, %v6761_v10  ;;  %v13033_v24 = vcombine.high %v6679_v25, %v6682_v17 }
 0xd4a   :  { %6519 = vmatprep.subr.bf16.mxu0 %v13003_v49  ;;  %7250 = vmatprep.subr.bf16.mxu1 %v13110_v30  ;;  %v13100_v49 = vcombine.high %v6758_v59, %v6761_v10  ;;  %v6763_v30 = vld [vmem:[#allocation3 + $0x728] sm:$0xff] }
 0xd4b   :  { %v6760_v59 = vld [vmem:[#allocation3 + $0x6e8] sm:$0xff]  ;;  %v13102_v10 = vcombine.low %v6763_v30, %v6766_v42 }
 0xd4d   :  { %6520 = vmatpush1.bf16.msra.mxu0 %v13002_v45  ;;  %7251 = vmatpush2.bf16.msra.mxu1 %v13109_v5  ;;  %v6752_v45 = vld [vmem:[#allocation3 + $0x630] sm:$0xff]  ;;  %v13108_v5 = vcombine.high %v6769_v36, %v6772_v38 }
 0xd4e   :  { %6521 = vmatprep.subr.bf16.mxu0 %v13001_v54  ;;  %7252 = vmatprep.subr.bf16.mxu1 %v13105_v60  ;;  %v13094_v2 = vcombine.low %v6752_v45, %v6755_v41  ;;  %v6746_v54 = vld [vmem:[#allocation3 + $0x5b0] sm:$0xff]  ;;  %v6757_v60 = vld [vmem:[#allocation3 + $0x6a8] sm:$0xff] }
 0xd51   :  { %6522 = vmatpush1.bf16.msra.mxu0 %v13000_v53  ;;  %7253 = vmatpush2.bf16.msra.mxu1 %v13104_v37  ;;  %v13095_v53 = vcombine.high %v6752_v45, %v6755_v41  ;;  %v13103_v37 = vcombine.high %v6763_v30, %v6766_v42  ;;  %v6754_v45 = vld [vmem:[#allocation3 + $0x668] sm:$0xff]  ;;  %v13097_v41 = vcombine.low %v6757_v60, %v6760_v59 }
 0xd52   :  { %7191 = vmatprep.subr.bf16.mxu0 %v13068_v28  ;;  %7254 = vmatprep.subr.bf16.mxu1 %v13100_v49  ;;  %v6749_v28 = vld [vmem:[#allocation3 + $0x5f0] sm:$0xff]  ;;  %v6751_v49 = vld [vmem:[#allocation3 + $0x628] sm:$0xff] }
 0xd53   :  { %v13089_v51 = vcombine.low %v6746_v54, %v6749_v28  ;;  %v13090_v52 = vcombine.high %v6746_v54, %v6749_v28  ;;  %v6748_v54 = vld [vmem:[#allocation3 + $0x5e8] sm:$0xff]  ;;  %v13092_v28 = vcombine.low %v6751_v49, %v6754_v45 }
 0xd55   :  { %7255 = vmatpush2.bf16.msra.mxu1 %v13099_v43  ;;  %v13098_v43 = vcombine.high %v6757_v60, %v6760_v59  ;;  %v6723_v60 = vld [vmem:[#allocation3 + $0x3b8] sm:$0xf] }
 0xd56   :  { %7256 = vmatprep.subr.bf16.mxu1 %v13095_v53  ;;  %v6745_v53 = vld [vmem:[#allocation3 + $0x5a8] sm:$0xff]  ;;  %v6726_v59 = vld [vmem:[#allocation3 + $0x3f8] sm:$0xf] }
 0xd59   :  { %7257 = vmatpush2.bf16.msra.mxu1 %v13094_v2  ;;  %v13093_v2 = vcombine.high %v6751_v49, %v6754_v45  ;;  %v6765_v49 = vld [vmem:[#allocation3 + $0x738] sm:$0xf] }
 0xd5a   :  { %7258 = vmatprep.subr.bf16.mxu1 %v13090_v52  ;;  %v13087_v52 = vcombine.low %v6745_v53, %v6748_v54  ;;  %v6768_v45 = vld [vmem:[#allocation3 + $0x778] sm:$0xf] }
 0xd5d   :  { %7259 = vmatpush2.bf16.msra.mxu1 %v13089_v51  ;;  %v13088_v51 = vcombine.high %v6745_v53, %v6748_v54  ;;  %v13071_v53 = vcombine.low %v6723_v60, %v6726_v59  ;;  %v7384_v60 = vld [vmem:[#allocation3 + $0x77c] sm:$0xf] }
 0xdf4   :  { %v6403_v32 = vpop.f32.mrf.mxu0 }
 0xdf6   :  { %v13839_v56 = vpop.f32.mrf.mxu0 }
 0xdf7   :  { %v6742_v56 = vld [vmem:[#allocation3 + $0x568] sm:$0xff] }
 0xdf8   :  { %v6406_v3 = vpop.f32.mrf.mxu0 }
 0xdf9   :  { %v6410_v1 = vpack.c.bf16 %v6406_v3, %v6403_v32  ;;  %v6739_v32 = vld [vmem:[#allocation3 + $0x528] sm:$0xff]  ;;  %v6743_v3 = vld [vmem:[#allocation3 + $0x570] sm:$0xff] }
 0xdfa   :  { %v13840_v4 = vpop.f32.mrf.mxu0  ;;  %v13083_v58 = vcombine.high %v6739_v32, %v6742_v56 }
 0xdfb   :  { %6540 = vmatmul.mubr.bf16.vlgmr.msra.gmra.mxu0 %v6410_v1  ;;  %v13082_v1 = vcombine.low %v6739_v32, %v6742_v56  ;;  %v13084_v4 = vcombine.low %v6740_v8, %v6743_v3  ;;  %v6759_v32 = vld [vmem:[#allocation3 + $0x6b8] sm:$0xf] }
 0xdfc   :  { %7192 = vmatpush1.bf16.msra.mxu0 %v13067_v48  ;;  %v6685_v48 = vld [vmem:[#allocation3 + $0xa8] sm:$0xff]  ;;  %v6711_v56 = vld [vmem:[#allocation3 + $0x2b8] sm:$0xf] }
 0xdfd   :  { %7193 = vmatprep.subr.bf16.mxu0 %v13063_v0  ;;  %v13038_v35 = vcombine.high %v6685_v48, %v6688_v12  ;;  %v13037_v19 = vcombine.low %v6685_v48, %v6688_v12  ;;  %v13085_v0 = vcombine.high %v6740_v8, %v6743_v3  ;;  %v6771_v48 = vld [vmem:[#allocation3 + $0x7b8] sm:$0xf] }
 0xdfe   :  { %v6774_v12 = vld [vmem:[#allocation3 + $0x7f8] sm:$0xf] }
 0xdff   :  { %7260 = vmatprep.subr.bf16.mxu1 %v13085_v0  ;;  %v6756_v8 = vld [vmem:[#allocation3 + $0x678] sm:$0xf] }
 0xe00   :  { %7194 = vmatpush1.bf16.msra.mxu0 %v13062_v57  ;;  %7261 = vmatpush2.bf16.msra.mxu1 %v13084_v4  ;;  %v13078_v57 = vcombine.high %v6733_v44, %v6736_v33  ;;  %v6705_v0 = vld [vmem:[#allocation3 + $0x238] sm:$0xf] }
 0xe01   :  { %7195 = vmatprep.subr.bf16.mxu0 %v13058_v46  ;;  %v6734_v46 = vld [vmem:[#allocation3 + $0x4b0] sm:$0xff]  ;;  %v6708_v4 = vld [vmem:[#allocation3 + $0x278] sm:$0xf] }
 0xe02   :  { %v6747_v44 = vld [vmem:[#allocation3 + $0x5b8] sm:$0xf] }
 0xe03   :  { %v6750_v33 = vld [vmem:[#allocation3 + $0x5f8] sm:$0xf] }
 0xe04   :  { %7196 = vmatpush1.bf16.msra.mxu0 %v13057_v29  ;;  %v13080_v29 = vcombine.high %v6734_v46, %v6737_v21 }
 0xe05   :  { %7197 = vmatprep.subr.bf16.mxu0 %v13053_v22  ;;  %v13079_v22 = vcombine.low %v6734_v46, %v6737_v21  ;;  %v13091_v46 = vcombine.low %v6747_v44, %v6750_v33  ;;  %v6699_v21 = vld [vmem:[#allocation3 + $0x1b8] sm:$0xf]  ;;  %v7359_v33 = vld [vmem:[#allocation3 + $0x13c] sm:$0xf] }
 0xe06   :  { %7262 = vmatprep.subr.bf16.mxu1 %v13080_v29  ;;  %v6741_v29 = vld [vmem:[#allocation3 + $0x538] sm:$0xf] }
 0xe07   :  { %7263 = vmatpush2.bf16.msra.mxu1 %v13079_v22  ;;  %v6744_v22 = vld [vmem:[#allocation3 + $0x578] sm:$0xf] }
 0xe08   :  { %7198 = vmatpush1.bf16.msra.mxu0 %v13052_v31  ;;  %v13073_v31 = vcombine.high %v6727_v11, %v6730_v26  ;;  %v13086_v26 = vcombine.low %v6741_v29, %v6744_v22  ;;  %v7357_v22 = vld [vmem:[#allocation3 + $0xbc] sm:$0xf] }
 0xe09   :  { %7199 = vmatprep.subr.bf16.mxu0 %v13048_v39  ;;  %v6728_v39 = vld [vmem:[#allocation3 + $0x430] sm:$0xff] }
 0xe0c   :  { %7200 = vmatpush1.bf16.msra.mxu0 %v13047_v13  ;;  %v13075_v13 = vcombine.high %v6728_v39, %v6731_v61 }
 0xe0d   :  { %7201 = vmatprep.subr.bf16.mxu0 %v13043_v16  ;;  %v13074_v16 = vcombine.low %v6728_v39, %v6731_v61  ;;  %v6696_v39 = vld [vmem:[#allocation3 + $0x178] sm:$0xf] }
 0xe0e   :  { %7264 = vmatprep.subr.bf16.mxu1 %v13075_v13  ;;  %v6735_v61 = vld [vmem:[#allocation3 + $0x4b8] sm:$0xf] }
 0xe0f   :  { %7265 = vmatpush2.bf16.msra.mxu1 %v13074_v16 }
 0xe10   :  { %7202 = vmatpush1.bf16.msra.mxu0 %v13042_v14  ;;  %v13111_v14 = vcombine.low %v6771_v48, %v6774_v12  ;;  %v6687_v48 = vld [vmem:[#allocation3 + $0xb8] sm:$0xf] }
 0xe11   :  { %7203 = vmatprep.subr.bf16.mxu0 %v13038_v35  ;;  %v6664_v35 = vpop.f32.mrf.mxu1  ;;  %v6690_v12 = vld [vmem:[#allocation3 + $0xf8] sm:$0xf] }
 0xe13   :  { %v6666_v25 = vpop.f32.mrf.mxu1 }
 0xe14   :  { %7204 = vmatpush1.bf16.msra.mxu0 %v13037_v19 }
 0xe15   :  { %7205 = vmatprep.subr.bf16.mxu0 %v13033_v24  ;;  %v6668_v19 = vpop.f32.mrf.mxu1 }
 0xe18   :  { %7206 = vmatpush1.bf16.msra.mxu0 %v13032_v40 }
 0xe19   :  { %7207 = vmatprep.subr.bf16.mxu0 %v13108_v5  ;;  %v6670_v5 = vpop.f32.mrf.mxu1 }
 0xe1c   :  { %7208 = vmatpush2.bf16.msra.mxu0 %v13107_v55 }
 0xe1d   :  { %7209 = vmatprep.subr.bf16.mxu0 %v13103_v37 }
 0xe20   :  { %7210 = vmatpush2.bf16.msra.mxu0 %v13102_v10 }
 0xe21   :  { %7211 = vmatprep.subr.bf16.mxu0 %v13098_v43 }
 0xe24   :  { %7212 = vmatpush2.bf16.msra.mxu0 %v13097_v41 }
 0xe25   :  { %7213 = vmatprep.subr.bf16.mxu0 %v13093_v2 }
 0xe28   :  { %7214 = vmatpush2.bf16.msra.mxu0 %v13092_v28  ;;  %v13106_v28 = vcombine.low %v6765_v49, %v6768_v45  ;;  %v7381_v45 = vld [vmem:[#allocation3 + $0x6bc] sm:$0xf] }
 0xe29   :  { %7215 = vmatprep.subr.bf16.mxu0 %v13088_v51  ;;  %v6717_v51 = vld [vmem:[#allocation3 + $0x338] sm:$0xf] }
 0xe2c   :  { %7216 = vmatpush2.bf16.msra.mxu0 %v13087_v52  ;;  %v6720_v52 = vld [vmem:[#allocation3 + $0x378] sm:$0xf] }
 0xe2d   :  { %7217 = vmatprep.subr.bf16.mxu0 %v13083_v58  ;;  %v6714_v58 = vld [vmem:[#allocation3 + $0x2f8] sm:$0xf] }
 0xe2e   :  { %v13061_v3 = vcombine.low %v6711_v56, %v6714_v58  ;;  %v7377_v56 = vld [vmem:[#allocation3 + $0x5bc] sm:$0xf] }
 0xe2f   :  { %v7378_v58 = vld [vmem:[#allocation3 + $0x5fc] sm:$0xf] }
 0xe30   :  { %7218 = vmatpush2.bf16.msra.mxu0 %v13082_v1 }
 0xe31   :  { %7219 = vmatprep.subr.bf16.mxu0 %v13078_v57  ;;  %v13056_v57 = vcombine.low %v6705_v0, %v6708_v4  ;;  %v7375_v0 = vld [vmem:[#allocation3 + $0x53c] sm:$0xf] }
 0xe32   :  { %v7376_v4 = vld [vmem:[#allocation3 + $0x57c] sm:$0xf] }
 0xe33   :  { %v13126_v44 = vcombine.low %v7375_v0, %v7376_v4  ;;  %v7318_v4 = vld [vmem:[#allocation13 + $0x120] ss:$0 sm:$0xff] }
 0xe34   :  { %7220 = vmatpush2.bf16.msra.mxu0 %v13077_v27  ;;  %v6702_v27 = vld [vmem:[#allocation3 + $0x1f8] sm:$0xf] }
 0xe35   :  { %7221 = vmatprep.subr.bf16.mxu0 %v13073_v31  ;;  %v13051_v11 = vcombine.low %v6699_v21, %v6702_v27  ;;  %v6693_v31 = vld [vmem:[#allocation3 + $0x138] sm:$0xf]  ;;  %v7373_v21 = vld [vmem:[#allocation3 + $0x4bc] sm:$0xf] }
 0xe36   :  { %v13046_v13 = vcombine.low %v6693_v31, %v6696_v39  ;;  %v7374_v27 = vld [vmem:[#allocation3 + $0x4fc] sm:$0xf] }
 0xe37   :  { %v13125_v29 = vcombine.low %v7373_v21, %v7374_v27  ;;  %v7371_v31 = vld [vmem:[#allocation3 + $0x43c] sm:$0xf] }
 0xe38   :  { %7222 = vmatpush2.bf16.msra.mxu0 %v13072_v34  ;;  %v6738_v34 = vld [vmem:[#allocation3 + $0x4f8] sm:$0xf]  ;;  %v7372_v39 = vld [vmem:[#allocation3 + $0x47c] sm:$0xf] }
 0xe39   :  { %13695 = vmatprep.subr.bf16.mxu0 %v13111_v14  ;;  %v13081_v16 = vcombine.low %v6735_v61, %v6738_v34  ;;  %v6729_v14 = vld [vmem:[#allocation3 + $0x438] sm:$0xf]  ;;  %v13124_v61 = vcombine.low %v7371_v31, %v7372_v39  ;;  %v7355_v34 = vld [vmem:[#allocation3 + $0x3c] sm:$0xf] }
 0xebb   :  { %v6541_v17 = vpop.f32.mrf.mxu0 }
 0xebc   :  { %v6665_v30 = vadd.f32 %v6664_v35, %v6541_v17  ;;  %v6732_v35 = vld [vmem:[#allocation3 + $0x478] sm:$0xf] }
 0xebd   :  { %v6543_v24 = vpop.f32.mrf.mxu0  ;;  %v13076_v17 = vcombine.low %v6729_v14, %v6732_v35 }
 0xebe   :  { %v6667_v38 = vadd.f32 %v6666_v25, %v6543_v24  ;;  %v6673_v41 = vadd.f32 %v6665_v30, %v16253_v63  ;;  %v6753_v63 = vld [vmem:[#allocation3 + $0x638] sm:$0xf]  ;;  %v13041_v25 = vcombine.low %v6687_v48, %v6690_v12  ;;  %v7369_v30 = vld [vmem:[#allocation3 + $0x3bc] sm:$0xf] }
 0xebf   :  { %v6545_v36 = vpop.f32.mrf.mxu0  ;;  %v13096_v1 = vcombine.low %v6753_v63, %v6756_v8  ;;  %v6684_v24 = vld [vmem:[#allocation3 + $0x78] sm:$0xf]  ;;  %v13127_v63 = vcombine.low %v7377_v56, %v7378_v58  ;;  %v7361_v8 = vld [vmem:[#allocation3 + $0x1bc] sm:$0xf] }
 0xec0   :  { %v6669_v40 = vadd.f32 %v6668_v19, %v6545_v36  ;;  %v6674_v10 = vadd.f32 %v6667_v38, %v16256_v47  ;;  %v13066_v47 = vcombine.low %v6717_v51, %v6720_v52  ;;  %v6681_v19 = vld [vmem:[#allocation3 + $0x38] sm:$0xf]  ;;  %v7385_v38 = vld [vmem:[#allocation3 + $0x7bc] sm:$0xf] }
 0xec1   :  { %v6547_v42 = vpop.f32.mrf.mxu0  ;;  %v13036_v36 = vcombine.low %v6681_v19, %v6684_v24  ;;  %v7379_v51 = vld [vmem:[#allocation3 + $0x63c] sm:$0xf] }
 0xec2   :  { %v6671_v55 = vadd.f32 %v6670_v5, %v6547_v42  ;;  %v6675_v37 = vadd.f32 %v6669_v40, %v16259_v20  ;;  %v6762_v20 = vld [vmem:[#allocation3 + $0x6f8] sm:$0xf]  ;;  %v7386_v40 = vld [vmem:[#allocation3 + $0x7fc] sm:$0xf] }
 0xec3   :  { %v13131_v5 = vcombine.low %v7385_v38, %v7386_v40  ;;  %v7370_v42 = vld [vmem:[#allocation3 + $0x3fc] sm:$0xf] }
 0xec4   :  { %v6676_v43 = vadd.f32 %v6671_v55, %v16261_v50  ;;  %v6677_v54 = vpack.c.bf16 %v6675_v37, %v6673_v41  ;;  %v13101_v50 = vcombine.low %v6759_v32, %v6762_v20  ;;  %v13123_v55 = vcombine.low %v7369_v30, %v7370_v42  ;;  %v7383_v37 = vld [vmem:[#allocation3 + $0x73c] sm:$0xf] }
 0xec5   :  { %13717 = vmatprep.subr.bf16.mxu1 %v13131_v5  ;;  %v13130_v59 = vcombine.low %v7383_v37, %v7384_v60  ;;  %v7382_v41 = vld [vmem:[#allocation3 + $0x6fc] sm:$0xf] }
 0xec6   :  { %v6678_v2 = vpack.c.bf16 %v6676_v43, %v6674_v10  ;;  %v7367_v10 = vld [vmem:[#allocation3 + $0x33c] sm:$0xf] }
 0xec7   :  { %v7368_v43 = vld [vmem:[#allocation3 + $0x37c] sm:$0xf] }
 0xec8   :  { %7223 = vmatprep.mubr.bf16.mxu0 %v6678_v2  ;;  %7266 = vmatprep.mubr.bf16.mxu1 %v6678_v2  ;;  %v13122_v49 = vcombine.low %v7367_v10, %v7368_v43  ;;  %v7380_v52 = vld [vmem:[#allocation3 + $0x67c] sm:$0xf] }
 0xec9   :  { %7224 = vmatmul.mubr.bf16.vlgmr.msra.gmra.mxu0 %v6677_v54  ;;  %7267 = vmatmul.mubr.bf16.vlgmr.msra.gmra.mxu1 %v6677_v54  ;;  %v13128_v32 = vcombine.low %v7379_v51, %v7380_v52  ;;  %v7363_v20 = vld [vmem:[#allocation3 + $0x23c] sm:$0xf] }
 0xeca   :  { %13696 = vmatpush3.bf16.msra.mxu0 %v13071_v53  ;;  %7309 = vmatprep.mubr.bf16.mxu0 %v6678_v2  ;;  %v13129_v2 = vcombine.low %v7381_v45, %v7382_v41  ;;  %v7365_v53 = vld [vmem:[#allocation3 + $0x2bc] sm:$0xf] }
 0xecb   :  { %13697 = vmatprep.subr.bf16.mxu0 %v13106_v28  ;;  %13718 = vmatpush3.bf16.msra.mxu1 %v13123_v55 }
 0xecc   :  { %13719 = vmatprep.subr.bf16.mxu1 %v13130_v59 }
 0xece   :  { %13698 = vmatpush3.bf16.msra.mxu0 %v13066_v47  ;;  %v7364_v47 = vld [vmem:[#allocation3 + $0x27c] sm:$0xf] }
 0xecf   :  { %13699 = vmatprep.subr.bf16.mxu0 %v13101_v50  ;;  %13720 = vmatpush3.bf16.msra.mxu1 %v13122_v49  ;;  %v13120_v50 = vcombine.low %v7363_v20, %v7364_v47 }
 0xed0   :  { %13721 = vmatprep.subr.bf16.mxu1 %v13129_v2 }
 0xed2   :  { %13700 = vmatpush3.bf16.msra.mxu0 %v13061_v3  ;;  %v7362_v3 = vld [vmem:[#allocation3 + $0x1fc] sm:$0xf] }
 0xed3   :  { %13701 = vmatprep.subr.bf16.mxu0 %v13096_v1  ;;  %v13119_v1 = vcombine.low %v7361_v8, %v7362_v3 }
 0xed6   :  { %13702 = vmatpush3.bf16.msra.mxu0 %v13056_v57  ;;  %v7360_v57 = vld [vmem:[#allocation3 + $0x17c] sm:$0xf] }
 0xed7   :  { %13703 = vmatprep.subr.bf16.mxu0 %v13091_v46  ;;  %v13118_v46 = vcombine.low %v7359_v33, %v7360_v57 }
 0xeda   :  { %13704 = vmatpush3.bf16.msra.mxu0 %v13051_v11  ;;  %v7358_v11 = vld [vmem:[#allocation3 + $0xfc] sm:$0xf] }
 0xedb   :  { %13705 = vmatprep.subr.bf16.mxu0 %v13086_v26  ;;  %v13117_v26 = vcombine.low %v7357_v22, %v7358_v11 }
 0xede   :  { %13706 = vmatpush3.bf16.msra.mxu0 %v13046_v13  ;;  %v7356_v13 = vld [vmem:[#allocation3 + $0x7c] sm:$0xf] }
 0xedf   :  { %13707 = vmatprep.subr.bf16.mxu0 %v13081_v16  ;;  %v13116_v16 = vcombine.low %v7355_v34, %v7356_v13 }
 0xee2   :  { %13708 = vmatpush3.bf16.msra.mxu0 %v13041_v25 }
 0xee3   :  { %13709 = vmatprep.subr.bf16.mxu0 %v13076_v17 }
 0xee6   :  { %13710 = vmatpush3.bf16.msra.mxu0 %v13036_v36 }
 0xee9   :  { %7310 = vmatmul.mubr.bf16.vlgmr.msra.gmra.mxu0 %v6677_v54  ;;  %v7366_v54 = vld [vmem:[#allocation3 + $0x2fc] sm:$0xf] }
 0xeea   :  { %v13121_v28 = vcombine.low %v7365_v53, %v7366_v54 }
 0xeec   :  { %13722 = vmatpush3.bf16.msra.mxu1 %v13121_v28 }
 0xeed   :  { %13723 = vmatprep.subr.bf16.mxu1 %v13128_v32 }
 0xef0   :  { %13724 = vmatpush3.bf16.msra.mxu1 %v13120_v50 }
 0xef1   :  { %13725 = vmatprep.subr.bf16.mxu1 %v13127_v63 }
 0xef4   :  { %13726 = vmatpush3.bf16.msra.mxu1 %v13119_v1 }
 0xef5   :  { %13727 = vmatprep.subr.bf16.mxu1 %v13126_v44 }
 0xef8   :  { %13728 = vmatpush3.bf16.msra.mxu1 %v13118_v46 }
 0xef9   :  { %13729 = vmatprep.subr.bf16.mxu1 %v13125_v29 }
 0xefc   :  { %13730 = vmatpush3.bf16.msra.mxu1 %v13117_v26 }
 0xefd   :  { %13731 = vmatprep.subr.bf16.mxu1 %v13124_v61 }
 0xf00   :  { %13732 = vmatpush3.bf16.msra.mxu1 %v13116_v16 }
 0xf89   :  { %v7268_v48 = vpop.f32.mrf.mxu1  ;;  %v7225_v12 = vpop.f32.mrf.mxu0 }
 0xf8a   :  { %v7319_v57 = vadd.f32 %v7318_v4, %v7225_v12 }
 0xf8b   :  { %v7270_v14 = vpop.f32.mrf.mxu1  ;;  %v7227_v35 = vpop.f32.mrf.mxu0 }
 0xf8c   :  { %v13112_v38 = vmul.f32 -1.442695, %v7270_v14 }
 0xf8d   :  { %v7272_v25 = vpop.f32.mrf.mxu1  ;;  %v7229_v17 = vpop.f32.mrf.mxu0 }
 0xf8e   :  { %v7320_v22 = vadd.f32 %v7318_v4, %v7229_v17 }
 0xf8f   :  { %v7274_v19 = vpop.f32.mrf.mxu1  ;;  %v7231_v24 = vpop.f32.mrf.mxu0 }
 0xf90   :  { %v13114_v36 = vmul.f32 -1.442695, %v7274_v19 }
 0xf92   :  { %14923 = vpow2.f32 %v13114_v36 }
 0xf93   :  { %14925 = vpow2.f32 %v13112_v38 }
 0xf9f   :  { %v14924_v10 = vpop.eup %14923 }
 0xfa0   :  { %v14926_v43 = vpop.eup %14925  ;;  %v7335_v49 = vadd.f32 1.0, %v14924_v10 }
 0xfa1   :  { %v7333_v41 = vadd.f32 1.0, %v14926_v43 }
 0xfa9   :  { %v13711_v40 = vpop.f32.mrf.mxu0 }
 0xfab   :  { %v13712_v5 = vpop.f32.mrf.mxu0 }
 0xfac   :  { %v13713_v30 = vadd.f32 %v13712_v5, %v13711_v40 }
 0xfad   :  { %v13714_v42 = vpop.f32.mrf.mxu0 }
 0xfae   :  { %v13113_v55 = vmul.f32 -1.442695, %v13713_v30 }
 0xfaf   :  { %v13715_v37 = vpop.f32.mrf.mxu0 }
 0xfb0   :  { %14927 = vpow2.f32 %v13113_v55  ;;  %v13716_v60 = vadd.f32 %v13715_v37, %v13714_v42 }
 0xfb2   :  { %v13115_v59 = vmul.f32 -1.442695, %v13716_v60 }
 0xfb4   :  { %14929 = vpow2.f32 %v13115_v59 }
 0xfb5   :  { %14931 = vrcp.f32 %v7335_v49 }
 0xfbd   :  { %v14928_v45 = vpop.eup %14927 }
 0xfbe   :  { %v7334_v2 = vadd.f32 1.0, %v14928_v45 }
 0xfc0   :  { %14933 = vrcp.f32 %v7334_v2 }
 0xfc1   :  { %v14930_v53 = vpop.eup %14929  ;;  %14935 = vrcp.f32 %v7333_v41 }
 0xfc2   :  { %v7336_v54 = vadd.f32 1.0, %v14930_v53  ;;  %v14932_v28 = vpop.eup %14931 }
 0xfc3   :  { %v7347_v32 = vmul.f32 %v14932_v28, %v7274_v19 }
 0xfc4   :  { %14937 = vrcp.f32 %v7336_v54 }
 0xfc5   :  { %v7351_v58 = vmul.f32 %v7347_v32, %v7231_v24 }
 0xfcd   :  { %v14934_v51 = vpop.eup %14933 }
 0xfce   :  { %v14936_v52 = vpop.eup %14935  ;;  %v7346_v20 = vmul.f32 %v14934_v51, %v13713_v30 }
 0xfcf   :  { %v7345_v50 = vmul.f32 %v14936_v52, %v7270_v14 }
 0xfd0   :  { %v7350_v63 = vmul.f32 %v7346_v20, %v7268_v48 }
 0xfd1   :  { %v14938_v47 = vpop.eup %14937  ;;  %v7349_v3 = vmul.f32 %v7345_v50, %v7227_v35 }
 0xfd2   :  { %v7348_v56 = vmul.f32 %v14938_v47, %v13716_v60 }
 0xfd3   :  { %v7353_v0 = vpack.c.bf16 %v7351_v58, %v7349_v3 }
 0xfd4   :  { %v7352_v8 = vmul.f32 %v7348_v56, %v7272_v25 }
 0xfd6   :  { %v7354_v1 = vpack.c.bf16 %v7352_v8, %v7350_v63 }
 0xfd8   :  { %7515 = vmatprep.mubr.bf16.mxu1 %v7354_v1 }
 0xfd9   :  { %7516 = vmatmul.mubr.bf16.vlgmr.msra.gmra.mxu1 %v7353_v0 }
0x1099   :  { %v13733_v44 = vpop.f32.mrf.mxu1 }
0x109b   :  { %v13734_v33 = vpop.f32.mrf.mxu1 }
0x109c   :  { %v13735_v46 = vadd.f32 %v13734_v33, %v13733_v44 }
0x109d   :  { %v13736_v21 = vpop.f32.mrf.mxu1 }
0x109e   :  { %v16341_v27 = vadd.f32 %v13735_v46, %v7319_v57 }
0x109f   :  { %v13737_v29 = vpop.f32.mrf.mxu1 }
0x10a0   :  { %v13738_v11 = vadd.f32 %v13737_v29, %v13736_v21 }
0x10a2   :  { %v16343_v26 = vadd.f32 %v13738_v11, %v7320_v22 }
0x10a3   :  { %15903 = dma.done.wait [#allocation7 + $0x2], 14336 }
0x10a4   :  { %15904 = vsyncadd [#allocation7 + $0x2], 4294952960  ;;  %7894 = vmatprep.mubr.bf16.mxu1 %v15925_v9  ;;  %7851 = vmatprep.mubr.bf16.mxu0 %v15925_v9  ;;  %v14939_v31 = vld [vmem:[#allocation4 + $0x31c] ss:$56 sps:$4 sm:$0xff]   ;;  %v14941_v39 = vld [vmem:[#allocation4 + $0x318] ss:$56 sps:$4 sm:$0xff]   ;;  %v16349_v28 = vpack.c.bf16 %v16343_v26, %v16341_v27 }
0x10a5   :  { %7862 = vmatprep.subr.bf16.mxu1 %v14939_v31  ;;  %v14942_v61 = vld [vmem:[#allocation4 + $0x314] ss:$56 sps:$4 sm:$0xff]   ;;  %v14944_v34 = vld [vmem:[#allocation4 + $0x310] ss:$56 sps:$4 sm:$0xff]   ;;  %v14948_v48 = vld [vmem:[#allocation4 + $0x2a4] ss:$56 sps:$4 sm:$0xff]  }
0x10a6   :  { %7863 = vmatpush1.bf16.msra.mxu1 %v14941_v39  ;;  %v14945_v13 = vld [vmem:[#allocation4 + $0x2ac] ss:$56 sps:$4 sm:$0xff]   ;;  %v14947_v16 = vld [vmem:[#allocation4 + $0x2a8] ss:$56 sps:$4 sm:$0xff]   ;;  %7819 = vmatprep.subr.bf16.mxu0 %v14942_v61  ;;  %v14951_v14 = vld [vmem:[#allocation4 + $0x23c] ss:$56 sps:$4 sm:$0xff]  }
0x10a7   :  { %7820 = vmatpush1.bf16.msra.mxu0 %v14944_v34  ;;  %7864 = vmatprep.subr.bf16.mxu1 %v14945_v13  ;;  %v14950_v12 = vld [vmem:[#allocation4 + $0x2a0] ss:$56 sps:$4 sm:$0xff]   ;;  %v14954_v25 = vld [vmem:[#allocation4 + $0x234] ss:$56 sps:$4 sm:$0xff]   ;;  %v14956_v19 = vld [vmem:[#allocation4 + $0x230] ss:$56 sps:$4 sm:$0xff]  }
0x10a8   :  { %7821 = vmatprep.subr.bf16.mxu0 %v14948_v48  ;;  %v14953_v35 = vld [vmem:[#allocation4 + $0x238] ss:$56 sps:$4 sm:$0xff]   ;;  %v14957_v17 = vld [vmem:[#allocation4 + $0x1cc] ss:$56 sps:$4 sm:$0xff]   ;;  %v14959_v36 = vld [vmem:[#allocation4 + $0x1c8] ss:$56 sps:$4 sm:$0xff]  }
0x10a9   :  { %v14960_v24 = vld [vmem:[#allocation4 + $0x1c4] ss:$56 sps:$4 sm:$0xff]   ;;  %v14962_v40 = vld [vmem:[#allocation4 + $0x1c0] ss:$56 sps:$4 sm:$0xff]   ;;  %v14966_v5 = vld [vmem:[#allocation4 + $0x154] ss:$56 sps:$4 sm:$0xff]  }
0x10aa   :  { %7865 = vmatpush1.bf16.msra.mxu1 %v14947_v16  ;;  %v14963_v38 = vld [vmem:[#allocation4 + $0x15c] ss:$56 sps:$4 sm:$0xff]   ;;  %v14965_v30 = vld [vmem:[#allocation4 + $0x158] ss:$56 sps:$4 sm:$0xff]   ;;  %v14969_v42 = vld [vmem:[#allocation4 + $0xec] ss:$56 sps:$4 sm:$0xff]  }
0x10ab   :  { %7866 = vmatprep.subr.bf16.mxu1 %v14951_v14  ;;  %7822 = vmatpush1.bf16.msra.mxu0 %v14950_v12  ;;  %v14968_v55 = vld [vmem:[#allocation4 + $0x150] ss:$56 sps:$4 sm:$0xff]   ;;  %v14972_v37 = vld [vmem:[#allocation4 + $0xe4] ss:$56 sps:$4 sm:$0xff]   ;;  %v14974_v59 = vld [vmem:[#allocation4 + $0xe0] ss:$56 sps:$4 sm:$0xff]  }
0x10ac   :  { %7823 = vmatprep.subr.bf16.mxu0 %v14954_v25  ;;  %v14971_v60 = vld [vmem:[#allocation4 + $0xe8] ss:$56 sps:$4 sm:$0xff]   ;;  %v14975_v10 = vld [vmem:[#allocation4 + $0x7c] ss:$56 sps:$4 sm:$0xff]   ;;  %v14977_v43 = vld [vmem:[#allocation4 + $0x78] ss:$56 sps:$4 sm:$0xff]  }
0x10ad   :  { %v14978_v49 = vld [vmem:[#allocation4 + $0x74] ss:$56 sps:$4 sm:$0xff]   ;;  %v14980_v41 = vld [vmem:[#allocation4 + $0x70] ss:$56 sps:$4 sm:$0xff]   ;;  %v14984_v2 = vld [vmem:[#allocation4 + $0x4] ss:$56 sps:$4 sm:$0xff]  }
0x10ae   :  { %7867 = vmatpush1.bf16.msra.mxu1 %v14953_v35  ;;  %v14981_v45 = vld [vmem:[#allocation4 + $0xc] ss:$56 sps:$4 sm:$0xff]   ;;  %v14983_v53 = vld [vmem:[#allocation4 + $0x8] ss:$56 sps:$4 sm:$0xff]  }
0x10af   :  { %7868 = vmatprep.subr.bf16.mxu1 %v14957_v17  ;;  %7824 = vmatpush1.bf16.msra.mxu0 %v14956_v19  ;;  %v14986_v54 = vld [vmem:[#allocation4] ss:$56 sps:$4 sm:$0xff]   ;;  %v7950_v20 = vld [vmem:[#allocation13 + $0x88] sm:$0xff] }
0x10b0   :  { %7825 = vmatprep.subr.bf16.mxu0 %v14960_v24  ;;  %v7948_v51 = vld [vmem:[#allocation13 + $0x80] sm:$0xff]  ;;  %v7951_v4 = vld [vmem:[#allocation13 + $0xa8] sm:$0xff] }
0x10b1   :  { %v7949_v63 = vld [vmem:[#allocation13 + $0xa0] sm:$0xff] }
0x10b2   :  { %7869 = vmatpush1.bf16.msra.mxu1 %v14959_v36 }
0x10b3   :  { %7870 = vmatprep.subr.bf16.mxu1 %v14963_v38  ;;  %7826 = vmatpush1.bf16.msra.mxu0 %v14962_v40 }
0x10b4   :  { %7827 = vmatprep.subr.bf16.mxu0 %v14966_v5 }
0x10b6   :  { %7871 = vmatpush1.bf16.msra.mxu1 %v14965_v30  ;;  %v14987_v30 = vld [vmem:[#allocation4 + $0x320] ss:$56 sps:$4 sm:$0xff]  }
0x10b7   :  { %7872 = vmatprep.subr.bf16.mxu1 %v14969_v42  ;;  %7828 = vmatpush1.bf16.msra.mxu0 %v14968_v55  ;;  %v14989_v42 = vld [vmem:[#allocation4 + $0x324] ss:$56 sps:$4 sm:$0xff]   ;;  %v14992_v55 = vld [vmem:[#allocation4 + $0x2b4] ss:$56 sps:$4 sm:$0xff]  }
0x10b8   :  { %7829 = vmatprep.subr.bf16.mxu0 %v14972_v37  ;;  %v14990_v37 = vld [vmem:[#allocation4 + $0x2b0] ss:$56 sps:$4 sm:$0xff]  }
0x10ba   :  { %7873 = vmatpush1.bf16.msra.mxu1 %v14971_v60  ;;  %v14995_v60 = vld [vmem:[#allocation4 + $0x244] ss:$56 sps:$4 sm:$0xff]  }
0x10bb   :  { %7874 = vmatprep.subr.bf16.mxu1 %v14975_v10  ;;  %7830 = vmatpush1.bf16.msra.mxu0 %v14974_v59  ;;  %v14993_v59 = vld [vmem:[#allocation4 + $0x240] ss:$56 sps:$4 sm:$0xff]   ;;  %v14998_v10 = vld [vmem:[#allocation4 + $0x1d4] ss:$56 sps:$4 sm:$0xff]  }
0x10bc   :  { %7831 = vmatprep.subr.bf16.mxu0 %v14978_v49  ;;  %v15001_v49 = vld [vmem:[#allocation4 + $0x164] ss:$56 sps:$4 sm:$0xff]  }
0x10be   :  { %7875 = vmatpush1.bf16.msra.mxu1 %v14977_v43  ;;  %v14996_v43 = vld [vmem:[#allocation4 + $0x1d0] ss:$56 sps:$4 sm:$0xff]  }
0x10bf   :  { %7876 = vmatprep.subr.bf16.mxu1 %v14981_v45  ;;  %7832 = vmatpush1.bf16.msra.mxu0 %v14980_v41  ;;  %v14999_v45 = vld [vmem:[#allocation4 + $0x160] ss:$56 sps:$4 sm:$0xff]   ;;  %v15004_v41 = vld [vmem:[#allocation4 + $0xf4] ss:$56 sps:$4 sm:$0xff]  }
0x10c0   :  { %7833 = vmatprep.subr.bf16.mxu0 %v14984_v2  ;;  %v15002_v2 = vld [vmem:[#allocation4 + $0xf0] ss:$56 sps:$4 sm:$0xff]  }
0x10c2   :  { %7877 = vmatpush1.bf16.msra.mxu1 %v14983_v53  ;;  %v15007_v53 = vld [vmem:[#allocation4 + $0x84] ss:$56 sps:$4 sm:$0xff]  }
0x10c3   :  { %13841 = vmatprep.subr.bf16.mxu1 %v15926_v62  ;;  %7834 = vmatpush1.bf16.msra.mxu0 %v14986_v54  ;;  %v15005_v54 = vld [vmem:[#allocation4 + $0x80] ss:$56 sps:$4 sm:$0xff]  }
0x10c4   :  { %7905 = vmatprep.subr.bf16.mxu0 %v14989_v42 }
0x10c5   :  { %7895 = vmatmul.mubr.bf16.vlgmr.msra.gmra.mxu1 %v16349_v28 }
0x10c6   :  { %13843 = vmatprep.mubr.msk.bf16.mxu1 %vm15927_vm1, %v15926_v62  ;;  %7852 = vmatmul.mubr.bf16.vlgmr.msra.gmra.mxu0 %v16349_v28 }
0x10c7   :  { %7937 = vmatprep.mubr.bf16.mxu0 %v15925_v9  ;;  %7906 = vmatpush1.bf16.msra.mxu0 %v14987_v30 }
0x10c8   :  { %7907 = vmatprep.subr.bf16.mxu0 %v14992_v55 }
0x10cb   :  { %7908 = vmatpush1.bf16.msra.mxu0 %v14990_v37 }
0x10cc   :  { %7909 = vmatprep.subr.bf16.mxu0 %v14995_v60 }
0x10cf   :  { %7910 = vmatpush1.bf16.msra.mxu0 %v14993_v59 }
0x10d0   :  { %7911 = vmatprep.subr.bf16.mxu0 %v14998_v10 }
0x10d3   :  { %7912 = vmatpush1.bf16.msra.mxu0 %v14996_v43 }
0x10d4   :  { %7913 = vmatprep.subr.bf16.mxu0 %v15001_v49 }
0x10d7   :  { %7914 = vmatpush1.bf16.msra.mxu0 %v14999_v45 }
0x10d8   :  { %7915 = vmatprep.subr.bf16.mxu0 %v15004_v41 }
0x10db   :  { %7916 = vmatpush1.bf16.msra.mxu0 %v15002_v2 }
0x10dc   :  { %7917 = vmatprep.subr.bf16.mxu0 %v15007_v53 }
0x10df   :  { %7918 = vmatpush1.bf16.msra.mxu0 %v15005_v54 }
0x1185   :  { %v7896_v52 = vpop.f32.mrf.mxu1 }
0x1186   :  { %v7970_v32 = vmul.f32 %v7948_v51, %v7896_v52  ;;  %v7853_v47 = vpop.f32.mrf.mxu0  ;;  %v7964_v22 = vmul.f32 %v7950_v20, %v7896_v52  ;;  %v15008_v52 = vld [vmem:[#allocation4 + $0x10] ss:$56 sps:$4 sm:$0xff]  }
0x1187   :  { %v7898_v50 = vpop.f32.mrf.mxu1  ;;  %v7958_v56 = vmul.f32 %v7948_v51, %v7853_v47  ;;  %v7952_v13 = vmul.f32 %v7950_v20, %v7853_v47 }
0x1188   :  { %v7972_v58 = vmul.f32 %v7950_v20, %v7898_v50  ;;  %v7855_v8 = vpop.f32.mrf.mxu0  ;;  %v7966_v44 = vmul.f32 %v7948_v51, %v7898_v50 }
0x1189   :  { %v7900_v3 = vpop.f32.mrf.mxu1  ;;  %v7960_v0 = vmul.f32 %v7950_v20, %v7855_v8  ;;  %v7954_v14 = vmul.f32 %v7948_v51, %v7855_v8  ;;  %v15010_v51 = vld [vmem:[#allocation4 + $0x14] ss:$56 sps:$4 sm:$0xff]  }
0x118a   :  { %v16357_v1 = vadd.f32 %v7972_v58, %v7970_v32  ;;  %v7971_v33 = vmul.f32 %v7949_v63, %v7900_v3  ;;  %v7857_v57 = vpop.f32.mrf.mxu0  ;;  %v7965_v11 = vmul.f32 %v7951_v4, %v7900_v3  ;;  %v7968_v16 = vsub.f32 %v7964_v22, %v7966_v44  ;;  %7919 = vmatprep.subr.bf16.mxu0 %v15010_v51 }
0x118b   :  { %v7902_v46 = vpop.f32.mrf.mxu1  ;;  %v16359_v21 = vadd.f32 %v7960_v0, %v7958_v56  ;;  %v7959_v29 = vmul.f32 %v7949_v63, %v7857_v57  ;;  %v7953_v35 = vmul.f32 %v7951_v4, %v7857_v57  ;;  %v7956_v38 = vsub.f32 %v7952_v13, %v7954_v14  ;;  %7920 = vmatpush1.bf16.msra.mxu0 %v15008_v52  ;;  %v15019_v52 = vld [vmem:[#allocation4 + $0x32c] ss:$56 sps:$4 sm:$0xff]  }
0x118c   :  { %v7967_v31 = vmul.f32 %v7949_v63, %v7902_v46  ;;  %v7973_v39 = vmul.f32 %v7951_v4, %v7902_v46  ;;  %v7859_v61 = vpop.f32.mrf.mxu0  ;;  %13865 = vmatprep.subr.bf16.mxu0 %v15926_v62 }
0x118d   :  { %v7961_v34 = vmul.f32 %v7951_v4, %v7859_v61  ;;  %v7955_v25 = vmul.f32 %v7949_v63, %v7859_v61 }
0x118e   :  { %v7969_v48 = vsub.f32 %v7965_v11, %v7967_v31  ;;  %v16361_v12 = vadd.f32 %v7973_v39, %v7971_v33  ;;  %7938 = vmatmul.mubr.bf16.vlgmr.msra.gmra.mxu0 %v16349_v28 }
0x118f   :  { %v16363_v17 = vadd.f32 %v7961_v34, %v7959_v29  ;;  %v7957_v40 = vsub.f32 %v7953_v35, %v7955_v25  ;;  %13881 = vmatprep.mubr.msk.bf16.mxu0 %vm15927_vm1, %v15926_v62  ;;  %13866 = vmatpush3.bf16.msra.mxu0 %v15019_v52 }
0x1190   :  { %v7977_v19 = vpack.c.bf16 %v7969_v48, %v7968_v16  ;;  %v8105_v24 = vpack.c.bf16 %v16361_v12, %v16357_v1  ;;  %13867 = vmatprep.subr.bf16.mxu0 %v15926_v62 }
0x1191   :  { %v8104_v36 = vpack.c.bf16 %v16363_v17, %v16359_v21  ;;  %v7976_v5 = vpack.c.bf16 %v7957_v40, %v7956_v38 }
0x1192   :  { %13842 = vmatpush3.bf16.xpose.msra.mxu1 %v7977_v19 }
0x1193   :  { %13847 = vmatprep.subr.bf16.mxu1 %v15926_v62 }
0x1199   :  { %13844 = vmatmul.mubr.bf16.vlgmr.msra.gmra.mxu1 %v7976_v5 }
0x119a   :  { %13849 = vmatprep.mubr.msk.bf16.mxu1 %vm15927_vm1, %v15926_v62 }
0x124e   :  { %v7939_v11 = vpop.f32.mrf.mxu0 }
0x1250   :  { %v7941_v31 = vpop.f32.mrf.mxu0 }
0x1252   :  { %v7943_v39 = vpop.f32.mrf.mxu0 }
0x1253   :  { %v7978_v61 = vpack.c.bf16 %v7943_v39, %v7939_v11  ;;  %v15017_v11 = vld [vmem:[#allocation4 + $0x88] ss:$56 sps:$4 sm:$0xff]   ;;  %v15025_v39 = vld [vmem:[#allocation4 + $0x8c] ss:$56 sps:$4 sm:$0xff]  }
0x1254   :  { %v7945_v19 = vpop.f32.mrf.mxu0 }
0x1255   :  { %13848 = vmatpush3.bf16.msra.mxu1 %v7978_v61  ;;  %v8106_v38 = vpack.c.bf16 %v7945_v19, %v7941_v31  ;;  %v15018_v31 = vld [vmem:[#allocation4 + $0x18] ss:$56 sps:$4 sm:$0xff]   ;;  %v15026_v61 = vld [vmem:[#allocation4 + $0x1c] ss:$56 sps:$4 sm:$0xff]   ;;  %v15050_v19 = vld [vmem:[#allocation4 + $0x1ec] ss:$56 sps:$4 sm:$0xff]  }
0x1256   :  { %13853 = vmatprep.subr.bf16.mxu1 %v15926_v62 }
0x1259   :  { %v8013_v32 = vpop.f32.mrf.mxu1 }
0x125a   :  { %v8014_v20 = vadd.f32 %v8013_v32, %v16007_v6  ;;  %v15020_v32 = vld [vmem:[#allocation4 + $0x2bc] ss:$56 sps:$4 sm:$0xff]  }
0x125b   :  { %v13845_v47 = vpop.f32.mrf.mxu1  ;;  %13868 = vmatpush3.bf16.msra.mxu0 %v15020_v32  ;;  %v15065_v32 = vld [vmem:[#allocation4 + $0x94] ss:$56 sps:$4 sm:$0xff]  }
0x125c   :  { %v8020_v50 = vsel %vm2483_vm0, %v8014_v20, -inf  ;;  %13869 = vmatprep.subr.bf16.mxu0 %v15926_v62  ;;  %v15022_v47 = vld [vmem:[#allocation4 + $0x1dc] ss:$56 sps:$4 sm:$0xff]  }
0x125d   :  { %8021 = vmax.xlane.f32.xlu0 %v8020_v50  ;;  %v8016_v56 = vpop.f32.mrf.mxu1  ;;  %v15023_v50 = vld [vmem:[#allocation4 + $0x16c] ss:$56 sps:$4 sm:$0xff]  }
0x125e   :  { %v8017_v58 = vadd.f32 %v8016_v56, %v16009_v7  ;;  %v15024_v56 = vld [vmem:[#allocation4 + $0xfc] ss:$56 sps:$4 sm:$0xff]  }
0x125f   :  { %v13846_v63 = vpop.f32.mrf.mxu1 }
0x1260   :  { %v8023_v8 = vsel %vm2483_vm0, %v8017_v58, -inf }
0x1261   :  { %8024 = vmax.xlane.f32.xlu0 %v8023_v8 }
0x12e6   :  { %v8022_v3 = vpop.xlane.xlu0 %8021 }
0x12e7   :  { %v8026_v0 = vsub.f32 %v8014_v20, %v8022_v3  ;;  %v15021_v20 = vld [vmem:[#allocation4 + $0x24c] ss:$56 sps:$4 sm:$0xff]  }
0x12e8   :  { %13870 = vmatpush3.bf16.msra.mxu0 %v15021_v20  ;;  %v15068_v20 = vld [vmem:[#allocation4 + $0x9c] ss:$56 sps:$4 sm:$0xff]  }
0x12e9   :  { %v8028_v28 = vmul.f32 1.442695, %v8026_v0  ;;  %13871 = vmatprep.subr.bf16.mxu0 %v15926_v62 }
0x12ea   :  { %v8025_v4 = vpop.xlane.xlu0 %8024 }
0x12eb   :  { %15099 = vpow2.f32 %v8028_v28  ;;  %v8027_v44 = vsub.f32 %v8017_v58, %v8025_v4  ;;  %v15011_v4 = vld [vmem:[#allocation4 + $0x328] ss:$56 sps:$4 sm:$0xff]  }
0x12ec   :  { %13872 = vmatpush3.bf16.msra.mxu0 %v15022_v47  ;;  %v15063_v47 = vld [vmem:[#allocation4 + $0x90] ss:$56 sps:$4 sm:$0xff]  }
0x12ed   :  { %v8030_v33 = vmul.f32 1.442695, %v8027_v44  ;;  %13873 = vmatprep.subr.bf16.mxu0 %v15926_v62 }
0x12ef   :  { %15101 = vpow2.f32 %v8030_v33  ;;  %v15012_v33 = vld [vmem:[#allocation4 + $0x2b8] ss:$56 sps:$4 sm:$0xff]  }
0x12f0   :  { %13874 = vmatpush3.bf16.msra.mxu0 %v15023_v50  ;;  %v15066_v50 = vld [vmem:[#allocation4 + $0x98] ss:$56 sps:$4 sm:$0xff]  }
0x12f1   :  { %13875 = vmatprep.subr.bf16.mxu0 %v15926_v62 }
0x12f4   :  { %13876 = vmatpush3.bf16.msra.mxu0 %v15024_v56  ;;  %v15071_v56 = vld [vmem:[#allocation4 + $0x24] ss:$56 sps:$4 sm:$0xff]  }
0x12f5   :  { %13877 = vmatprep.subr.bf16.mxu0 %v15926_v62 }
0x12f8   :  { %v15100_v57 = vpop.eup %15099  ;;  %13878 = vmatpush3.bf16.msra.mxu0 %v15025_v39  ;;  %v15078_v39 = vld [vmem:[#allocation4 + $0x2d0] ss:$56 sps:$4 sm:$0xff]  }
0x12f9   :  { %v8032_v46 = vsel %vm2483_vm0, %v15100_v57, 0.0  ;;  %13879 = vmatprep.subr.bf16.mxu0 %v15926_v62 }
0x12fa   :  { %8033 = vadd.xlane.f32.xlu1 %v8032_v46  ;;  %v15014_v46 = vld [vmem:[#allocation4 + $0x1d8] ss:$56 sps:$4 sm:$0xff]  }
0x12fc   :  { %v15102_v29 = vpop.eup %15101  ;;  %13880 = vmatpush3.bf16.msra.mxu0 %v15026_v61  ;;  %v15083_v61 = vld [vmem:[#allocation4 + $0x264] ss:$56 sps:$4 sm:$0xff]  }
0x12fd   :  { %v8035_v22 = vsel %vm2483_vm0, %v15102_v29, 0.0 }
0x12fe   :  { %8036 = vadd.xlane.f32.xlu1 %v8035_v22  ;;  %v15016_v22 = vld [vmem:[#allocation4 + $0xf8] ss:$56 sps:$4 sm:$0xff]  }
0x1383   :  { %v8034_v34 = vpop.xlane.xlu1 %8033 }
0x1384   :  { %15103 = vrcp.f32 %v8034_v34  ;;  %v15029_v34 = vld [vmem:[#allocation4 + $0x334] ss:$56 sps:$4 sm:$0xff]  }
0x1385   :  { %8605 = vmatprep.subr.bf16.mxu0 %v15029_v34  ;;  %v15081_v34 = vld [vmem:[#allocation4 + $0x260] ss:$56 sps:$4 sm:$0xff]  }
0x1387   :  { %v8037_v13 = vpop.xlane.xlu1 %8036 }
0x1388   :  { %15105 = vrcp.f32 %v8037_v13  ;;  %v15030_v13 = vld [vmem:[#allocation4 + $0x338] ss:$56 sps:$4 sm:$0xff]  }
0x1391   :  { %v15104_v16 = vpop.eup %15103 }
0x1392   :  { %v8040_v14 = vmul.f32 %v15104_v16, %v15100_v57  ;;  %v15013_v57 = vld [vmem:[#allocation4 + $0x248] ss:$56 sps:$4 sm:$0xff]   ;;  %v15032_v16 = vld [vmem:[#allocation4 + $0x33c] ss:$56 sps:$4 sm:$0xff]  }
0x1395   :  { %v15106_v48 = vpop.eup %15105 }
0x1396   :  { %v8041_v35 = vmul.f32 %v15106_v48, %v15102_v29  ;;  %v15015_v29 = vld [vmem:[#allocation4 + $0x168] ss:$56 sps:$4 sm:$0xff]   ;;  %v15038_v48 = vld [vmem:[#allocation4 + $0x2cc] ss:$56 sps:$4 sm:$0xff]  }
0x1398   :  { %v8042_v25 = vpack.c.bf16 %v8041_v35, %v8040_v14  ;;  %v15036_v14 = vld [vmem:[#allocation4 + $0x2c8] ss:$56 sps:$4 sm:$0xff]   ;;  %v15044_v35 = vld [vmem:[#allocation4 + $0x25c] ss:$56 sps:$4 sm:$0xff]  }
0x139a   :  { %13850 = vmatmul.mubr.msk.bf16.vlgmr.msra.gmra.mxu1 %vm2483_vm0, %v8042_v25  ;;  %v15042_v25 = vld [vmem:[#allocation4 + $0x258] ss:$56 sps:$4 sm:$0xff]  }
0x139b   :  { %13854 = vmatpush3.bf16.xpose.msra.mxu1 %v8105_v24  ;;  %13855 = vmatprep.mubr.msk.bf16.mxu1 %vm15927_vm1, %v15926_v62 }
0x139c   :  { %13859 = vmatprep.subr.bf16.mxu1 %v15926_v62 }
0x13a2   :  { %13856 = vmatmul.mubr.bf16.vlgmr.msra.gmra.mxu1 %v8104_v36 }
0x13a3   :  { %13860 = vmatpush3.bf16.msra.mxu1 %v8106_v38  ;;  %13861 = vmatprep.mubr.msk.bf16.mxu1 %vm15927_vm1, %v15926_v62  ;;  %v15048_v38 = vld [vmem:[#allocation4 + $0x1e8] ss:$56 sps:$4 sm:$0xff]  }
0x13a4   :  { %13885 = vmatprep.subr.bf16.mxu1 %v15926_v62 }
0x145a   :  { %v16396_v40 = vpop.f32.mrf.mxu1 }
0x145c   :  { %v13851_v1 = vpop.f32.mrf.mxu1 }
0x145d   :  { %v15054_v1 = vld [vmem:[#allocation4 + $0x178] ss:$56 sps:$4 sm:$0xff]  }
0x145e   :  { %v16398_v12 = vpop.f32.mrf.mxu1 }
0x145f   :  { %v8087_v24 = vpack.c.bf16 %v16398_v12, %v16396_v40  ;;  %v15056_v40 = vld [vmem:[#allocation4 + $0x17c] ss:$56 sps:$4 sm:$0xff]   ;;  %v15062_v12 = vld [vmem:[#allocation4 + $0x10c] ss:$56 sps:$4 sm:$0xff]  }
0x1460   :  { %v13852_v5 = vpop.f32.mrf.mxu1 }
0x1462   :  { %v8141_v30 = vpop.f32.mrf.mxu1 }
0x1463   :  { %v8142_v42 = vadd.f32 %v8141_v30, %v16007_v6 }
0x1464   :  { %v13857_v21 = vpop.f32.mrf.mxu1 }
0x1465   :  { %v8148_v17 = vsel %vm2483_vm0, %v8142_v42, -inf  ;;  %v15027_v21 = vld [vmem:[#allocation4 + $0x330] ss:$56 sps:$4 sm:$0xff]  }
0x1466   :  { %8149 = vmax.xlane.f32.xlu0 %v8148_v17  ;;  %v8144_v36 = vpop.f32.mrf.mxu1 }
0x1467   :  { %v8145_v55 = vadd.f32 %v8144_v36, %v16009_v7  ;;  %v15035_v36 = vld [vmem:[#allocation4 + $0x2c4] ss:$56 sps:$4 sm:$0xff]  }
0x1468   :  { %v13858_v37 = vpop.f32.mrf.mxu1 }
0x1469   :  { %v8151_v60 = vsel %vm2483_vm0, %v8145_v55, -inf  ;;  %v15033_v37 = vld [vmem:[#allocation4 + $0x2c0] ss:$56 sps:$4 sm:$0xff]  }
0x146a   :  { %8152 = vmax.xlane.f32.xlu1 %v8151_v60  ;;  %v15041_v60 = vld [vmem:[#allocation4 + $0x254] ss:$56 sps:$4 sm:$0xff]  }
0x14ef   :  { %v8150_v59 = vpop.xlane.xlu0 %8149 }
0x14f0   :  { %v8154_v10 = vsub.f32 %v8142_v42, %v8150_v59  ;;  %v15039_v59 = vld [vmem:[#allocation4 + $0x250] ss:$56 sps:$4 sm:$0xff]  }
0x14f2   :  { %v8156_v43 = vmul.f32 1.442695, %v8154_v10  ;;  %v15047_v10 = vld [vmem:[#allocation4 + $0x1e4] ss:$56 sps:$4 sm:$0xff]  }
0x14f3   :  { %v8153_v49 = vpop.xlane.xlu1 %8152 }
0x14f4   :  { %15107 = vpow2.f32 %v8156_v43  ;;  %v8155_v45 = vsub.f32 %v8145_v55, %v8153_v49  ;;  %v15045_v43 = vld [vmem:[#allocation4 + $0x1e0] ss:$56 sps:$4 sm:$0xff]   ;;  %v15053_v49 = vld [vmem:[#allocation4 + $0x174] ss:$56 sps:$4 sm:$0xff]  }
0x14f6   :  { %v8158_v41 = vmul.f32 1.442695, %v8155_v45  ;;  %v15051_v45 = vld [vmem:[#allocation4 + $0x170] ss:$56 sps:$4 sm:$0xff]  }
0x14f8   :  { %15109 = vpow2.f32 %v8158_v41  ;;  %v15059_v41 = vld [vmem:[#allocation4 + $0x104] ss:$56 sps:$4 sm:$0xff]  }
0x1501   :  { %v15108_v2 = vpop.eup %15107 }
0x1502   :  { %v8160_v53 = vsel %vm2483_vm0, %v15108_v2, 0.0 }
0x1503   :  { %8161 = vadd.xlane.f32.xlu0 %v8160_v53 }
0x1505   :  { %v15110_v54 = vpop.eup %15109 }
0x1506   :  { %v8163_v51 = vsel %vm2483_vm0, %v15110_v54, 0.0 }
0x1507   :  { %8164 = vadd.xlane.f32.xlu1 %v8163_v51 }
0x158c   :  { %v8162_v58 = vpop.xlane.xlu0 %8161 }
0x158d   :  { %15111 = vrcp.f32 %v8162_v58  ;;  %v15074_v58 = vld [vmem:[#allocation4 + $0x2c] ss:$56 sps:$4 sm:$0xff]  }
0x1590   :  { %v8165_v63 = vpop.xlane.xlu1 %8164 }
0x1591   :  { %15113 = vrcp.f32 %v8165_v63  ;;  %v15069_v63 = vld [vmem:[#allocation4 + $0x20] ss:$56 sps:$4 sm:$0xff]  }
0x159a   :  { %v15112_v8 = vpop.eup %15111 }
0x159b   :  { %v8168_v0 = vmul.f32 %v15112_v8, %v15108_v2  ;;  %v15057_v2 = vld [vmem:[#allocation4 + $0x100] ss:$56 sps:$4 sm:$0xff]  }
0x159c   :  { %v15072_v8 = vld [vmem:[#allocation4 + $0x28] ss:$56 sps:$4 sm:$0xff]  }
0x159e   :  { %v15114_v3 = vpop.eup %15113 }
0x159f   :  { %v8169_v28 = vmul.f32 %v15114_v3, %v15110_v54 }
0x15a1   :  { %v8170_v44 = vpack.c.bf16 %v8169_v28, %v8168_v0 }
0x15a3   :  { %13862 = vmatmul.mubr.msk.bf16.vlgmr.msra.gmra.mxu1 %vm2483_vm0, %v8170_v44 }
0x15a4   :  { %13886 = vmatpush3.bf16.msra.mxu1 %v15011_v4  ;;  %13901 = vmatprep.mubr.msk.bf16.mxu1 %vm15927_vm1, %v15926_v62 }
0x15a5   :  { %13887 = vmatprep.subr.bf16.mxu1 %v15926_v62 }
0x15a8   :  { %13888 = vmatpush3.bf16.msra.mxu1 %v15012_v33 }
0x15a9   :  { %13889 = vmatprep.subr.bf16.mxu1 %v15926_v62 }
0x15ac   :  { %13890 = vmatpush3.bf16.msra.mxu1 %v15013_v57 }
0x15ad   :  { %13891 = vmatprep.subr.bf16.mxu1 %v15926_v62 }
0x15b0   :  { %13892 = vmatpush3.bf16.msra.mxu1 %v15014_v46 }
0x15b1   :  { %13893 = vmatprep.subr.bf16.mxu1 %v15926_v62 }
0x15b4   :  { %13894 = vmatpush3.bf16.msra.mxu1 %v15015_v29 }
0x15b5   :  { %13895 = vmatprep.subr.bf16.mxu1 %v15926_v62 }
0x15b8   :  { %13896 = vmatpush3.bf16.msra.mxu1 %v15016_v22  ;;  %v15077_v22 = vld [vmem:[#allocation4 + $0x344] ss:$56 sps:$4 sm:$0xff]  }
0x15b9   :  { %13897 = vmatprep.subr.bf16.mxu1 %v15926_v62 }
0x15bc   :  { %13898 = vmatpush3.bf16.msra.mxu1 %v15017_v11  ;;  %v15075_v11 = vld [vmem:[#allocation4 + $0x340] ss:$56 sps:$4 sm:$0xff]  }
0x15bd   :  { %13899 = vmatprep.subr.bf16.mxu1 %v15926_v62 }
0x15c0   :  { %13900 = vmatpush3.bf16.msra.mxu1 %v15018_v31  ;;  %v15080_v31 = vld [vmem:[#allocation4 + $0x2d4] ss:$56 sps:$4 sm:$0xff]  }
0x15c1   :  { %8648 = vmatprep.subr.bf16.mxu1 %v15032_v16  ;;  %v15087_v16 = vld [vmem:[#allocation4 + $0x180] ss:$56 sps:$4 sm:$0xff]  }
0x15c3   :  { %13902 = vmatmul.mubr.bf16.vlgmr.msra.gmra.mxu1 %v8087_v24  ;;  %v15060_v24 = vld [vmem:[#allocation4 + $0x108] ss:$56 sps:$4 sm:$0xff]  }
0x15c4   :  { %8680 = vmatprep.mubr.bf16.mxu1 %v15925_v9  ;;  %8649 = vmatpush1.bf16.msra.mxu1 %v15030_v13  ;;  %v15084_v13 = vld [vmem:[#allocation4 + $0x1f0] ss:$56 sps:$4 sm:$0xff]  }
0x15c5   :  { %8650 = vmatprep.subr.bf16.mxu1 %v15038_v48  ;;  %v15092_v48 = vld [vmem:[#allocation4 + $0x114] ss:$56 sps:$4 sm:$0xff]  }
0x15c8   :  { %8651 = vmatpush1.bf16.msra.mxu1 %v15036_v14  ;;  %v15090_v14 = vld [vmem:[#allocation4 + $0x110] ss:$56 sps:$4 sm:$0xff]  }
0x15c9   :  { %8652 = vmatprep.subr.bf16.mxu1 %v15044_v35  ;;  %v15095_v35 = vld [vmem:[#allocation4 + $0xa4] ss:$56 sps:$4 sm:$0xff]  }
0x15cc   :  { %8653 = vmatpush1.bf16.msra.mxu1 %v15042_v25  ;;  %v15093_v25 = vld [vmem:[#allocation4 + $0xa0] ss:$56 sps:$4 sm:$0xff]  }
0x15cd   :  { %8654 = vmatprep.subr.bf16.mxu1 %v15050_v19  ;;  %v15098_v19 = vld [vmem:[#allocation4 + $0x34] ss:$56 sps:$4 sm:$0xff]  }
0x15d0   :  { %8655 = vmatpush1.bf16.msra.mxu1 %v15048_v38  ;;  %v15096_v38 = vld [vmem:[#allocation4 + $0x30] ss:$56 sps:$4 sm:$0xff]  }
0x15d1   :  { %8656 = vmatprep.subr.bf16.mxu1 %v15056_v40 }
0x15d4   :  { %8657 = vmatpush1.bf16.msra.mxu1 %v15054_v1 }
0x15d5   :  { %8658 = vmatprep.subr.bf16.mxu1 %v15062_v12 }
0x15d8   :  { %8659 = vmatpush1.bf16.msra.mxu1 %v15060_v24 }
0x15d9   :  { %8660 = vmatprep.subr.bf16.mxu1 %v15068_v20 }
0x15dc   :  { %8661 = vmatpush1.bf16.msra.mxu1 %v15066_v50 }
0x15dd   :  { %8662 = vmatprep.subr.bf16.mxu1 %v15074_v58 }
0x15e0   :  { %8663 = vmatpush1.bf16.msra.mxu1 %v15072_v8 }
0x1663   :  { %v8208_v5 = vpop.f32.mrf.mxu1 }
0x1665   :  { %v13863_v30 = vpop.f32.mrf.mxu1 }
0x1667   :  { %v8211_v42 = vpop.f32.mrf.mxu1 }
0x1668   :  { %v8215_v17 = vpack.c.bf16 %v8211_v42, %v8208_v5 }
0x1669   :  { %v13864_v55 = vpop.f32.mrf.mxu1 }
0x166a   :  { %13882 = vmatmul.mubr.bf16.vlgmr.msra.gmra.mxu0 %v8215_v17 }
0x166b   :  { %8606 = vmatpush1.bf16.msra.mxu0 %v15027_v21  ;;  %8637 = vmatprep.mubr.bf16.mxu0 %v15925_v9 }
0x166c   :  { %8607 = vmatprep.subr.bf16.mxu0 %v15035_v36 }
0x166f   :  { %8608 = vmatpush1.bf16.msra.mxu0 %v15033_v37 }
0x1670   :  { %8609 = vmatprep.subr.bf16.mxu0 %v15041_v60 }
0x1673   :  { %8610 = vmatpush1.bf16.msra.mxu0 %v15039_v59 }
0x1674   :  { %8611 = vmatprep.subr.bf16.mxu0 %v15047_v10 }
0x1677   :  { %8612 = vmatpush1.bf16.msra.mxu0 %v15045_v43 }
0x1678   :  { %8613 = vmatprep.subr.bf16.mxu0 %v15053_v49 }
0x167b   :  { %8614 = vmatpush1.bf16.msra.mxu0 %v15051_v45 }
0x167c   :  { %8615 = vmatprep.subr.bf16.mxu0 %v15059_v41 }
0x167f   :  { %8616 = vmatpush1.bf16.msra.mxu0 %v15057_v2  ;;  %v8692_v2 = vld [vmem:[#allocation13 + $0x140] ss:$8 sm:$0x3] }
0x1680   :  { %8617 = vmatprep.subr.bf16.mxu0 %v15065_v32 }
0x1683   :  { %v8403_v53 = vpop.f32.mrf.mxu1  ;;  %8618 = vmatpush1.bf16.msra.mxu0 %v15063_v47 }
0x1684   :  { %8619 = vmatprep.subr.bf16.mxu0 %v15071_v56 }
0x1685   :  { %v13903_v54 = vpop.f32.mrf.mxu1 }
0x1686   :  { %v8697_v54 = vrot.slane %v8692_v2, %v16244_v15 }
0x1687   :  { %v8406_v51 = vpop.f32.mrf.mxu1  ;;  %8620 = vmatpush1.bf16.msra.mxu0 %v15069_v63 }
0x1688   :  { %8821 = vmatprep.subr.bf16.mxu0 %v15077_v22 }
0x1689   :  { %v13904_v52 = vpop.f32.mrf.mxu1 }
0x172a   :  { %v8314_v3 = vpop.f32.mrf.mxu0 }
0x172b   :  { %v8404_v28 = vadd.f32 %v8403_v53, %v8314_v3 }
0x172c   :  { %v13883_v0 = vpop.f32.mrf.mxu0 }
0x172d   :  { %v8410_v57 = vadd.f32 %v8404_v28, %v16341_v27  ;;  %v15086_v27 = vld [vmem:[#allocation4 + $0x1f4] ss:$56 sps:$4 sm:$0xff]  }
0x172e   :  { %v8317_v4 = vpop.f32.mrf.mxu0 }
0x172f   :  { %v8407_v44 = vadd.f32 %v8406_v51, %v8317_v4  ;;  %v8701_v51 = vrot.slane %v8692_v2, %v16247_v18 }
0x1730   :  { %v13884_v33 = vpop.f32.mrf.mxu0 }
0x1731   :  { %v8411_v46 = vadd.f32 %v8407_v44, %v16343_v26  ;;  %v15089_v26 = vld [vmem:[#allocation4 + $0x184] ss:$56 sps:$4 sm:$0xff]  }
0x1733   :  { %v8412_v29 = vpack.c.bf16 %v8411_v46, %v8410_v57 }
0x1735   :  { %8638 = vmatmul.mubr.bf16.vlgmr.msra.gmra.mxu0 %v8412_v29  ;;  %8681 = vmatmul.mubr.bf16.vlgmr.msra.gmra.mxu1 %v8412_v29 }
0x1736   :  { %8853 = vmatprep.mubr.bf16.mxu0 %v15925_v9  ;;  %8822 = vmatpush1.bf16.msra.mxu0 %v15075_v11 }
0x1737   :  { %8823 = vmatprep.subr.bf16.mxu0 %v15080_v31 }
0x173a   :  { %8824 = vmatpush1.bf16.msra.mxu0 %v15078_v39 }
0x173b   :  { %8825 = vmatprep.subr.bf16.mxu0 %v15083_v61 }
0x173e   :  { %8826 = vmatpush1.bf16.msra.mxu0 %v15081_v34 }
0x173f   :  { %8827 = vmatprep.subr.bf16.mxu0 %v15086_v27 }
0x1742   :  { %8828 = vmatpush1.bf16.msra.mxu0 %v15084_v13 }
0x1743   :  { %8829 = vmatprep.subr.bf16.mxu0 %v15089_v26 }
0x1746   :  { %8830 = vmatpush1.bf16.msra.mxu0 %v15087_v16 }
0x1747   :  { %8831 = vmatprep.subr.bf16.mxu0 %v15092_v48 }
0x174a   :  { %8832 = vmatpush1.bf16.msra.mxu0 %v15090_v14 }
0x174b   :  { %8833 = vmatprep.subr.bf16.mxu0 %v15095_v35 }
0x174e   :  { %8834 = vmatpush1.bf16.msra.mxu0 %v15093_v25 }
0x174f   :  { %8835 = vmatprep.subr.bf16.mxu0 %v15098_v19 }
0x1752   :  { %8836 = vmatpush1.bf16.msra.mxu0 %v15096_v38 }
0x17f5   :  { %v8682_v40 = vpop.f32.mrf.mxu1  ;;  %v8639_v45 = vpop.f32.mrf.mxu0 }
0x17f6   :  { %v8704_v32 = vadd.f32 %v8697_v54, %v8639_v45 }
0x17f7   :  { %v8684_v1 = vpop.f32.mrf.mxu1  ;;  %v8641_v41 = vpop.f32.mrf.mxu0 }
0x17f8   :  { %v13230_v12 = vmul.f32 -1.442695, %v8684_v1  ;;  %v8705_v47 = vadd.f32 %v8701_v51, %v8641_v41 }
0x17f9   :  { %v8686_v24 = vpop.f32.mrf.mxu1  ;;  %v8643_v53 = vpop.f32.mrf.mxu0 }
0x17fa   :  { %15115 = vpow2.f32 %v13230_v12  ;;  %v8706_v58 = vadd.f32 %v8697_v54, %v8643_v53 }
0x17fb   :  { %v8688_v5 = vpop.f32.mrf.mxu1  ;;  %v8645_v52 = vpop.f32.mrf.mxu0 }
0x17fc   :  { %v13231_v30 = vmul.f32 -1.442695, %v8688_v5  ;;  %v8707_v3 = vadd.f32 %v8701_v51, %v8645_v52 }
0x17fe   :  { %15117 = vpow2.f32 %v13231_v30 }
0x1807   :  { %v15116_v42 = vpop.eup %15115 }
0x1808   :  { %v8714_v21 = vadd.f32 1.0, %v15116_v42 }
0x180a   :  { %15119 = vrcp.f32 %v8714_v21 }
0x180b   :  { %v15118_v17 = vpop.eup %15117 }
0x180c   :  { %v8715_v36 = vadd.f32 1.0, %v15118_v17 }
0x180e   :  { %15121 = vrcp.f32 %v8715_v36 }
0x1817   :  { %v15120_v55 = vpop.eup %15119 }
0x1818   :  { %v8720_v37 = vmul.f32 %v15120_v55, %v8684_v1 }
0x181a   :  { %v8722_v10 = vmul.f32 %v8720_v37, %v8682_v40 }
0x181b   :  { %v15122_v60 = vpop.eup %15121 }
0x181c   :  { %v8721_v59 = vmul.f32 %v15122_v60, %v8688_v5 }
0x181e   :  { %v8723_v43 = vmul.f32 %v8721_v59, %v8686_v24 }
0x1820   :  { %v8724_v49 = vpack.c.bf16 %v8723_v43, %v8722_v10 }
0x1822   :  { %8854 = vmatmul.mubr.bf16.vlgmr.msra.gmra.mxu0 %v8724_v49 }
0x18e2   :  { %v8855_v20 = vpop.f32.mrf.mxu0 }
0x18e3   :  { %v16435_v50 = vadd.f32 %v8855_v20, %v8704_v32 }
0x18e4   :  { %v8857_v56 = vpop.f32.mrf.mxu0 }
0x18e5   :  { %v16437_v63 = vadd.f32 %v8857_v56, %v8705_v47 }
0x18e6   :  { %v8859_v8 = vpop.f32.mrf.mxu0 }
0x18e7   :  { %v16439_v0 = vadd.f32 %v8859_v8, %v8706_v58 }
0x18e8   :  { %v8861_v28 = vpop.f32.mrf.mxu0 }
0x18e9   :  { %v16441_v4 = vadd.f32 %v8861_v28, %v8707_v3 }
0x18ea   :  { %15905 = dma.done.wait [#allocation7 + $0x3], 40960 }
0x18eb   :  { %15906 = vsyncadd [#allocation7 + $0x3], 4294926336  ;;  %v16445_v44 = vpack.c.bf16 %v16441_v4, %v16437_v63  ;;  %v15123_v33 = vld [vmem:[#allocation5 + $0x46c] ss:$80 sps:$4 sm:$0xff]   ;;  %v15125_v57 = vld [vmem:[#allocation5 + $0x468] ss:$80 sps:$4 sm:$0xff]  }
0x18ec   :  { %9492 = vmatprep.subr.bf16.mxu0 %v15123_v33  ;;  %v15126_v46 = vld [vmem:[#allocation5 + $0x464] ss:$80 sps:$4 sm:$0xff]   ;;  %v15128_v29 = vld [vmem:[#allocation5 + $0x460] ss:$80 sps:$4 sm:$0xff]   ;;  %v15129_v22 = vld [vmem:[#allocation5 + $0x3cc] ss:$80 sps:$4 sm:$0xff]  }
0x18ed   :  { %9524 = vmatprep.mubr.bf16.mxu0 %v16445_v44  ;;  %9481 = vmatprep.mubr.bf16.mxu1 %v16445_v44  ;;  %v15131_v11 = vld [vmem:[#allocation5 + $0x3c8] ss:$80 sps:$4 sm:$0xff]   ;;  %v15132_v31 = vld [vmem:[#allocation5 + $0x3c4] ss:$80 sps:$4 sm:$0xff]   ;;  %v15134_v39 = vld [vmem:[#allocation5 + $0x3c0] ss:$80 sps:$4 sm:$0xff]  }
0x18ee   :  { %9493 = vmatpush1.bf16.msra.mxu0 %v15125_v57  ;;  %9449 = vmatprep.subr.bf16.mxu1 %v15126_v46  ;;  %v15135_v61 = vld [vmem:[#allocation5 + $0x32c] ss:$80 sps:$4 sm:$0xff]   ;;  %v15137_v34 = vld [vmem:[#allocation5 + $0x328] ss:$80 sps:$4 sm:$0xff]   ;;  %v15138_v27 = vld [vmem:[#allocation5 + $0x324] ss:$80 sps:$4 sm:$0xff]  }
0x18ef   :  { %9450 = vmatpush1.bf16.msra.mxu1 %v15128_v29  ;;  %9494 = vmatprep.subr.bf16.mxu0 %v15129_v22  ;;  %v15141_v13 = vld [vmem:[#allocation5 + $0x28c] ss:$80 sps:$4 sm:$0xff]   ;;  %v15140_v26 = vld [vmem:[#allocation5 + $0x320] ss:$80 sps:$4 sm:$0xff]   ;;  %v15144_v16 = vld [vmem:[#allocation5 + $0x284] ss:$80 sps:$4 sm:$0xff]  }
0x18f0   :  { %9451 = vmatprep.subr.bf16.mxu1 %v15132_v31  ;;  %v15143_v48 = vld [vmem:[#allocation5 + $0x288] ss:$80 sps:$4 sm:$0xff]   ;;  %v15147_v14 = vld [vmem:[#allocation5 + $0x1ec] ss:$80 sps:$4 sm:$0xff]   ;;  %v15146_v35 = vld [vmem:[#allocation5 + $0x280] ss:$80 sps:$4 sm:$0xff]  }
0x18f1   :  { %v15150_v25 = vld [vmem:[#allocation5 + $0x1e4] ss:$80 sps:$4 sm:$0xff]   ;;  %v15149_v19 = vld [vmem:[#allocation5 + $0x1e8] ss:$80 sps:$4 sm:$0xff]   ;;  %v15153_v38 = vld [vmem:[#allocation5 + $0x14c] ss:$80 sps:$4 sm:$0xff]  }
0x18f2   :  { %9495 = vmatpush1.bf16.msra.mxu0 %v15131_v11  ;;  %v15152_v40 = vld [vmem:[#allocation5 + $0x1e0] ss:$80 sps:$4 sm:$0xff]   ;;  %v15156_v1 = vld [vmem:[#allocation5 + $0x144] ss:$80 sps:$4 sm:$0xff]   ;;  %v15155_v12 = vld [vmem:[#allocation5 + $0x148] ss:$80 sps:$4 sm:$0xff]  }
0x18f3   :  { %9496 = vmatprep.subr.bf16.mxu0 %v15135_v61  ;;  %9452 = vmatpush1.bf16.msra.mxu1 %v15134_v39  ;;  %v15159_v24 = vld [vmem:[#allocation5 + $0xac] ss:$80 sps:$4 sm:$0xff]   ;;  %v15158_v5 = vld [vmem:[#allocation5 + $0x140] ss:$80 sps:$4 sm:$0xff]   ;;  %v15162_v30 = vld [vmem:[#allocation5 + $0xa4] ss:$80 sps:$4 sm:$0xff]  }
0x18f4   :  { %9453 = vmatprep.subr.bf16.mxu1 %v15138_v27  ;;  %v15161_v42 = vld [vmem:[#allocation5 + $0xa8] ss:$80 sps:$4 sm:$0xff]   ;;  %v15165_v21 = vld [vmem:[#allocation5 + $0xc] ss:$80 sps:$4 sm:$0xff]   ;;  %v15164_v17 = vld [vmem:[#allocation5 + $0xa0] ss:$80 sps:$4 sm:$0xff]  }
0x18f5   :  { %v15168_v36 = vld [vmem:[#allocation5 + $0x4] ss:$80 sps:$4 sm:$0xff]   ;;  %v15167_v55 = vld [vmem:[#allocation5 + $0x8] ss:$80 sps:$4 sm:$0xff]   ;;  %v15171_v37 = vld [vmem:[#allocation5 + $0x96c] ss:$80 sps:$4 sm:$0xff]  }
0x18f6   :  { %9497 = vmatpush1.bf16.msra.mxu0 %v15137_v34  ;;  %v15170_v60 = vld [vmem:[#allocation5] ss:$80 sps:$4 sm:$0xff]   ;;  %v15174_v59 = vld [vmem:[#allocation5 + $0x964] ss:$80 sps:$4 sm:$0xff]   ;;  %v15173_v10 = vld [vmem:[#allocation5 + $0x968] ss:$80 sps:$4 sm:$0xff]  }
0x18f7   :  { %9498 = vmatprep.subr.bf16.mxu0 %v15141_v13  ;;  %9454 = vmatpush1.bf16.msra.mxu1 %v15140_v26  ;;  %v15177_v43 = vld [vmem:[#allocation5 + $0x8cc] ss:$80 sps:$4 sm:$0xff]   ;;  %v15176_v49 = vld [vmem:[#allocation5 + $0x960] ss:$80 sps:$4 sm:$0xff]   ;;  %v15180_v45 = vld [vmem:[#allocation5 + $0x8c4] ss:$80 sps:$4 sm:$0xff]   ;;  %v16451_v26 = vpack.c.bf16 %v16439_v0, %v16435_v50 }
0x18f8   :  { %9455 = vmatprep.subr.bf16.mxu1 %v15144_v16  ;;  %v15179_v41 = vld [vmem:[#allocation5 + $0x8c8] ss:$80 sps:$4 sm:$0xff]   ;;  %v15183_v2 = vld [vmem:[#allocation5 + $0x82c] ss:$80 sps:$4 sm:$0xff]   ;;  %v15182_v53 = vld [vmem:[#allocation5 + $0x8c0] ss:$80 sps:$4 sm:$0xff]  }
0x18f9   :  { %v15186_v54 = vld [vmem:[#allocation5 + $0x824] ss:$80 sps:$4 sm:$0xff]   ;;  %v15185_v51 = vld [vmem:[#allocation5 + $0x828] ss:$80 sps:$4 sm:$0xff]   ;;  %v15188_v52 = vld [vmem:[#allocation5 + $0x820] ss:$80 sps:$4 sm:$0xff]  }
0x18fa   :  { %9499 = vmatpush1.bf16.msra.mxu0 %v15143_v48  ;;  %v15189_v32 = vld [vmem:[#allocation5 + $0x78c] ss:$80 sps:$4 sm:$0xff]   ;;  %v15191_v20 = vld [vmem:[#allocation5 + $0x788] ss:$80 sps:$4 sm:$0xff]   ;;  %v15192_v47 = vld [vmem:[#allocation5 + $0x784] ss:$80 sps:$4 sm:$0xff]  }
0x18fb   :  { %9500 = vmatprep.subr.bf16.mxu0 %v15147_v14  ;;  %9456 = vmatpush1.bf16.msra.mxu1 %v15146_v35  ;;  %v15195_v56 = vld [vmem:[#allocation5 + $0x6ec] ss:$80 sps:$4 sm:$0xff]   ;;  %v15194_v58 = vld [vmem:[#allocation5 + $0x780] ss:$80 sps:$4 sm:$0xff]   ;;  %v15198_v8 = vld [vmem:[#allocation5 + $0x6e4] ss:$80 sps:$4 sm:$0xff]  }
0x18fc   :  { %9457 = vmatprep.subr.bf16.mxu1 %v15150_v25  ;;  %v15197_v3 = vld [vmem:[#allocation5 + $0x6e8] ss:$80 sps:$4 sm:$0xff]   ;;  %v15201_v28 = vld [vmem:[#allocation5 + $0x64c] ss:$80 sps:$4 sm:$0xff]   ;;  %v15200_v33 = vld [vmem:[#allocation5 + $0x6e0] ss:$80 sps:$4 sm:$0xff]  }
0x18fd   :  { %v15204_v57 = vld [vmem:[#allocation5 + $0x644] ss:$80 sps:$4 sm:$0xff]   ;;  %v15203_v46 = vld [vmem:[#allocation5 + $0x648] ss:$80 sps:$4 sm:$0xff]   ;;  %v15207_v29 = vld [vmem:[#allocation5 + $0x5ac] ss:$80 sps:$4 sm:$0xff]  }
0x18fe   :  { %9501 = vmatpush1.bf16.msra.mxu0 %v15149_v19  ;;  %v15206_v22 = vld [vmem:[#allocation5 + $0x640] ss:$80 sps:$4 sm:$0xff]   ;;  %v15210_v11 = vld [vmem:[#allocation5 + $0x5a4] ss:$80 sps:$4 sm:$0xff]   ;;  %v15209_v31 = vld [vmem:[#allocation5 + $0x5a8] ss:$80 sps:$4 sm:$0xff]  }
0x18ff   :  { %9502 = vmatprep.subr.bf16.mxu0 %v15153_v38  ;;  %9458 = vmatpush1.bf16.msra.mxu1 %v15152_v40  ;;  %v15213_v39 = vld [vmem:[#allocation5 + $0x50c] ss:$80 sps:$4 sm:$0xff]   ;;  %v15212_v61 = vld [vmem:[#allocation5 + $0x5a0] ss:$80 sps:$4 sm:$0xff]   ;;  %v15216_v34 = vld [vmem:[#allocation5 + $0x504] ss:$80 sps:$4 sm:$0xff]  }
0x1900   :  { %9459 = vmatprep.subr.bf16.mxu1 %v15156_v1  ;;  %v15215_v27 = vld [vmem:[#allocation5 + $0x508] ss:$80 sps:$4 sm:$0xff]   ;;  %v15218_v13 = vld [vmem:[#allocation5 + $0x500] ss:$80 sps:$4 sm:$0xff]  }
0x1901   :  { %v9578_v16 = vld [vmem:[#allocation13 + $0xc0] sm:$0xff]  ;;  %v9580_v35 = vld [vmem:[#allocation13 + $0xc8] sm:$0xff] }
0x1902   :  { %9503 = vmatpush1.bf16.msra.mxu0 %v15155_v12  ;;  %v9579_v1 = vld [vmem:[#allocation13 + $0xe0] sm:$0xff] }
0x1903   :  { %9504 = vmatprep.subr.bf16.mxu0 %v15159_v24  ;;  %9460 = vmatpush1.bf16.msra.mxu1 %v15158_v5 }
0x1904   :  { %9461 = vmatprep.subr.bf16.mxu1 %v15162_v30 }
0x1906   :  { %9505 = vmatpush1.bf16.msra.mxu0 %v15161_v42  ;;  %v9581_v42 = vld [vmem:[#allocation13 + $0xe8] sm:$0xff] }
0x1907   :  { %9506 = vmatprep.subr.bf16.mxu0 %v15165_v21  ;;  %9462 = vmatpush1.bf16.msra.mxu1 %v15164_v17 }
0x1908   :  { %9463 = vmatprep.subr.bf16.mxu1 %v15168_v36 }
0x190a   :  { %9507 = vmatpush1.bf16.msra.mxu0 %v15167_v55 }
0x190b   :  { %9508 = vmatprep.subr.bf16.mxu0 %v15171_v37  ;;  %9464 = vmatpush1.bf16.msra.mxu1 %v15170_v60 }
0x190c   :  { %9465 = vmatprep.subr.bf16.mxu1 %v15174_v59 }
0x190e   :  { %9509 = vmatpush2.bf16.msra.mxu0 %v15173_v10 }
0x190f   :  { %9510 = vmatprep.subr.bf16.mxu0 %v15177_v43  ;;  %9466 = vmatpush2.bf16.msra.mxu1 %v15176_v49 }
0x1910   :  { %9467 = vmatprep.subr.bf16.mxu1 %v15180_v45 }
0x1912   :  { %9511 = vmatpush2.bf16.msra.mxu0 %v15179_v41 }
0x1913   :  { %9512 = vmatprep.subr.bf16.mxu0 %v15183_v2  ;;  %9468 = vmatpush2.bf16.msra.mxu1 %v15182_v53 }
0x1914   :  { %9469 = vmatprep.subr.bf16.mxu1 %v15186_v54 }
0x1916   :  { %9513 = vmatpush2.bf16.msra.mxu0 %v15185_v51 }
0x1917   :  { %9514 = vmatprep.subr.bf16.mxu0 %v15189_v32  ;;  %9470 = vmatpush2.bf16.msra.mxu1 %v15188_v52 }
0x1918   :  { %9471 = vmatprep.subr.bf16.mxu1 %v15192_v47 }
0x191a   :  { %9515 = vmatpush2.bf16.msra.mxu0 %v15191_v20 }
0x191b   :  { %9516 = vmatprep.subr.bf16.mxu0 %v15195_v56  ;;  %9472 = vmatpush2.bf16.msra.mxu1 %v15194_v58 }
0x191c   :  { %9473 = vmatprep.subr.bf16.mxu1 %v15198_v8 }
0x191e   :  { %9517 = vmatpush2.bf16.msra.mxu0 %v15197_v3 }
0x191f   :  { %9518 = vmatprep.subr.bf16.mxu0 %v15201_v28  ;;  %9474 = vmatpush2.bf16.msra.mxu1 %v15200_v33  ;;  %v15219_v33 = vld [vmem:[#allocation5 + $0x470] ss:$80 sps:$4 sm:$0xff]  }
0x1920   :  { %9475 = vmatprep.subr.bf16.mxu1 %v15204_v57  ;;  %v15221_v57 = vld [vmem:[#allocation5 + $0x474] ss:$80 sps:$4 sm:$0xff]  }
0x1922   :  { %9519 = vmatpush2.bf16.msra.mxu0 %v15203_v46  ;;  %v15224_v46 = vld [vmem:[#allocation5 + $0x3d4] ss:$80 sps:$4 sm:$0xff]  }
0x1923   :  { %9520 = vmatprep.subr.bf16.mxu0 %v15207_v29  ;;  %9476 = vmatpush2.bf16.msra.mxu1 %v15206_v22  ;;  %v15222_v29 = vld [vmem:[#allocation5 + $0x3d0] ss:$80 sps:$4 sm:$0xff]   ;;  %v15227_v22 = vld [vmem:[#allocation5 + $0x334] ss:$80 sps:$4 sm:$0xff]  }
0x1924   :  { %9477 = vmatprep.subr.bf16.mxu1 %v15210_v11  ;;  %v15225_v11 = vld [vmem:[#allocation5 + $0x330] ss:$80 sps:$4 sm:$0xff]  }
0x1926   :  { %9521 = vmatpush2.bf16.msra.mxu0 %v15209_v31  ;;  %v15230_v31 = vld [vmem:[#allocation5 + $0x294] ss:$80 sps:$4 sm:$0xff]  }
0x1927   :  { %9522 = vmatprep.subr.bf16.mxu0 %v15213_v39  ;;  %9478 = vmatpush2.bf16.msra.mxu1 %v15212_v61  ;;  %v15228_v39 = vld [vmem:[#allocation5 + $0x290] ss:$80 sps:$4 sm:$0xff]   ;;  %v15233_v61 = vld [vmem:[#allocation5 + $0x1f4] ss:$80 sps:$4 sm:$0xff]  }
0x1928   :  { %9479 = vmatprep.subr.bf16.mxu1 %v15216_v34  ;;  %v15231_v34 = vld [vmem:[#allocation5 + $0x1f0] ss:$80 sps:$4 sm:$0xff]  }
0x192a   :  { %9523 = vmatpush2.bf16.msra.mxu0 %v15215_v27  ;;  %v15236_v27 = vld [vmem:[#allocation5 + $0x154] ss:$80 sps:$4 sm:$0xff]  }
0x192b   :  { %13905 = vmatprep.subr.bf16.mxu0 %v15926_v62  ;;  %9480 = vmatpush2.bf16.msra.mxu1 %v15218_v13  ;;  %v15234_v13 = vld [vmem:[#allocation5 + $0x150] ss:$80 sps:$4 sm:$0xff]  }
0x192c   :  { %9535 = vmatprep.subr.bf16.mxu1 %v15221_v57 }
0x192d   :  { %9525 = vmatmul.mubr.bf16.vlgmr.msra.gmra.mxu0 %v16451_v26 }
0x192e   :  { %13907 = vmatprep.mubr.msk.bf16.mxu0 %vm15927_vm1, %v15926_v62  ;;  %9482 = vmatmul.mubr.bf16.vlgmr.msra.gmra.mxu1 %v16451_v26 }
0x192f   :  { %9567 = vmatprep.mubr.bf16.mxu1 %v16445_v44  ;;  %9536 = vmatpush1.bf16.msra.mxu1 %v15219_v33 }
0x1930   :  { %9537 = vmatprep.subr.bf16.mxu1 %v15224_v46 }
0x1933   :  { %9538 = vmatpush1.bf16.msra.mxu1 %v15222_v29 }
0x1934   :  { %9539 = vmatprep.subr.bf16.mxu1 %v15227_v22 }
0x1937   :  { %9540 = vmatpush1.bf16.msra.mxu1 %v15225_v11 }
0x1938   :  { %9541 = vmatprep.subr.bf16.mxu1 %v15230_v31 }
0x193b   :  { %9542 = vmatpush1.bf16.msra.mxu1 %v15228_v39  ;;  %v15267_v39 = vld [vmem:[#allocation5 + $0x478] ss:$80 sps:$4 sm:$0xff]  }
0x193c   :  { %9543 = vmatprep.subr.bf16.mxu1 %v15233_v61  ;;  %v15269_v61 = vld [vmem:[#allocation5 + $0x47c] ss:$80 sps:$4 sm:$0xff]  }
0x193f   :  { %9544 = vmatpush1.bf16.msra.mxu1 %v15231_v34  ;;  %v15272_v34 = vld [vmem:[#allocation5 + $0x3dc] ss:$80 sps:$4 sm:$0xff]  }
0x1940   :  { %9545 = vmatprep.subr.bf16.mxu1 %v15236_v27  ;;  %v15270_v27 = vld [vmem:[#allocation5 + $0x3d8] ss:$80 sps:$4 sm:$0xff]  }
0x1943   :  { %9546 = vmatpush1.bf16.msra.mxu1 %v15234_v13  ;;  %v15275_v13 = vld [vmem:[#allocation5 + $0x33c] ss:$80 sps:$4 sm:$0xff]  }
0x19ed   :  { %v9526_v48 = vpop.f32.mrf.mxu0 }
0x19ee   :  { %v9600_v14 = vmul.f32 %v9578_v16, %v9526_v48  ;;  %v9483_v25 = vpop.f32.mrf.mxu1  ;;  %v9594_v60 = vmul.f32 %v9580_v35, %v9526_v48  ;;  %v15237_v48 = vld [vmem:[#allocation5 + $0xb0] ss:$80 sps:$4 sm:$0xff]  }
0x19ef   :  { %v9528_v19 = vpop.f32.mrf.mxu0  ;;  %v9588_v38 = vmul.f32 %v9578_v16, %v9483_v25  ;;  %v9582_v41 = vmul.f32 %v9580_v35, %v9483_v25  ;;  %v15245_v25 = vld [vmem:[#allocation5 + $0x974] ss:$80 sps:$4 sm:$0xff]  }
0x19f0   :  { %v9602_v40 = vmul.f32 %v9580_v35, %v9528_v19  ;;  %v9485_v12 = vpop.f32.mrf.mxu1  ;;  %v9596_v21 = vmul.f32 %v9578_v16, %v9528_v19  ;;  %v15243_v19 = vld [vmem:[#allocation5 + $0x970] ss:$80 sps:$4 sm:$0xff]  }
0x19f1   :  { %v9530_v24 = vpop.f32.mrf.mxu0  ;;  %v9590_v30 = vmul.f32 %v9580_v35, %v9485_v12  ;;  %v9584_v51 = vmul.f32 %v9578_v16, %v9485_v12  ;;  %v15239_v16 = vld [vmem:[#allocation5 + $0xb4] ss:$80 sps:$4 sm:$0xff]   ;;  %v15240_v35 = vld [vmem:[#allocation5 + $0x10] ss:$80 sps:$4 sm:$0xff]  }
0x19f2   :  { %v16459_v5 = vadd.f32 %v9602_v40, %v9600_v14  ;;  %v9601_v17 = vmul.f32 %v9579_v1, %v9530_v24  ;;  %v9487_v36 = vpop.f32.mrf.mxu1  ;;  %v9595_v59 = vmul.f32 %v9581_v42, %v9530_v24  ;;  %v9598_v2 = vsub.f32 %v9594_v60, %v9596_v21  ;;  %9547 = vmatprep.subr.bf16.mxu1 %v15239_v16  ;;  %v15242_v14 = vld [vmem:[#allocation5 + $0x14] ss:$80 sps:$4 sm:$0xff]   ;;  %v15246_v40 = vld [vmem:[#allocation5 + $0x8d0] ss:$80 sps:$4 sm:$0xff]   ;;  %v15273_v16 = vld [vmem:[#allocation5 + $0x338] ss:$80 sps:$4 sm:$0xff]  }
0x19f3   :  { %v9532_v55 = vpop.f32.mrf.mxu0  ;;  %v16461_v44 = vadd.f32 %v9590_v30, %v9588_v38  ;;  %v9589_v37 = vmul.f32 %v9579_v1, %v9487_v36  ;;  %v9583_v52 = vmul.f32 %v9581_v42, %v9487_v36  ;;  %v9586_v8 = vsub.f32 %v9582_v41, %v9584_v51  ;;  %9548 = vmatpush1.bf16.msra.mxu1 %v15237_v48  ;;  %v15248_v38 = vld [vmem:[#allocation5 + $0x8d4] ss:$80 sps:$4 sm:$0xff]   ;;  %v15249_v12 = vld [vmem:[#allocation5 + $0x830] ss:$80 sps:$4 sm:$0xff]   ;;  %v15278_v48 = vld [vmem:[#allocation5 + $0x29c] ss:$80 sps:$4 sm:$0xff]  }
0x19f4   :  { %v9597_v10 = vmul.f32 %v9579_v1, %v9532_v55  ;;  %v9603_v43 = vmul.f32 %v9581_v42, %v9532_v55  ;;  %v9489_v49 = vpop.f32.mrf.mxu1  ;;  %9549 = vmatprep.subr.bf16.mxu1 %v15242_v14  ;;  %v15254_v24 = vld [vmem:[#allocation5 + $0x794] ss:$80 sps:$4 sm:$0xff]   ;;  %v15252_v30 = vld [vmem:[#allocation5 + $0x790] ss:$80 sps:$4 sm:$0xff]   ;;  %v15276_v14 = vld [vmem:[#allocation5 + $0x298] ss:$80 sps:$4 sm:$0xff]  }
0x19f5   :  { %v9591_v45 = vmul.f32 %v9581_v42, %v9489_v49  ;;  %v9585_v32 = vmul.f32 %v9579_v1, %v9489_v49  ;;  %v15251_v1 = vld [vmem:[#allocation5 + $0x834] ss:$80 sps:$4 sm:$0xff]   ;;  %v15255_v21 = vld [vmem:[#allocation5 + $0x6f0] ss:$80 sps:$4 sm:$0xff]  }
0x19f6   :  { %v9599_v53 = vsub.f32 %v9595_v59, %v9597_v10  ;;  %v16463_v54 = vadd.f32 %v9603_v43, %v9601_v17  ;;  %v15257_v42 = vld [vmem:[#allocation5 + $0x6f4] ss:$80 sps:$4 sm:$0xff]   ;;  %v15258_v36 = vld [vmem:[#allocation5 + $0x650] ss:$80 sps:$4 sm:$0xff]  }
0x19f7   :  { %v16465_v20 = vadd.f32 %v9591_v45, %v9589_v37  ;;  %v9587_v3 = vsub.f32 %v9583_v52, %v9585_v32  ;;  %9550 = vmatpush1.bf16.msra.mxu1 %v15240_v35  ;;  %v15260_v17 = vld [vmem:[#allocation5 + $0x654] ss:$80 sps:$4 sm:$0xff]   ;;  %v15261_v37 = vld [vmem:[#allocation5 + $0x5b0] ss:$80 sps:$4 sm:$0xff]   ;;  %v15281_v35 = vld [vmem:[#allocation5 + $0x1fc] ss:$80 sps:$4 sm:$0xff]  }
0x19f8   :  { %v9607_v47 = vpack.c.bf16 %v9599_v53, %v9598_v2  ;;  %v9735_v56 = vpack.c.bf16 %v16463_v54, %v16459_v5  ;;  %9551 = vmatprep.subr.bf16.mxu1 %v15245_v25  ;;  %v15263_v55 = vld [vmem:[#allocation5 + $0x5b4] ss:$80 sps:$4 sm:$0xff]   ;;  %v15264_v59 = vld [vmem:[#allocation5 + $0x510] ss:$80 sps:$4 sm:$0xff]   ;;  %v15279_v25 = vld [vmem:[#allocation5 + $0x1f8] ss:$80 sps:$4 sm:$0xff]  }
0x19f9   :  { %v9734_v58 = vpack.c.bf16 %v16465_v20, %v16461_v44  ;;  %v9606_v28 = vpack.c.bf16 %v9587_v3, %v9586_v8  ;;  %v15266_v60 = vld [vmem:[#allocation5 + $0x514] ss:$80 sps:$4 sm:$0xff]  }
0x19fa   :  { %13906 = vmatpush3.bf16.xpose.msra.mxu0 %v9607_v47 }
0x19fb   :  { %13911 = vmatprep.subr.bf16.mxu0 %v15926_v62  ;;  %9552 = vmatpush2.bf16.msra.mxu1 %v15243_v19  ;;  %v15284_v19 = vld [vmem:[#allocation5 + $0x15c] ss:$80 sps:$4 sm:$0xff]  }
0x19fc   :  { %9553 = vmatprep.subr.bf16.mxu1 %v15248_v38  ;;  %v15282_v38 = vld [vmem:[#allocation5 + $0x158] ss:$80 sps:$4 sm:$0xff]  }
0x19ff   :  { %9554 = vmatpush2.bf16.msra.mxu1 %v15246_v40  ;;  %v15287_v40 = vld [vmem:[#allocation5 + $0xbc] ss:$80 sps:$4 sm:$0xff]  }
0x1a00   :  { %9555 = vmatprep.subr.bf16.mxu1 %v15251_v1  ;;  %v15285_v1 = vld [vmem:[#allocation5 + $0xb8] ss:$80 sps:$4 sm:$0xff]  }
0x1a01   :  { %13908 = vmatmul.mubr.bf16.vlgmr.msra.gmra.mxu0 %v9606_v28 }
0x1a02   :  { %13913 = vmatprep.mubr.msk.bf16.mxu0 %vm15927_vm1, %v15926_v62 }
0x1a03   :  { %9556 = vmatpush2.bf16.msra.mxu1 %v15249_v12 }
0x1a04   :  { %9557 = vmatprep.subr.bf16.mxu1 %v15254_v24 }
0x1a07   :  { %9558 = vmatpush2.bf16.msra.mxu1 %v15252_v30 }
0x1a08   :  { %9559 = vmatprep.subr.bf16.mxu1 %v15257_v42 }
0x1a0b   :  { %9560 = vmatpush2.bf16.msra.mxu1 %v15255_v21 }
0x1a0c   :  { %9561 = vmatprep.subr.bf16.mxu1 %v15260_v17 }
0x1a0f   :  { %9562 = vmatpush2.bf16.msra.mxu1 %v15258_v36 }
0x1a10   :  { %9563 = vmatprep.subr.bf16.mxu1 %v15263_v55 }
0x1a13   :  { %9564 = vmatpush2.bf16.msra.mxu1 %v15261_v37 }
0x1a14   :  { %9565 = vmatprep.subr.bf16.mxu1 %v15266_v60  ;;  %v15288_v60 = vld [vmem:[#allocation5 + $0x18] ss:$80 sps:$4 sm:$0xff]  }
0x1a17   :  { %9566 = vmatpush2.bf16.msra.mxu1 %v15264_v59  ;;  %v15290_v59 = vld [vmem:[#allocation5 + $0x1c] ss:$80 sps:$4 sm:$0xff]  }
0x1a18   :  { %10065 = vmatprep.subr.bf16.mxu1 %v15269_v61  ;;  %v15296_v61 = vld [vmem:[#allocation5 + $0x3e4] ss:$80 sps:$4 sm:$0xff]  }
0x1a1a   :  { %9568 = vmatmul.mubr.bf16.vlgmr.msra.gmra.mxu1 %v16451_v26 }
0x1a1b   :  { %10097 = vmatprep.mubr.bf16.mxu1 %v15925_v9  ;;  %10066 = vmatpush1.bf16.msra.mxu1 %v15267_v39 }
0x1a1c   :  { %10067 = vmatprep.subr.bf16.mxu1 %v15272_v34  ;;  %v15294_v34 = vld [vmem:[#allocation5 + $0x3e0] ss:$80 sps:$4 sm:$0xff]  }
0x1a1f   :  { %10068 = vmatpush1.bf16.msra.mxu1 %v15270_v27  ;;  %v15299_v27 = vld [vmem:[#allocation5 + $0x344] ss:$80 sps:$4 sm:$0xff]  }
0x1a20   :  { %10069 = vmatprep.subr.bf16.mxu1 %v15275_v13  ;;  %v15297_v13 = vld [vmem:[#allocation5 + $0x340] ss:$80 sps:$4 sm:$0xff]  }
0x1a23   :  { %10070 = vmatpush1.bf16.msra.mxu1 %v15273_v16  ;;  %v15302_v16 = vld [vmem:[#allocation5 + $0x2a4] ss:$80 sps:$4 sm:$0xff]  }
0x1a24   :  { %10071 = vmatprep.subr.bf16.mxu1 %v15278_v48  ;;  %v15300_v48 = vld [vmem:[#allocation5 + $0x2a0] ss:$80 sps:$4 sm:$0xff]  }
0x1a27   :  { %10072 = vmatpush1.bf16.msra.mxu1 %v15276_v14  ;;  %v15305_v14 = vld [vmem:[#allocation5 + $0x204] ss:$80 sps:$4 sm:$0xff]  }
0x1a28   :  { %10073 = vmatprep.subr.bf16.mxu1 %v15281_v35  ;;  %v15303_v35 = vld [vmem:[#allocation5 + $0x200] ss:$80 sps:$4 sm:$0xff]  }
0x1a2b   :  { %10074 = vmatpush1.bf16.msra.mxu1 %v15279_v25  ;;  %v15308_v25 = vld [vmem:[#allocation5 + $0x164] ss:$80 sps:$4 sm:$0xff]  }
0x1a2c   :  { %10075 = vmatprep.subr.bf16.mxu1 %v15284_v19  ;;  %v15306_v19 = vld [vmem:[#allocation5 + $0x160] ss:$80 sps:$4 sm:$0xff]  }
0x1a2f   :  { %10076 = vmatpush1.bf16.msra.mxu1 %v15282_v38  ;;  %v15311_v38 = vld [vmem:[#allocation5 + $0xc4] ss:$80 sps:$4 sm:$0xff]  }
0x1a30   :  { %10077 = vmatprep.subr.bf16.mxu1 %v15287_v40  ;;  %v15309_v40 = vld [vmem:[#allocation5 + $0xc0] ss:$80 sps:$4 sm:$0xff]  }
0x1a33   :  { %10078 = vmatpush1.bf16.msra.mxu1 %v15285_v1  ;;  %v15312_v1 = vld [vmem:[#allocation5 + $0x20] ss:$80 sps:$4 sm:$0xff]  }
0x1a34   :  { %10079 = vmatprep.subr.bf16.mxu1 %v15290_v59  ;;  %v15344_v59 = vld [vmem:[#allocation5 + $0x214] ss:$80 sps:$4 sm:$0xff]  }
0x1a37   :  { %10080 = vmatpush1.bf16.msra.mxu1 %v15288_v60  ;;  %v15336_v60 = vld [vmem:[#allocation5 + $0x2b0] ss:$80 sps:$4 sm:$0xff]  }
0x1ac1   :  { %v9643_v10 = vpop.f32.mrf.mxu0 }
0x1ac2   :  { %v9644_v43 = vadd.f32 %v9643_v10, %v16007_v6 }
0x1ac3   :  { %v13909_v49 = vpop.f32.mrf.mxu0 }
0x1ac4   :  { %v9650_v45 = vsel %vm2483_vm0, %v9644_v43, -inf }
0x1ac5   :  { %9651 = vmax.xlane.f32.xlu0 %v9650_v45  ;;  %v9646_v41 = vpop.f32.mrf.mxu0 }
0x1ac6   :  { %v9647_v2 = vadd.f32 %v9646_v41, %v16009_v7 }
0x1ac7   :  { %v13910_v53 = vpop.f32.mrf.mxu0 }
0x1ac8   :  { %v9653_v51 = vsel %vm2483_vm0, %v9647_v2, -inf }
0x1ac9   :  { %9654 = vmax.xlane.f32.xlu0 %v9653_v51 }
0x1ada   :  { %v9569_v29 = vpop.f32.mrf.mxu1 }
0x1adc   :  { %v9571_v22 = vpop.f32.mrf.mxu1 }
0x1ade   :  { %v9573_v11 = vpop.f32.mrf.mxu1 }
0x1adf   :  { %v9608_v31 = vpack.c.bf16 %v9573_v11, %v9569_v29 }
0x1ae0   :  { %v9575_v55 = vpop.f32.mrf.mxu1 }
0x1ae1   :  { %13912 = vmatpush3.bf16.msra.mxu0 %v9608_v31  ;;  %v9736_v37 = vpack.c.bf16 %v9575_v55, %v9571_v22  ;;  %v15291_v31 = vld [vmem:[#allocation5 + $0x480] ss:$80 sps:$4 sm:$0xff]  }
0x1ae2   :  { %13917 = vmatprep.subr.bf16.mxu0 %v15926_v62  ;;  %v15330_v55 = vld [vmem:[#allocation5 + $0x350] ss:$80 sps:$4 sm:$0xff]  }
0x1b4e   :  { %v9652_v52 = vpop.xlane.xlu0 %9651 }
0x1b4f   :  { %v9656_v32 = vsub.f32 %v9644_v43, %v9652_v52 }
0x1b51   :  { %v9658_v47 = vmul.f32 1.442695, %v9656_v32 }
0x1b52   :  { %v9655_v26 = vpop.xlane.xlu0 %9654 }
0x1b53   :  { %15539 = vpow2.f32 %v9658_v47  ;;  %v9657_v8 = vsub.f32 %v9647_v2, %v9655_v26 }
0x1b55   :  { %v9660_v3 = vmul.f32 1.442695, %v9657_v8 }
0x1b57   :  { %15541 = vpow2.f32 %v9660_v3 }
0x1b60   :  { %v15540_v28 = vpop.eup %15539 }
0x1b61   :  { %v9662_v33 = vsel %vm2483_vm0, %v15540_v28, 0.0 }
0x1b62   :  { %9663 = vadd.xlane.f32.xlu1 %v9662_v33 }
0x1b64   :  { %v15542_v57 = vpop.eup %15541 }
0x1b65   :  { %v9665_v46 = vsel %vm2483_vm0, %v15542_v57, 0.0 }
0x1b66   :  { %9666 = vadd.xlane.f32.xlu1 %v9665_v46 }
0x1beb   :  { %v9664_v12 = vpop.xlane.xlu1 %9663 }
0x1bec   :  { %15543 = vrcp.f32 %v9664_v12  ;;  %v15314_v12 = vld [vmem:[#allocation5 + $0x24] ss:$80 sps:$4 sm:$0xff]  }
0x1bef   :  { %v9667_v24 = vpop.xlane.xlu1 %9666 }
0x1bf0   :  { %15545 = vrcp.f32 %v9667_v24  ;;  %v15317_v24 = vld [vmem:[#allocation5 + $0x48c] ss:$80 sps:$4 sm:$0xff]  }
0x1bf9   :  { %v15544_v30 = vpop.eup %15543 }
0x1bfa   :  { %v9670_v21 = vmul.f32 %v15544_v30, %v15540_v28  ;;  %v15318_v30 = vld [vmem:[#allocation5 + $0x490] ss:$80 sps:$4 sm:$0xff]  }
0x1bfd   :  { %v15546_v42 = vpop.eup %15545 }
0x1bfe   :  { %v9671_v17 = vmul.f32 %v15546_v42, %v15542_v57  ;;  %v15320_v42 = vld [vmem:[#allocation5 + $0x494] ss:$80 sps:$4 sm:$0xff]  }
0x1bff   :  { %10861 = vmatprep.subr.bf16.mxu1 %v15320_v42  ;;  %v15398_v42 = vld [vmem:[#allocation5 + $0x674] ss:$80 sps:$4 sm:$0xff]  }
0x1c00   :  { %v9672_v36 = vpack.c.bf16 %v9671_v17, %v9670_v21  ;;  %v15326_v21 = vld [vmem:[#allocation5 + $0x3f4] ss:$80 sps:$4 sm:$0xff]   ;;  %v15324_v17 = vld [vmem:[#allocation5 + $0x3f0] ss:$80 sps:$4 sm:$0xff]  }
0x1c02   :  { %13914 = vmatmul.mubr.msk.bf16.vlgmr.msra.gmra.mxu0 %vm2483_vm0, %v9672_v36  ;;  %v15332_v36 = vld [vmem:[#allocation5 + $0x354] ss:$80 sps:$4 sm:$0xff]  }
0x1c03   :  { %13918 = vmatpush3.bf16.xpose.msra.mxu0 %v9735_v56  ;;  %13919 = vmatprep.mubr.msk.bf16.mxu0 %vm15927_vm1, %v15926_v62 }
0x1c04   :  { %13923 = vmatprep.subr.bf16.mxu0 %v15926_v62 }
0x1c0a   :  { %13920 = vmatmul.mubr.bf16.vlgmr.msra.gmra.mxu0 %v9734_v58 }
0x1c0b   :  { %13924 = vmatpush3.bf16.msra.mxu0 %v9736_v37  ;;  %13925 = vmatprep.mubr.msk.bf16.mxu0 %vm15927_vm1, %v15926_v62  ;;  %v15338_v37 = vld [vmem:[#allocation5 + $0x2b4] ss:$80 sps:$4 sm:$0xff]  }
0x1cc2   :  { %v9710_v5 = vpop.f32.mrf.mxu0 }
0x1cc4   :  { %v13915_v54 = vpop.f32.mrf.mxu0 }
0x1cc5   :  { %v15350_v54 = vld [vmem:[#allocation5 + $0x174] ss:$80 sps:$4 sm:$0xff]  }
0x1cc6   :  { %v9713_v56 = vpop.f32.mrf.mxu0 }
0x1cc7   :  { %v9717_v10 = vpack.c.bf16 %v9713_v56, %v9710_v5  ;;  %v15342_v5 = vld [vmem:[#allocation5 + $0x210] ss:$80 sps:$4 sm:$0xff]  }
0x1cc8   :  { %v13916_v43 = vpop.f32.mrf.mxu0  ;;  %v15348_v56 = vld [vmem:[#allocation5 + $0x170] ss:$80 sps:$4 sm:$0xff]  }
0x1cc9   :  { %10098 = vmatmul.mubr.bf16.vlgmr.msra.gmra.mxu1 %v9717_v10  ;;  %v15356_v10 = vld [vmem:[#allocation5 + $0xd4] ss:$80 sps:$4 sm:$0xff]   ;;  %v15354_v43 = vld [vmem:[#allocation5 + $0xd0] ss:$80 sps:$4 sm:$0xff]  }
0x1cca   :  { %v9771_v49 = vpop.f32.mrf.mxu0  ;;  %10862 = vmatpush1.bf16.msra.mxu1 %v15318_v30  ;;  %v15395_v30 = vld [vmem:[#allocation5 + $0x66c] ss:$80 sps:$4 sm:$0xff]  }
0x1ccb   :  { %v9772_v45 = vadd.f32 %v9771_v49, %v16007_v6  ;;  %10863 = vmatprep.subr.bf16.mxu1 %v15326_v21  ;;  %v15362_v49 = vld [vmem:[#allocation5 + $0x34] ss:$80 sps:$4 sm:$0xff]   ;;  %v15393_v21 = vld [vmem:[#allocation5 + $0x668] ss:$80 sps:$4 sm:$0xff]  }
0x1ccc   :  { %v13921_v41 = vpop.f32.mrf.mxu0 }
0x1ccd   :  { %v9778_v44 = vsel %vm2483_vm0, %v9772_v45, -inf  ;;  %v15368_v41 = vld [vmem:[#allocation5 + $0x994] ss:$80 sps:$4 sm:$0xff]  }
0x1cce   :  { %9779 = vmax.xlane.f32.xlu0 %v9778_v44  ;;  %v9774_v20 = vpop.f32.mrf.mxu0  ;;  %10864 = vmatpush1.bf16.msra.mxu1 %v15324_v17  ;;  %v15366_v44 = vld [vmem:[#allocation5 + $0x990] ss:$80 sps:$4 sm:$0xff]  }
0x1ccf   :  { %v9775_v62 = vadd.f32 %v9774_v20, %v16009_v7  ;;  %v15293_v7 = vld [vmem:[#allocation5 + $0x484] ss:$80 sps:$4 sm:$0xff]   ;;  %10865 = vmatprep.subr.bf16.mxu1 %v15332_v36  ;;  %v15396_v17 = vld [vmem:[#allocation5 + $0x670] ss:$80 sps:$4 sm:$0xff]   ;;  %v15401_v36 = vld [vmem:[#allocation5 + $0x5cc] ss:$80 sps:$4 sm:$0xff]  }
0x1cd0   :  { %v13922_v58 = vpop.f32.mrf.mxu0  ;;  %9942 = vmatprep.subr.bf16.mxu0 %v15293_v7  ;;  %v15374_v20 = vld [vmem:[#allocation5 + $0x8f4] ss:$80 sps:$4 sm:$0xff]  }
0x1cd1   :  { %v9781_v2 = vsel %vm2483_vm0, %v9775_v62, -inf  ;;  %v15380_v58 = vld [vmem:[#allocation5 + $0x854] ss:$80 sps:$4 sm:$0xff]  }
0x1cd2   :  { %9782 = vmax.xlane.f32.xlu1 %v9781_v2  ;;  %10866 = vmatpush1.bf16.msra.mxu1 %v15330_v55  ;;  %v15378_v2 = vld [vmem:[#allocation5 + $0x850] ss:$80 sps:$4 sm:$0xff]   ;;  %v15404_v55 = vld [vmem:[#allocation5 + $0x5d4] ss:$80 sps:$4 sm:$0xff]  }
0x1cd3   :  { %10867 = vmatprep.subr.bf16.mxu1 %v15338_v37  ;;  %v15399_v37 = vld [vmem:[#allocation5 + $0x5c8] ss:$80 sps:$4 sm:$0xff]  }
0x1cd6   :  { %10868 = vmatpush1.bf16.msra.mxu1 %v15336_v60  ;;  %v15402_v60 = vld [vmem:[#allocation5 + $0x5d0] ss:$80 sps:$4 sm:$0xff]  }
0x1cd7   :  { %10869 = vmatprep.subr.bf16.mxu1 %v15344_v59  ;;  %v15407_v59 = vld [vmem:[#allocation5 + $0x52c] ss:$80 sps:$4 sm:$0xff]  }
0x1cda   :  { %10870 = vmatpush1.bf16.msra.mxu1 %v15342_v5  ;;  %v15410_v5 = vld [vmem:[#allocation5 + $0x534] ss:$80 sps:$4 sm:$0xff]  }
0x1cdb   :  { %10871 = vmatprep.subr.bf16.mxu1 %v15350_v54  ;;  %v15405_v54 = vld [vmem:[#allocation5 + $0x528] ss:$80 sps:$4 sm:$0xff]  }
0x1cde   :  { %10872 = vmatpush1.bf16.msra.mxu1 %v15348_v56  ;;  %v15408_v56 = vld [vmem:[#allocation5 + $0x530] ss:$80 sps:$4 sm:$0xff]  }
0x1cdf   :  { %10873 = vmatprep.subr.bf16.mxu1 %v15356_v10  ;;  %v15413_v10 = vld [vmem:[#allocation5 + $0x49c] ss:$80 sps:$4 sm:$0xff]  }
0x1ce2   :  { %10874 = vmatpush1.bf16.msra.mxu1 %v15354_v43  ;;  %v15414_v43 = vld [vmem:[#allocation5 + $0x9a0] ss:$80 sps:$4 sm:$0xff]  }
0x1ce3   :  { %10875 = vmatprep.subr.bf16.mxu1 %v15362_v49 }
0x1d57   :  { %v9780_v53 = vpop.xlane.xlu0 %9779 }
0x1d58   :  { %v9784_v51 = vsub.f32 %v9772_v45, %v9780_v53  ;;  %v15360_v45 = vld [vmem:[#allocation5 + $0x30] ss:$80 sps:$4 sm:$0xff]   ;;  %v15386_v53 = vld [vmem:[#allocation5 + $0x7b4] ss:$80 sps:$4 sm:$0xff]  }
0x1d59   :  { %10876 = vmatpush1.bf16.msra.mxu1 %v15360_v45 }
0x1d5a   :  { %v9786_v52 = vmul.f32 1.442695, %v9784_v51  ;;  %10877 = vmatprep.subr.bf16.mxu1 %v15368_v41  ;;  %v15384_v51 = vld [vmem:[#allocation5 + $0x7b0] ss:$80 sps:$4 sm:$0xff]  }
0x1d5b   :  { %v9783_v32 = vpop.xlane.xlu1 %9782 }
0x1d5c   :  { %15547 = vpow2.f32 %v9786_v52  ;;  %v9785_v47 = vsub.f32 %v9775_v62, %v9783_v32  ;;  %v15372_v62 = vld [vmem:[#allocation5 + $0x8f0] ss:$80 sps:$4 sm:$0xff]   ;;  %v15392_v52 = vld [vmem:[#allocation5 + $0x714] ss:$80 sps:$4 sm:$0xff]  }
0x1d5d   :  { %10878 = vmatpush2.bf16.msra.mxu1 %v15366_v44  ;;  %v15390_v32 = vld [vmem:[#allocation5 + $0x710] ss:$80 sps:$4 sm:$0xff]  }
0x1d5e   :  { %v9788_v26 = vmul.f32 1.442695, %v9785_v47  ;;  %10879 = vmatprep.subr.bf16.mxu1 %v15374_v20 }
0x1d60   :  { %15549 = vpow2.f32 %v9788_v26 }
0x1d61   :  { %10880 = vmatpush2.bf16.msra.mxu1 %v15372_v62 }
0x1d62   :  { %10881 = vmatprep.subr.bf16.mxu1 %v15380_v58 }
0x1d65   :  { %10882 = vmatpush2.bf16.msra.mxu1 %v15378_v2 }
0x1d66   :  { %10883 = vmatprep.subr.bf16.mxu1 %v15386_v53 }
0x1d69   :  { %v15548_v6 = vpop.eup %15547  ;;  %10884 = vmatpush2.bf16.msra.mxu1 %v15384_v51 }
0x1d6a   :  { %v9790_v8 = vsel %vm2483_vm0, %v15548_v6, 0.0  ;;  %10885 = vmatprep.subr.bf16.mxu1 %v15392_v52 }
0x1d6b   :  { %9791 = vadd.xlane.f32.xlu0 %v9790_v8  ;;  %v15315_v8 = vld [vmem:[#allocation5 + $0x488] ss:$80 sps:$4 sm:$0xff]  }
0x1d6d   :  { %v15550_v3 = vpop.eup %15549  ;;  %10886 = vmatpush2.bf16.msra.mxu1 %v15390_v32 }
0x1d6e   :  { %v9793_v28 = vsel %vm2483_vm0, %v15550_v3, 0.0  ;;  %10887 = vmatprep.subr.bf16.mxu1 %v15398_v42  ;;  %v15450_v42 = vld [vmem:[#allocation5 + $0x40] ss:$80 sps:$4 sm:$0xff]  }
0x1d6f   :  { %9794 = vadd.xlane.f32.xlu1 %v9793_v28  ;;  %v15323_v28 = vld [vmem:[#allocation5 + $0x3ec] ss:$80 sps:$4 sm:$0xff]  }
0x1d71   :  { %10888 = vmatpush2.bf16.msra.mxu1 %v15396_v17  ;;  %v15451_v17 = vld [vmem:[#allocation5 + $0x998] ss:$80 sps:$4 sm:$0xff]  }
0x1d72   :  { %10889 = vmatprep.subr.bf16.mxu1 %v15404_v55  ;;  %v15454_v55 = vld [vmem:[#allocation5 + $0x8f8] ss:$80 sps:$4 sm:$0xff]  }
0x1d75   :  { %10890 = vmatpush2.bf16.msra.mxu1 %v15402_v60  ;;  %v15457_v60 = vld [vmem:[#allocation5 + $0x858] ss:$80 sps:$4 sm:$0xff]  }
0x1d76   :  { %10891 = vmatprep.subr.bf16.mxu1 %v15410_v5  ;;  %v15460_v5 = vld [vmem:[#allocation5 + $0x7b8] ss:$80 sps:$4 sm:$0xff]  }
0x1d79   :  { %10892 = vmatpush2.bf16.msra.mxu1 %v15408_v56  ;;  %v15463_v56 = vld [vmem:[#allocation5 + $0x718] ss:$80 sps:$4 sm:$0xff]  }
0x1d7a   :  { %13773 = vmatprep.subr.bf16.mxu1 %v15414_v43  ;;  %v15466_v43 = vld [vmem:[#allocation5 + $0x678] ss:$80 sps:$4 sm:$0xff]  }
0x1d89   :  { %v10099_v49 = vpop.f32.mrf.mxu1 }
0x1d8b   :  { %v10101_v45 = vpop.f32.mrf.mxu1 }
0x1d8d   :  { %v10103_v44 = vpop.f32.mrf.mxu1 }
0x1d8f   :  { %v10105_v53 = vpop.f32.mrf.mxu1 }
0x1df4   :  { %v9792_v33 = vpop.xlane.xlu0 %9791 }
0x1df5   :  { %15551 = vrcp.f32 %v9792_v33  ;;  %v15321_v33 = vld [vmem:[#allocation5 + $0x3e8] ss:$80 sps:$4 sm:$0xff]  }
0x1df8   :  { %v9795_v57 = vpop.xlane.xlu1 %9794 }
0x1df9   :  { %15553 = vrcp.f32 %v9795_v57  ;;  %v15329_v57 = vld [vmem:[#allocation5 + $0x34c] ss:$80 sps:$4 sm:$0xff]  }
0x1e02   :  { %v15552_v46 = vpop.eup %15551 }
0x1e03   :  { %v9798_v22 = vmul.f32 %v15552_v46, %v15548_v6  ;;  %v15327_v46 = vld [vmem:[#allocation5 + $0x348] ss:$80 sps:$4 sm:$0xff]  }
0x1e06   :  { %v15554_v29 = vpop.eup %15553 }
0x1e07   :  { %v9799_v11 = vmul.f32 %v15554_v29, %v15550_v3  ;;  %v15335_v29 = vld [vmem:[#allocation5 + $0x2ac] ss:$80 sps:$4 sm:$0xff]  }
0x1e09   :  { %v9800_v39 = vpack.c.bf16 %v9799_v11, %v9798_v22  ;;  %v15333_v22 = vld [vmem:[#allocation5 + $0x2a8] ss:$80 sps:$4 sm:$0xff]   ;;  %v15341_v11 = vld [vmem:[#allocation5 + $0x20c] ss:$80 sps:$4 sm:$0xff]  }
0x1e0b   :  { %13926 = vmatmul.mubr.msk.bf16.vlgmr.msra.gmra.mxu0 %vm2483_vm0, %v9800_v39  ;;  %v15347_v39 = vld [vmem:[#allocation5 + $0x16c] ss:$80 sps:$4 sm:$0xff]  }
0x1e0c   :  { %9943 = vmatpush1.bf16.msra.mxu0 %v15291_v31  ;;  %9974 = vmatprep.mubr.bf16.mxu0 %v15925_v9  ;;  %v15339_v31 = vld [vmem:[#allocation5 + $0x208] ss:$80 sps:$4 sm:$0xff]  }
0x1e0d   :  { %9944 = vmatprep.subr.bf16.mxu0 %v15296_v61  ;;  %v15345_v61 = vld [vmem:[#allocation5 + $0x168] ss:$80 sps:$4 sm:$0xff]  }
0x1e10   :  { %9945 = vmatpush1.bf16.msra.mxu0 %v15294_v34  ;;  %v15353_v34 = vld [vmem:[#allocation5 + $0xcc] ss:$80 sps:$4 sm:$0xff]  }
0x1e11   :  { %9946 = vmatprep.subr.bf16.mxu0 %v15299_v27  ;;  %v15351_v27 = vld [vmem:[#allocation5 + $0xc8] ss:$80 sps:$4 sm:$0xff]  }
0x1e14   :  { %9947 = vmatpush1.bf16.msra.mxu0 %v15297_v13  ;;  %v15359_v13 = vld [vmem:[#allocation5 + $0x2c] ss:$80 sps:$4 sm:$0xff]  }
0x1e15   :  { %9948 = vmatprep.subr.bf16.mxu0 %v15302_v16  ;;  %v15357_v16 = vld [vmem:[#allocation5 + $0x28] ss:$80 sps:$4 sm:$0xff]  }
0x1e18   :  { %9949 = vmatpush1.bf16.msra.mxu0 %v15300_v48  ;;  %v15365_v48 = vld [vmem:[#allocation5 + $0x98c] ss:$80 sps:$4 sm:$0xff]  }
0x1e19   :  { %9950 = vmatprep.subr.bf16.mxu0 %v15305_v14  ;;  %v15363_v14 = vld [vmem:[#allocation5 + $0x988] ss:$80 sps:$4 sm:$0xff]  }
0x1e1c   :  { %9951 = vmatpush1.bf16.msra.mxu0 %v15303_v35  ;;  %v15371_v35 = vld [vmem:[#allocation5 + $0x8ec] ss:$80 sps:$4 sm:$0xff]  }
0x1e1d   :  { %9952 = vmatprep.subr.bf16.mxu0 %v15308_v25  ;;  %v15369_v25 = vld [vmem:[#allocation5 + $0x8e8] ss:$80 sps:$4 sm:$0xff]  }
0x1e20   :  { %9953 = vmatpush1.bf16.msra.mxu0 %v15306_v19  ;;  %v15377_v19 = vld [vmem:[#allocation5 + $0x84c] ss:$80 sps:$4 sm:$0xff]  }
0x1e21   :  { %9954 = vmatprep.subr.bf16.mxu0 %v15311_v38  ;;  %v15375_v38 = vld [vmem:[#allocation5 + $0x848] ss:$80 sps:$4 sm:$0xff]  }
0x1e24   :  { %9955 = vmatpush1.bf16.msra.mxu0 %v15309_v40  ;;  %v15383_v40 = vld [vmem:[#allocation5 + $0x7ac] ss:$80 sps:$4 sm:$0xff]  }
0x1e25   :  { %9956 = vmatprep.subr.bf16.mxu0 %v15314_v12  ;;  %v15389_v12 = vld [vmem:[#allocation5 + $0x70c] ss:$80 sps:$4 sm:$0xff]  }
0x1e28   :  { %9957 = vmatpush1.bf16.msra.mxu0 %v15312_v1  ;;  %v15381_v1 = vld [vmem:[#allocation5 + $0x7a8] ss:$80 sps:$4 sm:$0xff]  }
0x1e29   :  { %10818 = vmatprep.subr.bf16.mxu0 %v15317_v24  ;;  %v15387_v24 = vld [vmem:[#allocation5 + $0x708] ss:$80 sps:$4 sm:$0xff]  }
0x1ecb   :  { %v9838_v47 = vpop.f32.mrf.mxu0 }
0x1ecd   :  { %v13927_v26 = vpop.f32.mrf.mxu0 }
0x1ecf   :  { %v9841_v6 = vpop.f32.mrf.mxu0 }
0x1ed0   :  { %v9845_v3 = vpack.c.bf16 %v9841_v6, %v9838_v47 }
0x1ed1   :  { %v13928_v7 = vpop.f32.mrf.mxu0 }
0x1ed2   :  { %9975 = vmatmul.mubr.bf16.vlgmr.msra.gmra.mxu0 %v9845_v3  ;;  %v15415_v7 = vld [vmem:[#allocation5 + $0x4a0] ss:$80 sps:$4 sm:$0xff]  }
0x1ed3   :  { %10819 = vmatpush1.bf16.msra.mxu0 %v15315_v8 }
0x1ed4   :  { %10820 = vmatprep.subr.bf16.mxu0 %v15323_v28  ;;  %v15411_v28 = vld [vmem:[#allocation5 + $0x498] ss:$80 sps:$4 sm:$0xff]  }
0x1ed7   :  { %10821 = vmatpush1.bf16.msra.mxu0 %v15321_v33 }
0x1ed8   :  { %10822 = vmatprep.subr.bf16.mxu0 %v15329_v57  ;;  %v15418_v57 = vld [vmem:[#allocation5 + $0x3fc] ss:$80 sps:$4 sm:$0xff]  }
0x1edb   :  { %10823 = vmatpush1.bf16.msra.mxu0 %v15327_v46  ;;  %v15419_v46 = vld [vmem:[#allocation5 + $0x900] ss:$80 sps:$4 sm:$0xff]  }
0x1edc   :  { %10824 = vmatprep.subr.bf16.mxu0 %v15335_v29  ;;  %v15421_v29 = vld [vmem:[#allocation5 + $0x358] ss:$80 sps:$4 sm:$0xff]  }
0x1edf   :  { %10825 = vmatpush1.bf16.msra.mxu0 %v15333_v22  ;;  %v15425_v22 = vld [vmem:[#allocation5 + $0x360] ss:$80 sps:$4 sm:$0xff]  }
0x1ee0   :  { %10826 = vmatprep.subr.bf16.mxu0 %v15341_v11  ;;  %v15428_v11 = vld [vmem:[#allocation5 + $0x2bc] ss:$80 sps:$4 sm:$0xff]  }
0x1ee3   :  { %10827 = vmatpush1.bf16.msra.mxu0 %v15339_v31  ;;  %v15429_v31 = vld [vmem:[#allocation5 + $0x7c0] ss:$80 sps:$4 sm:$0xff]  }
0x1ee4   :  { %10828 = vmatprep.subr.bf16.mxu0 %v15347_v39  ;;  %v15426_v39 = vld [vmem:[#allocation5 + $0x2b8] ss:$80 sps:$4 sm:$0xff]  }
0x1ee7   :  { %10829 = vmatpush1.bf16.msra.mxu0 %v15345_v61  ;;  %v15430_v61 = vld [vmem:[#allocation5 + $0x2c0] ss:$80 sps:$4 sm:$0xff]  }
0x1ee8   :  { %10830 = vmatprep.subr.bf16.mxu0 %v15353_v34  ;;  %v15433_v34 = vld [vmem:[#allocation5 + $0x21c] ss:$80 sps:$4 sm:$0xff]  }
0x1eeb   :  { %10831 = vmatpush1.bf16.msra.mxu0 %v15351_v27  ;;  %v15434_v27 = vld [vmem:[#allocation5 + $0x720] ss:$80 sps:$4 sm:$0xff]  }
0x1eec   :  { %10832 = vmatprep.subr.bf16.mxu0 %v15359_v13  ;;  %v15431_v13 = vld [vmem:[#allocation5 + $0x218] ss:$80 sps:$4 sm:$0xff]  }
0x1eef   :  { %10833 = vmatpush1.bf16.msra.mxu0 %v15357_v16  ;;  %v15435_v16 = vld [vmem:[#allocation5 + $0x220] ss:$80 sps:$4 sm:$0xff]  }
0x1ef0   :  { %10834 = vmatprep.subr.bf16.mxu0 %v15365_v48  ;;  %v15438_v48 = vld [vmem:[#allocation5 + $0x17c] ss:$80 sps:$4 sm:$0xff]  }
0x1ef3   :  { %10835 = vmatpush2.bf16.msra.mxu0 %v15363_v14  ;;  %v15439_v14 = vld [vmem:[#allocation5 + $0x680] ss:$80 sps:$4 sm:$0xff]  }
0x1ef4   :  { %10836 = vmatprep.subr.bf16.mxu0 %v15371_v35  ;;  %v15436_v35 = vld [vmem:[#allocation5 + $0x178] ss:$80 sps:$4 sm:$0xff]  }
0x1ef7   :  { %10837 = vmatpush2.bf16.msra.mxu0 %v15369_v25  ;;  %v15440_v25 = vld [vmem:[#allocation5 + $0x180] ss:$80 sps:$4 sm:$0xff]  }
0x1ef8   :  { %10838 = vmatprep.subr.bf16.mxu0 %v15377_v19  ;;  %v15443_v19 = vld [vmem:[#allocation5 + $0xdc] ss:$80 sps:$4 sm:$0xff]  }
0x1efb   :  { %10839 = vmatpush2.bf16.msra.mxu0 %v15375_v38  ;;  %v15444_v38 = vld [vmem:[#allocation5 + $0x5e0] ss:$80 sps:$4 sm:$0xff]  }
0x1efc   :  { %10840 = vmatprep.subr.bf16.mxu0 %v15383_v40  ;;  %v15441_v40 = vld [vmem:[#allocation5 + $0xd8] ss:$80 sps:$4 sm:$0xff]  }
0x1eff   :  { %10841 = vmatpush2.bf16.msra.mxu0 %v15381_v1  ;;  %v15445_v1 = vld [vmem:[#allocation5 + $0xe0] ss:$80 sps:$4 sm:$0xff]  }
0x1f00   :  { %10842 = vmatprep.subr.bf16.mxu0 %v15389_v12  ;;  %v15448_v12 = vld [vmem:[#allocation5 + $0x3c] ss:$80 sps:$4 sm:$0xff]  }
0x1f03   :  { %10843 = vmatpush2.bf16.msra.mxu0 %v15387_v24  ;;  %v15449_v24 = vld [vmem:[#allocation5 + $0x540] ss:$80 sps:$4 sm:$0xff]  }
0x1f04   :  { %10844 = vmatprep.subr.bf16.mxu0 %v15395_v30  ;;  %v15446_v30 = vld [vmem:[#allocation5 + $0x38] ss:$80 sps:$4 sm:$0xff]  }
0x1f07   :  { %10845 = vmatpush2.bf16.msra.mxu0 %v15393_v21  ;;  %v15453_v21 = vld [vmem:[#allocation5 + $0x99c] ss:$80 sps:$4 sm:$0xff]  }
0x1f08   :  { %10846 = vmatprep.subr.bf16.mxu0 %v15401_v36  ;;  %v15456_v36 = vld [vmem:[#allocation5 + $0x8fc] ss:$80 sps:$4 sm:$0xff]  }
0x1f0b   :  { %10847 = vmatpush2.bf16.msra.mxu0 %v15399_v37  ;;  %v15459_v37 = vld [vmem:[#allocation5 + $0x85c] ss:$80 sps:$4 sm:$0xff]  }
0x1f0c   :  { %10848 = vmatprep.subr.bf16.mxu0 %v15407_v59  ;;  %v15462_v59 = vld [vmem:[#allocation5 + $0x7bc] ss:$80 sps:$4 sm:$0xff]  }
0x1f0f   :  { %10849 = vmatpush2.bf16.msra.mxu0 %v15405_v54  ;;  %v15465_v54 = vld [vmem:[#allocation5 + $0x71c] ss:$80 sps:$4 sm:$0xff]  }
0x1f10   :  { %10904 = vmatprep.subr.bf16.mxu0 %v15413_v10  ;;  %v15468_v10 = vld [vmem:[#allocation5 + $0x67c] ss:$80 sps:$4 sm:$0xff]  }
0x1f92   :  { %v9976_v41 = vpop.f32.mrf.mxu0 }
0x1f93   :  { %v10100_v51 = vadd.f32 %v10099_v49, %v9976_v41  ;;  %v15471_v49 = vld [vmem:[#allocation5 + $0x5dc] ss:$80 sps:$4 sm:$0xff]  }
0x1f94   :  { %v9978_v20 = vpop.f32.mrf.mxu0  ;;  %v15474_v41 = vld [vmem:[#allocation5 + $0x53c] ss:$80 sps:$4 sm:$0xff]  }
0x1f95   :  { %v10102_v58 = vadd.f32 %v10101_v45, %v9978_v20  ;;  %v10108_v8 = vadd.f32 %v10100_v51, %v16435_v50  ;;  %v15423_v50 = vld [vmem:[#allocation5 + $0x35c] ss:$80 sps:$4 sm:$0xff]   ;;  %v15469_v45 = vld [vmem:[#allocation5 + $0x5d8] ss:$80 sps:$4 sm:$0xff]   ;;  %v15481_v51 = vld [vmem:[#allocation5 + $0x364] ss:$80 sps:$4 sm:$0xff]  }
0x1f96   :  { %v9980_v62 = vpop.f32.mrf.mxu0  ;;  %v15477_v20 = vld [vmem:[#allocation5 + $0x4a8] ss:$80 sps:$4 sm:$0xff]  }
0x1f97   :  { %v10104_v2 = vadd.f32 %v10103_v44, %v9980_v62  ;;  %v10109_v26 = vadd.f32 %v10102_v58, %v16437_v63  ;;  %v15416_v63 = vld [vmem:[#allocation5 + $0x3f8] ss:$80 sps:$4 sm:$0xff]   ;;  %v15475_v62 = vld [vmem:[#allocation5 + $0x4a4] ss:$80 sps:$4 sm:$0xff]  }
0x1f98   :  { %v9982_v52 = vpop.f32.mrf.mxu0  ;;  %v15472_v44 = vld [vmem:[#allocation5 + $0x538] ss:$80 sps:$4 sm:$0xff]  }
0x1f99   :  { %v10106_v32 = vadd.f32 %v10105_v53, %v9982_v52  ;;  %v10110_v47 = vadd.f32 %v10104_v2, %v16439_v0  ;;  %v15420_v0 = vld [vmem:[#allocation5 + $0x400] ss:$80 sps:$4 sm:$0xff]   ;;  %v15480_v58 = vld [vmem:[#allocation5 + $0x408] ss:$80 sps:$4 sm:$0xff]   ;;  %v15478_v2 = vld [vmem:[#allocation5 + $0x404] ss:$80 sps:$4 sm:$0xff]  }
0x1f9a   :  { %v15483_v53 = vld [vmem:[#allocation5 + $0x368] ss:$80 sps:$4 sm:$0xff]  }
0x1f9b   :  { %v10111_v6 = vadd.f32 %v10106_v32, %v16441_v4  ;;  %v16507_v33 = vpack.c.bf16 %v10110_v47, %v10108_v8  ;;  %v15424_v4 = vld [vmem:[#allocation5 + $0x860] ss:$80 sps:$4 sm:$0xff]   ;;  %v15486_v52 = vld [vmem:[#allocation5 + $0x2c8] ss:$80 sps:$4 sm:$0xff]   ;;  %v15484_v32 = vld [vmem:[#allocation5 + $0x2c4] ss:$80 sps:$4 sm:$0xff]  }
0x1f9c   :  { %v15487_v47 = vld [vmem:[#allocation5 + $0x224] ss:$80 sps:$4 sm:$0xff]  }
0x1f9d   :  { %v10113_v3 = vpack.c.bf16 %v10111_v6, %v10109_v26  ;;  %v15489_v26 = vld [vmem:[#allocation5 + $0x228] ss:$80 sps:$4 sm:$0xff]   ;;  %v15490_v8 = vld [vmem:[#allocation5 + $0x184] ss:$80 sps:$4 sm:$0xff]  }
0x1f9e   :  { %v15492_v6 = vld [vmem:[#allocation5 + $0x188] ss:$80 sps:$4 sm:$0xff]  }
0x1f9f   :  { %10850 = vmatprep.mubr.bf16.mxu0 %v10113_v3  ;;  %10893 = vmatprep.mubr.bf16.mxu1 %v10113_v3 }
0x1fa0   :  { %10851 = vmatmul.mubr.bf16.vlgmr.msra.gmra.mxu0 %v16507_v33  ;;  %10894 = vmatmul.mubr.bf16.vlgmr.msra.gmra.mxu1 %v16507_v33 }
0x1fa1   :  { %10905 = vmatpush1.bf16.msra.mxu0 %v15411_v28  ;;  %13774 = vmatpush3.bf16.msra.mxu1 %v15415_v7  ;;  %v15493_v28 = vld [vmem:[#allocation5 + $0xe4] ss:$80 sps:$4 sm:$0xff]   ;;  %v15498_v7 = vld [vmem:[#allocation5 + $0x48] ss:$80 sps:$4 sm:$0xff]  }
0x1fa2   :  { %10936 = vmatprep.mubr.bf16.mxu0 %v10113_v3  ;;  %10979 = vmatprep.mubr.bf16.mxu1 %v10113_v3  ;;  %v15495_v3 = vld [vmem:[#allocation5 + $0xe8] ss:$80 sps:$4 sm:$0xff]  }
0x1fa3   :  { %10906 = vmatprep.subr.bf16.mxu0 %v15418_v57  ;;  %13775 = vmatprep.subr.bf16.mxu1 %v15419_v46  ;;  %v15501_v57 = vld [vmem:[#allocation5 + $0x9a8] ss:$80 sps:$4 sm:$0xff]   ;;  %v15502_v46 = vld [vmem:[#allocation5 + $0x9ac] ss:$80 sps:$4 sm:$0xff]  }
0x1fa5   :  { %10907 = vmatpush1.bf16.msra.mxu0 %v15416_v63  ;;  %13776 = vmatpush3.bf16.msra.mxu1 %v15420_v0  ;;  %v15499_v63 = vld [vmem:[#allocation5 + $0x9a4] ss:$80 sps:$4 sm:$0xff]   ;;  %v15503_v0 = vld [vmem:[#allocation5 + $0x4ac] ss:$80 sps:$4 sm:$0xff]  }
0x1fa6   :  { %10908 = vmatprep.subr.bf16.mxu0 %v15423_v50  ;;  %13777 = vmatprep.subr.bf16.mxu1 %v15424_v4  ;;  %v15506_v50 = vld [vmem:[#allocation5 + $0x908] ss:$80 sps:$4 sm:$0xff]   ;;  %v15507_v4 = vld [vmem:[#allocation5 + $0x90c] ss:$80 sps:$4 sm:$0xff]  }
0x1fa9   :  { %10909 = vmatpush1.bf16.msra.mxu0 %v15421_v29  ;;  %13778 = vmatpush3.bf16.msra.mxu1 %v15425_v22  ;;  %v15504_v29 = vld [vmem:[#allocation5 + $0x904] ss:$80 sps:$4 sm:$0xff]   ;;  %v15508_v22 = vld [vmem:[#allocation5 + $0x40c] ss:$80 sps:$4 sm:$0xff]  }
0x1faa   :  { %10910 = vmatprep.subr.bf16.mxu0 %v15428_v11  ;;  %13779 = vmatprep.subr.bf16.mxu1 %v15429_v31  ;;  %v15511_v11 = vld [vmem:[#allocation5 + $0x868] ss:$80 sps:$4 sm:$0xff]   ;;  %v15512_v31 = vld [vmem:[#allocation5 + $0x86c] ss:$80 sps:$4 sm:$0xff]  }
0x1fad   :  { %10911 = vmatpush1.bf16.msra.mxu0 %v15426_v39  ;;  %13780 = vmatpush3.bf16.msra.mxu1 %v15430_v61  ;;  %v15509_v39 = vld [vmem:[#allocation5 + $0x864] ss:$80 sps:$4 sm:$0xff]   ;;  %v15513_v61 = vld [vmem:[#allocation5 + $0x36c] ss:$80 sps:$4 sm:$0xff]  }
0x1fae   :  { %10912 = vmatprep.subr.bf16.mxu0 %v15433_v34  ;;  %13781 = vmatprep.subr.bf16.mxu1 %v15434_v27  ;;  %v15516_v34 = vld [vmem:[#allocation5 + $0x7c8] ss:$80 sps:$4 sm:$0xff]   ;;  %v15517_v27 = vld [vmem:[#allocation5 + $0x7cc] ss:$80 sps:$4 sm:$0xff]  }
0x1fb1   :  { %10913 = vmatpush1.bf16.msra.mxu0 %v15431_v13  ;;  %13782 = vmatpush3.bf16.msra.mxu1 %v15435_v16  ;;  %v15514_v13 = vld [vmem:[#allocation5 + $0x7c4] ss:$80 sps:$4 sm:$0xff]   ;;  %v15518_v16 = vld [vmem:[#allocation5 + $0x2cc] ss:$80 sps:$4 sm:$0xff]  }
0x1fb2   :  { %10914 = vmatprep.subr.bf16.mxu0 %v15438_v48  ;;  %13783 = vmatprep.subr.bf16.mxu1 %v15439_v14  ;;  %v15521_v48 = vld [vmem:[#allocation5 + $0x728] ss:$80 sps:$4 sm:$0xff]   ;;  %v15522_v14 = vld [vmem:[#allocation5 + $0x72c] ss:$80 sps:$4 sm:$0xff]  }
0x1fb5   :  { %10915 = vmatpush1.bf16.msra.mxu0 %v15436_v35  ;;  %13784 = vmatpush3.bf16.msra.mxu1 %v15440_v25  ;;  %v15519_v35 = vld [vmem:[#allocation5 + $0x724] ss:$80 sps:$4 sm:$0xff]   ;;  %v15523_v25 = vld [vmem:[#allocation5 + $0x22c] ss:$80 sps:$4 sm:$0xff]  }
0x1fb6   :  { %10916 = vmatprep.subr.bf16.mxu0 %v15443_v19  ;;  %13785 = vmatprep.subr.bf16.mxu1 %v15444_v38  ;;  %v15526_v19 = vld [vmem:[#allocation5 + $0x688] ss:$80 sps:$4 sm:$0xff]   ;;  %v15527_v38 = vld [vmem:[#allocation5 + $0x68c] ss:$80 sps:$4 sm:$0xff]  }
0x1fb9   :  { %10917 = vmatpush1.bf16.msra.mxu0 %v15441_v40  ;;  %13786 = vmatpush3.bf16.msra.mxu1 %v15445_v1  ;;  %v15524_v40 = vld [vmem:[#allocation5 + $0x684] ss:$80 sps:$4 sm:$0xff]   ;;  %v15528_v1 = vld [vmem:[#allocation5 + $0x18c] ss:$80 sps:$4 sm:$0xff]  }
0x1fba   :  { %10918 = vmatprep.subr.bf16.mxu0 %v15448_v12  ;;  %13787 = vmatprep.subr.bf16.mxu1 %v15449_v24  ;;  %v15531_v12 = vld [vmem:[#allocation5 + $0x5e8] ss:$80 sps:$4 sm:$0xff]   ;;  %v15532_v24 = vld [vmem:[#allocation5 + $0x5ec] ss:$80 sps:$4 sm:$0xff]  }
0x1fbd   :  { %10919 = vmatpush1.bf16.msra.mxu0 %v15446_v30  ;;  %13788 = vmatpush3.bf16.msra.mxu1 %v15450_v42  ;;  %v15529_v30 = vld [vmem:[#allocation5 + $0x5e4] ss:$80 sps:$4 sm:$0xff]   ;;  %v15533_v42 = vld [vmem:[#allocation5 + $0xec] ss:$80 sps:$4 sm:$0xff]  }
0x1fbe   :  { %10920 = vmatprep.subr.bf16.mxu0 %v15453_v21  ;;  %11366 = vmatprep.subr.bf16.mxu1 %v15477_v20  ;;  %v15536_v21 = vld [vmem:[#allocation5 + $0x548] ss:$80 sps:$4 sm:$0xff]  }
0x1fc0   :  { %10980 = vmatmul.mubr.bf16.vlgmr.msra.gmra.mxu1 %v16507_v33 }
0x1fc1   :  { %10921 = vmatpush2.bf16.msra.mxu0 %v15451_v17  ;;  %11367 = vmatpush1.bf16.msra.mxu1 %v15475_v62  ;;  %v15537_v17 = vld [vmem:[#allocation5 + $0x54c] ss:$80 sps:$4 sm:$0xff]  }
0x1fc2   :  { %10922 = vmatprep.subr.bf16.mxu0 %v15456_v36  ;;  %11368 = vmatprep.subr.bf16.mxu1 %v15480_v58  ;;  %v15534_v36 = vld [vmem:[#allocation5 + $0x544] ss:$80 sps:$4 sm:$0xff]  }
0x1fc5   :  { %10923 = vmatpush2.bf16.msra.mxu0 %v15454_v55  ;;  %11369 = vmatpush1.bf16.msra.mxu1 %v15478_v2  ;;  %v15538_v55 = vld [vmem:[#allocation5 + $0x4c] ss:$80 sps:$4 sm:$0xff]  }
0x1fc6   :  { %10924 = vmatprep.subr.bf16.mxu0 %v15459_v37  ;;  %11370 = vmatprep.subr.bf16.mxu1 %v15483_v53 }
0x1fc9   :  { %10925 = vmatpush2.bf16.msra.mxu0 %v15457_v60  ;;  %11371 = vmatpush1.bf16.msra.mxu1 %v15481_v51 }
0x1fca   :  { %10926 = vmatprep.subr.bf16.mxu0 %v15462_v59  ;;  %11372 = vmatprep.subr.bf16.mxu1 %v15486_v52 }
0x1fcd   :  { %10927 = vmatpush2.bf16.msra.mxu0 %v15460_v5  ;;  %11373 = vmatpush1.bf16.msra.mxu1 %v15484_v32 }
0x1fce   :  { %10928 = vmatprep.subr.bf16.mxu0 %v15465_v54  ;;  %11374 = vmatprep.subr.bf16.mxu1 %v15489_v26 }
0x1fd1   :  { %10929 = vmatpush2.bf16.msra.mxu0 %v15463_v56  ;;  %11375 = vmatpush1.bf16.msra.mxu1 %v15487_v47 }
0x1fd2   :  { %10930 = vmatprep.subr.bf16.mxu0 %v15468_v10  ;;  %11376 = vmatprep.subr.bf16.mxu1 %v15492_v6 }
0x1fd5   :  { %10931 = vmatpush2.bf16.msra.mxu0 %v15466_v43  ;;  %11377 = vmatpush1.bf16.msra.mxu1 %v15490_v8 }
0x1fd6   :  { %10932 = vmatprep.subr.bf16.mxu0 %v15471_v49  ;;  %11378 = vmatprep.subr.bf16.mxu1 %v15495_v3 }
0x1fd9   :  { %10933 = vmatpush2.bf16.msra.mxu0 %v15469_v45  ;;  %11379 = vmatpush1.bf16.msra.mxu1 %v15493_v28 }
0x1fda   :  { %10934 = vmatprep.subr.bf16.mxu0 %v15474_v41  ;;  %11380 = vmatprep.subr.bf16.mxu1 %v15498_v7 }
0x1fdd   :  { %10935 = vmatpush2.bf16.msra.mxu0 %v15472_v44 }
0x1fde   :  { %13795 = vmatprep.subr.bf16.mxu0 %v15502_v46 }
0x1fe0   :  { %10937 = vmatmul.mubr.bf16.vlgmr.msra.gmra.mxu0 %v16507_v33  ;;  %v15496_v33 = vld [vmem:[#allocation5 + $0x44] ss:$80 sps:$4 sm:$0xff]  }
0x1fe1   :  { %11381 = vmatpush1.bf16.msra.mxu1 %v15496_v33  ;;  %13796 = vmatpush3.bf16.msra.mxu0 %v15503_v0 }
0x1fe2   :  { %11382 = vmatprep.subr.bf16.mxu1 %v15501_v57  ;;  %13797 = vmatprep.subr.bf16.mxu0 %v15507_v4 }
0x1fe5   :  { %11383 = vmatpush2.bf16.msra.mxu1 %v15499_v63  ;;  %13798 = vmatpush3.bf16.msra.mxu0 %v15508_v22 }
0x1fe6   :  { %11384 = vmatprep.subr.bf16.mxu1 %v15506_v50  ;;  %13799 = vmatprep.subr.bf16.mxu0 %v15512_v31 }
0x1fe9   :  { %11385 = vmatpush2.bf16.msra.mxu1 %v15504_v29  ;;  %13800 = vmatpush3.bf16.msra.mxu0 %v15513_v61 }
0x1fea   :  { %11386 = vmatprep.subr.bf16.mxu1 %v15511_v11  ;;  %13801 = vmatprep.subr.bf16.mxu0 %v15517_v27 }
0x1fed   :  { %11387 = vmatpush2.bf16.msra.mxu1 %v15509_v39  ;;  %13802 = vmatpush3.bf16.msra.mxu0 %v15518_v16 }
0x1fee   :  { %11388 = vmatprep.subr.bf16.mxu1 %v15516_v34  ;;  %13803 = vmatprep.subr.bf16.mxu0 %v15522_v14 }
0x1ff1   :  { %11389 = vmatpush2.bf16.msra.mxu1 %v15514_v13  ;;  %13804 = vmatpush3.bf16.msra.mxu0 %v15523_v25 }
0x1ff2   :  { %11390 = vmatprep.subr.bf16.mxu1 %v15521_v48  ;;  %13805 = vmatprep.subr.bf16.mxu0 %v15527_v38  ;;  %v10989_v48 = vld [vmem:[#allocation13 + $0x160] ss:$8 sm:$0x7] }
0x1ff3   :  { %v10994_v14 = vrot.slane %v10989_v48, %v16244_v15  ;;  %v10998_v25 = vrot.slane %v10989_v48, %v16247_v18 }
0x1ff5   :  { %11391 = vmatpush2.bf16.msra.mxu1 %v15519_v35  ;;  %13806 = vmatpush3.bf16.msra.mxu0 %v15528_v1  ;;  %v11001_v35 = vsub.s32 2, %v16241_v23 }
0x1ff6   :  { %11392 = vmatprep.subr.bf16.mxu1 %v15526_v19  ;;  %13807 = vmatprep.subr.bf16.mxu0 %v15532_v24 }
0x1ff7   :  { %v11002_v38 = vrot.slane %v10989_v48, %v11001_v35 }
0x1ff9   :  { %11393 = vmatpush2.bf16.msra.mxu1 %v15524_v40  ;;  %13808 = vmatpush3.bf16.msra.mxu0 %v15533_v42 }
0x1ffa   :  { %11394 = vmatprep.subr.bf16.mxu1 %v15531_v12  ;;  %13809 = vmatprep.subr.bf16.mxu0 %v15537_v17 }
0x1ffd   :  { %11395 = vmatpush2.bf16.msra.mxu1 %v15529_v30  ;;  %13810 = vmatpush3.bf16.msra.mxu0 %v15538_v55 }
0x1ffe   :  { %11396 = vmatprep.subr.bf16.mxu1 %v15536_v21 }
0x2001   :  { %11397 = vmatpush2.bf16.msra.mxu1 %v15534_v36 }
0x2060   :  { %v16513_v37 = vpop.f32.mrf.mxu1  ;;  %v10852_v20 = vpop.f32.mrf.mxu0 }
0x2061   :  { %v11006_v19 = vadd.f32 %v10994_v14, %v10852_v20  ;;  %v11008_v21 = vadd.f32 %v11002_v38, %v16513_v37 }
0x2062   :  { %v10897_v60 = vpop.f32.mrf.mxu1  ;;  %v10854_v2 = vpop.f32.mrf.mxu0 }
0x2063   :  { %v11007_v12 = vadd.f32 %v10998_v25, %v10854_v2 }
0x2064   :  { %v16515_v59 = vpop.f32.mrf.mxu1  ;;  %v10856_v52 = vpop.f32.mrf.mxu0 }
0x2065   :  { %v11009_v17 = vadd.f32 %v10994_v14, %v10856_v52 }
0x2066   :  { %v10901_v5 = vpop.f32.mrf.mxu1  ;;  %v10858_v32 = vpop.f32.mrf.mxu0 }
0x2080   :  { %v13789_v54 = vpop.f32.mrf.mxu1 }
0x2082   :  { %v13790_v56 = vpop.f32.mrf.mxu1 }
0x2083   :  { %v13791_v10 = vadd.f32 %v13790_v56, %v13789_v54 }
0x2084   :  { %v13792_v43 = vpop.f32.mrf.mxu1 }
0x2085   :  { %v13491_v49 = vmul.f32 -1.442695, %v13791_v10 }
0x2086   :  { %v13793_v45 = vpop.f32.mrf.mxu1 }
0x2087   :  { %15555 = vpow2.f32 %v13491_v49  ;;  %v13794_v41 = vadd.f32 %v13793_v45, %v13792_v43 }
0x2089   :  { %v13493_v44 = vmul.f32 -1.442695, %v13794_v41 }
0x208b   :  { %15557 = vpow2.f32 %v13493_v44 }
0x2094   :  { %v15556_v62 = vpop.eup %15555 }
0x2095   :  { %v11025_v58 = vadd.f32 1.0, %v15556_v62 }
0x2097   :  { %15559 = vrcp.f32 %v11025_v58 }
0x2098   :  { %v15558_v53 = vpop.eup %15557 }
0x2099   :  { %v11027_v51 = vadd.f32 1.0, %v15558_v53 }
0x209b   :  { %15561 = vrcp.f32 %v11027_v51 }
0x20a0   :  { %v10938_v47 = vpop.f32.mrf.mxu0 }
0x20a2   :  { %v10940_v26 = vpop.f32.mrf.mxu0 }
0x20a3   :  { %v13490_v6 = vmul.f32 -1.442695, %v10940_v26 }
0x20a4   :  { %v15560_v8 = vpop.eup %15559  ;;  %v10942_v3 = vpop.f32.mrf.mxu0 }
0x20a5   :  { %15563 = vpow2.f32 %v13490_v6  ;;  %v11037_v7 = vmul.f32 %v15560_v8, %v13791_v10  ;;  %v11011_v10 = vadd.f32 %v11002_v38, %v16515_v59 }
0x20a6   :  { %v10944_v28 = vpop.f32.mrf.mxu0 }
0x20a7   :  { %v13492_v33 = vmul.f32 -1.442695, %v10944_v28  ;;  %v11041_v63 = vmul.f32 %v11037_v7, %v10938_v47 }
0x20a8   :  { %v15562_v57 = vpop.eup %15561 }
0x20a9   :  { %v11039_v46 = vmul.f32 %v15562_v57, %v13794_v41  ;;  %15565 = vpow2.f32 %v13492_v33 }
0x20ab   :  { %v11043_v0 = vmul.f32 %v11039_v46, %v10942_v3 }
0x20ad   :  { %v11045_v50 = vpack.c.bf16 %v11043_v0, %v11041_v63 }
0x20af   :  { %11398 = vmatprep.mubr.bf16.mxu1 %v11045_v50  ;;  %11441 = vmatprep.mubr.bf16.mxu0 %v11045_v50 }
0x20b2   :  { %v15564_v4 = vpop.eup %15563 }
0x20b3   :  { %v11024_v29 = vadd.f32 1.0, %v15564_v4 }
0x20b5   :  { %15567 = vrcp.f32 %v11024_v29 }
0x20b6   :  { %v15566_v22 = vpop.eup %15565 }
0x20b7   :  { %v11026_v11 = vadd.f32 1.0, %v15566_v22 }
0x20b9   :  { %15569 = vrcp.f32 %v11026_v11 }
0x20c2   :  { %v15568_v31 = vpop.eup %15567 }
0x20c3   :  { %v11036_v39 = vmul.f32 %v15568_v31, %v10940_v26 }
0x20c5   :  { %v11040_v27 = vmul.f32 %v11036_v39, %v10897_v60 }
0x20c6   :  { %v15570_v61 = vpop.eup %15569 }
0x20c7   :  { %v11038_v34 = vmul.f32 %v15570_v61, %v10944_v28 }
0x20c9   :  { %v11042_v13 = vmul.f32 %v11038_v34, %v10901_v5  ;;  %v11010_v5 = vadd.f32 %v10998_v25, %v10858_v32 }
0x20cb   :  { %v11044_v16 = vpack.c.bf16 %v11042_v13, %v11040_v27 }
0x20cd   :  { %11399 = vmatmul.mubr.bf16.vlgmr.msra.gmra.mxu1 %v11044_v16  ;;  %11442 = vmatmul.mubr.bf16.vlgmr.msra.gmra.mxu0 %v11044_v16 }
0x218d   :  { %v11400_v40 = vpop.f32.mrf.mxu1  ;;  %v13811_v1 = vpop.f32.mrf.mxu0 }
0x218e   :  { %v16520_v24 = vadd.f32 %v11400_v40, %v11006_v19 }
0x218f   :  { %v11402_v30 = vpop.f32.mrf.mxu1  ;;  %v13812_v42 = vpop.f32.mrf.mxu0 }
0x2190   :  { %v11451_v36 = vadd.f32 %v11402_v30, %v11007_v12  ;;  %v13813_v55 = vadd.f32 %v13812_v42, %v13811_v1 }
0x2191   :  { %v11404_v60 = vpop.f32.mrf.mxu1  ;;  %v13814_v15 = vpop.f32.mrf.mxu0 }
0x2192   :  { %v16523_v23 = vadd.f32 %v13813_v55, %v11008_v21  ;;  %v16525_v18 = vadd.f32 %v11404_v60, %v11009_v17 }
0x2193   :  { %v11406_v54 = vpop.f32.mrf.mxu1  ;;  %v13815_v56 = vpop.f32.mrf.mxu0 }
0x2194   :  { %v11454_v43 = vadd.f32 %v11406_v54, %v11010_v5  ;;  %v13816_v49 = vadd.f32 %v13815_v56, %v13814_v15 }
0x2196   :  { %v16528_v45 = vadd.f32 %v13816_v49, %v11011_v10 }
0x2197   :  { %15907 = dma.done.wait [#allocation7 + $0x4], 12288 }
0x2198   :  { %15908 = vsyncadd [#allocation7 + $0x4], 4294955008  ;;  %12113 = vmatprep.mubr.bf16.mxu1 %v15925_v9  ;;  %v16531_v37 = vpack.c.bf16 %v11454_v43, %v11451_v36  ;;  %v15571_v41 = vld [vmem:[#allocation6 + $0xe4] ss:$16 sps:$4 sm:$0xff]   ;;  %v15575_v20 = vld [vmem:[#allocation6 + $0xe0] ss:$16 sps:$4 sm:$0xff]   ;;  %v16536_v16 = vpack.c.bf16 %v16528_v45, %v16523_v23 }
0x2199   :  { %v15573_v44 = vld [vmem:[#allocation6 + $0x2e4] ss:$16 sps:$4 sm:$0xff]   ;;  %12038 = vmatprep.subr.bf16.mxu0 %v15571_v41  ;;  %v15576_v62 = vld [vmem:[#allocation6 + $0x2e0] ss:$16 sps:$4 sm:$0xff]   ;;  %v15623_v13 = vld [vmem:[#allocation6 + $0xec] ss:$16 sps:$4 sm:$0xff]  }
0x219a   :  { %12070 = vmatprep.mubr.bf16.mxu0 %v16531_v37  ;;  %12081 = vmatprep.subr.bf16.mxu1 %v15573_v44  ;;  %v15577_v58 = vld [vmem:[#allocation6 + $0xc4] ss:$16 sps:$4 sm:$0xff]   ;;  %v15581_v2 = vld [vmem:[#allocation6 + $0xc0] ss:$16 sps:$4 sm:$0xff]   ;;  %v15621_v48 = vld [vmem:[#allocation6 + $0xe8] ss:$16 sps:$4 sm:$0xff]  }
0x219b   :  { %12039 = vmatpush1.bf16.msra.mxu0 %v15575_v20  ;;  %12082 = vmatpush1.bf16.msra.mxu1 %v15576_v62  ;;  %v15579_v59 = vld [vmem:[#allocation6 + $0x2c4] ss:$16 sps:$4 sm:$0xff]   ;;  %v15582_v53 = vld [vmem:[#allocation6 + $0x2c0] ss:$16 sps:$4 sm:$0xff]   ;;  %v15629_v25 = vld [vmem:[#allocation6 + $0xcc] ss:$16 sps:$4 sm:$0xff]  }
0x219c   :  { %12040 = vmatprep.subr.bf16.mxu0 %v15577_v58  ;;  %12083 = vmatprep.subr.bf16.mxu1 %v15579_v59  ;;  %v15583_v51 = vld [vmem:[#allocation6 + $0xa4] ss:$16 sps:$4 sm:$0xff]   ;;  %v15587_v32 = vld [vmem:[#allocation6 + $0xa0] ss:$16 sps:$4 sm:$0xff]   ;;  %v15627_v19 = vld [vmem:[#allocation6 + $0xc8] ss:$16 sps:$4 sm:$0xff]  }
0x219d   :  { %v15585_v52 = vld [vmem:[#allocation6 + $0x2a4] ss:$16 sps:$4 sm:$0xff]   ;;  %v15588_v47 = vld [vmem:[#allocation6 + $0x2a0] ss:$16 sps:$4 sm:$0xff]   ;;  %v15635_v1 = vld [vmem:[#allocation6 + $0xac] ss:$16 sps:$4 sm:$0xff]  }
0x219e   :  { %v15589_v26 = vld [vmem:[#allocation6 + $0x84] ss:$16 sps:$4 sm:$0xff]   ;;  %v15593_v8 = vld [vmem:[#allocation6 + $0x80] ss:$16 sps:$4 sm:$0xff]   ;;  %v15633_v12 = vld [vmem:[#allocation6 + $0xa8] ss:$16 sps:$4 sm:$0xff]  }
0x219f   :  { %12041 = vmatpush1.bf16.msra.mxu0 %v15581_v2  ;;  %12084 = vmatpush1.bf16.msra.mxu1 %v15582_v53  ;;  %v15591_v6 = vld [vmem:[#allocation6 + $0x284] ss:$16 sps:$4 sm:$0xff]   ;;  %v15594_v3 = vld [vmem:[#allocation6 + $0x280] ss:$16 sps:$4 sm:$0xff]   ;;  %v15641_v21 = vld [vmem:[#allocation6 + $0x8c] ss:$16 sps:$4 sm:$0xff]   ;;  %v16542_v2 = vpack.c.bf16 %v16525_v18, %v16520_v24 }
0x21a0   :  { %12042 = vmatprep.subr.bf16.mxu0 %v15583_v51  ;;  %12085 = vmatprep.subr.bf16.mxu1 %v15585_v52  ;;  %v15595_v28 = vld [vmem:[#allocation6 + $0x64] ss:$16 sps:$4 sm:$0xff]   ;;  %v15599_v33 = vld [vmem:[#allocation6 + $0x60] ss:$16 sps:$4 sm:$0xff]   ;;  %v15639_v17 = vld [vmem:[#allocation6 + $0x88] ss:$16 sps:$4 sm:$0xff]  }
0x21a1   :  { %v15597_v7 = vld [vmem:[#allocation6 + $0x264] ss:$16 sps:$4 sm:$0xff]   ;;  %v15600_v57 = vld [vmem:[#allocation6 + $0x260] ss:$16 sps:$4 sm:$0xff]   ;;  %v15647_v60 = vld [vmem:[#allocation6 + $0x6c] ss:$16 sps:$4 sm:$0xff]  }
0x21a2   :  { %v15601_v46 = vld [vmem:[#allocation6 + $0x44] ss:$16 sps:$4 sm:$0xff]   ;;  %v15605_v0 = vld [vmem:[#allocation6 + $0x40] ss:$16 sps:$4 sm:$0xff]   ;;  %v15645_v15 = vld [vmem:[#allocation6 + $0x68] ss:$16 sps:$4 sm:$0xff]  }
0x21a3   :  { %12043 = vmatpush1.bf16.msra.mxu0 %v15587_v32  ;;  %12086 = vmatpush1.bf16.msra.mxu1 %v15588_v47  ;;  %v15603_v63 = vld [vmem:[#allocation6 + $0x244] ss:$16 sps:$4 sm:$0xff]   ;;  %v15606_v50 = vld [vmem:[#allocation6 + $0x240] ss:$16 sps:$4 sm:$0xff]   ;;  %v15653_v54 = vld [vmem:[#allocation6 + $0x4c] ss:$16 sps:$4 sm:$0xff]  }
0x21a4   :  { %12044 = vmatprep.subr.bf16.mxu0 %v15589_v26  ;;  %12087 = vmatprep.subr.bf16.mxu1 %v15591_v6  ;;  %v15607_v4 = vld [vmem:[#allocation6 + $0x24] ss:$16 sps:$4 sm:$0xff]   ;;  %v15611_v22 = vld [vmem:[#allocation6 + $0x20] ss:$16 sps:$4 sm:$0xff]   ;;  %v15651_v56 = vld [vmem:[#allocation6 + $0x48] ss:$16 sps:$4 sm:$0xff]  }
0x21a5   :  { %v15609_v29 = vld [vmem:[#allocation6 + $0x224] ss:$16 sps:$4 sm:$0xff]   ;;  %v15612_v11 = vld [vmem:[#allocation6 + $0x220] ss:$16 sps:$4 sm:$0xff]   ;;  %v15659_v49 = vld [vmem:[#allocation6 + $0x2c] ss:$16 sps:$4 sm:$0xff]  }
0x21a6   :  { %v15613_v31 = vld [vmem:[#allocation6 + $0x4] ss:$16 sps:$4 sm:$0xff]   ;;  %v15617_v61 = vld [vmem:[#allocation6] ss:$16 sps:$4 sm:$0xff]   ;;  %v15657_v45 = vld [vmem:[#allocation6 + $0x28] ss:$16 sps:$4 sm:$0xff]  }
0x21a7   :  { %12045 = vmatpush1.bf16.msra.mxu0 %v15593_v8  ;;  %12088 = vmatpush1.bf16.msra.mxu1 %v15594_v3  ;;  %v15615_v39 = vld [vmem:[#allocation6 + $0x204] ss:$16 sps:$4 sm:$0xff]   ;;  %v15618_v34 = vld [vmem:[#allocation6 + $0x200] ss:$16 sps:$4 sm:$0xff]   ;;  %v15665_v44 = vld [vmem:[#allocation6 + $0xc] ss:$16 sps:$4 sm:$0xff]  }
0x21a8   :  { %12046 = vmatprep.subr.bf16.mxu0 %v15595_v28  ;;  %12089 = vmatprep.subr.bf16.mxu1 %v15597_v7  ;;  %v15619_v27 = vld [vmem:[#allocation6 + $0x1e4] ss:$16 sps:$4 sm:$0xff]   ;;  %v15624_v14 = vld [vmem:[#allocation6 + $0x1e0] ss:$16 sps:$4 sm:$0xff]   ;;  %v15663_v20 = vld [vmem:[#allocation6 + $0x8] ss:$16 sps:$4 sm:$0xff]  }
0x21a9   :  { %v15625_v35 = vld [vmem:[#allocation6 + $0x1c4] ss:$16 sps:$4 sm:$0xff]   ;;  %v15630_v38 = vld [vmem:[#allocation6 + $0x1c0] ss:$16 sps:$4 sm:$0xff]   ;;  %v15669_v58 = vld [vmem:[#allocation6 + $0x1ec] ss:$16 sps:$4 sm:$0xff]  }
0x21aa   :  { %v15631_v40 = vld [vmem:[#allocation6 + $0x1a4] ss:$16 sps:$4 sm:$0xff]   ;;  %v15636_v30 = vld [vmem:[#allocation6 + $0x1a0] ss:$16 sps:$4 sm:$0xff]   ;;  %v15672_v59 = vld [vmem:[#allocation6 + $0x2ec] ss:$16 sps:$4 sm:$0xff]  }
0x21ab   :  { %12047 = vmatpush1.bf16.msra.mxu0 %v15599_v33  ;;  %12090 = vmatpush1.bf16.msra.mxu1 %v15600_v57  ;;  %v15637_v42 = vld [vmem:[#allocation6 + $0x184] ss:$16 sps:$4 sm:$0xff]   ;;  %v15642_v36 = vld [vmem:[#allocation6 + $0x180] ss:$16 sps:$4 sm:$0xff]   ;;  %v15667_v53 = vld [vmem:[#allocation6 + $0x1e8] ss:$16 sps:$4 sm:$0xff]  }
0x21ac   :  { %12048 = vmatprep.subr.bf16.mxu0 %v15601_v46  ;;  %12091 = vmatprep.subr.bf16.mxu1 %v15603_v63  ;;  %v15643_v55 = vld [vmem:[#allocation6 + $0x164] ss:$16 sps:$4 sm:$0xff]   ;;  %v15648_v5 = vld [vmem:[#allocation6 + $0x160] ss:$16 sps:$4 sm:$0xff]   ;;  %v15670_v51 = vld [vmem:[#allocation6 + $0x2e8] ss:$16 sps:$4 sm:$0xff]  }
0x21ad   :  { %v15649_v23 = vld [vmem:[#allocation6 + $0x144] ss:$16 sps:$4 sm:$0xff]   ;;  %v15654_v10 = vld [vmem:[#allocation6 + $0x140] ss:$16 sps:$4 sm:$0xff]   ;;  %v15675_v52 = vld [vmem:[#allocation6 + $0x1cc] ss:$16 sps:$4 sm:$0xff]  }
0x21ae   :  { %v15655_v43 = vld [vmem:[#allocation6 + $0x124] ss:$16 sps:$4 sm:$0xff]   ;;  %v15666_v62 = vld [vmem:[#allocation6 + $0x100] ss:$16 sps:$4 sm:$0xff]   ;;  %v15678_v32 = vld [vmem:[#allocation6 + $0x2cc] ss:$16 sps:$4 sm:$0xff]  }
0x21af   :  { %12049 = vmatpush1.bf16.msra.mxu0 %v15605_v0  ;;  %12092 = vmatpush1.bf16.msra.mxu1 %v15606_v50  ;;  %v15661_v41 = vld [vmem:[#allocation6 + $0x104] ss:$16 sps:$4 sm:$0xff]   ;;  %v15673_v47 = vld [vmem:[#allocation6 + $0x1c8] ss:$16 sps:$4 sm:$0xff]   ;;  %v15681_v6 = vld [vmem:[#allocation6 + $0x1ac] ss:$16 sps:$4 sm:$0xff]  }
0x21b0   :  { %12050 = vmatprep.subr.bf16.mxu0 %v15607_v4  ;;  %12093 = vmatprep.subr.bf16.mxu1 %v15609_v29  ;;  %v15676_v26 = vld [vmem:[#allocation6 + $0x2c8] ss:$16 sps:$4 sm:$0xff]   ;;  %v15684_v8 = vld [vmem:[#allocation6 + $0x2ac] ss:$16 sps:$4 sm:$0xff]   ;;  %s15928_s6 = smov [#allocation14]  }
0x21b1   :  { %v15679_v24 = vld [vmem:[#allocation6 + $0x1a8] ss:$16 sps:$4 sm:$0xff]   ;;  %v15687_v3 = vld [vmem:[#allocation6 + $0x18c] ss:$16 sps:$4 sm:$0xff]   ;;  %s12223_s7 = sshll.u32 %s15928_s6, 4  ;;  %s12224_s7 = int_to_ptr.vmem [resolvable:$true] %s12223_s7 }
0x21b2   :  { %v15682_v18 = vld [vmem:[#allocation6 + $0x2a8] ss:$16 sps:$4 sm:$0xff]   ;;  %v15690_v28 = vld [vmem:[#allocation6 + $0x28c] ss:$16 sps:$4 sm:$0xff]   ;;  %s15875_s24 = scalar_lea.vmem %s12224_s7, 1024  ;;  %p15880_p13 = scmp.lt.s32.totalorder %s12224_s7, %s12224_s7 }
0x21b3   :  { %12051 = vmatpush1.bf16.msra.mxu0 %v15611_v22  ;;  %12094 = vmatpush1.bf16.msra.mxu1 %v15612_v11  ;;  %v15685_v7 = vld [vmem:[#allocation6 + $0x188] ss:$16 sps:$4 sm:$0xff]   ;;  %v15693_v57 = vld [vmem:[#allocation6 + $0x16c] ss:$16 sps:$4 sm:$0xff]   ;;  %p15876_p12 = scmp.ne.s32.totalorder %s12224_s7, %s15875_s24  ;;  %p15881_p0 = scmp.lt.s32.totalorder %s15875_s24, %s15875_s24 }
0x21b4   :  { %12052 = vmatprep.subr.bf16.mxu0 %v15613_v31  ;;  %12095 = vmatprep.subr.bf16.mxu1 %v15615_v39  ;;  %v15688_v33 = vld [vmem:[#allocation6 + $0x288] ss:$16 sps:$4 sm:$0xff]   ;;  %v15696_v46 = vld [vmem:[#allocation6 + $0x26c] ss:$16 sps:$4 sm:$0xff]  }
0x21b5   :  { %v15691_v63 = vld [vmem:[#allocation6 + $0x168] ss:$16 sps:$4 sm:$0xff]   ;;  %v15699_v0 = vld [vmem:[#allocation6 + $0x14c] ss:$16 sps:$4 sm:$0xff]   ;;  %p15882_p1 = por %p15881_p0, %p15880_p13 }
0x21b6   :  { %v15702_v50 = vld [vmem:[#allocation6 + $0x24c] ss:$16 sps:$4 sm:$0xff]   ;;  %v15697_v4 = vld [vmem:[#allocation6 + $0x148] ss:$16 sps:$4 sm:$0xff]  }
0x21b7   :  { %12053 = vmatpush1.bf16.msra.mxu0 %v15617_v61  ;;  %12096 = vmatpush1.bf16.msra.mxu1 %v15618_v34  ;;  %v15700_v29 = vld [vmem:[#allocation6 + $0x248] ss:$16 sps:$4 sm:$0xff]   ;;  %v15705_v22 = vld [vmem:[#allocation6 + $0x12c] ss:$16 sps:$4 sm:$0xff]   ;;  %p15883_p2 = pnand %p15882_p1, %p15876_p12 }
0x21b8   :  { %12054 = vmatprep.subr.bf16.mxu0 %v15619_v27  ;;  %12124 = vmatprep.subr.bf16.mxu1 %v15623_v13  ;;  %v15708_v11 = vld [vmem:[#allocation6 + $0x22c] ss:$16 sps:$4 sm:$0xff]   ;;  %v15703_v31 = vld [vmem:[#allocation6 + $0x128] ss:$16 sps:$4 sm:$0xff]  }
0x21b9   :  { %v15706_v39 = vld [vmem:[#allocation6 + $0x228] ss:$16 sps:$4 sm:$0xff]   ;;  %v15711_v61 = vld [vmem:[#allocation6 + $0x10c] ss:$16 sps:$4 sm:$0xff]  }
0x21ba   :  { %12114 = vmatmul.mubr.bf16.vlgmr.msra.gmra.mxu1 %v16536_v16  ;;  %v15714_v34 = vld [vmem:[#allocation6 + $0x20c] ss:$16 sps:$4 sm:$0xff]   ;;  %v15709_v27 = vld [vmem:[#allocation6 + $0x108] ss:$16 sps:$4 sm:$0xff]  }
0x21bb   :  { %12055 = vmatpush2.bf16.msra.mxu0 %v15624_v14  ;;  %12125 = vmatpush1.bf16.msra.mxu1 %v15621_v48  ;;  %v15712_v13 = vld [vmem:[#allocation6 + $0x208] ss:$16 sps:$4 sm:$0xff]  }
0x21bc   :  { %12056 = vmatprep.subr.bf16.mxu0 %v15625_v35  ;;  %12126 = vmatprep.subr.bf16.mxu1 %v15629_v25 }
0x21bd   :  { %12156 = vmatprep.mubr.bf16.mxu1 %v16531_v37  ;;  %v15660_v37 = vld [vmem:[#allocation6 + $0x120] ss:$16 sps:$4 sm:$0xff]  }
0x21bf   :  { %12057 = vmatpush2.bf16.msra.mxu0 %v15630_v38  ;;  %12127 = vmatpush1.bf16.msra.mxu1 %v15627_v19 }
0x21c0   :  { %12058 = vmatprep.subr.bf16.mxu0 %v15631_v40  ;;  %12128 = vmatprep.subr.bf16.mxu1 %v15635_v1 }
0x21c3   :  { %12059 = vmatpush2.bf16.msra.mxu0 %v15636_v30  ;;  %12129 = vmatpush1.bf16.msra.mxu1 %v15633_v12 }
0x21c4   :  { %12060 = vmatprep.subr.bf16.mxu0 %v15637_v42  ;;  %12130 = vmatprep.subr.bf16.mxu1 %v15641_v21 }
0x21c7   :  { %12061 = vmatpush2.bf16.msra.mxu0 %v15642_v36  ;;  %12131 = vmatpush1.bf16.msra.mxu1 %v15639_v17 }
0x21c8   :  { %12062 = vmatprep.subr.bf16.mxu0 %v15643_v55  ;;  %12132 = vmatprep.subr.bf16.mxu1 %v15647_v60 }
0x21cb   :  { %12063 = vmatpush2.bf16.msra.mxu0 %v15648_v5  ;;  %12133 = vmatpush1.bf16.msra.mxu1 %v15645_v15 }
0x21cc   :  { %12064 = vmatprep.subr.bf16.mxu0 %v15649_v23  ;;  %12134 = vmatprep.subr.bf16.mxu1 %v15653_v54 }
0x21cf   :  { %12065 = vmatpush2.bf16.msra.mxu0 %v15654_v10  ;;  %12135 = vmatpush1.bf16.msra.mxu1 %v15651_v56 }
0x21d0   :  { %12066 = vmatprep.subr.bf16.mxu0 %v15655_v43  ;;  %12136 = vmatprep.subr.bf16.mxu1 %v15659_v49 }
0x21d3   :  { %12067 = vmatpush2.bf16.msra.mxu0 %v15660_v37  ;;  %12137 = vmatpush1.bf16.msra.mxu1 %v15657_v45 }
0x21d4   :  { %12068 = vmatprep.subr.bf16.mxu0 %v15661_v41  ;;  %12138 = vmatprep.subr.bf16.mxu1 %v15665_v44 }
0x21d7   :  { %12069 = vmatpush2.bf16.msra.mxu0 %v15666_v62  ;;  %12139 = vmatpush1.bf16.msra.mxu1 %v15663_v20 }
0x21d8   :  { %12140 = vmatprep.subr.bf16.mxu1 %v15669_v58  ;;  %12167 = vmatprep.subr.bf16.mxu0 %v15672_v59 }
0x21da   :  { %12071 = vmatmul.mubr.bf16.vlgmr.msra.gmra.mxu0 %v16542_v2 }
0x21db   :  { %12141 = vmatpush2.bf16.msra.mxu1 %v15667_v53  ;;  %12168 = vmatpush1.bf16.msra.mxu0 %v15670_v51 }
0x21dc   :  { %12142 = vmatprep.subr.bf16.mxu1 %v15675_v52  ;;  %12169 = vmatprep.subr.bf16.mxu0 %v15678_v32 }
0x21dd   :  { %12199 = vmatprep.mubr.bf16.mxu0 %v15925_v9  ;;  %v15694_v9 = vld [vmem:[#allocation6 + $0x268] ss:$16 sps:$4 sm:$0xff]  }
0x21df   :  { %12143 = vmatpush2.bf16.msra.mxu1 %v15673_v47  ;;  %12170 = vmatpush1.bf16.msra.mxu0 %v15676_v26 }
0x21e0   :  { %12144 = vmatprep.subr.bf16.mxu1 %v15681_v6  ;;  %12171 = vmatprep.subr.bf16.mxu0 %v15684_v8 }
0x21e3   :  { %12145 = vmatpush2.bf16.msra.mxu1 %v15679_v24  ;;  %12172 = vmatpush1.bf16.msra.mxu0 %v15682_v18 }
0x21e4   :  { %12146 = vmatprep.subr.bf16.mxu1 %v15687_v3  ;;  %12173 = vmatprep.subr.bf16.mxu0 %v15690_v28 }
0x21e7   :  { %12147 = vmatpush2.bf16.msra.mxu1 %v15685_v7  ;;  %12174 = vmatpush1.bf16.msra.mxu0 %v15688_v33 }
0x21e8   :  { %12148 = vmatprep.subr.bf16.mxu1 %v15693_v57  ;;  %12175 = vmatprep.subr.bf16.mxu0 %v15696_v46 }
0x21eb   :  { %12149 = vmatpush2.bf16.msra.mxu1 %v15691_v63  ;;  %12176 = vmatpush1.bf16.msra.mxu0 %v15694_v9 }
0x21ec   :  { %12150 = vmatprep.subr.bf16.mxu1 %v15699_v0  ;;  %12177 = vmatprep.subr.bf16.mxu0 %v15702_v50 }
0x21ef   :  { %12151 = vmatpush2.bf16.msra.mxu1 %v15697_v4  ;;  %12178 = vmatpush1.bf16.msra.mxu0 %v15700_v29 }
0x21f0   :  { %12152 = vmatprep.subr.bf16.mxu1 %v15705_v22  ;;  %12179 = vmatprep.subr.bf16.mxu0 %v15708_v11 }
0x21f3   :  { %12153 = vmatpush2.bf16.msra.mxu1 %v15703_v31  ;;  %12180 = vmatpush1.bf16.msra.mxu0 %v15706_v39 }
0x21f4   :  { %12154 = vmatprep.subr.bf16.mxu1 %v15711_v61  ;;  %12181 = vmatprep.subr.bf16.mxu0 %v15714_v34 }
0x21f7   :  { %12155 = vmatpush2.bf16.msra.mxu1 %v15709_v27  ;;  %12182 = vmatpush1.bf16.msra.mxu0 %v15712_v13 }
0x21fa   :  { %12157 = vmatmul.mubr.bf16.vlgmr.msra.gmra.mxu1 %v16542_v2  ;;  %12200 = vmatmul.mubr.bf16.vlgmr.msra.gmra.mxu0 %v16536_v16 }
0x227a   :  { %v12115_v48 = vpop.f32.mrf.mxu1 }
0x227c   :  { %v12117_v14 = vpop.f32.mrf.mxu1 }
0x227e   :  { %v12119_v19 = vpop.f32.mrf.mxu1 }
0x2280   :  { %v12121_v30 = vpop.f32.mrf.mxu1 }
0x229a   :  { %v12072_v35 = vpop.f32.mrf.mxu0 }
0x229b   :  { %v12116_v25 = vadd.f32 %v12115_v48, %v12072_v35 }
0x229c   :  { %v12074_v38 = vpop.f32.mrf.mxu0 }
0x229d   :  { %12210 = vst [vmem:[#allocation14] sm:$0xff] %v12116_v25  ;;  %v12118_v40 = vadd.f32 %v12117_v14, %v12074_v38 }
0x229e   :  { %v12076_v1 = vpop.f32.mrf.mxu0 }
0x229f   :  { %12211 = vst [vmem:[#allocation14 + $0x8] sm:$0xff] %v12118_v40  ;;  %v12120_v12 = vadd.f32 %v12119_v19, %v12076_v1 }
0x22a0   :  { %v12078_v42 = vpop.f32.mrf.mxu0 }
0x22a1   :  { %12214 = vst [vmem:[#allocation14 + $0x20] sm:$0xff] %v12120_v12  ;;  %v12122_v21 = vadd.f32 %v12121_v30, %v12078_v42 }
0x22a3   :  { %12215 = vst [vmem:[#allocation14 + $0x28] sm:$0xff] %v12122_v21 }
0x22ba   :  { %v12158_v17 = vpop.f32.mrf.mxu1  ;;  %v12201_v36 = vpop.f32.mrf.mxu0 }
0x22bb   :  { %v12202_v55 = vadd.f32 %v12201_v36, %v12158_v17 }
0x22bc   :  { %v12160_v16 = vpop.f32.mrf.mxu1  ;;  %v12203_v60 = vpop.f32.mrf.mxu0 }
0x22bd   :  { %12212 = vst [vmem:[#allocation14 + $0x10] sm:$0xff] %v12202_v55  ;;  %v12204_v15 = vadd.f32 %v12203_v60, %v12160_v16 }
0x22be   :  { %v12162_v5 = vpop.f32.mrf.mxu1  ;;  %v12205_v23 = vpop.f32.mrf.mxu0 }
0x22bf   :  { %12213 = vst [vmem:[#allocation14 + $0x18] sm:$0xff] %v12204_v15  ;;  %v12206_v54 = vadd.f32 %v12205_v23, %v12162_v5 }
0x22c0   :  { %v12164_v56 = vpop.f32.mrf.mxu1  ;;  %v12207_v10 = vpop.f32.mrf.mxu0 }
0x22c1   :  { %12216 = vst [vmem:[#allocation14 + $0x30] sm:$0xff] %v12206_v54  ;;  %v12208_v43 = vadd.f32 %v12207_v10, %v12164_v56 }
0x22c3   :  { %12217 = vst [vmem:[#allocation14 + $0x38] sm:$0xff] %v12208_v43 }
0x22c4   :  { %15886 = shalt.err (!%p15883_p2)
}
0x22c5   :  { %12229 = dma.vmem_to_hbm [thread:$0]  %s12224_s7, 1024, %s16562_s8, [#allocation10], %s15918_s21, %s15918_s21, %s15919_s22  }
0x22c6   :  { %15909 = dma.done.wait [#allocation10], 1024  }
0x22c7   :  { %15910 = vsyncadd [#allocation10], 4294966272 }
0x22c8   :  { %12233 = vsyncpa [#allocation9], 1 }
0x22c9   :  { %12234 = vsyncpa [#allocation12], 1 }
0x22ca   :  { %12235 = vsyncpa [#allocation10], 1 }
0x22cb   :  { %12236 = vsyncmov [#allocation7] }
0x22ce   :  { %s12237_s26 = vpop.sfrf %12236 }
0x22cf   :  { %p13638_p3 = scmp.ne.s32.totalorder %s12237_s26, 0 }
0x22d1   :  { %12241 = shalt.err (%p13638_p3)  }
0x22d2   :  { %12243 = vsyncmov [#allocation7 + $0x1] }
0x22d5   :  { %s12244_s27 = vpop.sfrf %12243 }
0x22d6   :  { %p13639_p4 = scmp.ne.s32.totalorder %s12244_s27, 0 }
0x22d8   :  { %12248 = shalt.err (%p13639_p4)  }
0x22d9   :  { %12250 = vsyncmov [#allocation7 + $0x2] }
0x22dc   :  { %s12251_s28 = vpop.sfrf %12250 }
0x22dd   :  { %p13640_p5 = scmp.ne.s32.totalorder %s12251_s28, 0 }
0x22df   :  { %12255 = shalt.err (%p13640_p5)  }
0x22e0   :  { %12257 = vsyncmov [#allocation7 + $0x3] }
0x22e3   :  { %s12258_s29 = vpop.sfrf %12257 }
0x22e4   :  { %p13641_p6 = scmp.ne.s32.totalorder %s12258_s29, 0 }
0x22e6   :  { %12262 = shalt.err (%p13641_p6)  }
0x22e7   :  { %12264 = vsyncmov [#allocation7 + $0x4] }
0x22ea   :  { %s12265_s8 = vpop.sfrf %12264 }
0x22eb   :  { %p13642_p7 = scmp.ne.s32.totalorder %s12265_s8, 0 }
0x22ed   :  { %12269 = shalt.err (%p13642_p7)  }

</bundles_post_ra>
